<compile_context>
chip_gen: v5e
topology: v5e:2x2
jax: 0.10.0
libtpu: 0.0.40
codegen_flags: <defaults>
</compile_context>

<pallas_src>
import functools

import jax
import jax.numpy as jnp
from jax import lax
from jax.experimental import pallas as pl
from jax.experimental.pallas import tpu as pltpu

# Model hyperparameters (from the PyTorch file).
N_EMBD = 32
BLOCK_SIZE = 8                   # max sequence length (tril buffer size)
N_HEAD = 4
HEAD_SIZE = N_EMBD // N_HEAD     # Block() computes head_size = n_embd // n_head = 8
FF_HIDDEN = 4 * N_EMBD           # 128
NEG_INF = -1e30                  # finite "minus infinity" for the additive causal mask


def _block_kernel(x_ref, wqkv_ref, wproj_ref, bproj_ref,
                  w1_ref, b1_ref, w2_ref, b2_ref, o_ref, *, bt, seq_len):
    """One grid step = bt batch elements, processed as a (bt*seq_len, C) row slab."""
    rows = bt * seq_len
    C = N_EMBD
    scale = C ** (-0.5)          # PyTorch code scales by C**-0.5 (C = n_embd), not head_size

    # (bt, T, C) -> (rows, C). T == 8 == sublane tile => pure re-view, no data movement.
    x = x_ref[...].reshape(rows, C)

    # Fused q/k/v projection: one (rows, C) @ (C, 3C) MXU pass (N = 96 lanes).
    qkv = jnp.dot(x, wqkv_ref[...], preferred_element_type=jnp.float32)   # (rows, 3C)
    qkv3 = qkv.reshape(bt, seq_len, 3 * C)

    # Additive causal mask, computed once for all heads / batch elements.
    row = lax.broadcasted_iota(jnp.int32, (seq_len, seq_len), 0)
    col = lax.broadcasted_iota(jnp.int32, (seq_len, seq_len), 1)
    mask = jnp.where(row >= col, 0.0, NEG_INF).astype(jnp.float32)        # (T, T)

    head_outs = []
    for h in range(N_HEAD):      # static loop; every iteration is batched over bt
        q_sl = slice(h * HEAD_SIZE, (h + 1) * HEAD_SIZE)
        k_sl = slice(C + h * HEAD_SIZE, C + (h + 1) * HEAD_SIZE)
        v_sl = slice(2 * C + h * HEAD_SIZE, 2 * C + (h + 1) * HEAD_SIZE)
        qh = qkv3[:, :, q_sl]    # (bt, T, hs)
        kh = qkv3[:, :, k_sl]
        vh = qkv3[:, :, v_sl]

        wei = jnp.einsum('bqd,bkd->bqk', qh, kh,
                         preferred_element_type=jnp.float32) * scale      # (bt, T, T)
        wei = wei + mask                                                  # broadcast over bt
        wei = wei - jnp.max(wei, axis=-1, keepdims=True)
        p = jnp.exp(wei)
        inv = pl.reciprocal(jnp.sum(p, axis=-1, keepdims=True), approx=False)
        p = p * inv
        head_outs.append(jnp.einsum('bqk,bkd->bqd', p, vh,
                                    preferred_element_type=jnp.float32))  # (bt, T, hs)

    cat = jnp.concatenate(head_outs, axis=-1).reshape(rows, C)            # (rows, C)
    sa = jnp.dot(cat, wproj_ref[...],
                 preferred_element_type=jnp.float32) + bproj_ref[...]

    x1 = x + sa                                                           # first residual

    h1 = jnp.dot(x1, w1_ref[...], preferred_element_type=jnp.float32) + b1_ref[...]
    h1 = jnp.maximum(h1, 0.0)                                             # ReLU
    ff = jnp.dot(h1, w2_ref[...], preferred_element_type=jnp.float32) + b2_ref[...]

    o_ref[...] = (x1 + ff).reshape(bt, seq_len, C)                        # second residual


def _pick_bt(B, T, target_rows=512):
    """Largest divisor of B with bt*T <= target_rows; prefer >=2 grid steps (megacore)."""
    bt_max = max(1, target_rows // T)
    divisors = [d for d in range(1, min(B, bt_max) + 1) if B % d == 0]
    multi = [d for d in divisors if B // d >= 2]
    return max(multi) if multi else max(divisors)


def block_forward(x, params, *, target_rows=512):
    """x: (B, T, C) float32. params: dict of (in, out)-layout weights / (1, n) biases."""
    B, T, C = x.shape
    assert C == N_EMBD and T <= BLOCK_SIZE

    bt = _pick_bt(B, T, target_rows)

    # One-time weight prep (outside the kernel): fuse q/k/v weights column-wise.
    wqkv = jnp.concatenate([params["wq"], params["wk"], params["wv"]], axis=1)  # (C, 3C)

    kernel = functools.partial(_block_kernel, bt=bt, seq_len=T)
    full = lambda shape: pl.BlockSpec(shape, lambda i: tuple(0 for _ in shape))

    out = pl.pallas_call(
        kernel,
        out_shape=jax.ShapeDtypeStruct((B, T, C), x.dtype),
        grid_spec=pltpu.PrefetchScalarGridSpec(
            num_scalar_prefetch=0,
            grid=(B // bt,),
            in_specs=[
                pl.BlockSpec((bt, T, C), lambda i: (i, 0, 0)),   # x batch slab
                full((C, 3 * N_EMBD)),                           # wqkv (all heads, fused)
                full((C, N_EMBD)),                               # wproj
                full((1, N_EMBD)),                               # bproj
                full((C, FF_HIDDEN)),                            # w1
                full((1, FF_HIDDEN)),                            # b1
                full((FF_HIDDEN, C)),                            # w2
                full((1, C)),                                    # b2
            ],
            out_specs=pl.BlockSpec((bt, T, C), lambda i: (i, 0, 0)),
        ),
        compiler_params=pltpu.CompilerParams(dimension_semantics=("parallel",)),
    )(x, wqkv, params["wproj"], params["bproj"],
      params["w1"], params["b1"], params["w2"], params["b2"])

    return out


def make_params(key):
    """Deterministic synthetic parameters (torch.nn.Linear shapes, stored as (in, out))."""
    ks = jax.random.split(key, 10)
    s = 0.1
    # per-head q/k/v weights stacked column-wise: columns [h*hs:(h+1)*hs] = head h
    wq = jax.random.normal(ks[0], (N_EMBD, N_HEAD * HEAD_SIZE), jnp.float32) * s
    wk = jax.random.normal(ks[1], (N_EMBD, N_HEAD * HEAD_SIZE), jnp.float32) * s
    wv = jax.random.normal(ks[2], (N_EMBD, N_HEAD * HEAD_SIZE), jnp.float32) * s
    wproj = jax.random.normal(ks[3], (N_EMBD, N_EMBD), jnp.float32) * s
    bproj = jax.random.normal(ks[4], (1, N_EMBD), jnp.float32) * s
    w1 = jax.random.normal(ks[5], (N_EMBD, FF_HIDDEN), jnp.float32) * s
    b1 = jax.random.normal(ks[6], (1, FF_HIDDEN), jnp.float32) * s
    w2 = jax.random.normal(ks[7], (FF_HIDDEN, N_EMBD), jnp.float32) * s
    b2 = jax.random.normal(ks[8], (1, N_EMBD), jnp.float32) * s
    return dict(wq=wq, wk=wk, wv=wv, wproj=wproj, bproj=bproj,
                w1=w1, b1=b1, w2=w2, b2=b2)


def block_reference(x, p):
    """Pure-JAX reference mirroring the PyTorch forward, for a numeric sanity check."""
    B, T, C = x.shape
    q = x @ p["wq"]; k = x @ p["wk"]; v = x @ p["wv"]
    mask = jnp.tril(jnp.ones((T, T), bool))
    outs = []
    for h in range(N_HEAD):
        sl = slice(h * HEAD_SIZE, (h + 1) * HEAD_SIZE)
        wei = (q[:, :, sl] @ jnp.swapaxes(k[:, :, sl], -1, -2)) * C ** (-0.5)
        wei = jnp.where(mask, wei, -jnp.inf)
        wei = jax.nn.softmax(wei, axis=-1)
        outs.append(wei @ v[:, :, sl])
    sa = jnp.concatenate(outs, axis=-1) @ p["wproj"] + p["bproj"][0]
    x1 = x + sa
    ff = jax.nn.relu(x1 @ p["w1"] + p["b1"][0]) @ p["w2"] + p["b2"][0]
    return x1 + ff


if __name__ == "__main__":
    key = jax.random.PRNGKey(0)
    kx, kp = jax.random.split(key)
    B, T = 64, BLOCK_SIZE     # 64 batch elements -> bt=32 (256 rows/step), grid=(2,)
    x = jax.random.normal(kx, (B, T, N_EMBD), jnp.float32)
    params = make_params(kp)

    fwd = jax.jit(block_forward)
    out = jax.block_until_ready(fwd(x, params))

    ref = block_reference(x, params)
    assert out.shape == (B, T, N_EMBD)
    assert jnp.allclose(out, ref, atol=2e-4, rtol=2e-4), "mismatch vs pure-JAX reference"
    print("KERNEL_OK")
</pallas_src>

<mosaic_0001>
module attributes {stable_mosaic.version = 11 : i64} {
  func.func @_block_kernel(%arg0: i32, %arg1: memref<32x8x32xf32, #tpu.memory_space<vmem>>, %arg2: memref<32x96xf32, #tpu.memory_space<vmem>>, %arg3: memref<32x32xf32, #tpu.memory_space<vmem>>, %arg4: memref<1x32xf32, #tpu.memory_space<vmem>>, %arg5: memref<32x128xf32, #tpu.memory_space<vmem>>, %arg6: memref<1x128xf32, #tpu.memory_space<vmem>>, %arg7: memref<128x32xf32, #tpu.memory_space<vmem>>, %arg8: memref<1x32xf32, #tpu.memory_space<vmem>>, %arg9: memref<32x8x32xf32, #tpu.memory_space<vmem>>) attributes {dimension_semantics = [#tpu.dimension_semantics<parallel>], iteration_bounds = array<i64: 2>, scalar_prefetch = 0 : i64, scratch_operands = 0 : i64, tpu.core_type = #tpu.core_type<tc>, window_params = [{transform_indices = @transform_0, window_bounds = array<i64: 32, 8, 32>}, {pipeline_mode = #tpu.pipeline_mode<synchronous>, transform_indices = @transform_1, window_bounds = array<i64: 32, 96>}, {pipeline_mode = #tpu.pipeline_mode<synchronous>, transform_indices = @transform_2, window_bounds = array<i64: 32, 32>}, {pipeline_mode = #tpu.pipeline_mode<synchronous>, transform_indices = @transform_3, window_bounds = array<i64: 1, 32>}, {pipeline_mode = #tpu.pipeline_mode<synchronous>, transform_indices = @transform_4, window_bounds = array<i64: 32, 128>}, {pipeline_mode = #tpu.pipeline_mode<synchronous>, transform_indices = @transform_5, window_bounds = array<i64: 1, 128>}, {pipeline_mode = #tpu.pipeline_mode<synchronous>, transform_indices = @transform_6, window_bounds = array<i64: 128, 32>}, {pipeline_mode = #tpu.pipeline_mode<synchronous>, transform_indices = @transform_7, window_bounds = array<i64: 1, 32>}, {transform_indices = @transform_8, window_bounds = array<i64: 32, 8, 32>}]} {
    %c0 = arith.constant 0 : index
    %c0_0 = arith.constant 0 : index
    %c0_1 = arith.constant 0 : index
    %0 = vector.load %arg1[%c0, %c0_0, %c0_1] : memref<32x8x32xf32, #tpu.memory_space<vmem>>, vector<32x8x32xf32>
    %1 = vector.shape_cast %0 : vector<32x8x32xf32> to vector<256x32xf32>
    %c0_2 = arith.constant 0 : index
    %c0_3 = arith.constant 0 : index
    %2 = vector.load %arg2[%c0_2, %c0_3] : memref<32x96xf32, #tpu.memory_space<vmem>>, vector<32x96xf32>
    %cst = arith.constant dense<0.000000e+00> : vector<256x96xf32>
    %3 = tpu.matmul %1, %2, %cst {dimension_numbers = #tpu.dot_dimension_numbers<[1], [0], [0], [1], [0, 0, 1, 1], [], []>} : vector<256x32xf32>, vector<32x96xf32>, vector<256x96xf32> -> vector<256x96xf32>
    %4 = vector.shape_cast %3 : vector<256x96xf32> to vector<32x8x96xf32>
    %5 = tpu.iota {dimensions = array<i32: 0>} : vector<8x8xi32>
    %6 = tpu.iota {dimensions = array<i32: 1>} : vector<8x8xi32>
    %7 = arith.cmpi sge, %5, %6 : vector<8x8xi32>
    %cst_4 = arith.constant 0.000000e+00 : f32
    %cst_5 = arith.constant -1.000000e+30 : f32
    %8 = vector.broadcast %cst_4 : f32 to vector<8x8xf32>
    %9 = vector.broadcast %cst_5 : f32 to vector<8x8xf32>
    %10 = arith.select %7, %8, %9 : vector<8x8xi1>, vector<8x8xf32>
    %11 = vector.extract_strided_slice %4 {offsets = [0, 0, 0], sizes = [32, 8, 8], strides = [1, 1, 1]} : vector<32x8x96xf32> to vector<32x8x8xf32>
    %12 = vector.extract_strided_slice %4 {offsets = [0, 0, 32], sizes = [32, 8, 8], strides = [1, 1, 1]} : vector<32x8x96xf32> to vector<32x8x8xf32>
    %13 = vector.extract_strided_slice %4 {offsets = [0, 0, 64], sizes = [32, 8, 8], strides = [1, 1, 1]} : vector<32x8x96xf32> to vector<32x8x8xf32>
    "tpu.trace_start"() <{level = 10 : i32, message = "bqd,bkd->bqk"}> : () -> ()
    %cst_6 = arith.constant dense<0.000000e+00> : vector<32x8x8xf32>
    %14 = tpu.matmul %11, %12, %cst_6 {dimension_numbers = #tpu.dot_dimension_numbers<[2], [2], [1], [1], [0, 0, 0, 1, 1, 1], [0], [0]>} : vector<32x8x8xf32>, vector<32x8x8xf32>, vector<32x8x8xf32> -> vector<32x8x8xf32>
    "tpu.trace_stop"() : () -> ()
    %cst_7 = arith.constant 0.176776692 : f32
    %15 = vector.broadcast %cst_7 : f32 to vector<32x8x8xf32>
    %16 = arith.mulf %14, %15 : vector<32x8x8xf32>
    %17 = vector.shape_cast %10 : vector<8x8xf32> to vector<1x8x8xf32>
    %18 = vector.broadcast %17 : vector<1x8x8xf32> to vector<32x8x8xf32>
    %19 = arith.addf %16, %18 : vector<32x8x8xf32>
    %cst_8 = arith.constant dense<0xFF800000> : vector<32x8xf32>
    %20 = vector.multi_reduction <maximumf>, %19, %cst_8 [2] : vector<32x8x8xf32> to vector<32x8xf32>
    %21 = vector.shape_cast %20 : vector<32x8xf32> to vector<32x8x1xf32>
    %22 = vector.broadcast %21 : vector<32x8x1xf32> to vector<32x8x8xf32>
    %23 = arith.subf %19, %22 : vector<32x8x8xf32>
    %24 = math.exp %23 : vector<32x8x8xf32>
    %cst_9 = arith.constant dense<0.000000e+00> : vector<32x8xf32>
    %25 = vector.multi_reduction <add>, %24, %cst_9 [2] : vector<32x8x8xf32> to vector<32x8xf32>
    %26 = vector.shape_cast %25 : vector<32x8xf32> to vector<32x8x1xf32>
    %27 = tpu.reciprocal %26 : vector<32x8x1xf32> -> vector<32x8x1xf32>
    %28 = vector.broadcast %27 : vector<32x8x1xf32> to vector<32x8x8xf32>
    %29 = arith.mulf %24, %28 : vector<32x8x8xf32>
    "tpu.trace_start"() <{level = 10 : i32, message = "bqk,bkd->bqd"}> : () -> ()
    %cst_10 = arith.constant dense<0.000000e+00> : vector<32x8x8xf32>
    %30 = tpu.matmul %29, %13, %cst_10 {dimension_numbers = #tpu.dot_dimension_numbers<[2], [1], [1], [2], [0, 0, 0, 1, 1, 2], [0], [0]>} : vector<32x8x8xf32>, vector<32x8x8xf32>, vector<32x8x8xf32> -> vector<32x8x8xf32>
    "tpu.trace_stop"() : () -> ()
    %31 = vector.extract_strided_slice %4 {offsets = [0, 0, 8], sizes = [32, 8, 8], strides = [1, 1, 1]} : vector<32x8x96xf32> to vector<32x8x8xf32>
    %32 = vector.extract_strided_slice %4 {offsets = [0, 0, 40], sizes = [32, 8, 8], strides = [1, 1, 1]} : vector<32x8x96xf32> to vector<32x8x8xf32>
    %33 = vector.extract_strided_slice %4 {offsets = [0, 0, 72], sizes = [32, 8, 8], strides = [1, 1, 1]} : vector<32x8x96xf32> to vector<32x8x8xf32>
    "tpu.trace_start"() <{level = 10 : i32, message = "bqd,bkd->bqk"}> : () -> ()
    %cst_11 = arith.constant dense<0.000000e+00> : vector<32x8x8xf32>
    %34 = tpu.matmul %31, %32, %cst_11 {dimension_numbers = #tpu.dot_dimension_numbers<[2], [2], [1], [1], [0, 0, 0, 1, 1, 1], [0], [0]>} : vector<32x8x8xf32>, vector<32x8x8xf32>, vector<32x8x8xf32> -> vector<32x8x8xf32>
    "tpu.trace_stop"() : () -> ()
    %cst_12 = arith.constant 0.176776692 : f32
    %35 = vector.broadcast %cst_12 : f32 to vector<32x8x8xf32>
    %36 = arith.mulf %34, %35 : vector<32x8x8xf32>
    %37 = vector.shape_cast %10 : vector<8x8xf32> to vector<1x8x8xf32>
    %38 = vector.broadcast %37 : vector<1x8x8xf32> to vector<32x8x8xf32>
    %39 = arith.addf %36, %38 : vector<32x8x8xf32>
    %cst_13 = arith.constant dense<0xFF800000> : vector<32x8xf32>
    %40 = vector.multi_reduction <maximumf>, %39, %cst_13 [2] : vector<32x8x8xf32> to vector<32x8xf32>
    %41 = vector.shape_cast %40 : vector<32x8xf32> to vector<32x8x1xf32>
    %42 = vector.broadcast %41 : vector<32x8x1xf32> to vector<32x8x8xf32>
    %43 = arith.subf %39, %42 : vector<32x8x8xf32>
    %44 = math.exp %43 : vector<32x8x8xf32>
    %cst_14 = arith.constant dense<0.000000e+00> : vector<32x8xf32>
    %45 = vector.multi_reduction <add>, %44, %cst_14 [2] : vector<32x8x8xf32> to vector<32x8xf32>
    %46 = vector.shape_cast %45 : vector<32x8xf32> to vector<32x8x1xf32>
    %47 = tpu.reciprocal %46 : vector<32x8x1xf32> -> vector<32x8x1xf32>
    %48 = vector.broadcast %47 : vector<32x8x1xf32> to vector<32x8x8xf32>
    %49 = arith.mulf %44, %48 : vector<32x8x8xf32>
    "tpu.trace_start"() <{level = 10 : i32, message = "bqk,bkd->bqd"}> : () -> ()
    %cst_15 = arith.constant dense<0.000000e+00> : vector<32x8x8xf32>
    %50 = tpu.matmul %49, %33, %cst_15 {dimension_numbers = #tpu.dot_dimension_numbers<[2], [1], [1], [2], [0, 0, 0, 1, 1, 2], [0], [0]>} : vector<32x8x8xf32>, vector<32x8x8xf32>, vector<32x8x8xf32> -> vector<32x8x8xf32>
    "tpu.trace_stop"() : () -> ()
    %51 = vector.extract_strided_slice %4 {offsets = [0, 0, 16], sizes = [32, 8, 8], strides = [1, 1, 1]} : vector<32x8x96xf32> to vector<32x8x8xf32>
    %52 = vector.extract_strided_slice %4 {offsets = [0, 0, 48], sizes = [32, 8, 8], strides = [1, 1, 1]} : vector<32x8x96xf32> to vector<32x8x8xf32>
    %53 = vector.extract_strided_slice %4 {offsets = [0, 0, 80], sizes = [32, 8, 8], strides = [1, 1, 1]} : vector<32x8x96xf32> to vector<32x8x8xf32>
    "tpu.trace_start"() <{level = 10 : i32, message = "bqd,bkd->bqk"}> : () -> ()
    %cst_16 = arith.constant dense<0.000000e+00> : vector<32x8x8xf32>
    %54 = tpu.matmul %51, %52, %cst_16 {dimension_numbers = #tpu.dot_dimension_numbers<[2], [2], [1], [1], [0, 0, 0, 1, 1, 1], [0], [0]>} : vector<32x8x8xf32>, vector<32x8x8xf32>, vector<32x8x8xf32> -> vector<32x8x8xf32>
    "tpu.trace_stop"() : () -> ()
    %cst_17 = arith.constant 0.176776692 : f32
    %55 = vector.broadcast %cst_17 : f32 to vector<32x8x8xf32>
    %56 = arith.mulf %54, %55 : vector<32x8x8xf32>
    %57 = vector.shape_cast %10 : vector<8x8xf32> to vector<1x8x8xf32>
    %58 = vector.broadcast %57 : vector<1x8x8xf32> to vector<32x8x8xf32>
    %59 = arith.addf %56, %58 : vector<32x8x8xf32>
    %cst_18 = arith.constant dense<0xFF800000> : vector<32x8xf32>
    %60 = vector.multi_reduction <maximumf>, %59, %cst_18 [2] : vector<32x8x8xf32> to vector<32x8xf32>
    %61 = vector.shape_cast %60 : vector<32x8xf32> to vector<32x8x1xf32>
    %62 = vector.broadcast %61 : vector<32x8x1xf32> to vector<32x8x8xf32>
    %63 = arith.subf %59, %62 : vector<32x8x8xf32>
    %64 = math.exp %63 : vector<32x8x8xf32>
    %cst_19 = arith.constant dense<0.000000e+00> : vector<32x8xf32>
    %65 = vector.multi_reduction <add>, %64, %cst_19 [2] : vector<32x8x8xf32> to vector<32x8xf32>
    %66 = vector.shape_cast %65 : vector<32x8xf32> to vector<32x8x1xf32>
    %67 = tpu.reciprocal %66 : vector<32x8x1xf32> -> vector<32x8x1xf32>
    %68 = vector.broadcast %67 : vector<32x8x1xf32> to vector<32x8x8xf32>
    %69 = arith.mulf %64, %68 : vector<32x8x8xf32>
    "tpu.trace_start"() <{level = 10 : i32, message = "bqk,bkd->bqd"}> : () -> ()
    %cst_20 = arith.constant dense<0.000000e+00> : vector<32x8x8xf32>
    %70 = tpu.matmul %69, %53, %cst_20 {dimension_numbers = #tpu.dot_dimension_numbers<[2], [1], [1], [2], [0, 0, 0, 1, 1, 2], [0], [0]>} : vector<32x8x8xf32>, vector<32x8x8xf32>, vector<32x8x8xf32> -> vector<32x8x8xf32>
    "tpu.trace_stop"() : () -> ()
    %71 = vector.extract_strided_slice %4 {offsets = [0, 0, 24], sizes = [32, 8, 8], strides = [1, 1, 1]} : vector<32x8x96xf32> to vector<32x8x8xf32>
    %72 = vector.extract_strided_slice %4 {offsets = [0, 0, 56], sizes = [32, 8, 8], strides = [1, 1, 1]} : vector<32x8x96xf32> to vector<32x8x8xf32>
    %73 = vector.extract_strided_slice %4 {offsets = [0, 0, 88], sizes = [32, 8, 8], strides = [1, 1, 1]} : vector<32x8x96xf32> to vector<32x8x8xf32>
    "tpu.trace_start"() <{level = 10 : i32, message = "bqd,bkd->bqk"}> : () -> ()
    %cst_21 = arith.constant dense<0.000000e+00> : vector<32x8x8xf32>
    %74 = tpu.matmul %71, %72, %cst_21 {dimension_numbers = #tpu.dot_dimension_numbers<[2], [2], [1], [1], [0, 0, 0, 1, 1, 1], [0], [0]>} : vector<32x8x8xf32>, vector<32x8x8xf32>, vector<32x8x8xf32> -> vector<32x8x8xf32>
    "tpu.trace_stop"() : () -> ()
    %cst_22 = arith.constant 0.176776692 : f32
    %75 = vector.broadcast %cst_22 : f32 to vector<32x8x8xf32>
    %76 = arith.mulf %74, %75 : vector<32x8x8xf32>
    %77 = vector.shape_cast %10 : vector<8x8xf32> to vector<1x8x8xf32>
    %78 = vector.broadcast %77 : vector<1x8x8xf32> to vector<32x8x8xf32>
    %79 = arith.addf %76, %78 : vector<32x8x8xf32>
    %cst_23 = arith.constant dense<0xFF800000> : vector<32x8xf32>
    %80 = vector.multi_reduction <maximumf>, %79, %cst_23 [2] : vector<32x8x8xf32> to vector<32x8xf32>
    %81 = vector.shape_cast %80 : vector<32x8xf32> to vector<32x8x1xf32>
    %82 = vector.broadcast %81 : vector<32x8x1xf32> to vector<32x8x8xf32>
    %83 = arith.subf %79, %82 : vector<32x8x8xf32>
    %84 = math.exp %83 : vector<32x8x8xf32>
    %cst_24 = arith.constant dense<0.000000e+00> : vector<32x8xf32>
    %85 = vector.multi_reduction <add>, %84, %cst_24 [2] : vector<32x8x8xf32> to vector<32x8xf32>
    %86 = vector.shape_cast %85 : vector<32x8xf32> to vector<32x8x1xf32>
    %87 = tpu.reciprocal %86 : vector<32x8x1xf32> -> vector<32x8x1xf32>
    %88 = vector.broadcast %87 : vector<32x8x1xf32> to vector<32x8x8xf32>
    %89 = arith.mulf %84, %88 : vector<32x8x8xf32>
    "tpu.trace_start"() <{level = 10 : i32, message = "bqk,bkd->bqd"}> : () -> ()
    %cst_25 = arith.constant dense<0.000000e+00> : vector<32x8x8xf32>
    %90 = tpu.matmul %89, %73, %cst_25 {dimension_numbers = #tpu.dot_dimension_numbers<[2], [1], [1], [2], [0, 0, 0, 1, 1, 2], [0], [0]>} : vector<32x8x8xf32>, vector<32x8x8xf32>, vector<32x8x8xf32> -> vector<32x8x8xf32>
    "tpu.trace_stop"() : () -> ()
    %91 = tpu.concatenate %30, %50, %70, %90 in 2 : vector<32x8x8xf32>, vector<32x8x8xf32>, vector<32x8x8xf32>, vector<32x8x8xf32> -> vector<32x8x32xf32>
    %92 = vector.shape_cast %91 : vector<32x8x32xf32> to vector<256x32xf32>
    %c0_26 = arith.constant 0 : index
    %c0_27 = arith.constant 0 : index
    %93 = vector.load %arg3[%c0_26, %c0_27] : memref<32x32xf32, #tpu.memory_space<vmem>>, vector<32x32xf32>
    %cst_28 = arith.constant dense<0.000000e+00> : vector<256x32xf32>
    %94 = tpu.matmul %92, %93, %cst_28 {dimension_numbers = #tpu.dot_dimension_numbers<[1], [0], [0], [1], [0, 0, 1, 1], [], []>} : vector<256x32xf32>, vector<32x32xf32>, vector<256x32xf32> -> vector<256x32xf32>
    %c0_29 = arith.constant 0 : index
    %c0_30 = arith.constant 0 : index
    %95 = vector.load %arg4[%c0_29, %c0_30] : memref<1x32xf32, #tpu.memory_space<vmem>>, vector<1x32xf32>
    %96 = vector.broadcast %95 : vector<1x32xf32> to vector<256x32xf32>
    %97 = arith.addf %94, %96 : vector<256x32xf32>
    %98 = arith.addf %1, %97 : vector<256x32xf32>
    %c0_31 = arith.constant 0 : index
    %c0_32 = arith.constant 0 : index
    %99 = vector.load %arg5[%c0_31, %c0_32] : memref<32x128xf32, #tpu.memory_space<vmem>>, vector<32x128xf32>
    %cst_33 = arith.constant dense<0.000000e+00> : vector<256x128xf32>
    %100 = tpu.matmul %98, %99, %cst_33 {dimension_numbers = #tpu.dot_dimension_numbers<[1], [0], [0], [1], [0, 0, 1, 1], [], []>} : vector<256x32xf32>, vector<32x128xf32>, vector<256x128xf32> -> vector<256x128xf32>
    %c0_34 = arith.constant 0 : index
    %c0_35 = arith.constant 0 : index
    %101 = vector.load %arg6[%c0_34, %c0_35] : memref<1x128xf32, #tpu.memory_space<vmem>>, vector<1x128xf32>
    %102 = vector.broadcast %101 : vector<1x128xf32> to vector<256x128xf32>
    %103 = arith.addf %100, %102 : vector<256x128xf32>
    %cst_36 = arith.constant 0.000000e+00 : f32
    %104 = vector.broadcast %cst_36 : f32 to vector<256x128xf32>
    %105 = arith.maximumf %103, %104 : vector<256x128xf32>
    %c0_37 = arith.constant 0 : index
    %c0_38 = arith.constant 0 : index
    %106 = vector.load %arg7[%c0_37, %c0_38] : memref<128x32xf32, #tpu.memory_space<vmem>>, vector<128x32xf32>
    %cst_39 = arith.constant dense<0.000000e+00> : vector<256x32xf32>
    %107 = tpu.matmul %105, %106, %cst_39 {dimension_numbers = #tpu.dot_dimension_numbers<[1], [0], [0], [1], [0, 0, 1, 1], [], []>} : vector<256x128xf32>, vector<128x32xf32>, vector<256x32xf32> -> vector<256x32xf32>
    %c0_40 = arith.constant 0 : index
    %c0_41 = arith.constant 0 : index
    %108 = vector.load %arg8[%c0_40, %c0_41] : memref<1x32xf32, #tpu.memory_space<vmem>>, vector<1x32xf32>
    %109 = vector.broadcast %108 : vector<1x32xf32> to vector<256x32xf32>
    %110 = arith.addf %107, %109 : vector<256x32xf32>
    %111 = arith.addf %98, %110 : vector<256x32xf32>
    %112 = vector.shape_cast %111 : vector<256x32xf32> to vector<32x8x32xf32>
    %c0_42 = arith.constant 0 : index
    %c0_43 = arith.constant 0 : index
    %c0_44 = arith.constant 0 : index
    %113 = vector.load %arg9[%c0_42, %c0_43, %c0_44] : memref<32x8x32xf32, #tpu.memory_space<vmem>>, vector<32x8x32xf32>
    tpu.vector_store %arg9[%c0_42, %c0_43, %c0_44], %112 {strides = array<i32>} : memref<32x8x32xf32, #tpu.memory_space<vmem>>, vector<32x8x32xf32>,
    return
  }
  func.func @transform_0(%arg0: i32) -> (i32, i32, i32) {
    %c0_i32 = arith.constant 0 : i32
    %c0_i32_0 = arith.constant 0 : i32
    %c0_i32_1 = arith.constant 0 : i32
    return %arg0, %c0_i32, %c0_i32_0 : i32, i32, i32
  }
  func.func @transform_1(%arg0: i32) -> (i32, i32) {
    %c0_i32 = arith.constant 0 : i32
    %c0_i32_0 = arith.constant 0 : i32
    %c0_i32_1 = arith.constant 0 : i32
    return %c0_i32, %c0_i32_0 : i32, i32
  }
  func.func @transform_2(%arg0: i32) -> (i32, i32) {
    %c0_i32 = arith.constant 0 : i32
    %c0_i32_0 = arith.constant 0 : i32
    %c0_i32_1 = arith.constant 0 : i32
    return %c0_i32, %c0_i32_0 : i32, i32
  }
  func.func @transform_3(%arg0: i32) -> (i32, i32) {
    %c0_i32 = arith.constant 0 : i32
    %c0_i32_0 = arith.constant 0 : i32
    %c0_i32_1 = arith.constant 0 : i32
    return %c0_i32, %c0_i32_0 : i32, i32
  }
  func.func @transform_4(%arg0: i32) -> (i32, i32) {
    %c0_i32 = arith.constant 0 : i32
    %c0_i32_0 = arith.constant 0 : i32
    %c0_i32_1 = arith.constant 0 : i32
    return %c0_i32, %c0_i32_0 : i32, i32
  }
  func.func @transform_5(%arg0: i32) -> (i32, i32) {
    %c0_i32 = arith.constant 0 : i32
    %c0_i32_0 = arith.constant 0 : i32
    %c0_i32_1 = arith.constant 0 : i32
    return %c0_i32, %c0_i32_0 : i32, i32
  }
  func.func @transform_6(%arg0: i32) -> (i32, i32) {
    %c0_i32 = arith.constant 0 : i32
    %c0_i32_0 = arith.constant 0 : i32
    %c0_i32_1 = arith.constant 0 : i32
    return %c0_i32, %c0_i32_0 : i32, i32
  }
  func.func @transform_7(%arg0: i32) -> (i32, i32) {
    %c0_i32 = arith.constant 0 : i32
    %c0_i32_0 = arith.constant 0 : i32
    %c0_i32_1 = arith.constant 0 : i32
    return %c0_i32, %c0_i32_0 : i32, i32
  }
  func.func @transform_8(%arg0: i32) -> (i32, i32, i32) {
    %c0_i32 = arith.constant 0 : i32
    %c0_i32_0 = arith.constant 0 : i32
    %c0_i32_1 = arith.constant 0 : i32
    return %arg0, %c0_i32, %c0_i32_0 : i32, i32, i32
  }
}

</mosaic_0001>

<bundles_post_ra>
// kernel: block_forward.1
= control target key start
LH: loop header
LB: loop body
LE: loop exit
PB: predicated region body
PF: predicated region fallthrough
CT: control target
= control target key end

     0   :  { %s13476_s27 = smov 0   ;;  %s19246_s0 = inlined_call_operand.vmem [shape: f32[64,8,32], index: 0, kind: input, shape index: {}]   ;;  %s19247_s1 = inlined_call_operand.vmem [shape: f32[32,96], index: 1, kind: input, shape index: {}]   ;;  %s19248_s2 = inlined_call_operand.vmem [shape: f32[32,32], index: 2, kind: input, shape index: {}]   ;;  %s19249_s3 = inlined_call_operand.vmem [shape: f32[1,32], index: 3, kind: input, shape index: {}]   ;;  %s19250_s4 = inlined_call_operand.vmem [shape: f32[32,128], index: 4, kind: input, shape index: {}]   ;;  %s19251_s5 = inlined_call_operand.vmem [shape: f32[1,128], index: 5, kind: input, shape index: {}]   ;;  %s19252_s6 = inlined_call_operand.vmem [shape: f32[128,32], index: 6, kind: input, shape index: {}]   ;;  %s19253_s7 = inlined_call_operand.vmem [shape: f32[1,32], index: 7, kind: input, shape index: {}]   ;;  %s19254_s8 = inlined_call_operand.vmem [shape: f32[64,8,32], index: 8, kind: output, shape index: {}]  }
   0x1 LB: > { %s12003_s28 = sadd.s32 4294967295, %s13414_s27   ;;  %p12007_p0 = scmp.ge.s32.totalorder %s13414_s27, 1  ;;  %s13414_s27 = sphi %s13476_s27, %s18_s27  }
   0x2   : > { %p263_p1 = scmp.lt.s32.totalorder %s13414_s27, 3 }
   0x4   : > { %p264_p2 = pnand %p12007_p0, %p263_p1 }
   0x6   : > { %267 = sbr.rel (%p264_p2) target bundleno = 4096 (0x1000), region = 52 }
   0xb   : > { %v344_v0 = vld [vmem:[%s19247_s1 + $0x18] sm:$0xff]  ;;  %v343_v1 = vld [vmem:[%s19247_s1 + $0x10] sm:$0xff]  ;;  %s12008_s11 = sshll.u32 %s12003_s28, 5  ;;  %v342_v2 = vld [vmem:[%s19247_s1 + $0x8] sm:$0xff]  ;;  %vm345_vm0 = vcmask 261120   ;;  %s13416_s20 = smov 88  }
   0xc   : > { %454 = vmatpush.msra.mxu0 %v344_v0  ;;  %p298_p3 = scmp.lt.s32.totalorder %s12008_s11, 63  ;;  %v341_v3 = vld [vmem:[%s19247_s1] sm:$0xff]  ;;  %s13417_s21 = smov 120   ;;  %vm564_vm1 = vcmask 64512  }
   0xd   : > { %s13418_s22 = smov 96   ;;  %s13419_s23 = smov 64  }
   0xe   : > { %455 = vmatpush.msra.mxu0 %v343_v1  ;;  %s20285_s11 = smov (!%p298_p3, %s12008_s11), 63  ;;  %s13420_s24 = smov 56  }
   0xf   : > { %s12009_s16 = sshll.u32 %s20285_s11, 3  ;;  %s13422_s25 = smov 80  }
  0x10   : > { %456 = vmatpush.msra.mxu0 %v342_v2  ;;  %s13504_s19 = scalar_lea.vmem %s19246_s0, %s12009_s16  ;;  %s13423_s26 = smov 112  }
  0x11   : > { %v309_v4 = vld [vmem:[%s13504_s19] sm:$0xff]  ;;  %v310_v5 = vld [vmem:[%s13504_s19 + $0x8] sm:$0xff]  ;;  %v311_v6 = vld [vmem:[%s13504_s19 + $0x10] sm:$0xff]  ;;  %s13424_s28 = smov 48   ;;  %s13425_s29 = smov 104  }
  0x12   : > { %457 = vmatpush.msra.mxu0 %v341_v3  ;;  %v312_v7 = vld [vmem:[%s13504_s19 + $0x18] sm:$0xff]  ;;  %v313_v8 = vld [vmem:[%s13504_s19 + $0x20] sm:$0xff]  ;;  %v314_v9 = vld [vmem:[%s13504_s19 + $0x28] sm:$0xff]  ;;  %s13426_s30 = smov 72   ;;  %s13427_s9 = smov 40  }
  0x13   : > { %12012 = vmatmul.msk.f32.vlgmr.msra.gmra.mxu0 %vm345_vm0, %v309_v4  ;;  %v315_v10 = vld [vmem:[%s13504_s19 + $0x30] sm:$0xff]  ;;  %v316_v11 = vld [vmem:[%s13504_s19 + $0x38] sm:$0xff]  ;;  %v317_v12 = vld [vmem:[%s13504_s19 + $0x40] sm:$0xff]  ;;  %s13428_s10 = smov 8   ;;  %s13429_s12 = smov 16  }
  0x14   : > { %v318_v13 = vld [vmem:[%s13504_s19 + $0x48] sm:$0xff]  ;;  %v319_v14 = vld [vmem:[%s13504_s19 + $0x50] sm:$0xff]  ;;  %v320_v15 = vld [vmem:[%s13504_s19 + $0x58] sm:$0xff]  ;;  %s13430_s13 = smov 24   ;;  %s19097_s15 = scalar_lea.vmem %s19254_s8, %s12009_s16 }
  0x15   : > { %v321_v16 = vld [vmem:[%s13504_s19 + $0x60] sm:$0xff]  ;;  %v322_v17 = vld [vmem:[%s13504_s19 + $0x68] sm:$0xff]  ;;  %v323_v18 = vld [vmem:[%s13504_s19 + $0x70] sm:$0xff] }
  0x16   : > { %v324_v19 = vld [vmem:[%s13504_s19 + $0x78] sm:$0xff]  ;;  %v325_v21 = vld [vmem:[%s13504_s19 + $0x80] sm:$0xff]  ;;  %v326_v23 = vld [vmem:[%s13504_s19 + $0x88] sm:$0xff] }
  0x17   : > { %v327_v26 = vld [vmem:[%s13504_s19 + $0x90] sm:$0xff]  ;;  %v328_v28 = vld [vmem:[%s13504_s19 + $0x98] sm:$0xff]  ;;  %v329_v32 = vld [vmem:[%s13504_s19 + $0xa0] sm:$0xff] }
  0x18   : > { %v330_v34 = vld [vmem:[%s13504_s19 + $0xa8] sm:$0xff]  ;;  %v331_v36 = vld [vmem:[%s13504_s19 + $0xb0] sm:$0xff]  ;;  %v332_v38 = vld [vmem:[%s13504_s19 + $0xb8] sm:$0xff] }
  0x19   : > { %v333_v42 = vld [vmem:[%s13504_s19 + $0xc0] sm:$0xff]  ;;  %v334_v45 = vld [vmem:[%s13504_s19 + $0xc8] sm:$0xff]  ;;  %v335_v47 = vld [vmem:[%s13504_s19 + $0xd0] sm:$0xff] }
  0x1a   : > { %v336_v49 = vld [vmem:[%s13504_s19 + $0xd8] sm:$0xff]  ;;  %v337_v52 = vld [vmem:[%s13504_s19 + $0xe0] sm:$0xff]  ;;  %v338_v56 = vld [vmem:[%s13504_s19 + $0xe8] sm:$0xff] }
  0x1b   : > { %12013 = vmatmul.msk.f32.gmra.mxu0 %vm345_vm0, %v310_v5  ;;  %v339_v59 = vld [vmem:[%s13504_s19 + $0xf0] sm:$0xff]  ;;  %v340_v0 = vld [vmem:[%s13504_s19 + $0xf8] sm:$0xff] }
  0x23   : > { %12014 = vmatmul.msk.f32.gmra.mxu0 %vm345_vm0, %v311_v6 }
  0x2b   : > { %12015 = vmatmul.msk.f32.gmra.mxu0 %vm345_vm0, %v312_v7 }
  0x33   : > { %12016 = vmatmul.msk.f32.gmra.mxu0 %vm345_vm0, %v313_v8 }
  0x3b   : > { %12017 = vmatmul.msk.f32.gmra.mxu0 %vm345_vm0, %v314_v9 }
  0x43   : > { %12018 = vmatmul.msk.f32.gmra.mxu0 %vm345_vm0, %v315_v10 }
  0x4b   : > { %12019 = vmatmul.msk.f32.gmra.mxu0 %vm345_vm0, %v316_v11 }
  0x53   : > { %12020 = vmatmul.msk.f32.gmra.mxu0 %vm345_vm0, %v317_v12 }
  0x5b   : > { %12021 = vmatmul.msk.f32.gmra.mxu0 %vm345_vm0, %v318_v13 }
  0x63   : > { %12022 = vmatmul.msk.f32.gmra.mxu0 %vm345_vm0, %v319_v14 }
  0x6b   : > { %12023 = vmatmul.msk.f32.gmra.mxu0 %vm345_vm0, %v320_v15 }
  0x73   : > { %12024 = vmatmul.msk.f32.gmra.mxu0 %vm345_vm0, %v321_v16 }
  0x7b   : > { %12025 = vmatmul.msk.f32.gmra.mxu0 %vm345_vm0, %v322_v17 }
  0x83   : > { %12026 = vmatmul.msk.f32.gmra.mxu0 %vm345_vm0, %v323_v18 }
  0x8b   : > { %12027 = vmatmul.msk.f32.gmra.mxu0 %vm345_vm0, %v324_v19 }
  0x90   : > { %v13538_v20 = vpop.f32.mrf.mxu0 }
  0x91   : > { %19407 = vst [vmem:[#allocation2_spill] sm:$0xff] %v13538_v20  ;;  %3092 = vrot.lane.b32.xlu1 %v13538_v20, %s13416_s20  ;;  %3090 = vrot.lane.b32.xlu2 %v13538_v20, %s13417_s21 }
  0x92   : > { %562 = vrot.lane.b32.xlu0 %v13538_v20, %s13418_s22 }
  0x93   : > { %12028 = vmatmul.msk.f32.gmra.mxu0 %vm345_vm0, %v325_v21 }
  0x98   : > { %v13548_v22 = vpop.f32.mrf.mxu0 }
  0x99   : > { %19408 = vst [vmem:[#allocation3_spill] sm:$0xff] %v13548_v22  ;;  %v12541_v24 = vpack.i.bf16 %v13548_v22, %v13538_v20 }
  0x9a   : > { %590 = vrot.lane.b32.xlu0 %v13548_v22, %s13418_s22 }
  0x9b   : > { %12542 = vrot.lane.b32.xlu2 %v12541_v24, %s13419_s23  ;;  %12029 = vmatmul.msk.f32.gmra.mxu0 %vm345_vm0, %v326_v23 }
  0xa0   : > { %v13557_v25 = vpop.f32.mrf.mxu0 }
  0xa1   : > { %19409 = vst [vmem:[#allocation4_spill] sm:$0xff] %v13557_v25  ;;  %617 = vrot.lane.b32.xlu1 %v13557_v25, %s13418_s22  ;;  %v12546_v29 = vpack.i.bf16 %v13557_v25, %v13548_v22 }
  0xa2   : > { %3118 = vrot.lane.b32.xlu0 %v13548_v22, %s13417_s21 }
  0xa3   : > { %3120 = vrot.lane.b32.xlu2 %v13548_v22, %s13416_s20  ;;  %12030 = vmatmul.msk.f32.gmra.mxu0 %vm345_vm0, %v327_v26 }
  0xa8   : > { %v13567_v27 = vpop.f32.mrf.mxu0 }
  0xa9   : > { %19410 = vst [vmem:[#allocation5_spill] sm:$0xff] %v13567_v27  ;;  %3146 = vrot.lane.b32.xlu1 %v13557_v25, %s13417_s21  ;;  %v12551_v31 = vpack.i.bf16 %v13567_v27, %v13557_v25 }
  0xaa   : > { %3148 = vrot.lane.b32.xlu0 %v13557_v25, %s13416_s20 }
  0xab   : > { %12547 = vrot.lane.b32.xlu2 %v12546_v29, %s13420_s24  ;;  %12031 = vmatmul.msk.f32.gmra.mxu0 %vm345_vm0, %v328_v28 }
  0xb0   : > { %v13578_v30 = vpop.f32.mrf.mxu0 }
  0xb1   : > { %19411 = vst [vmem:[#allocation6_spill] sm:$0xff] %v13578_v30  ;;  %644 = vrot.lane.b32.xlu1 %v13567_v27, %s13418_s22 }
  0xb2   : > { %12552 = vrot.lane.b32.xlu0 %v12551_v31, %s13419_s23 }
  0xb3   : > { %3174 = vrot.lane.b32.xlu2 %v13567_v27, %s13417_s21  ;;  %12032 = vmatmul.msk.f32.gmra.mxu0 %vm345_vm0, %v329_v32 }
  0xb8   : > { %v13589_v33 = vpop.f32.mrf.mxu0 }
  0xb9   : > { %19412 = vst [vmem:[#allocation7_spill] sm:$0xff] %v13589_v33  ;;  %3176 = vrot.lane.b32.xlu1 %v13567_v27, %s13416_s20  ;;  %v12556_v35 = vpack.i.bf16 %v13589_v33, %v13578_v30  ;;  %v12561_v40 = vpack.i.bf16 %v13538_v20, %v13589_v33 }
  0xba   : > { %3202 = vrot.lane.b32.xlu0 %v13578_v30, %s13417_s21 }
  0xbb   : > { %671 = vrot.lane.b32.xlu2 %v13578_v30, %s13418_s22  ;;  %12033 = vmatmul.msk.f32.gmra.mxu0 %vm345_vm0, %v330_v34 }
  0xc0   : > { %v13603_v37 = vpop.f32.mrf.mxu0 }
  0xc1   : > { %12557 = vrot.lane.b32.xlu1 %v12556_v35, %s13419_s23  ;;  %19413 = vst [vmem:[#allocation8_spill] sm:$0xff] %v13603_v37  ;;  %v12566_v41 = vpack.i.bf16 %v13603_v37, %v13567_v27 }
  0xc2   : > { %3232 = vrot.lane.b32.xlu0 %v13589_v33, %s13416_s20 }
  0xc3   : > { %3204 = vrot.lane.b32.xlu2 %v13578_v30, %s13416_s20  ;;  %12034 = vmatmul.msk.f32.gmra.mxu0 %vm345_vm0, %v331_v36 }
  0xc8   : > { %v13618_v39 = vpop.f32.mrf.mxu0 }
  0xc9   : > { %3230 = vrot.lane.b32.xlu1 %v13589_v33, %s13417_s21  ;;  %19414 = vst [vmem:[#allocation9_spill] sm:$0xff] %v13618_v39  ;;  %v12571_v44 = vpack.i.bf16 %v13618_v39, %v13603_v37 }
  0xca   : > { %725 = vrot.lane.b32.xlu0 %v13603_v37, %s13418_s22 }
  0xcb   : > { %698 = vrot.lane.b32.xlu2 %v13589_v33, %s13418_s22  ;;  %12035 = vmatmul.msk.f32.gmra.mxu0 %vm345_vm0, %v332_v38 }
  0xd0   : > { %v13630_v43 = vpop.f32.mrf.mxu0 }
  0xd1   : > { %12562 = vrot.lane.b32.xlu1 %v12561_v40, %s13420_s24  ;;  %19415 = vst [vmem:[#allocation10_spill] sm:$0xff] %v13630_v43 }
  0xd2   : > { %12567 = vrot.lane.b32.xlu0 %v12566_v41, %s13420_s24 }
  0xd3   : > { %3258 = vrot.lane.b32.xlu2 %v13603_v37, %s13417_s21  ;;  %12036 = vmatmul.msk.f32.gmra.mxu0 %vm345_vm0, %v333_v42 }
  0xd8   : > { %v13641_v46 = vpop.f32.mrf.mxu0 }
  0xd9   : > { %3260 = vrot.lane.b32.xlu1 %v13603_v37, %s13416_s20  ;;  %v12576_v48 = vpack.i.bf16 %v13641_v46, %v13630_v43  ;;  %v12581_v55 = vpack.i.bf16 %v13578_v30, %v13641_v46 }
  0xda   : > { %12572 = vrot.lane.b32.xlu0 %v12571_v44, %s13419_s23 }
  0xdb   : > { %3288 = vrot.lane.b32.xlu2 %v13618_v39, %s13416_s20  ;;  %12037 = vmatmul.msk.f32.gmra.mxu0 %vm345_vm0, %v334_v45 }
  0xe0   : > { %v13656_v50 = vpop.f32.mrf.mxu0 }
  0xe1   : > { %752 = vrot.lane.b32.xlu1 %v13618_v39, %s13418_s22  ;;  %v12586_v62 = vpack.i.bf16 %v13656_v50, %v13618_v39 }
  0xe2   : > { %3286 = vrot.lane.b32.xlu0 %v13618_v39, %s13417_s21 }
  0xe3   : > { %779 = vrot.lane.b32.xlu2 %v13630_v43, %s13418_s22  ;;  %12038 = vmatmul.msk.f32.gmra.mxu0 %vm345_vm0, %v335_v47 }
  0xe8   : > { %v13672_v53 = vpop.f32.mrf.mxu0 }
  0xe9   : > { %3314 = vrot.lane.b32.xlu1 %v13630_v43, %s13417_s21  ;;  %v13724_v5 = vpack.i.bf16 %v13672_v53, %v13656_v50 }
  0xea   : > { %3316 = vrot.lane.b32.xlu0 %v13630_v43, %s13416_s20 }
  0xeb   : > { %12577 = vrot.lane.b32.xlu2 %v12576_v48, %s13419_s23  ;;  %12039 = vmatmul.msk.f32.gmra.mxu0 %vm345_vm0, %v336_v49  ;;  %v13662_v51 = vpop.permute.xlu2 %3090  ;;  %19422 = vst [vmem:[#allocation17_spill] sm:$0xff] %v13724_v5 }
  0xec   : > { %19416 = vst [vmem:[#allocation11_spill] sm:$0xff] %v13662_v51 }
  0xf0   : > { %v13687_v58 = vpop.f32.mrf.mxu0 }
  0xf1   : > { %3344 = vrot.lane.b32.xlu1 %v13641_v46, %s13416_s20 }
  0xf2   : > { %806 = vrot.lane.b32.xlu0 %v13641_v46, %s13418_s22 }
  0xf3   : > { %3342 = vrot.lane.b32.xlu2 %v13641_v46, %s13417_s21  ;;  %12040 = vmatmul.msk.f32.gmra.mxu0 %vm345_vm0, %v337_v52 }
  0xf5   : > { %v13674_v54 = vpop.permute.xlu2 %12542 }
  0xf8   : > { %v13702_v63 = vpop.f32.mrf.mxu0 }
  0xf9   : > { %12582 = vrot.lane.b32.xlu1 %v12581_v55, %s13420_s24  ;;  %v13720_v4 = vpack.i.bf16 %v13702_v63, %v13687_v58  ;;  %v12601_v15 = vpack.i.bf16 %v13630_v43, %v13702_v63 }
  0xfa   : > { %3370 = vrot.lane.b32.xlu0 %v13656_v50, %s13417_s21 }
  0xfb   : > { %3372 = vrot.lane.b32.xlu2 %v13656_v50, %s13416_s20  ;;  %12041 = vmatmul.msk.f32.gmra.mxu0 %vm345_vm0, %v338_v56  ;;  %19421 = vst [vmem:[#allocation16_spill] sm:$0xff] %v13720_v4 }
  0xfd   : > { %v13685_v57 = vpop.permute.xlu2 %3120 }
  0xfe   : > { %19417 = vst [vmem:[#allocation12_spill] sm:$0xff] %v13685_v57 }
 0x100   : > { %v13726_v6 = vpop.f32.mrf.mxu0 }
 0x101   : > { %833 = vrot.lane.b32.xlu1 %v13656_v50, %s13418_s22  ;;  %19423 = vst [vmem:[#allocation18_spill] sm:$0xff] %v13726_v6 }
 0x102   : > { %3400 = vrot.lane.b32.xlu0 %v13672_v53, %s13416_s20 }
 0x103   : > { %860 = vrot.lane.b32.xlu2 %v13672_v53, %s13418_s22  ;;  %12042 = vmatmul.msk.f32.gmra.mxu0 %vm345_vm0, %v339_v59  ;;  %v13710_v1 = vpop.permute.xlu1 %3092 }
 0x104   : > { %v563_v60 = vpop.permute.xlu0 %562  ;;  %19419 = vst [vmem:[#allocation14_spill] sm:$0xff] %v13710_v1 }
 0x105   : > { %12044 = vmatpush.xpose.msk.msra.mxu1 %vm564_vm1, %v563_v60  ;;  %v13698_v61 = vpop.permute.xlu2 %12547 }
 0x106   : > { %19418 = vst [vmem:[#allocation13_spill] sm:$0xff] %v13698_v61 }
 0x108   : > { %12045 = vmatmul.msk.f32.vlgmr.msra.gmra.mxu1 %vm564_vm1, %v13538_v20  ;;  %v13746_v10 = vpop.f32.mrf.mxu0 }
 0x109   : > { %12587 = vrot.lane.b32.xlu1 %v12586_v62, %s13420_s24  ;;  %v13760_v14 = vpack.i.bf16 %v13746_v10, %v13726_v6 }
 0x10a   : > { %887 = vrot.lane.b32.xlu0 %v13687_v58, %s13418_s22 }
 0x10b   : > { %3426 = vrot.lane.b32.xlu2 %v13687_v58, %s13417_s21  ;;  %12043 = vmatmul.msk.f32.gmra.mxu0 %vm345_vm0, %v340_v0  ;;  %19428 = vst [vmem:[#allocation23_spill] sm:$0xff] %v13760_v14 }
 0x10c   : > { %v591_v2 = vpop.permute.xlu0 %590 }
 0x10d   : > { %12046 = vmatpush.xpose.msk.msra.mxu2 %vm564_vm1, %v591_v2  ;;  %v13716_v3 = vpop.permute.xlu2 %3174 }
 0x10e   : > { %19420 = vst [vmem:[#allocation15_spill] sm:$0xff] %v13716_v3 }
 0x110   : > { %12047 = vmatmul.msk.f32.vlgmr.msra.gmra.mxu2 %vm564_vm1, %v13548_v22  ;;  %v13769_v17 = vpop.f32.mrf.mxu0 }
 0x111   : > { %12592 = vrot.lane.b32.xlu1 %v13724_v5, %s13419_s23  ;;  %19429 = vst [vmem:[#allocation24_spill] sm:$0xff] %v13769_v17 }
 0x112   : > { %12597 = vrot.lane.b32.xlu0 %v13720_v4, %s13419_s23 }
 0x113   : > { %v618_v7 = vpop.permute.xlu1 %617  ;;  %3456 = vrot.lane.b32.xlu2 %v13702_v63, %s13416_s20 }
 0x114   : > { %v13736_v8 = vpop.permute.xlu0 %3118  ;;  %12048 = vmatpush.xpose.msk.msrb.mxu0 %vm564_vm1, %v618_v7 }
 0x115   : > { %19424 = vst [vmem:[#allocation19_spill] sm:$0xff] %v13736_v8  ;;  %v672_v9 = vpop.permute.xlu2 %671 }
 0x116   : > { %12052 = vmatpush.xpose.msk.msrb.mxu2 %vm564_vm1, %v672_v9 }
 0x117   : > { %12049 = vmatmul.msk.f32.vlgmr.msrb.gmra.mxu0 %vm564_vm1, %v13557_v25 }
 0x118   : > { %v13791_v26 = vpop.f32.mrf.mxu0 }
 0x119   : > { %3398 = vrot.lane.b32.xlu1 %v13672_v53, %s13417_s21  ;;  %12053 = vmatmul.msk.f32.vlgmr.msrb.gmra.mxu2 %vm564_vm1, %v13578_v30  ;;  %19433 = vst [vmem:[#allocation28_spill] sm:$0xff] %v13791_v26  ;;  %v13838_v45 = vpack.i.bf16 %v13791_v26, %v13769_v17 }
 0x11a   : > { %3454 = vrot.lane.b32.xlu0 %v13702_v63, %s13417_s21 }
 0x11b   : > { %v13750_v11 = vpop.permute.xlu1 %3146  ;;  %941 = vrot.lane.b32.xlu2 %v13726_v6, %s13418_s22  ;;  %19440 = vst [vmem:[#allocation35_spill] sm:$0xff] %v13838_v45 }
 0x11c   : > { %19425 = vst [vmem:[#allocation20_spill] sm:$0xff] %v13750_v11  ;;  %v13754_v12 = vpop.permute.xlu0 %3148 }
 0x11d   : > { %19426 = vst [vmem:[#allocation21_spill] sm:$0xff] %v13754_v12  ;;  %v13756_v13 = vpop.permute.xlu2 %3204 }
 0x11e   : > { %19427 = vst [vmem:[#allocation22_spill] sm:$0xff] %v13756_v13  ;;  %v12656_v13 = vpack.i.bf16 %v13687_v58, %v13791_v26 }
 0x120   : > { %v13805_v32 = vpop.f32.mrf.mxu0 }
 0x121   : > { %3428 = vrot.lane.b32.xlu1 %v13687_v58, %s13416_s20 }
 0x122   : > { %12602 = vrot.lane.b32.xlu0 %v12601_v15, %s13420_s24 }
 0x123   : > { %v645_v16 = vpop.permute.xlu1 %644  ;;  %12607 = vrot.lane.b32.xlu2 %v13760_v14, %s13419_s23 }
 0x124   : > { %v13771_v18 = vpop.permute.xlu0 %12552  ;;  %12050 = vmatpush.xpose.msk.msrb.mxu1 %vm564_vm1, %v645_v16 }
 0x125   : > { %v699_v19 = vpop.permute.xlu2 %698 }
 0x126   : > { %12054 = vmatpush.xpose.msk.msra.mxu3 %vm564_vm1, %v699_v19 }
 0x127   : > { %12051 = vmatmul.msk.f32.vlgmr.msrb.gmra.mxu1 %vm564_vm1, %v13567_v27 }
 0x128   : > { %v13823_v38 = vpop.f32.mrf.mxu0 }
 0x129   : > { %914 = vrot.lane.b32.xlu1 %v13702_v63, %s13418_s22  ;;  %12055 = vmatmul.msk.f32.vlgmr.msra.gmra.mxu3 %vm564_vm1, %v13589_v33  ;;  %19437 = vst [vmem:[#allocation32_spill] sm:$0xff] %v13823_v38  ;;  %v13856_v55 = vpack.i.bf16 %v13823_v38, %v13805_v32 }
 0x12a   : > { %3484 = vrot.lane.b32.xlu0 %v13726_v6, %s13416_s20 }
 0x12b   : > { %v13783_v21 = vpop.permute.xlu1 %3176  ;;  %3510 = vrot.lane.b32.xlu2 %v13746_v10, %s13417_s21  ;;  %19444 = vst [vmem:[#allocation39_spill] sm:$0xff] %v13856_v55 }
 0x12c   : > { %19430 = vst [vmem:[#allocation25_spill] sm:$0xff] %v13783_v21  ;;  %v13787_v23 = vpop.permute.xlu0 %3202 }
 0x12d   : > { %19431 = vst [vmem:[#allocation26_spill] sm:$0xff] %v13787_v23  ;;  %v13789_v24 = vpop.permute.xlu2 %3258 }
 0x12e   : > { %19432 = vst [vmem:[#allocation27_spill] sm:$0xff] %v13789_v24 }
 0x130   : > { %v13848_v48 = vpop.f32.mrf.mxu0 }
 0x131   : > { %3482 = vrot.lane.b32.xlu1 %v13726_v6, %s13417_s21  ;;  %19442 = vst [vmem:[#allocation37_spill] sm:$0xff] %v13848_v48 }
 0x132   : > { %968 = vrot.lane.b32.xlu0 %v13746_v10, %s13418_s22 }
 0x133   : > { %v13797_v28 = vpop.permute.xlu1 %12557  ;;  %3540 = vrot.lane.b32.xlu2 %v13769_v17, %s13416_s20 }
 0x134   : > { %v13801_v29 = vpop.permute.xlu0 %3232 }
 0x135   : > { %19434 = vst [vmem:[#allocation29_spill] sm:$0xff] %v13801_v29  ;;  %v13803_v31 = vpop.permute.xlu2 %3288 }
 0x136   : > { %19435 = vst [vmem:[#allocation30_spill] sm:$0xff] %v13803_v31 }
 0x138   : > { %v13869_v62 = vpop.f32.mrf.mxu0 }
 0x139   : > { %3512 = vrot.lane.b32.xlu1 %v13746_v10, %s13416_s20  ;;  %19447 = vst [vmem:[#allocation42_spill] sm:$0xff] %v13869_v62  ;;  %v13873_v0 = vpack.i.bf16 %v13869_v62, %v13848_v48 }
 0x13a   : > { %3538 = vrot.lane.b32.xlu0 %v13769_v17, %s13417_s21 }
 0x13b   : > { %v13811_v34 = vpop.permute.xlu1 %3230  ;;  %1022 = vrot.lane.b32.xlu2 %v13791_v26, %s13418_s22  ;;  %19448 = vst [vmem:[#allocation43_spill] sm:$0xff] %v13873_v0 }
 0x13c   : > { %19436 = vst [vmem:[#allocation31_spill] sm:$0xff] %v13811_v34  ;;  %v726_v35 = vpop.permute.xlu0 %725 }
 0x13d   : > { %v780_v36 = vpop.permute.xlu2 %779  ;;  %12056 = vmatpush.xpose.msk.msra.mxu1 %vm564_vm1, %v726_v35 }
 0x13e   : > { %12060 = vmatpush.xpose.msk.msrb.mxu3 %vm564_vm1, %v780_v36 }
 0x140   : > { %12057 = vmatmul.msk.f32.vlgmr.msra.gmra.mxu1 %vm564_vm1, %v13603_v37  ;;  %v13888_v15 = vpop.f32.mrf.mxu0 }
 0x141   : > { %995 = vrot.lane.b32.xlu1 %v13769_v17, %s13418_s22  ;;  %12061 = vmatmul.msk.f32.vlgmr.msrb.gmra.mxu3 %vm564_vm1, %v13630_v43  ;;  %19451 = vst [vmem:[#allocation46_spill] sm:$0xff] %v13888_v15 }
 0x142   : > { %3568 = vrot.lane.b32.xlu0 %v13791_v26, %s13416_s20 }
 0x143   : > { %v13827_v40 = vpop.permute.xlu1 %12562  ;;  %3594 = vrot.lane.b32.xlu2 %v13805_v32, %s13417_s21 }
 0x144   : > { %19438 = vst [vmem:[#allocation33_spill] sm:$0xff] %v13827_v40  ;;  %v13831_v41 = vpop.permute.xlu0 %12567 }
 0x145   : > { %19439 = vst [vmem:[#allocation34_spill] sm:$0xff] %v13831_v41  ;;  %v12569_v42 = vunpack.i.l.bf16 %v13831_v41  ;;  %v13834_v44 = vpop.permute.xlu2 %12577 }
 0x147   : > { %4917 = vmatpush.msra.mxu0 %v12569_v42 }
 0x148   : > { %v13907_v36 = vpop.f32.mrf.mxu0 }
 0x149   : > { %12612 = vrot.lane.b32.xlu1 %v13838_v45, %s13419_s23  ;;  %19454 = vst [vmem:[#allocation49_spill] sm:$0xff] %v13907_v36 }
 0x14a   : > { %1049 = vrot.lane.b32.xlu0 %v13805_v32, %s13418_s22 }
 0x14b   : > { %v13844_v47 = vpop.permute.xlu1 %3260  ;;  %3624 = vrot.lane.b32.xlu2 %v13823_v38, %s13416_s20 }
 0x14c   : > { %19441 = vst [vmem:[#allocation36_spill] sm:$0xff] %v13844_v47  ;;  %v13850_v49 = vpop.permute.xlu0 %12572 }
 0x14d   : > { %v13852_v52 = vpop.permute.xlu2 %3342 }
 0x14e   : > { %19443 = vst [vmem:[#allocation38_spill] sm:$0xff] %v13852_v52 }
 0x151   : > { %3566 = vrot.lane.b32.xlu1 %v13791_v26, %s13417_s21 }
 0x152   : > { %12617 = vrot.lane.b32.xlu0 %v13856_v55, %s13419_s23  ;;  %v13925_v55 = vpop.f32.mrf.mxu0 }
 0x153   : > { %v753_v56 = vpop.permute.xlu1 %752  ;;  %1103 = vrot.lane.b32.xlu2 %v13848_v48, %s13418_s22  ;;  %19458 = vst [vmem:[#allocation53_spill] sm:$0xff] %v13925_v55 }
 0x154   : > { %v13864_v59 = vpop.permute.xlu0 %3286  ;;  %12058 = vmatpush.xpose.msk.msra.mxu2 %vm564_vm1, %v753_v56 }
 0x155   : > { %19445 = vst [vmem:[#allocation40_spill] sm:$0xff] %v13864_v59  ;;  %v13867_v60 = vpop.permute.xlu2 %3372  ;;  %v12544_v59 = vunpack.i.l.bf16 %v13674_v54 }
 0x156   : > { %19446 = vst [vmem:[#allocation41_spill] sm:$0xff] %v13867_v60 }
 0x157   : > { %12059 = vmatmul.msk.f32.vlgmr.msra.gmra.mxu2 %vm564_vm1, %v13618_v39 }
 0x159   : > { %3596 = vrot.lane.b32.xlu1 %v13805_v32, %s13416_s20 }
 0x15a   : > { %3622 = vrot.lane.b32.xlu0 %v13823_v38, %s13417_s21  ;;  %v13947_v5 = vpop.f32.mrf.mxu0 }
 0x15b   : > { %v13881_v2 = vpop.permute.xlu1 %3314  ;;  %12622 = vrot.lane.b32.xlu2 %v13873_v0, %s13419_s23  ;;  %19461 = vst [vmem:[#allocation56_spill] sm:$0xff] %v13947_v5  ;;  %v13983_v34 = vpack.i.bf16 %v13947_v5, %v13925_v55 }
 0x15c   : > { %19449 = vst [vmem:[#allocation44_spill] sm:$0xff] %v13881_v2  ;;  %v13885_v7 = vpop.permute.xlu0 %3316 }
 0x15d   : > { %19450 = vst [vmem:[#allocation45_spill] sm:$0xff] %v13885_v7  ;;  %v861_v9 = vpop.permute.xlu2 %860 }
 0x15e   : > { %12066 = vmatpush.xpose.msk.msra.mxu3 %vm564_vm1, %v861_v9  ;;  %19468 = vst [vmem:[#allocation63_spill] sm:$0xff] %v13983_v34 }
 0x161   : > { %1076 = vrot.lane.b32.xlu1 %v13823_v38, %s13418_s22  ;;  %12067 = vmatmul.msk.f32.vlgmr.msra.gmra.mxu3 %vm564_vm1, %v13672_v53 }
 0x162   : > { %3652 = vrot.lane.b32.xlu0 %v13848_v48, %s13416_s20  ;;  %v13967_v40 = vpop.f32.mrf.mxu0 }
 0x163   : > { %v13896_v16 = vpop.permute.xlu1 %3344  ;;  %3678 = vrot.lane.b32.xlu2 %v13869_v62, %s13417_s21  ;;  %19464 = vst [vmem:[#allocation59_spill] sm:$0xff] %v13967_v40 }
 0x164   : > { %19452 = vst [vmem:[#allocation47_spill] sm:$0xff] %v13896_v16  ;;  %v807_v19 = vpop.permute.xlu0 %806 }
 0x165   : > { %v13900_v35 = vpop.permute.xlu2 %3426  ;;  %12062 = vmatpush.xpose.msk.msrb.mxu1 %vm564_vm1, %v807_v19 }
 0x166   : > { %19453 = vst [vmem:[#allocation48_spill] sm:$0xff] %v13900_v35 }
 0x168   : > { %12063 = vmatmul.msk.f32.vlgmr.msrb.gmra.mxu1 %vm564_vm1, %v13641_v46 }
 0x169   : > { %3650 = vrot.lane.b32.xlu1 %v13848_v48, %s13417_s21 }
 0x16a   : > { %1130 = vrot.lane.b32.xlu0 %v13869_v62, %s13418_s22  ;;  %v13987_v7 = vpop.f32.mrf.mxu0 }
 0x16b   : > { %v13911_v42 = vpop.permute.xlu1 %12582  ;;  %3708 = vrot.lane.b32.xlu2 %v13888_v15, %s13416_s20  ;;  %19469 = vst [vmem:[#allocation64_spill] sm:$0xff] %v13987_v7 }
 0x16c   : > { %19455 = vst [vmem:[#allocation50_spill] sm:$0xff] %v13911_v42  ;;  %v13915_v56 = vpop.permute.xlu0 %3370  ;;  %v13951_v42 = vpack.i.bf16 %v13907_v36, %v13888_v15 }
 0x16d   : > { %19456 = vst [vmem:[#allocation51_spill] sm:$0xff] %v13915_v56  ;;  %v13917_v9 = vpop.permute.xlu2 %3456 }
 0x16e   : > { %19457 = vst [vmem:[#allocation52_spill] sm:$0xff] %v13917_v9 }
 0x16f   : > { %19462 = vst [vmem:[#allocation57_spill] sm:$0xff] %v13951_v42 }
 0x171   : > { %3680 = vrot.lane.b32.xlu1 %v13869_v62, %s13416_s20 }
 0x172   : > { %3706 = vrot.lane.b32.xlu0 %v13888_v15, %s13417_s21  ;;  %v14007_v35 = vpop.f32.mrf.mxu0 }
 0x173   : > { %v834_v19 = vpop.permute.xlu1 %833  ;;  %1184 = vrot.lane.b32.xlu2 %v13907_v36, %s13418_s22  ;;  %19472 = vst [vmem:[#allocation67_spill] sm:$0xff] %v14007_v35 }
 0x174   : > { %v13927_v0 = vpop.permute.xlu0 %3400  ;;  %12064 = vmatpush.xpose.msk.msrb.mxu2 %vm564_vm1, %v834_v19 }
 0x175   : > { %19459 = vst [vmem:[#allocation54_spill] sm:$0xff] %v13927_v0  ;;  %v942_v45 = vpop.permute.xlu2 %941 }
 0x176   : > { %12072 = vmatpush.xpose.msk.msrb.mxu3 %vm564_vm1, %v942_v45 }
 0x177   : > { %12065 = vmatmul.msk.f32.vlgmr.msrb.gmra.mxu2 %vm564_vm1, %v13656_v50 }
 0x179   : > { %1157 = vrot.lane.b32.xlu1 %v13888_v15, %s13418_s22  ;;  %12073 = vmatmul.msk.f32.vlgmr.msrb.gmra.mxu3 %vm564_vm1, %v13726_v6 }
 0x17a   : > { %3736 = vrot.lane.b32.xlu0 %v13907_v36, %s13416_s20 }
 0x17b   : > { %v13939_v14 = vpop.permute.xlu1 %12587  ;;  %3764 = vrot.lane.b32.xlu2 %v13925_v55, %s13416_s20 }
 0x17c   : > { %19460 = vst [vmem:[#allocation55_spill] sm:$0xff] %v13939_v14  ;;  %v12589_v19 = vunpack.i.l.bf16 %v13939_v14  ;;  %v888_v45 = vpop.permute.xlu0 %887 }
 0x17d   : > { %v13944_v4 = vpop.permute.xlu2 %12607  ;;  %12068 = vmatpush.xpose.msk.msra.mxu1 %vm564_vm1, %v888_v45 }
 0x17e   : > { %5021 = vmatpush.msrb.mxu0 %v12589_v19 }
 0x180   : > { %12069 = vmatmul.msk.f32.vlgmr.msra.gmra.mxu1 %vm564_vm1, %v13687_v58 }
 0x181   : > { %12627 = vrot.lane.b32.xlu1 %v13951_v42, %s13419_s23 }
 0x182   : > { %1211 = vrot.lane.b32.xlu0 %v13925_v55, %s13418_s22 }
 0x183   : > { %v13959_v14 = vpop.permute.xlu1 %12592  ;;  %3790 = vrot.lane.b32.xlu2 %v13947_v5, %s13417_s21 }
 0x184   : > { %v13963_v45 = vpop.permute.xlu0 %12597 }
 0x185   : > { %v13965_v19 = vpop.permute.xlu2 %3510 }
 0x186   : > { %19463 = vst [vmem:[#allocation58_spill] sm:$0xff] %v13965_v19  ;;  %v12636_v19 = vpack.i.bf16 %v13987_v7, %v13967_v40 }
 0x189   : > { %3734 = vrot.lane.b32.xlu1 %v13907_v36, %s13417_s21 }
 0x18a   : > { %3762 = vrot.lane.b32.xlu0 %v13925_v55, %s13417_s21 }
 0x18b   : > { %v13973_v42 = vpop.permute.xlu1 %3398  ;;  %1265 = vrot.lane.b32.xlu2 %v13967_v40, %s13418_s22 }
 0x18c   : > { %19465 = vst [vmem:[#allocation60_spill] sm:$0xff] %v13973_v42  ;;  %v13977_v2 = vpop.permute.xlu0 %3454 }
 0x18d   : > { %19466 = vst [vmem:[#allocation61_spill] sm:$0xff] %v13977_v2  ;;  %v13979_v0 = vpop.permute.xlu2 %3540 }
 0x18e   : > { %19467 = vst [vmem:[#allocation62_spill] sm:$0xff] %v13979_v0  ;;  %v13421_v0 = vmov -1e+30  }
 0x191   : > { %1238 = vrot.lane.b32.xlu1 %v13947_v5, %s13418_s22 }
 0x192   : > { %12632 = vrot.lane.b32.xlu0 %v13983_v34, %s13419_s23 }
 0x193   : > { %v13991_v42 = vpop.permute.xlu1 %3428  ;;  %3818 = vrot.lane.b32.xlu2 %v13967_v40, %s13417_s21 }
 0x194   : > { %19470 = vst [vmem:[#allocation65_spill] sm:$0xff] %v13991_v42  ;;  %v13995_v11 = vpop.permute.xlu0 %12602 }
 0x195   : > { %19471 = vst [vmem:[#allocation66_spill] sm:$0xff] %v13995_v11  ;;  %v1023_v29 = vpop.permute.xlu2 %1022 }
 0x196   : > { %12078 = vmatpush.xpose.msk.msra.mxu3 %vm564_vm1, %v1023_v29 }
 0x199   : > { %3792 = vrot.lane.b32.xlu1 %v13947_v5, %s13416_s20  ;;  %12079 = vmatmul.msk.f32.vlgmr.msra.gmra.mxu3 %vm564_vm1, %v13791_v26 }
 0x19a   : > { %1292 = vrot.lane.b32.xlu0 %v13987_v7, %s13418_s22 }
 0x19b   : > { %v915_v34 = vpop.permute.xlu1 %914  ;;  %12637 = vrot.lane.b32.xlu2 %v12636_v19, %s13419_s23 }
 0x19c   : > { %v14009_v11 = vpop.permute.xlu0 %3484  ;;  %12070 = vmatpush.xpose.msk.msra.mxu2 %vm564_vm1, %v915_v34  ;;  %v14027_v34 = vpop.f32.mrf.mxu0 }
 0x19d   : > { %19473 = vst [vmem:[#allocation68_spill] sm:$0xff] %v14009_v11  ;;  %v14012_v29 = vpop.permute.xlu2 %3594  ;;  %v12641_v16 = vpack.i.bf16 %v14027_v34, %v14007_v35 }
 0x19e   : > { %19474 = vst [vmem:[#allocation69_spill] sm:$0xff] %v14012_v29 }
 0x19f   : > { %12071 = vmatmul.msk.f32.vlgmr.msra.gmra.mxu2 %vm564_vm1, %v13702_v63  ;;  %19477 = vst [vmem:[#allocation72_spill] sm:$0xff] %v14027_v34 }
 0x1a1   : > { %3820 = vrot.lane.b32.xlu1 %v13967_v40, %s13416_s20 }
 0x1a2   : > { %3848 = vrot.lane.b32.xlu0 %v13987_v7, %s13416_s20 }
 0x1a3   : > { %v14020_v52 = vpop.permute.xlu1 %3482  ;;  %3874 = vrot.lane.b32.xlu2 %v14007_v35, %s13417_s21 }
 0x1a4   : > { %19475 = vst [vmem:[#allocation70_spill] sm:$0xff] %v14020_v52  ;;  %v969_v19 = vpop.permute.xlu0 %968 }
 0x1a5   : > { %v14024_v11 = vpop.permute.xlu2 %3624  ;;  %12074 = vmatpush.xpose.msk.msrb.mxu1 %vm564_vm1, %v969_v19  ;;  %v14042_v19 = vpop.f32.mrf.mxu0 }
 0x1a6   : > { %19476 = vst [vmem:[#allocation71_spill] sm:$0xff] %v14024_v11 }
 0x1a7   : > { %19480 = vst [vmem:[#allocation75_spill] sm:$0xff] %v14042_v19 }
 0x1a8   : > { %12075 = vmatmul.msk.f32.vlgmr.msrb.gmra.mxu1 %vm564_vm1, %v13746_v10 }
 0x1a9   : > { %1319 = vrot.lane.b32.xlu1 %v14007_v35, %s13418_s22 }
 0x1aa   : > { %3846 = vrot.lane.b32.xlu0 %v13987_v7, %s13417_s21 }
 0x1ab   : > { %v14035_v52 = vpop.permute.xlu1 %3512  ;;  %1346 = vrot.lane.b32.xlu2 %v14027_v34, %s13418_s22 }
 0x1ac   : > { %19478 = vst [vmem:[#allocation73_spill] sm:$0xff] %v14035_v52  ;;  %v14039_v29 = vpop.permute.xlu0 %3538 }
 0x1ad   : > { %19479 = vst [vmem:[#allocation74_spill] sm:$0xff] %v14039_v29  ;;  %v1104_v42 = vpop.permute.xlu2 %1103  ;;  %v14062_v3 = vpop.f32.mrf.mxu0 }
 0x1ae   : > { %12084 = vmatpush.xpose.msk.msrb.mxu3 %vm564_vm1, %v1104_v42  ;;  %19482 = vst [vmem:[#allocation77_spill] sm:$0xff] %v14062_v3 }
 0x1b1   : > { %3876 = vrot.lane.b32.xlu1 %v14007_v35, %s13416_s20  ;;  %12085 = vmatmul.msk.f32.vlgmr.msrb.gmra.mxu3 %vm564_vm1, %v13848_v48 }
 0x1b2   : > { %1373 = vrot.lane.b32.xlu0 %v14042_v19, %s13418_s22 }
 0x1b3   : > { %v996_v52 = vpop.permute.xlu1 %995  ;;  %3902 = vrot.lane.b32.xlu2 %v14027_v34, %s13417_s21 }
 0x1b4   : > { %v14052_v24 = vpop.permute.xlu0 %3568  ;;  %12076 = vmatpush.xpose.msk.msrb.mxu2 %vm564_vm1, %v996_v52 }
 0x1b5   : > { %19481 = vst [vmem:[#allocation76_spill] sm:$0xff] %v14052_v24  ;;  %v14055_v42 = vpop.permute.xlu2 %12622 }
 0x1b7   : > { %12077 = vmatmul.msk.f32.vlgmr.msrb.gmra.mxu2 %vm564_vm1, %v13769_v17 }
 0x1b9   : > { %12642 = vrot.lane.b32.xlu1 %v12641_v16, %s13419_s23 }
 0x1ba   : > { %3932 = vrot.lane.b32.xlu0 %v14042_v19, %s13416_s20 }
 0x1bb   : > { %v14066_v47 = vpop.permute.xlu1 %12612  ;;  %3958 = vrot.lane.b32.xlu2 %v14062_v3, %s13417_s21 }
 0x1bc   : > { %v1050_v52 = vpop.permute.xlu0 %1049 }
 0x1bd   : > { %v14070_v24 = vpop.permute.xlu2 %3678  ;;  %12080 = vmatpush.xpose.msk.msra.mxu1 %vm564_vm1, %v1050_v52 }
 0x1be   : > { %19483 = vst [vmem:[#allocation78_spill] sm:$0xff] %v14070_v24  ;;  %v14087_v24 = vpack.i.bf16 %v14062_v3, %v14042_v19 }
 0x1c0   : > { %12081 = vmatmul.msk.f32.vlgmr.msra.gmra.mxu1 %vm564_vm1, %v13805_v32  ;;  %19486 = vst [vmem:[#allocation81_spill] sm:$0xff] %v14087_v24 }
 0x1c1   : > { %3904 = vrot.lane.b32.xlu1 %v14027_v34, %s13416_s20 }
 0x1c2   : > { %3930 = vrot.lane.b32.xlu0 %v14042_v19, %s13417_s21 }
 0x1c3   : > { %v14079_v16 = vpop.permute.xlu1 %3566 }
 0x1c4   : > { %19484 = vst [vmem:[#allocation79_spill] sm:$0xff] %v14079_v16  ;;  %v14081_v51 = vpop.permute.xlu0 %12617  ;;  %v555_v16 = vlaneseq }
 0x1c5   : > { %v14083_v21 = vpop.permute.xlu2 %3708 }
 0x1c6   : > { %19485 = vst [vmem:[#allocation80_spill] sm:$0xff] %v14083_v21  ;;  %v558_v29 = vand.u32 127, %v555_v16 }
 0x1c9   : > { %1400 = vrot.lane.b32.xlu1 %v14062_v3, %s13418_s22 }
 0x1ca   : > { %12647 = vrot.lane.b32.xlu0 %v14087_v24, %s13419_s23 }
 0x1cb   : > { %v14093_v52 = vpop.permute.xlu1 %3596 }
 0x1cc   : > { %19487 = vst [vmem:[#allocation82_spill] sm:$0xff] %v14093_v52  ;;  %v14095_v41 = vpop.permute.xlu0 %3622  ;;  %v556_v52 = vshrl.u32 %v555_v16, 7 }
 0x1cd   : > { %19488 = vst [vmem:[#allocation83_spill] sm:$0xff] %v14095_v41  ;;  %v1185_v61 = vpop.permute.xlu2 %1184 }
 0x1ce   : > { %12090 = vmatpush.xpose.msk.msra.mxu3 %vm564_vm1, %v1185_v61  ;;  %v586_v61 = vpop.f32.mrf.mxu1  ;;  %vm559_vm2 = vcmp.ge.s32.totalorder %v556_v52, %v558_v29 }
 0x1cf   : > { %v1426_v41 = vmul.f32 0.17677669, %v586_v61  ;;  %v14111_v56 = vsel %vm559_vm2, 0.0, %v13421_v0  ;;  %v613_v61 = vpop.f32.mrf.mxu2 }
 0x1d0   : > { %19492 = vst [vmem:[#allocation87_spill] sm:$0xff] %v14111_v56 }
 0x1d1   : > { %3960 = vrot.lane.b32.xlu1 %v14062_v3, %s13416_s20  ;;  %12091 = vmatmul.msk.f32.vlgmr.msra.gmra.mxu3 %vm564_vm1, %v13907_v36 }
 0x1d3   : > { %v1077_v12 = vpop.permute.xlu1 %1076 }
 0x1d4   : > { %v14102_v21 = vpop.permute.xlu0 %3652  ;;  %12082 = vmatpush.xpose.msk.msra.mxu2 %vm564_vm1, %v1077_v12  ;;  %v14117_v12 = vadd.f32 %v1426_v41, %v14111_v56  ;;  %v1427_v41 = vmul.f32 0.17677669, %v613_v61 }
 0x1d5   : > { %19489 = vst [vmem:[#allocation84_spill] sm:$0xff] %v14102_v21  ;;  %v14105_v24 = vpop.permute.xlu2 %3764 }
 0x1d6   : > { %19490 = vst [vmem:[#allocation85_spill] sm:$0xff] %v14105_v24  ;;  %v1490_v29 = vsel %vm564_vm1, %v14117_v12, -inf  ;;  %v640_v24 = vpop.f32.mrf.mxu0 }
 0x1d7   : > { %12083 = vmatmul.msk.f32.vlgmr.msra.gmra.mxu2 %vm564_vm1, %v13823_v38 }
 0x1db   : > { %v14109_v11 = vpop.permute.xlu1 %3650 }
 0x1dc   : > { %19491 = vst [vmem:[#allocation86_spill] sm:$0xff] %v14109_v11  ;;  %v1131_v2 = vpop.permute.xlu0 %1130 }
 0x1dd   : > { %v14113_v9 = vpop.permute.xlu2 %3790  ;;  %12086 = vmatpush.xpose.msk.msrb.mxu1 %vm564_vm1, %v1131_v2 }
 0x1de   : > { %19493 = vst [vmem:[#allocation88_spill] sm:$0xff] %v14113_v9 }
 0x1e0   : > { %12087 = vmatmul.msk.f32.vlgmr.msrb.gmra.mxu1 %vm564_vm1, %v13869_v62 }
 0x1e3   : > { %v14121_v16 = vpop.permute.xlu1 %3680 }
 0x1e4   : > { %19494 = vst [vmem:[#allocation89_spill] sm:$0xff] %v14121_v16  ;;  %v14125_v52 = vpop.permute.xlu0 %3706  ;;  %1491 = vmax.xlane.f32.xlu2 %v1490_v29  ;;  %v14136_v16 = vadd.f32 %v1427_v41, %v14111_v56  ;;  %v1428_v29 = vmul.f32 0.17677669, %v640_v24  ;;  %v12651_v41 = vpack.i.bf16 %v13726_v6, %v13672_v53 }
 0x1e5   : > { %19495 = vst [vmem:[#allocation90_spill] sm:$0xff] %v14125_v52  ;;  %v1266_v0 = vpop.permute.xlu2 %1265 }
 0x1e6   : > { %12096 = vmatpush.xpose.msk.msrb.mxu3 %vm564_vm1, %v1266_v0  ;;  %v1493_v61 = vsel %vm564_vm1, %v14136_v16, -inf }
 0x1e9   : > { %12097 = vmatmul.msk.f32.vlgmr.msrb.gmra.mxu3 %vm564_vm1, %v13967_v40 }
 0x1eb   : > { %v1158_v2 = vpop.permute.xlu1 %1157 }
 0x1ec   : > { %v14130_v11 = vpop.permute.xlu0 %3736  ;;  %12088 = vmatpush.xpose.msk.msrb.mxu2 %vm564_vm1, %v1158_v2  ;;  %v14148_v2 = vadd.f32 %v1428_v29, %v14111_v56 }
 0x1ed   : > { %19496 = vst [vmem:[#allocation91_spill] sm:$0xff] %v14130_v11  ;;  %v14133_v21 = vpop.permute.xlu2 %3818 }
 0x1ee   : > { %19497 = vst [vmem:[#allocation92_spill] sm:$0xff] %v14133_v21  ;;  %v1496_v24 = vsel %vm564_vm1, %v14148_v2, -inf }
 0x1ef   : > { %12089 = vmatmul.msk.f32.vlgmr.msrb.gmra.mxu2 %vm564_vm1, %v13888_v15 }
 0x1f3   : > { %v14140_v0 = vpop.permute.xlu1 %12627 }
 0x1f4   : > { %19498 = vst [vmem:[#allocation93_spill] sm:$0xff] %v14140_v0  ;;  %v1212_v9 = vpop.permute.xlu0 %1211  ;;  %1494 = vmax.xlane.f32.xlu0 %v1493_v61 }
 0x1f5   : > { %v14144_v11 = vpop.permute.xlu2 %12637  ;;  %12092 = vmatpush.xpose.msk.msra.mxu1 %vm564_vm1, %v1212_v9 }
 0x1f6   : > { %19499 = vst [vmem:[#allocation94_spill] sm:$0xff] %v14144_v11 }
 0x1f8   : > { %12093 = vmatmul.msk.f32.vlgmr.msra.gmra.mxu1 %vm564_vm1, %v13925_v55 }
 0x1fb   : > { %v14156_v21 = vpop.permute.xlu1 %3734  ;;  %1497 = vmax.xlane.f32.xlu1 %v1496_v24  ;;  %v12555_v24 = vunpack.i.h.bf16 %v13771_v18 }
 0x1fc   : > { %19500 = vst [vmem:[#allocation95_spill] sm:$0xff] %v14156_v21  ;;  %v14158_v61 = vpop.permute.xlu0 %3762  ;;  %12652 = vrot.lane.b32.xlu2 %v12651_v41, %s13420_s24  ;;  %v12666_v21 = vpack.i.bf16 %v13769_v17, %v13869_v62 }
 0x1fd   : > { %19501 = vst [vmem:[#allocation96_spill] sm:$0xff] %v14158_v61  ;;  %v14161_v9 = vpop.permute.xlu2 %3874 }
 0x1fe   : > { %19502 = vst [vmem:[#allocation97_spill] sm:$0xff] %v14161_v9 }
 0x203   : > { %v1239_v29 = vpop.permute.xlu1 %1238 }
 0x204   : > { %v14163_v52 = vpop.permute.xlu0 %12632  ;;  %12094 = vmatpush.xpose.msk.msra.mxu2 %vm564_vm1, %v1239_v29 }
 0x205   : > { %19503 = vst [vmem:[#allocation98_spill] sm:$0xff] %v14163_v52  ;;  %v1347_v1 = vpop.permute.xlu2 %1346 }
 0x206   : > { %12102 = vmatpush.xpose.msk.msra.mxu3 %vm564_vm1, %v1347_v1  ;;  %v12661_v1 = vpack.i.bf16 %v13805_v32, %v13746_v10 }
 0x207   : > { %12095 = vmatmul.msk.f32.vlgmr.msra.gmra.mxu2 %vm564_vm1, %v13947_v5 }
 0x208   : > { %12667 = vrot.lane.b32.xlu0 %v12666_v21, %s13420_s24  ;;  %v667_v21 = vpop.f32.mrf.mxu1 }
 0x209   : > { %12103 = vmatmul.msk.f32.vlgmr.msra.gmra.mxu3 %vm564_vm1, %v14027_v34 }
 0x20a   : > { %2279 = vmatpush.msrb.mxu3 %v12544_v59 }
 0x20b   : > { %v14176_v41 = vpop.permute.xlu1 %3792 }
 0x20c   : > { %2357 = vmatpush.msra.mxu3 %v12555_v24  ;;  %19504 = vst [vmem:[#allocation99_spill] sm:$0xff] %v14176_v41  ;;  %v1293_v29 = vpop.permute.xlu0 %1292  ;;  %v1429_v24 = vmul.f32 0.17677669, %v667_v21  ;;  %v721_v21 = vpop.f32.mrf.mxu3 }
 0x20d   : > { %12098 = vmatpush.xpose.msk.msrb.mxu1 %vm564_vm1, %v1293_v29 }
 0x20e   : > { %v14194_v29 = vadd.f32 %v1429_v24, %v14111_v56  ;;  %v1431_v24 = vmul.f32 0.17677669, %v721_v21 }
 0x210   : > { %12099 = vmatmul.msk.f32.vlgmr.msrb.gmra.mxu1 %vm564_vm1, %v13987_v7 }
 0x213   : > { %v14183_v59 = vpop.permute.xlu1 %3820 }
 0x214   : > { %19505 = vst [vmem:[#allocation100_spill] sm:$0xff] %v14183_v59  ;;  %v14185_v61 = vpop.permute.xlu0 %3848  ;;  %12662 = vrot.lane.b32.xlu1 %v12661_v1, %s13420_s24  ;;  %v12545_v59 = vunpack.i.h.bf16 %v13674_v54  ;;  %v1499_v1 = vsel %vm564_vm1, %v14194_v29, -inf  ;;  %v14208_v54 = vadd.f32 %v1431_v24, %v14111_v56 }
 0x215   : > { %19506 = vst [vmem:[#allocation101_spill] sm:$0xff] %v14185_v61 }
 0x21b   : > { %v1320_v9 = vpop.permute.xlu1 %1319 }
 0x21c   : > { %v14188_v60 = vpop.permute.xlu0 %3846  ;;  %12100 = vmatpush.xpose.msk.msrb.mxu2 %vm564_vm1, %v1320_v9  ;;  %v12559_v9 = vunpack.i.l.bf16 %v13797_v28 }
 0x21d   : > { %19507 = vst [vmem:[#allocation102_spill] sm:$0xff] %v14188_v60 }
 0x21f   : > { %12101 = vmatmul.msk.f32.vlgmr.msrb.gmra.mxu2 %vm564_vm1, %v14007_v35 }
 0x223   : > { %v14196_v41 = vpop.permute.xlu1 %3876 }
 0x224   : > { %19508 = vst [vmem:[#allocation103_spill] sm:$0xff] %v14196_v41  ;;  %v1374_v61 = vpop.permute.xlu0 %1373  ;;  %v802_v41 = vpop.f32.mrf.mxu3 }
 0x225   : > { %12104 = vmatpush.xpose.msk.msra.mxu1 %vm564_vm1, %v1374_v61  ;;  %1500 = vmax.xlane.f32.xlu2 %v1499_v1  ;;  %v1434_v23 = vmul.f32 0.17677669, %v802_v41  ;;  %v1505_v61 = vsel %vm564_vm1, %v14208_v54, -inf  ;;  %v748_v1 = vpop.f32.mrf.mxu1  ;;  %v12554_v41 = vunpack.i.l.bf16 %v13771_v18  ;;  %v12686_v18 = vpack.i.bf16 %v13925_v55, %v14027_v34 }
 0x226   : > { %v1432_v31 = vmul.f32 0.17677669, %v748_v1 }
 0x227   : > { %v14215_v8 = vadd.f32 %v1434_v23, %v14111_v56 }
 0x228   : > { %12105 = vmatmul.msk.f32.vlgmr.msra.gmra.mxu1 %vm564_vm1, %v14042_v19 }
 0x229   : > { %2305 = vmatpush.msrb.mxu1 %v12545_v59  ;;  %v1514_v21 = vsel %vm564_vm1, %v14215_v8, -inf }
 0x22b   : > { %2383 = vmatpush.msra.mxu1 %v12559_v9  ;;  %v14205_v60 = vpop.permute.xlu1 %12642  ;;  %v14220_v9 = vadd.f32 %v1432_v31, %v14111_v56  ;;  %v12676_v31 = vpack.i.bf16 %v13848_v48, %v13947_v5 }
 0x22c   : > { %19509 = vst [vmem:[#allocation104_spill] sm:$0xff] %v14205_v60 }
 0x22d   : > { %v1508_v23 = vsel %vm564_vm1, %v14220_v9, -inf }
 0x232   : > { %1506 = vmax.xlane.f32.xlu0 %v1505_v61  ;;  %v12560_v61 = vunpack.i.h.bf16 %v13797_v28 }
 0x233   : > { %v14212_v59 = vpop.permute.xlu1 %3904 }
 0x234   : > { %19510 = vst [vmem:[#allocation105_spill] sm:$0xff] %v14212_v59 }
 0x23a   : > { %1515 = vmax.xlane.f32.xlu0 %v1514_v21 }
 0x23b   : > { %v1401_v24 = vpop.permute.xlu1 %1400 }
 0x23c   : > { %12106 = vmatpush.xpose.msk.msra.mxu2 %vm564_vm1, %v1401_v24 }
 0x23d   : > { %12657 = vrot.lane.b32.xlu2 %v12656_v13, %s13420_s24  ;;  %v694_v13 = vpop.f32.mrf.mxu2 }
 0x23e   : > { %1509 = vmax.xlane.f32.xlu1 %v1508_v23  ;;  %v1430_v1 = vmul.f32 0.17677669, %v694_v13 }
 0x23f   : > { %12107 = vmatmul.msk.f32.vlgmr.msra.gmra.mxu2 %vm564_vm1, %v14062_v3 }
 0x240   : > { %2331 = vmatpush.msrb.mxu2 %v12554_v41  ;;  %v14239_v21 = vadd.f32 %v1430_v1, %v14111_v56  ;;  %v829_v1 = vpop.f32.mrf.mxu1 }
 0x241   : > { %v1435_v59 = vmul.f32 0.17677669, %v829_v1 }
 0x242   : > { %2409 = vmatpush.msra.mxu2 %v12560_v61  ;;  %v1502_v24 = vsel %vm564_vm1, %v14239_v21, -inf  ;;  %v883_v61 = vpop.f32.mrf.mxu3 }
 0x245   : > { %v775_v28 = vpop.f32.mrf.mxu2 }
 0x246   : > { %v1433_v41 = vmul.f32 0.17677669, %v775_v28 }
 0x248   : > { %v14244_v23 = vadd.f32 %v1433_v41, %v14111_v56 }
 0x24e   : > { %12687 = vrot.lane.b32.xlu0 %v12686_v18, %s13420_s24  ;;  %v1511_v18 = vsel %vm564_vm1, %v14244_v23, -inf }
 0x257   : > { %12677 = vrot.lane.b32.xlu1 %v12676_v31, %s13420_s24  ;;  %v1437_v31 = vmul.f32 0.17677669, %v883_v61  ;;  %v12681_v61 = vpack.i.bf16 %v13967_v40, %v13907_v36  ;;  %v12696_v36 = vpack.i.bf16 %v14062_v3, %v14007_v35 }
 0x259   : > { %v14249_v13 = vadd.f32 %v1437_v31, %v14111_v56  ;;  %v856_v31 = vpop.f32.mrf.mxu2 }
 0x25a   : > { %v1436_v1 = vmul.f32 0.17677669, %v856_v31 }
 0x25b   : > { %v1523_v28 = vsel %vm564_vm1, %v14249_v13, -inf }
 0x266   : > { %1503 = vmax.xlane.f32.xlu2 %v1502_v24  ;;  %v14254_v24 = vadd.f32 %v1435_v59, %v14111_v56  ;;  %v12691_v59 = vpack.i.bf16 %v14042_v19, %v13987_v7  ;;  %v910_v19 = vpop.f32.mrf.mxu1 }
 0x268   : > { %v1517_v41 = vsel %vm564_vm1, %v14254_v24, -inf }
 0x26e   : > { %1512 = vmax.xlane.f32.xlu2 %v1511_v18  ;;  %v12671_v18 = vpack.i.bf16 %v13888_v15, %v13823_v38 }
 0x278   : > { %1524 = vmax.xlane.f32.xlu0 %v1523_v28  ;;  %v964_v28 = vpop.f32.mrf.mxu3 }
 0x281   : > { %1518 = vmax.xlane.f32.xlu1 %v1517_v41  ;;  %v14270_v41 = vadd.f32 %v1436_v1, %v14111_v56  ;;  %v14288_v1 = vpop.permute.xlu2 %3902 }
 0x282   : > { %19511 = vst [vmem:[#allocation106_spill] sm:$0xff] %v14288_v1 }
 0x283   : > { %v1520_v34 = vsel %vm564_vm1, %v14270_v41, -inf }
 0x286   : > { %12672 = vrot.lane.b32.xlu2 %v12671_v18, %s13420_s24  ;;  %v1440_v18 = vmul.f32 0.17677669, %v964_v28 }
 0x288   : > { %v14275_v57 = vadd.f32 %v1440_v18, %v14111_v56 }
 0x289   : > { %v14290_v28 = vpop.permute.xlu2 %3958 }
 0x28a   : > { %19512 = vst [vmem:[#allocation107_spill] sm:$0xff] %v14290_v28 }
 0x28c   : > { %5708 = vrot.lane.b32.xlu0 %v13557_v25, %s13422_s25 }
 0x291   : > { %v1492_v18 = vpop.xlane.xlu2 %1491 }
 0x29a   : > { %12682 = vrot.lane.b32.xlu1 %v12681_v61, %s13420_s24  ;;  %v1532_v61 = vsel %vm564_vm1, %v14275_v57, -inf }
 0x2a2   : > { %12692 = vrot.lane.b32.xlu1 %v12691_v59, %s13420_s24  ;;  %v1438_v59 = vmul.f32 0.17677669, %v910_v19  ;;  %v1586_v19 = vsub.f32 %v14117_v12, %v1492_v18  ;;  %v1045_v18 = vpop.f32.mrf.mxu3 }
 0x2a3   : > { %v1443_v28 = vmul.f32 0.17677669, %v1045_v18 }
 0x2a4   : > { %v14282_v31 = vadd.f32 %v1438_v59, %v14111_v56  ;;  %v1618_v59 = vmul.f32 1.442695, %v1586_v19 }
 0x2a6   : > { %12864 = vpow2.f32 %v1618_v59  ;;  %v991_v59 = vpop.f32.mrf.mxu1 }
 0x2ac   : > { %v14303_v12 = vpop.eup %12864 }
 0x2ad   : > { %v1682_v19 = vsel %vm564_vm1, %v14303_v12, 0.0 }
 0x2af   : > { %1521 = vmax.xlane.f32.xlu2 %v1520_v34  ;;  %v1526_v34 = vsel %vm564_vm1, %v14282_v31, -inf }
 0x2b6   : > { %1533 = vmax.xlane.f32.xlu0 %v1532_v61  ;;  %v937_v61 = vpop.f32.mrf.mxu2 }
 0x2b7   : > { %v1439_v60 = vmul.f32 0.17677669, %v937_v61  ;;  %v14308_v61 = vadd.f32 %v1443_v28, %v14111_v56 }
 0x2be   : > { %v1018_v3 = vpop.f32.mrf.mxu2 }
 0x2c6   : > { %v1099_v11 = vpop.f32.mrf.mxu2 }
 0x2c7   : > { %5680 = vrot.lane.b32.xlu2 %v13548_v22, %s13422_s25  ;;  %v1445_v48 = vmul.f32 0.17677669, %v1099_v11 }
 0x2c9   : > { %v14387_v38 = vadd.f32 %v1445_v48, %v14111_v56 }
 0x2ca   : > { %5736 = vrot.lane.b32.xlu0 %v13567_v27, %s13422_s25 }
 0x2cb   : > { %19524 = vst [vmem:[#allocation119_spill] sm:$0xff] %v14387_v38 }
 0x2cc   : > { %1527 = vmax.xlane.f32.xlu1 %v1526_v34  ;;  %v14298_v34 = vadd.f32 %v1439_v60, %v14111_v56  ;;  %v1541_v60 = vsel %vm564_vm1, %v14308_v61, -inf }
 0x2ce   : > { %v1529_v1 = vsel %vm564_vm1, %v14298_v34, -inf }
 0x2e5   : > { %5678 = vrot.lane.b32.xlu1 %v13548_v22, %s13423_s26 }
 0x2ed   : > { %12697 = vrot.lane.b32.xlu1 %v12696_v36, %s13420_s24  ;;  %v14312_v36 = vpop.permute.xlu0 %3932 }
 0x2ee   : > { %19513 = vst [vmem:[#allocation108_spill] sm:$0xff] %v14312_v36 }
 0x2f0   : > { %1530 = vmax.xlane.f32.xlu2 %v1529_v1  ;;  %v1441_v1 = vmul.f32 0.17677669, %v991_v59  ;;  %v1442_v59 = vmul.f32 0.17677669, %v1018_v3 }
 0x2f2   : > { %v14321_v18 = vadd.f32 %v1441_v1, %v14111_v56  ;;  %v14333_v1 = vadd.f32 %v1442_v59, %v14111_v56 }
 0x2f4   : > { %1683 = vadd.xlane.f32.xlu0 %v1682_v19  ;;  %v1535_v19 = vsel %vm564_vm1, %v14321_v18, -inf }
 0x2f5   : > { %v14316_v22 = vpop.permute.xlu0 %3930 }
 0x2f6   : > { %19514 = vst [vmem:[#allocation109_spill] sm:$0xff] %v14316_v22 }
 0x2fc   : > { %1542 = vmax.xlane.f32.xlu0 %v1541_v60  ;;  %v14327_v60 = vpop.permute.xlu2 %12652 }
 0x2fd   : > { %v14323_v28 = vpop.permute.xlu0 %12647  ;;  %19516 = vst [vmem:[#allocation111_spill] sm:$0xff] %v14327_v60 }
 0x2fe   : > { %19515 = vst [vmem:[#allocation110_spill] sm:$0xff] %v14323_v28 }
 0x304   : > { %v1501_v22 = vpop.xlane.xlu2 %1500 }
 0x305   : > { %v1495_v36 = vpop.xlane.xlu0 %1494  ;;  %v1589_v15 = vsub.f32 %v14194_v29, %v1501_v22 }
 0x306   : > { %v1587_v7 = vsub.f32 %v14136_v16, %v1495_v36 }
 0x308   : > { %5652 = vrot.lane.b32.xlu2 %v13538_v20, %s13422_s25 }
 0x30d   : > { %v14329_v35 = vpop.permute.xlu0 %12667 }
 0x30e   : > { %19517 = vst [vmem:[#allocation112_spill] sm:$0xff] %v14329_v35  ;;  %v1126_v35 = vpop.f32.mrf.mxu3 }
 0x30f   : > { %v1446_v22 = vmul.f32 0.17677669, %v1126_v35  ;;  %v1620_v35 = vmul.f32 1.442695, %v1587_v7 }
 0x310   : > { %5650 = vrot.lane.b32.xlu0 %v13538_v20, %s13423_s26  ;;  %v1624_v20 = vmul.f32 1.442695, %v1589_v15 }
 0x311   : > { %v14348_v29 = vadd.f32 %v1446_v22, %v14111_v56 }
 0x312   : > { %12866 = vpow2.f32 %v1624_v20 }
 0x313   : > { %19518 = vst [vmem:[#allocation113_spill] sm:$0xff] %v14348_v29  ;;  %v1550_v59 = vsel %vm564_vm1, %v14348_v29, -inf  ;;  %12868 = vpow2.f32 %v1620_v35 }
 0x315   : > { %v14335_v55 = vpop.xlane.xlu0 %1506 }
 0x317   : > { %1536 = vmax.xlane.f32.xlu1 %v1535_v19  ;;  %v1538_v19 = vsel %vm564_vm1, %v14333_v1, -inf }
 0x318   : > { %v14341_v60 = vpop.eup %12866 }
 0x319   : > { %v1691_v15 = vsel %vm564_vm1, %v14341_v60, 0.0  ;;  %v14363_v22 = vpop.eup %12868 }
 0x31a   : > { %v1685_v16 = vsel %vm564_vm1, %v14363_v22, 0.0 }
 0x31d   : > { %v14343_v3 = vpop.xlane.xlu0 %1515 }
 0x325   : > { %v14350_v20 = vpop.permute.xlu0 %12687 }
 0x326   : > { %19519 = vst [vmem:[#allocation114_spill] sm:$0xff] %v14350_v20  ;;  %v1072_v20 = vpop.f32.mrf.mxu1 }
 0x327   : > { %v1444_v17 = vmul.f32 0.17677669, %v1072_v20 }
 0x329   : > { %v14372_v7 = vadd.f32 %v1444_v17, %v14111_v56 }
 0x330   : > { %5792 = vrot.lane.b32.xlu1 %v13589_v33, %s13422_s25 }
 0x331   : > { %1539 = vmax.xlane.f32.xlu2 %v1538_v19  ;;  %v14354_v19 = vpop.xlane.xlu0 %1524 }
 0x339   : > { %v14359_v28 = vpop.permute.xlu0 %5708 }
 0x33a   : > { %1692 = vadd.xlane.f32.xlu0 %v1691_v15  ;;  %19520 = vst [vmem:[#allocation115_spill] sm:$0xff] %v14359_v28  ;;  %v14361_v15 = vpop.permute.xlu1 %3960 }
 0x33b   : > { %19521 = vst [vmem:[#allocation116_spill] sm:$0xff] %v14361_v15  ;;  %v1544_v15 = vsel %vm564_vm1, %v14372_v7, -inf }
 0x342   : > { %1551 = vmax.xlane.f32.xlu0 %v1550_v59  ;;  %v14367_v59 = vpop.xlane.xlu0 %1533  ;;  %v1498_v36 = vpop.xlane.xlu1 %1497 }
 0x343   : > { %v1588_v28 = vsub.f32 %v14148_v2, %v1498_v36 }
 0x345   : > { %v1622_v40 = vmul.f32 1.442695, %v1588_v28 }
 0x347   : > { %12870 = vpow2.f32 %v1622_v40 }
 0x349   : > { %5790 = vrot.lane.b32.xlu2 %v13589_v33, %s13423_s26 }
 0x34a   : > { %v14374_v35 = vpop.permute.xlu0 %5736  ;;  %v14379_v33 = vpop.permute.xlu1 %12662 }
 0x34b   : > { %19522 = vst [vmem:[#allocation117_spill] sm:$0xff] %v14374_v35 }
 0x34c   : > { %19523 = vst [vmem:[#allocation118_spill] sm:$0xff] %v14379_v33 }
 0x352   : > { %v1510_v5 = vpop.xlane.xlu1 %1509 }
 0x353   : > { %v1592_v17 = vsub.f32 %v14220_v9, %v1510_v5 }
 0x355   : > { %v1630_v36 = vmul.f32 1.442695, %v1592_v17  ;;  %v1547_v17 = vsel %vm564_vm1, %v14387_v38, -inf }
 0x356   : > { %5904 = vrot.lane.b32.xlu0 %v13641_v46, %s13422_s25 }
 0x35a   : > { %1686 = vadd.xlane.f32.xlu1 %v1685_v16  ;;  %v14381_v16 = vpop.eup %12870 }
 0x35b   : > { %v1688_v2 = vsel %vm564_vm1, %v14381_v16, 0.0 }
 0x362   : > { %1545 = vmax.xlane.f32.xlu1 %v1544_v15 }
 0x367   : > { %v1684_v20 = vpop.xlane.xlu0 %1683 }
 0x368   : > { %12872 = vrcp.f32 %v1684_v20  ;;  %v1789_v33 = vand.u32 2147483648, %v1684_v20  ;;  %v1787_v40 = vand.u32 2147483647, %v1684_v20  ;;  %vm1783_vm4 = vweird.f32 %v1684_v20 }
 0x369   : > { %12874 = vpow2.f32 %v1630_v36  ;;  %v1207_v36 = vpop.f32.mrf.mxu3 }
 0x36a   : > { %v1790_v5 = vor.u32 1.1754944e-38, %v1789_v33  ;;  %vm1788_vm6 = vcmp.eq.f32.partialorder %v1787_v40, 8.507059e+37  ;;  %v1449_v33 = vmul.f32 0.17677669, %v1207_v36 }
 0x36e   : > { %v12873_v0 = vpop.eup %12872 }
 0x36f   : > { %v1779_v35 = vmul.f32 %v12873_v0, %v1684_v20  ;;  %vm1784_vm3 = vweird.f32 %v12873_v0  ;;  %v14395_v48 = vpop.eup %12874 }
 0x370   : > { %vm1785_vm5 = vmor %vm1783_vm4, %vm1784_vm3 }
 0x371   : > { %v1780_v15 = vsub.f32 1.0, %v1779_v35 }
 0x372   : > { %1689 = vadd.xlane.f32.xlu2 %v1688_v2  ;;  %v12574_v2 = vunpack.i.l.bf16 %v13850_v49 }
 0x373   : > { %v1781_v28 = vmul.f32 %v12873_v0, %v1780_v15  ;;  %v14407_v15 = vpop.permute.xlu2 %12657 }
 0x374   : > { %19527 = vst [vmem:[#allocation122_spill] sm:$0xff] %v14407_v15 }
 0x375   : > { %v1782_v29 = vadd.f32 %v12873_v0, %v1781_v28 }
 0x377   : > { %v1786_v9 = vsel %vm1785_vm5, %v12873_v0, %v1782_v29  ;;  %v1700_v0 = vsel %vm564_vm1, %v14395_v48, 0.0  ;;  %v14400_v29 = vpop.permute.xlu1 %12677 }
 0x378   : > { %v1791_v11 = vsel %vm1788_vm6, %v1790_v5, %v1786_v9  ;;  %19525 = vst [vmem:[#allocation120_spill] sm:$0xff] %v14400_v29 }
 0x379   : > { %v2226_v35 = vmul.f32 %v14303_v12, %v1791_v11  ;;  %v14403_v12 = vadd.f32 %v1449_v33, %v14111_v56  ;;  %v1153_v33 = vpop.f32.mrf.mxu1 }
 0x37a   : > { %1548 = vmax.xlane.f32.xlu2 %v1547_v17 }
 0x37b   : > { %5706 = vrot.lane.b32.xlu1 %v13557_v25, %s13423_s26  ;;  %12108 = vmatmul.msk.f32.vlgmr.msrb.gmra.mxu3 %vm564_vm1, %v2226_v35  ;;  %19526 = vst [vmem:[#allocation121_spill] sm:$0xff] %v14403_v12  ;;  %v1559_v20 = vsel %vm564_vm1, %v14403_v12, -inf  ;;  %v1504_v40 = vpop.xlane.xlu2 %1503 }
 0x37c   : > { %2435 = vmatpush.msrb.mxu3 %v12574_v2  ;;  %v1590_v9 = vsub.f32 %v14239_v21, %v1504_v40  ;;  %v14420_v2 = vpop.xlane.xlu0 %1542 }
 0x37e   : > { %v1626_v11 = vmul.f32 1.442695, %v1590_v9 }
 0x37f   : > { %v1519_v28 = vpop.xlane.xlu1 %1518 }
 0x380   : > { %1701 = vadd.xlane.f32.xlu0 %v1700_v0  ;;  %12876 = vpow2.f32 %v1626_v11 }
 0x383   : > { %v14418_v35 = vpop.xlane.xlu2 %1512 }
 0x384   : > { %v14428_v40 = vpop.permute.xlu0 %5650 }
 0x385   : > { %19530 = vst [vmem:[#allocation125_spill] sm:$0xff] %v14428_v40  ;;  %v1595_v40 = vsub.f32 %v14254_v24, %v1519_v28 }
 0x386   : > { %v14422_v36 = vpop.eup %12876 }
 0x387   : > { %v14409_v5 = vpop.permute.xlu1 %12682  ;;  %v1694_v21 = vsel %vm564_vm1, %v14422_v36, 0.0 }
 0x388   : > { %1560 = vmax.xlane.f32.xlu0 %v1559_v20  ;;  %19528 = vst [vmem:[#allocation123_spill] sm:$0xff] %v14409_v5  ;;  %v1447_v20 = vmul.f32 0.17677669, %v1153_v33 }
 0x38a   : > { %v14433_v11 = vadd.f32 %v1447_v20, %v14111_v56 }
 0x38b   : > { %v14430_v9 = vpop.permute.xlu2 %12672 }
 0x38c   : > { %19531 = vst [vmem:[#allocation126_spill] sm:$0xff] %v14430_v9  ;;  %v1553_v29 = vsel %vm564_vm1, %v14433_v11, -inf }
 0x38f   : > { %v14414_v17 = vpop.permute.xlu1 %12692 }
 0x390   : > { %19529 = vst [vmem:[#allocation124_spill] sm:$0xff] %v14414_v17  ;;  %v1591_v17 = vsub.f32 %v14208_v54, %v14335_v55  ;;  %v1180_v55 = vpop.f32.mrf.mxu2 }
 0x391   : > { %v1448_v38 = vmul.f32 0.17677669, %v1180_v55  ;;  %v12580_v55 = vunpack.i.h.bf16 %v13834_v44 }
 0x392   : > { %5820 = vrot.lane.b32.xlu2 %v13603_v37, %s13422_s25  ;;  %v1628_v33 = vmul.f32 1.442695, %v1591_v17 }
 0x397   : > { %v14424_v0 = vpop.xlane.xlu1 %1527 }
 0x39c   : > { %5818 = vrot.lane.b32.xlu0 %v13603_v37, %s13423_s26  ;;  %v14441_v37 = vpop.xlane.xlu2 %1521 }
 0x39f   : > { %v14437_v5 = vpop.permute.xlu1 %5678 }
 0x3a0   : > { %19532 = vst [vmem:[#allocation127_spill] sm:$0xff] %v14437_v5  ;;  %v1636_v5 = vmul.f32 1.442695, %v1595_v40 }
 0x3a4   : > { %v14448_v52 = vpop.permute.xlu2 %5680 }
 0x3a5   : > { %1695 = vadd.xlane.f32.xlu1 %v1694_v21  ;;  %19534 = vst [vmem:[#allocation129_spill] sm:$0xff] %v14448_v52  ;;  %v14455_v52 = vadd.f32 %v1448_v38, %v14111_v56 }
 0x3a7   : > { %v14444_v20 = vpop.permute.xlu1 %12697 }
 0x3a8   : > { %19533 = vst [vmem:[#allocation128_spill] sm:$0xff] %v14444_v20 }
 0x3ac   : > { %v14459_v20 = vpop.xlane.xlu2 %1530 }
 0x3ad   : > { %v1693_v15 = vpop.xlane.xlu0 %1692  ;;  %1554 = vmax.xlane.f32.xlu1 %v1553_v29 }
 0x3ae   : > { %12878 = vrcp.f32 %v1693_v15  ;;  %v1831_v12 = vand.u32 2147483648, %v1693_v15  ;;  %v1829_v29 = vand.u32 2147483647, %v1693_v15  ;;  %vm1825_vm8 = vweird.f32 %v1693_v15 }
 0x3af   : > { %12880 = vpow2.f32 %v1628_v33  ;;  %v14452_v28 = vpop.xlane.xlu1 %1536 }
 0x3b0   : > { %12882 = vpow2.f32 %v1636_v5  ;;  %v1832_v24 = vor.u32 1.1754944e-38, %v1831_v12  ;;  %vm1830_vm10 = vcmp.eq.f32.partialorder %v1829_v29, 8.507059e+37  ;;  %v1288_v5 = vpop.f32.mrf.mxu3 }
 0x3b1   : > { %v1452_v12 = vmul.f32 0.17677669, %v1288_v5 }
 0x3b4   : > { %v12879_v21 = vpop.eup %12878 }
 0x3b5   : > { %v1821_v9 = vmul.f32 %v12879_v21, %v1693_v15  ;;  %v14446_v25 = vpop.eup %12880  ;;  %vm1826_vm7 = vweird.f32 %v12879_v21 }
 0x3b6   : > { %v1697_v33 = vsel %vm564_vm1, %v14446_v25, 0.0  ;;  %vm1827_vm9 = vmor %vm1825_vm8, %vm1826_vm7  ;;  %v14462_v15 = vpop.eup %12882 }
 0x3b7   : > { %v1822_v54 = vsub.f32 1.0, %v1821_v9  ;;  %v1709_v38 = vsel %vm564_vm1, %v14462_v15, 0.0 }
 0x3b9   : > { %v1823_v17 = vmul.f32 %v12879_v21, %v1822_v54 }
 0x3bb   : > { %v1824_v26 = vadd.f32 %v12879_v21, %v1823_v17  ;;  %1698 = vadd.xlane.f32.xlu2 %v1697_v33  ;;  %v14475_v17 = vpop.permute.xlu2 %5652 }
 0x3bc   : > { %19537 = vst [vmem:[#allocation132_spill] sm:$0xff] %v14475_v17 }
 0x3bd   : > { %v1828_v9 = vsel %vm1827_vm9, %v12879_v21, %v1824_v26  ;;  %v1556_v26 = vsel %vm564_vm1, %v14455_v52, -inf  ;;  %v14466_v21 = vpop.permute.xlu1 %5792 }
 0x3be   : > { %v1833_v40 = vsel %vm1830_vm10, %v1832_v24, %v1828_v9  ;;  %19535 = vst [vmem:[#allocation130_spill] sm:$0xff] %v14466_v21 }
 0x3bf   : > { %v2229_v54 = vmul.f32 %v14341_v60, %v1833_v40  ;;  %v14473_v60 = vadd.f32 %v1452_v12, %v14111_v56 }
 0x3c1   : > { %12111 = vmatmul.msk.f32.vlgmr.msra.gmra.mxu3 %vm564_vm1, %v2229_v54  ;;  %19536 = vst [vmem:[#allocation131_spill] sm:$0xff] %v14473_v60  ;;  %v1568_v29 = vsel %vm564_vm1, %v14473_v60, -inf }
 0x3c2   : > { %2513 = vmatpush.msra.mxu3 %v12580_v55 }
 0x3c3   : > { %1557 = vmax.xlane.f32.xlu2 %v1556_v26  ;;  %v14479_v24 = vpop.xlane.xlu2 %1539 }
 0x3c6   : > { %1710 = vadd.xlane.f32.xlu0 %v1709_v38  ;;  %5734 = vrot.lane.b32.xlu1 %v13567_v27, %s13423_s26 }
 0x3cb   : > { %v14485_v21 = vpop.permute.xlu2 %5790 }
 0x3cc   : > { %19538 = vst [vmem:[#allocation133_spill] sm:$0xff] %v14485_v21 }
 0x3cd   : > { %v1687_v33 = vpop.xlane.xlu1 %1686 }
 0x3ce   : > { %1569 = vmax.xlane.f32.xlu0 %v1568_v29  ;;  %12884 = vrcp.f32 %v1687_v33  ;;  %v1803_v55 = vand.u32 2147483648, %v1687_v33  ;;  %v1801_v26 = vand.u32 2147483647, %v1687_v33  ;;  %vm1797_vm12 = vweird.f32 %v1687_v33 }
 0x3cf   : > { %v1593_v29 = vsub.f32 %v14244_v23, %v14418_v35 }
 0x3d0   : > { %v1804_v12 = vor.u32 1.1754944e-38, %v1803_v55  ;;  %vm1802_vm14 = vcmp.eq.f32.partialorder %v1801_v26, 8.507059e+37 }
 0x3d1   : > { %v1632_v60 = vmul.f32 1.442695, %v1593_v29 }
 0x3d3   : > { %12886 = vpow2.f32 %v1632_v60  ;;  %v1594_v60 = vsub.f32 %v14215_v8, %v14343_v3  ;;  %v12579_v8 = vunpack.i.l.bf16 %v13834_v44 }
 0x3d4   : > { %v12885_v9 = vpop.eup %12884 }
 0x3d5   : > { %v1793_v40 = vmul.f32 %v12885_v9, %v1687_v33  ;;  %vm1798_vm11 = vweird.f32 %v12885_v9  ;;  %v14492_v33 = vpop.xlane.xlu0 %1551  ;;  %v1634_v21 = vmul.f32 1.442695, %v1594_v60 }
 0x3d6   : > { %vm1799_vm13 = vmor %vm1797_vm12, %vm1798_vm11 }
 0x3d7   : > { %v1794_v54 = vsub.f32 1.0, %v1793_v40 }
 0x3d9   : > { %v1795_v5 = vmul.f32 %v12885_v9, %v1794_v54  ;;  %v12575_v54 = vunpack.i.h.bf16 %v13850_v49  ;;  %v14494_v35 = vpop.eup %12886 }
 0x3db   : > { %v1796_v38 = vadd.f32 %v12885_v9, %v1795_v5  ;;  %5848 = vrot.lane.b32.xlu2 %v13618_v39, %s13422_s25  ;;  %v1703_v5 = vsel %vm564_vm1, %v14494_v35, 0.0 }
 0x3dd   : > { %v1800_v17 = vsel %vm1799_vm13, %v12885_v9, %v1796_v38  ;;  %v14496_v9 = vpop.permute.xlu0 %5904 }
 0x3de   : > { %v1805_v27 = vsel %vm1802_vm14, %v1804_v12, %v1800_v17  ;;  %19539 = vst [vmem:[#allocation134_spill] sm:$0xff] %v14496_v9 }
 0x3df   : > { %v2227_v40 = vmul.f32 %v14363_v22, %v1805_v27  ;;  %v1234_v27 = vpop.f32.mrf.mxu1 }
 0x3e0   : > { %v1450_v49 = vmul.f32 0.17677669, %v1234_v27 }
 0x3e1   : > { %12109 = vmatmul.msk.f32.vlgmr.msrb.gmra.mxu1 %vm564_vm1, %v2227_v40 }
 0x3e2   : > { %5846 = vrot.lane.b32.xlu0 %v13618_v39, %s13423_s26  ;;  %2461 = vmatpush.msrb.mxu1 %v12575_v54  ;;  %v14503_v54 = vadd.f32 %v1450_v49, %v14111_v56 }
 0x3e5   : > { %v1690_v23 = vpop.xlane.xlu2 %1689 }
 0x3e6   : > { %12888 = vrcp.f32 %v1690_v23  ;;  %v1817_v26 = vand.u32 2147483648, %v1690_v23  ;;  %v1815_v12 = vand.u32 2147483647, %v1690_v23  ;;  %vm1811_vm2 = vweird.f32 %v1690_v23 }
 0x3e8   : > { %v1818_v27 = vor.u32 1.1754944e-38, %v1817_v26  ;;  %vm1816_vm4 = vcmp.eq.f32.partialorder %v1815_v12, 8.507059e+37 }
 0x3ec   : > { %v12889_v17 = vpop.eup %12888 }
 0x3ed   : > { %v1807_v22 = vmul.f32 %v12889_v17, %v1690_v23  ;;  %vm1812_vm15 = vweird.f32 %v12889_v17  ;;  %v1598_v23 = vsub.f32 %v14282_v31, %v14424_v0 }
 0x3ee   : > { %vm1813_vm3 = vmor %vm1811_vm2, %vm1812_vm15 }
 0x3ef   : > { %v1808_v55 = vsub.f32 1.0, %v1807_v22  ;;  %v1642_v26 = vmul.f32 1.442695, %v1598_v23  ;;  %v14524_v23 = vpop.xlane.xlu1 %1545 }
 0x3f0   : > { %1704 = vadd.xlane.f32.xlu1 %v1703_v5 }
 0x3f1   : > { %v1809_v38 = vmul.f32 %v12889_v17, %v1808_v55  ;;  %v1562_v55 = vsel %vm564_vm1, %v14503_v54, -inf }
 0x3f3   : > { %v1810_v29 = vadd.f32 %v12889_v17, %v1809_v38  ;;  %v1702_v40 = vpop.xlane.xlu0 %1701 }
 0x3f4   : > { %12890 = vrcp.f32 %v1702_v40  ;;  %v1873_v38 = vand.u32 2147483648, %v1702_v40  ;;  %v1871_v60 = vand.u32 2147483647, %v1702_v40  ;;  %vm1867_vm6 = vweird.f32 %v1702_v40 }
 0x3f5   : > { %v1814_v22 = vsel %vm1813_vm3, %v12889_v17, %v1810_v29  ;;  %12892 = vpow2.f32 %v1634_v21 }
 0x3f6   : > { %v1819_v9 = vsel %vm1816_vm4, %v1818_v27, %v1814_v22  ;;  %12894 = vpow2.f32 %v1642_v26  ;;  %vm1872_vm8 = vcmp.eq.f32.partialorder %v1871_v60, 8.507059e+37  ;;  %v14539_v60 = vpop.xlane.xlu2 %1548 }
 0x3f7   : > { %v2228_v5 = vmul.f32 %v14381_v16, %v1819_v9  ;;  %v1261_v16 = vpop.f32.mrf.mxu2  ;;  %v1874_v9 = vor.u32 1.1754944e-38, %v1873_v38  ;;  %v14533_v26 = vpop.permute.xlu1 %5706 }
 0x3f8   : > { %1563 = vmax.xlane.f32.xlu1 %v1562_v55  ;;  %v1451_v21 = vmul.f32 0.17677669, %v1261_v16  ;;  %v12599_v55 = vunpack.i.l.bf16 %v13963_v45  ;;  %19540 = vst [vmem:[#allocation135_spill] sm:$0xff] %v14533_v26 }
 0x3f9   : > { %12110 = vmatmul.msk.f32.vlgmr.msrb.gmra.mxu2 %vm564_vm1, %v2228_v5 }
 0x3fa   : > { %v12891_v3 = vpop.eup %12890  ;;  %2487 = vmatpush.msrb.mxu2 %v12579_v8  ;;  %v14520_v5 = vadd.f32 %v1451_v21, %v14111_v56  ;;  %v1369_v8 = vpop.f32.mrf.mxu3 }
 0x3fb   : > { %v1863_v17 = vmul.f32 %v12891_v3, %v1702_v40  ;;  %vm1868_vm5 = vweird.f32 %v12891_v3  ;;  %v14512_v29 = vpop.eup %12892 }
 0x3fc   : > { %vm1869_vm7 = vmor %vm1867_vm6, %vm1868_vm5  ;;  %v1706_v31 = vsel %vm564_vm1, %v14512_v29, 0.0  ;;  %v14522_v40 = vpop.eup %12894 }
 0x3fd   : > { %v1864_v49 = vsub.f32 1.0, %v1863_v17  ;;  %v1718_v17 = vsel %vm564_vm1, %v14522_v40, 0.0 }
 0x3ff   : > { %v1865_v12 = vmul.f32 %v12891_v3, %v1864_v49 }
 0x401   : > { %v1866_v44 = vadd.f32 %v12891_v3, %v1865_v12 }
 0x403   : > { %v1870_v27 = vsel %vm1869_vm7, %v12891_v3, %v1866_v44  ;;  %v1455_v3 = vmul.f32 0.17677669, %v1369_v8  ;;  %v1596_v8 = vsub.f32 %v14270_v41, %v14441_v37 }
 0x404   : > { %1707 = vadd.xlane.f32.xlu2 %v1706_v31  ;;  %v1875_v0 = vsel %vm1872_vm8, %v1874_v9, %v1870_v27 }
 0x405   : > { %v2232_v22 = vmul.f32 %v14395_v48, %v1875_v0  ;;  %v1565_v48 = vsel %vm564_vm1, %v14520_v5, -inf  ;;  %v14531_v49 = vadd.f32 %v1455_v3, %v14111_v56  ;;  %v14543_v0 = vpop.permute.xlu2 %5820 }
 0x406   : > { %19541 = vst [vmem:[#allocation136_spill] sm:$0xff] %v14543_v0 }
 0x407   : > { %12114 = vmatmul.msk.f32.vlgmr.msrb.gmra.mxu3 %vm564_vm1, %v2232_v22  ;;  %v1577_v38 = vsel %vm564_vm1, %v14531_v49, -inf }
 0x408   : > { %2591 = vmatpush.msrb.mxu3 %v12599_v55 }
 0x40c   : > { %1719 = vadd.xlane.f32.xlu0 %v1718_v17  ;;  %1566 = vmax.xlane.f32.xlu2 %v1565_v48  ;;  %v14549_v17 = vpop.xlane.xlu0 %1560 }
 0x411   : > { %5764 = vrot.lane.b32.xlu1 %v13578_v30, %s13422_s25 }
 0x414   : > { %1578 = vmax.xlane.f32.xlu0 %v1577_v38  ;;  %v14554_v37 = vpop.permute.xlu0 %5818 }
 0x415   : > { %19542 = vst [vmem:[#allocation137_spill] sm:$0xff] %v14554_v37 }
 0x418   : > { %v1696_v12 = vpop.xlane.xlu1 %1695 }
 0x419   : > { %12896 = vrcp.f32 %v1696_v12  ;;  %v1845_v21 = vand.u32 2147483648, %v1696_v12  ;;  %v1843_v31 = vand.u32 2147483647, %v1696_v12  ;;  %vm1839_vm10 = vweird.f32 %v1696_v12 }
 0x41b   : > { %v1846_v55 = vor.u32 1.1754944e-38, %v1845_v21  ;;  %vm1844_vm12 = vcmp.eq.f32.partialorder %v1843_v31, 8.507059e+37  ;;  %v1315_v21 = vpop.f32.mrf.mxu1 }
 0x41f   : > { %v12897_v16 = vpop.eup %12896 }
 0x420   : > { %v1835_v44 = vmul.f32 %v12897_v16, %v1696_v12  ;;  %vm1840_vm9 = vweird.f32 %v12897_v16 }
 0x421   : > { %vm1841_vm11 = vmor %vm1839_vm10, %vm1840_vm9 }
 0x422   : > { %v1836_v9 = vsub.f32 1.0, %v1835_v44  ;;  %v12594_v44 = vunpack.i.l.bf16 %v13959_v14 }
 0x424   : > { %v1837_v27 = vmul.f32 %v12897_v16, %v1836_v9  ;;  %5762 = vrot.lane.b32.xlu2 %v13578_v30, %s13423_s26  ;;  %v1638_v9 = vmul.f32 1.442695, %v1596_v8 }
 0x426   : > { %v1838_v22 = vadd.f32 %v12897_v16, %v1837_v27 }
 0x428   : > { %v1842_v3 = vsel %vm1841_vm11, %v12897_v16, %v1838_v22  ;;  %5876 = vrot.lane.b32.xlu0 %v13630_v43, %s13422_s25  ;;  %v1453_v22 = vmul.f32 0.17677669, %v1315_v21 }
 0x429   : > { %v1847_v48 = vsel %vm1844_vm12, %v1846_v55, %v1842_v3 }
 0x42a   : > { %v2230_v38 = vmul.f32 %v14422_v36, %v1847_v48  ;;  %v14563_v21 = vadd.f32 %v1453_v22, %v14111_v56 }
 0x42c   : > { %12112 = vmatmul.msk.f32.vlgmr.msra.gmra.mxu1 %vm564_vm1, %v2230_v38  ;;  %v1597_v38 = vsub.f32 %v14249_v13, %v14354_v19  ;;  %v12595_v13 = vunpack.i.h.bf16 %v13959_v14 }
 0x42d   : > { %2539 = vmatpush.msra.mxu1 %v12594_v44 }
 0x42e   : > { %v1699_v12 = vpop.xlane.xlu2 %1698 }
 0x42f   : > { %12898 = vrcp.f32 %v1699_v12  ;;  %v1859_v55 = vand.u32 2147483648, %v1699_v12  ;;  %v1857_v48 = vand.u32 2147483647, %v1699_v12  ;;  %vm1853_vm14 = vweird.f32 %v1699_v12 }
 0x430   : > { %12900 = vpow2.f32 %v1638_v9 }
 0x431   : > { %v1860_v9 = vor.u32 1.1754944e-38, %v1859_v55  ;;  %vm1858_vm2 = vcmp.eq.f32.partialorder %v1857_v48, 8.507059e+37  ;;  %v12610_v48 = vunpack.i.h.bf16 %v13944_v4 }
 0x435   : > { %v12899_v41 = vpop.eup %12898 }
 0x436   : > { %v14556_v16 = vpop.eup %12900  ;;  %v1849_v27 = vmul.f32 %v12899_v41, %v1699_v12  ;;  %vm1854_vm13 = vweird.f32 %v12899_v41  ;;  %v1571_v12 = vsel %vm564_vm1, %v14563_v21, -inf }
 0x437   : > { %v1712_v8 = vsel %vm564_vm1, %v14556_v16, 0.0  ;;  %vm1855_vm15 = vmor %vm1853_vm14, %vm1854_vm13 }
 0x438   : > { %v1850_v31 = vsub.f32 1.0, %v1849_v27  ;;  %v1640_v27 = vmul.f32 1.442695, %v1597_v38 }
 0x439   : > { %v1711_v36 = vpop.xlane.xlu0 %1710 }
 0x43a   : > { %v1851_v3 = vmul.f32 %v12899_v41, %v1850_v31  ;;  %12902 = vrcp.f32 %v1711_v36  ;;  %v1601_v31 = vsub.f32 %v14321_v18, %v14452_v28  ;;  %vm1909_vm4 = vweird.f32 %v1711_v36 }
 0x43b   : > { %1713 = vadd.xlane.f32.xlu1 %v1712_v8  ;;  %12904 = vpow2.f32 %v1640_v27  ;;  %v1913_v8 = vand.u32 2147483647, %v1711_v36 }
 0x43c   : > { %v1852_v44 = vadd.f32 %v12899_v41, %v1851_v3  ;;  %v1648_v22 = vmul.f32 1.442695, %v1601_v31 }
 0x43d   : > { %vm1914_vm6 = vcmp.eq.f32.partialorder %v1913_v8, 8.507059e+37 }
 0x43e   : > { %v1856_v37 = vsel %vm1855_vm15, %v12899_v41, %v1852_v44  ;;  %12906 = vpow2.f32 %v1648_v22 }
 0x43f   : > { %v1861_v26 = vsel %vm1858_vm2, %v1860_v9, %v1856_v37  ;;  %v1915_v37 = vand.u32 2147483648, %v1711_v36 }
 0x440   : > { %v12903_v0 = vpop.eup %12902  ;;  %v2231_v39 = vmul.f32 %v14446_v25, %v1861_v26 }
 0x441   : > { %v1905_v19 = vmul.f32 %v12903_v0, %v1711_v36  ;;  %vm1910_vm3 = vweird.f32 %v12903_v0  ;;  %v1916_v25 = vor.u32 1.1754944e-38, %v1915_v37  ;;  %v14572_v14 = vpop.eup %12904  ;;  %v14604_v8 = vpop.xlane.xlu0 %1569 }
 0x442   : > { %12113 = vmatmul.msk.f32.vlgmr.msra.gmra.mxu2 %vm564_vm1, %v2231_v39  ;;  %vm1911_vm5 = vmor %vm1909_vm4, %vm1910_vm3  ;;  %v1342_v39 = vpop.f32.mrf.mxu2  ;;  %v1715_v44 = vsel %vm564_vm1, %v14572_v14, 0.0 }
 0x443   : > { %v1906_v41 = vsub.f32 1.0, %v1905_v19  ;;  %2565 = vmatpush.msra.mxu2 %v12595_v13  ;;  %1572 = vmax.xlane.f32.xlu1 %v1571_v12  ;;  %v1454_v38 = vmul.f32 0.17677669, %v1342_v39  ;;  %v14594_v19 = vpop.xlane.xlu2 %1557 }
 0x444   : > { %v14579_v36 = vpop.eup %12906 }
 0x445   : > { %v1907_v55 = vmul.f32 %v12903_v0, %v1906_v41  ;;  %v14582_v9 = vadd.f32 %v1454_v38, %v14111_v56 }
 0x447   : > { %v1908_v18 = vadd.f32 %v12903_v0, %v1907_v55  ;;  %v1574_v27 = vsel %vm564_vm1, %v14582_v9, -inf }
 0x449   : > { %v1912_v28 = vsel %vm1911_vm5, %v12903_v0, %v1908_v18  ;;  %v1727_v0 = vsel %vm564_vm1, %v14579_v36, 0.0 }
 0x44a   : > { %v1917_v26 = vsel %vm1914_vm6, %v1916_v25, %v1912_v28 }
 0x44b   : > { %v2235_v3 = vmul.f32 %v14462_v15, %v1917_v26  ;;  %v14586_v15 = vpop.xlane.xlu1 %1554  ;;  %v14602_v55 = vpop.permute.xlu2 %5848 }
 0x44c   : > { %19544 = vst [vmem:[#allocation139_spill] sm:$0xff] %v14602_v55 }
 0x44d   : > { %12117 = vmatmul.msk.f32.vlgmr.msra.gmra.mxu3 %vm564_vm1, %v2235_v3  ;;  %1716 = vadd.xlane.f32.xlu2 %v1715_v44  ;;  %v1599_v3 = vsub.f32 %v14298_v34, %v14459_v20  ;;  %v12600_v44 = vunpack.i.h.bf16 %v13963_v45  ;;  %v1396_v20 = vpop.f32.mrf.mxu1 }
 0x44e   : > { %2669 = vmatpush.msra.mxu3 %v12610_v48 }
 0x452   : > { %1728 = vadd.xlane.f32.xlu0 %v1727_v0 }
 0x453   : > { %v14590_v31 = vpop.permute.xlu1 %5734 }
 0x454   : > { %19543 = vst [vmem:[#allocation138_spill] sm:$0xff] %v14590_v31  ;;  %v14610_v0 = vpop.permute.xlu0 %5846 }
 0x455   : > { %1575 = vmax.xlane.f32.xlu2 %v1574_v27  ;;  %19545 = vst [vmem:[#allocation140_spill] sm:$0xff] %v14610_v0 }
 0x45c   : > { %5902 = vrot.lane.b32.xlu1 %v13641_v46, %s13423_s26 }
 0x463   : > { %v1705_v13 = vpop.xlane.xlu1 %1704 }
 0x464   : > { %12908 = vrcp.f32 %v1705_v13  ;;  %v1887_v37 = vand.u32 2147483648, %v1705_v13  ;;  %v1885_v25 = vand.u32 2147483647, %v1705_v13  ;;  %vm1881_vm8 = vweird.f32 %v1705_v13 }
 0x466   : > { %6014 = vrot.lane.b32.xlu0 %v13702_v63, %s13423_s26  ;;  %v1888_v28 = vor.u32 1.1754944e-38, %v1887_v37  ;;  %vm1886_vm10 = vcmp.eq.f32.partialorder %v1885_v25, 8.507059e+37  ;;  %v1600_v25 = vsub.f32 %v14275_v57, %v14367_v59 }
 0x46a   : > { %v12909_v12 = vpop.eup %12908 }
 0x46b   : > { %v1877_v41 = vmul.f32 %v12909_v12, %v1705_v13  ;;  %vm1882_vm7 = vweird.f32 %v12909_v12 }
 0x46c   : > { %vm1883_vm9 = vmor %vm1881_vm8, %vm1882_vm7 }
 0x46d   : > { %v1878_v22 = vsub.f32 1.0, %v1877_v41  ;;  %6016 = vrot.lane.b32.xlu2 %v13702_v63, %s13422_s25  ;;  %v1644_v41 = vmul.f32 1.442695, %v1599_v3 }
 0x46e   : > { %6044 = vrot.lane.b32.xlu0 %v13726_v6, %s13422_s25 }
 0x46f   : > { %v1879_v18 = vmul.f32 %v12909_v12, %v1878_v22 }
 0x471   : > { %v1880_v39 = vadd.f32 %v12909_v12, %v1879_v18 }
 0x473   : > { %v1884_v26 = vsel %vm1883_vm9, %v12909_v12, %v1880_v39  ;;  %v1456_v39 = vmul.f32 0.17677669, %v1396_v20 }
 0x474   : > { %v1889_v48 = vsel %vm1886_vm10, %v1888_v28, %v1884_v26 }
 0x475   : > { %v2233_v38 = vmul.f32 %v14494_v35, %v1889_v48  ;;  %v1604_v48 = vsub.f32 %v14372_v7, %v14524_v23  ;;  %v14623_v59 = vadd.f32 %v1456_v39, %v14111_v56  ;;  %v1423_v39 = vpop.f32.mrf.mxu2 }
 0x477   : > { %v1708_v27 = vpop.xlane.xlu2 %1707  ;;  %12115 = vmatmul.msk.f32.vlgmr.msrb.gmra.mxu1 %vm564_vm1, %v2233_v38  ;;  %v1654_v20 = vmul.f32 1.442695, %v1604_v48  ;;  %v14645_v48 = vpop.xlane.xlu1 %1563 }
 0x478   : > { %12910 = vrcp.f32 %v1708_v27  ;;  %2617 = vmatpush.msrb.mxu1 %v12600_v44  ;;  %v1901_v35 = vand.u32 2147483648, %v1708_v27  ;;  %v1899_v45 = vand.u32 2147483647, %v1708_v27  ;;  %vm1895_vm12 = vweird.f32 %v1708_v27 }
 0x479   : > { %12912 = vpow2.f32 %v1644_v41 }
 0x47a   : > { %v1902_v38 = vor.u32 1.1754944e-38, %v1901_v35  ;;  %vm1900_vm14 = vcmp.eq.f32.partialorder %v1899_v45, 8.507059e+37 }
 0x47e   : > { %v12911_v13 = vpop.eup %12910 }
 0x47f   : > { %v1891_v12 = vmul.f32 %v12911_v13, %v1708_v27  ;;  %v1720_v22 = vpop.xlane.xlu0 %1719  ;;  %v14613_v34 = vpop.eup %12912  ;;  %vm1896_vm11 = vweird.f32 %v12911_v13  ;;  %v12609_v27 = vunpack.i.l.bf16 %v13944_v4 }
 0x480   : > { %12914 = vrcp.f32 %v1720_v22  ;;  %v1721_v26 = vsel %vm564_vm1, %v14613_v34, 0.0  ;;  %vm1897_vm13 = vmor %vm1895_vm12, %vm1896_vm11  ;;  %v1955_v7 = vand.u32 2147483647, %v1720_v22  ;;  %vm1951_vm2 = vweird.f32 %v1720_v22 }
 0x481   : > { %v1892_v37 = vsub.f32 1.0, %v1891_v12  ;;  %v1646_v12 = vmul.f32 1.442695, %v1600_v25  ;;  %v12619_v25 = vunpack.i.l.bf16 %v14081_v51 }
 0x482   : > { %vm1956_vm4 = vcmp.eq.f32.partialorder %v1955_v7, 8.507059e+37 }
 0x483   : > { %v1893_v18 = vmul.f32 %v12911_v13, %v1892_v37  ;;  %12916 = vpow2.f32 %v1646_v12 }
 0x484   : > { %12918 = vpow2.f32 %v1654_v20 }
 0x485   : > { %v1894_v28 = vadd.f32 %v12911_v13, %v1893_v18  ;;  %v1957_v18 = vand.u32 2147483648, %v1720_v22 }
 0x486   : > { %v12915_v3 = vpop.eup %12914  ;;  %1722 = vadd.xlane.f32.xlu1 %v1721_v26 }
 0x487   : > { %v1898_v44 = vsel %vm1897_vm13, %v12911_v13, %v1894_v28  ;;  %v1947_v41 = vmul.f32 %v12915_v3, %v1720_v22  ;;  %vm1952_vm15 = vweird.f32 %v12915_v3  ;;  %v1580_v13 = vsel %vm564_vm1, %v14623_v59, -inf }
 0x488   : > { %v1903_v37 = vsel %vm1900_vm14, %v1902_v38, %v1898_v44  ;;  %vm1953_vm3 = vmor %vm1951_vm2, %vm1952_vm15  ;;  %v1457_v22 = vmul.f32 0.17677669, %v1423_v39  ;;  %v14647_v38 = vpop.permute.xlu1 %5764  ;;  %v14653_v44 = vpop.xlane.xlu2 %1566 }
 0x489   : > { %v1948_v0 = vsub.f32 1.0, %v1947_v41  ;;  %v2234_v57 = vmul.f32 %v14512_v29, %v1903_v37  ;;  %v1958_v29 = vor.u32 1.1754944e-38, %v1957_v18  ;;  %v14630_v45 = vpop.eup %12916  ;;  %19546 = vst [vmem:[#allocation141_spill] sm:$0xff] %v14647_v38  ;;  %v14657_v37 = vpop.xlane.xlu0 %1578 }
 0x48a   : > { %v1724_v28 = vsel %vm564_vm1, %v14630_v45, 0.0 }
 0x48b   : > { %v1949_v31 = vmul.f32 %v12915_v3, %v1948_v0  ;;  %12116 = vmatmul.msk.f32.vlgmr.msrb.gmra.mxu2 %vm564_vm1, %v2234_v57 }
 0x48c   : > { %2643 = vmatpush.msrb.mxu2 %v12609_v27 }
 0x48d   : > { %v1950_v23 = vadd.f32 %v12915_v3, %v1949_v31  ;;  %v14634_v31 = vpop.eup %12918 }
 0x48e   : > { %1581 = vmax.xlane.f32.xlu1 %v1580_v13  ;;  %v1736_v26 = vsel %vm564_vm1, %v14634_v31, 0.0 }
 0x48f   : > { %v1954_v35 = vsel %vm1953_vm3, %v12915_v3, %v1950_v23 }
 0x490   : > { %v1959_v4 = vsel %vm1956_vm4, %v1958_v29, %v1954_v35  ;;  %v14661_v27 = vpop.permute.xlu2 %5762  ;;  %v1602_v29 = vsub.f32 %v14333_v1, %v14479_v24 }
 0x491   : > { %v2238_v0 = vmul.f32 %v14522_v40, %v1959_v4  ;;  %v14641_v40 = vadd.f32 %v1457_v22, %v14111_v56  ;;  %19547 = vst [vmem:[#allocation142_spill] sm:$0xff] %v14661_v27 }
 0x493   : > { %12120 = vmatmul.msk.f32.vlgmr.msrb.gmra.mxu3 %vm564_vm1, %v2238_v0  ;;  %v1583_v3 = vsel %vm564_vm1, %v14641_v40, -inf }
 0x494   : > { %2747 = vmatpush.msrb.mxu3 %v12619_v25 }
 0x496   : > { %1725 = vadd.xlane.f32.xlu2 %v1724_v28  ;;  %v12614_v28 = vunpack.i.l.bf16 %v14066_v47 }
 0x498   : > { %1737 = vadd.xlane.f32.xlu0 %v1736_v26  ;;  %v1650_v26 = vmul.f32 1.442695, %v1602_v29 }
 0x49a   : > { %v14665_v35 = vpop.permute.xlu0 %5876 }
 0x49b   : > { %19548 = vst [vmem:[#allocation143_spill] sm:$0xff] %v14665_v35 }
 0x49e   : > { %1584 = vmax.xlane.f32.xlu2 %v1583_v3 }
 0x4a7   : > { %5932 = vrot.lane.b32.xlu1 %v13656_v50, %s13422_s25 }
 0x4ac   : > { %6072 = vrot.lane.b32.xlu0 %v13746_v10, %s13422_s25 }
 0x4ae   : > { %v1714_v41 = vpop.xlane.xlu1 %1713 }
 0x4af   : > { %12920 = vrcp.f32 %v1714_v41  ;;  %v1929_v18 = vand.u32 2147483648, %v1714_v41  ;;  %v1927_v23 = vand.u32 2147483647, %v1714_v41  ;;  %vm1923_vm6 = vweird.f32 %v1714_v41 }
 0x4b1   : > { %v1930_v4 = vor.u32 1.1754944e-38, %v1929_v18  ;;  %vm1928_vm8 = vcmp.eq.f32.partialorder %v1927_v23, 8.507059e+37 }
 0x4b4   : > { %5986 = vrot.lane.b32.xlu0 %v13687_v58, %s13423_s26 }
 0x4b5   : > { %v12921_v12 = vpop.eup %12920 }
 0x4b6   : > { %v1919_v57 = vmul.f32 %v12921_v12, %v1714_v41  ;;  %5930 = vrot.lane.b32.xlu2 %v13656_v50, %s13423_s26  ;;  %vm1924_vm5 = vweird.f32 %v12921_v12 }
 0x4b7   : > { %vm1925_vm7 = vmor %vm1923_vm6, %vm1924_vm5 }
 0x4b8   : > { %v1920_v20 = vsub.f32 1.0, %v1919_v57 }
 0x4ba   : > { %v1921_v7 = vmul.f32 %v12921_v12, %v1920_v20 }
 0x4bc   : > { %v1922_v13 = vadd.f32 %v12921_v12, %v1921_v7 }
 0x4be   : > { %v1926_v0 = vsel %vm1925_vm7, %v12921_v12, %v1922_v13  ;;  %5958 = vrot.lane.b32.xlu2 %v13672_v53, %s13423_s26 }
 0x4bf   : > { %v1931_v25 = vsel %vm1928_vm8, %v1930_v4, %v1926_v0 }
 0x4c0   : > { %v1717_v39 = vpop.xlane.xlu2 %1716  ;;  %v2236_v22 = vmul.f32 %v14556_v16, %v1931_v25  ;;  %v1607_v16 = vsub.f32 %v14433_v11, %v14586_v15 }
 0x4c1   : > { %12922 = vrcp.f32 %v1717_v39  ;;  %v1943_v57 = vand.u32 2147483648, %v1717_v39  ;;  %v1941_v7 = vand.u32 2147483647, %v1717_v39  ;;  %vm1937_vm10 = vweird.f32 %v1717_v39 }
 0x4c2   : > { %12118 = vmatmul.msk.f32.vlgmr.msra.gmra.mxu1 %vm564_vm1, %v2236_v22  ;;  %12924 = vpow2.f32 %v1650_v26  ;;  %v1660_v25 = vmul.f32 1.442695, %v1607_v16 }
 0x4c3   : > { %2695 = vmatpush.msra.mxu1 %v12614_v28  ;;  %v1944_v29 = vor.u32 1.1754944e-38, %v1943_v57  ;;  %vm1942_vm12 = vcmp.eq.f32.partialorder %v1941_v7, 8.507059e+37 }
 0x4c5   : > { %v1729_v1 = vpop.xlane.xlu0 %1728 }
 0x4c6   : > { %12926 = vrcp.f32 %v1729_v1  ;;  %v1999_v28 = vand.u32 2147483648, %v1729_v1  ;;  %vm1993_vm14 = vweird.f32 %v1729_v1 }
 0x4c7   : > { %v12923_v24 = vpop.eup %12922  ;;  %12928 = vpow2.f32 %v1660_v25 }
 0x4c8   : > { %v1933_v3 = vmul.f32 %v12923_v24, %v1717_v39  ;;  %v14672_v12 = vpop.eup %12924  ;;  %vm1938_vm9 = vweird.f32 %v12923_v24  ;;  %v2000_v57 = vor.u32 1.1754944e-38, %v1999_v28 }
 0x4c9   : > { %vm1939_vm11 = vmor %vm1937_vm10, %vm1938_vm9  ;;  %v1730_v0 = vsel %vm564_vm1, %v14672_v12, 0.0 }
 0x4ca   : > { %v1934_v41 = vsub.f32 1.0, %v1933_v3  ;;  %v1997_v3 = vand.u32 2147483647, %v1729_v1 }
 0x4cc   : > { %v12927_v20 = vpop.eup %12926  ;;  %v1935_v18 = vmul.f32 %v12923_v24, %v1934_v41  ;;  %v12615_v41 = vunpack.i.h.bf16 %v14066_v47  ;;  %vm1998_vm2 = vcmp.eq.f32.partialorder %v1997_v3, 8.507059e+37 }
 0x4cd   : > { %v1989_v23 = vmul.f32 %v12927_v20, %v1729_v1  ;;  %vm1994_vm13 = vweird.f32 %v12927_v20  ;;  %v14686_v47 = vpop.eup %12928 }
 0x4ce   : > { %v1936_v13 = vadd.f32 %v12923_v24, %v1935_v18  ;;  %vm1995_vm15 = vmor %vm1993_vm14, %vm1994_vm13  ;;  %v1745_v1 = vsel %vm564_vm1, %v14686_v47, 0.0 }
 0x4cf   : > { %v1990_v4 = vsub.f32 1.0, %v1989_v23 }
 0x4d0   : > { %v1940_v22 = vsel %vm1939_vm11, %v12923_v24, %v1936_v13  ;;  %v1603_v24 = vsub.f32 %v14308_v61, %v14420_v2  ;;  %v14704_v13 = vpop.xlane.xlu2 %1575 }
 0x4d1   : > { %v1991_v26 = vmul.f32 %v12927_v20, %v1990_v4  ;;  %1731 = vadd.xlane.f32.xlu1 %v1730_v0  ;;  %v1945_v11 = vsel %vm1942_vm12, %v1944_v29, %v1940_v22 }
 0x4d2   : > { %v2237_v15 = vmul.f32 %v14572_v14, %v1945_v11  ;;  %v12625_v14 = vunpack.i.h.bf16 %v14055_v42  ;;  %v1652_v23 = vmul.f32 1.442695, %v1603_v24 }
 0x4d3   : > { %v1992_v39 = vadd.f32 %v12927_v20, %v1991_v26 }
 0x4d4   : > { %12119 = vmatmul.msk.f32.vlgmr.msra.gmra.mxu2 %vm564_vm1, %v2237_v15  ;;  %12930 = vpow2.f32 %v1652_v23 }
 0x4d5   : > { %v1996_v16 = vsel %vm1995_vm15, %v12927_v20, %v1992_v39  ;;  %2721 = vmatpush.msra.mxu2 %v12615_v41  ;;  %v19553_v39 = vld [vmem:[#allocation28_spill] sm:$0xff] }
 0x4d6   : > { %v2001_v18 = vsel %vm1998_vm2, %v2000_v57, %v1996_v16 }
 0x4d7   : > { %v2241_v7 = vmul.f32 %v14579_v36, %v2001_v18  ;;  %v14694_v36 = vpop.xlane.xlu1 %1572  ;;  %v19554_v18 = vld [vmem:[#allocation119_spill] sm:$0xff] }
 0x4d8   : > { %v14706_v29 = vpop.permute.xlu0 %6014  ;;  %v14712_v25 = vpop.permute.xlu2 %6016 }
 0x4d9   : > { %12123 = vmatmul.msk.f32.vlgmr.msra.gmra.mxu3 %vm564_vm1, %v2241_v7  ;;  %19550 = vst [vmem:[#allocation145_spill] sm:$0xff] %v14706_v29  ;;  %v1605_v7 = vsub.f32 %v19554_v18, %v14539_v60  ;;  %v1610_v60 = vsub.f32 %v14503_v54, %v14645_v48  ;;  %v1613_v29 = vsub.f32 %v14563_v21, %v14694_v36 }
 0x4da   : > { %2825 = vmatpush.msra.mxu3 %v12625_v14  ;;  %v14690_v61 = vpop.eup %12930  ;;  %19551 = vst [vmem:[#allocation146_spill] sm:$0xff] %v14712_v25 }
 0x4db   : > { %v1733_v2 = vsel %vm564_vm1, %v14690_v61, 0.0 }
 0x4de   : > { %1746 = vadd.xlane.f32.xlu0 %v1745_v1 }
 0x4df   : > { %v14698_v20 = vpop.permute.xlu1 %5902 }
 0x4e0   : > { %19549 = vst [vmem:[#allocation144_spill] sm:$0xff] %v14698_v20  ;;  %v14714_v28 = vpop.permute.xlu0 %6044 }
 0x4e1   : > { %19552 = vst [vmem:[#allocation147_spill] sm:$0xff] %v14714_v28 }
 0x4e7   : > { %1734 = vadd.xlane.f32.xlu2 %v1733_v2  ;;  %v12620_v2 = vunpack.i.h.bf16 %v14081_v51 }
 0x4ea   : > { %5960 = vrot.lane.b32.xlu1 %v13672_v53, %s13422_s25 }
 0x4f2   : > { %6240 = vrot.lane.b32.xlu0 %v13869_v62, %s13422_s25  ;;  %5874 = vrot.lane.b32.xlu1 %v13630_v43, %s13423_s26 }
 0x4f9   : > { %v1723_v4 = vpop.xlane.xlu1 %1722 }
 0x4fa   : > { %6154 = vrot.lane.b32.xlu0 %v13805_v32, %s13423_s26  ;;  %12932 = vrcp.f32 %v1723_v4  ;;  %v1971_v11 = vand.u32 2147483648, %v1723_v4  ;;  %v1969_v15 = vand.u32 2147483647, %v1723_v4  ;;  %vm1965_vm4 = vweird.f32 %v1723_v4 }
 0x4fc   : > { %v1972_v24 = vor.u32 1.1754944e-38, %v1971_v11  ;;  %vm1970_vm6 = vcmp.eq.f32.partialorder %v1969_v15, 8.507059e+37 }
 0x4ff   : > { %5988 = vrot.lane.b32.xlu2 %v13687_v58, %s13422_s25 }
 0x500   : > { %v12933_v0 = vpop.eup %12932 }
 0x501   : > { %v1961_v22 = vmul.f32 %v12933_v0, %v1723_v4  ;;  %vm1966_vm3 = vweird.f32 %v12933_v0  ;;  %v1656_v4 = vmul.f32 1.442695, %v1605_v7 }
 0x502   : > { %vm1967_vm5 = vmor %vm1965_vm4, %vm1966_vm3 }
 0x503   : > { %v1962_v26 = vsub.f32 1.0, %v1961_v22 }
 0x505   : > { %v1963_v3 = vmul.f32 %v12933_v0, %v1962_v26 }
 0x507   : > { %v1964_v41 = vadd.f32 %v12933_v0, %v1963_v3  ;;  %6126 = vrot.lane.b32.xlu2 %v19553_v39, %s13423_s26 }
 0x509   : > { %v1968_v57 = vsel %vm1967_vm5, %v12933_v0, %v1964_v41  ;;  %v1726_v16 = vpop.xlane.xlu2 %1725 }
 0x50a   : > { %12934 = vrcp.f32 %v1726_v16  ;;  %v1973_v23 = vsel %vm1970_vm6, %v1972_v24, %v1968_v57  ;;  %v1985_v15 = vand.u32 2147483648, %v1726_v16  ;;  %v1983_v57 = vand.u32 2147483647, %v1726_v16 }
 0x50b   : > { %v1738_v14 = vpop.xlane.xlu0 %1737  ;;  %v2239_v1 = vmul.f32 %v14613_v34, %v1973_v23  ;;  %v1666_v24 = vmul.f32 1.442695, %v1610_v60  ;;  %vm1979_vm8 = vweird.f32 %v1726_v16 }
 0x50c   : > { %12936 = vrcp.f32 %v1738_v14  ;;  %v2041_v51 = vand.u32 2147483648, %v1738_v14  ;;  %v2039_v23 = vand.u32 2147483647, %v1738_v14  ;;  %vm1984_vm11 = vcmp.eq.f32.partialorder %v1983_v57, 8.507059e+37  ;;  %v19556_v57 = vld [vmem:[#allocation113_spill] sm:$0xff] }
 0x50d   : > { %12121 = vmatmul.msk.f32.vlgmr.msrb.gmra.mxu1 %vm564_vm1, %v2239_v1  ;;  %12938 = vpow2.f32 %v1656_v4  ;;  %vm2035_vm12 = vweird.f32 %v1738_v14 }
 0x50e   : > { %2773 = vmatpush.msrb.mxu1 %v12620_v2  ;;  %v1986_v2 = vor.u32 1.1754944e-38, %v1985_v15  ;;  %12940 = vpow2.f32 %v1666_v24  ;;  %v2042_v48 = vor.u32 1.1754944e-38, %v2041_v51  ;;  %vm2040_vm14 = vcmp.eq.f32.partialorder %v2039_v23, 8.507059e+37  ;;  %v14745_v51 = vpop.xlane.xlu1 %1581 }
 0x510   : > { %v12935_v22 = vpop.eup %12934 }
 0x511   : > { %v1975_v0 = vmul.f32 %v12935_v22, %v1726_v16  ;;  %vm1980_vm7 = vweird.f32 %v12935_v22 }
 0x512   : > { %v12937_v26 = vpop.eup %12936  ;;  %vm1981_vm10 = vmor %vm1979_vm8, %vm1980_vm7 }
 0x513   : > { %v1976_v3 = vsub.f32 1.0, %v1975_v0  ;;  %v2031_v11 = vmul.f32 %v12937_v26, %v1738_v14  ;;  %vm2036_vm9 = vweird.f32 %v12937_v26  ;;  %v14725_v1 = vpop.eup %12938  ;;  %v19555_v14 = vld [vmem:[#allocation98_spill] sm:$0xff] }
 0x514   : > { %vm2037_vm13 = vmor %vm2035_vm12, %vm2036_vm9  ;;  %v1739_v16 = vsel %vm564_vm1, %v14725_v1, 0.0  ;;  %v12634_v15 = vunpack.i.l.bf16 %v19555_v14 }
 0x515   : > { %v1977_v41 = vmul.f32 %v12935_v22, %v1976_v3  ;;  %v2032_v34 = vsub.f32 1.0, %v2031_v11  ;;  %v12624_v11 = vunpack.i.l.bf16 %v14055_v42 }
 0x517   : > { %v1978_v18 = vadd.f32 %v12935_v22, %v1977_v41  ;;  %v2033_v7 = vmul.f32 %v12937_v26, %v2032_v34  ;;  %v1606_v34 = vsub.f32 %v19556_v57, %v14492_v33  ;;  %v19557_v33 = vld [vmem:[#allocation32_spill] sm:$0xff] }
 0x519   : > { %v1982_v4 = vsel %vm1981_vm10, %v12935_v22, %v1978_v18  ;;  %v2034_v54 = vadd.f32 %v12937_v26, %v2033_v7  ;;  %v14751_v18 = vpop.permute.xlu1 %5932  ;;  %v14755_v7 = vpop.xlane.xlu2 %1584 }
 0x51a   : > { %v1987_v0 = vsel %vm1984_vm11, %v1986_v2, %v1982_v4  ;;  %19558 = vst [vmem:[#allocation28_spill] sm:$0xff] %v14751_v18  ;;  %v19560_v2 = vld [vmem:[#allocation37_spill] sm:$0xff] }
 0x51b   : > { %v2038_v3 = vsel %vm2037_vm13, %v12937_v26, %v2034_v54  ;;  %v2240_v60 = vmul.f32 %v14630_v45, %v1987_v0  ;;  %v14737_v26 = vpop.eup %12940  ;;  %v1658_v45 = vmul.f32 1.442695, %v1606_v34 }
 0x51c   : > { %1740 = vadd.xlane.f32.xlu1 %v1739_v16  ;;  %v2043_v41 = vsel %vm2040_vm14, %v2042_v48, %v2038_v3  ;;  %v1754_v42 = vsel %vm564_vm1, %v14737_v26, 0.0 }
 0x51d   : > { %12122 = vmatmul.msk.f32.vlgmr.msrb.gmra.mxu2 %vm564_vm1, %v2240_v60  ;;  %v2244_v22 = vmul.f32 %v14634_v31, %v2043_v41  ;;  %12942 = vpow2.f32 %v1658_v45 }
 0x51e   : > { %2799 = vmatpush.msrb.mxu2 %v12624_v11  ;;  %v14757_v23 = vpop.permute.xlu0 %6072 }
 0x51f   : > { %12126 = vmatmul.msk.f32.vlgmr.msrb.gmra.mxu3 %vm564_vm1, %v2244_v22  ;;  %19559 = vst [vmem:[#allocation119_spill] sm:$0xff] %v14757_v23 }
 0x520   : > { %2903 = vmatpush.msrb.mxu3 %v12634_v15 }
 0x521   : > { %v14761_v54 = vpop.permute.xlu2 %5930 }
 0x522   : > { %19561 = vst [vmem:[#allocation98_spill] sm:$0xff] %v14761_v54 }
 0x523   : > { %v14741_v24 = vpop.eup %12942 }
 0x524   : > { %1755 = vadd.xlane.f32.xlu0 %v1754_v42  ;;  %v1742_v31 = vsel %vm564_vm1, %v14741_v24, 0.0  ;;  %v1608_v42 = vsub.f32 %v14455_v52, %v14594_v19 }
 0x526   : > { %v14765_v48 = vpop.permute.xlu0 %5986 }
 0x527   : > { %19562 = vst [vmem:[#allocation113_spill] sm:$0xff] %v14765_v48 }
 0x529   : > { %v14769_v15 = vpop.permute.xlu2 %5958 }
 0x52a   : > { %19563 = vst [vmem:[#allocation32_spill] sm:$0xff] %v14769_v15 }
 0x530   : > { %1743 = vadd.xlane.f32.xlu2 %v1742_v31 }
 0x535   : > { %6128 = vrot.lane.b32.xlu1 %v19553_v39, %s13422_s25 }
 0x538   : > { %6182 = vrot.lane.b32.xlu0 %v19557_v33, %s13423_s26 }
 0x53d   : > { %6042 = vrot.lane.b32.xlu1 %v13726_v6, %s13423_s26 }
 0x540   : > { %6212 = vrot.lane.b32.xlu0 %v19560_v2, %s13422_s25 }
 0x544   : > { %v1732_v4 = vpop.xlane.xlu1 %1731 }
 0x545   : > { %12944 = vrcp.f32 %v1732_v4  ;;  %v2013_v60 = vand.u32 2147483648, %v1732_v4  ;;  %v2011_v41 = vand.u32 2147483647, %v1732_v4  ;;  %vm2007_vm2 = vweird.f32 %v1732_v4 }
 0x547   : > { %v2014_v34 = vor.u32 1.1754944e-38, %v2013_v60  ;;  %vm2012_vm4 = vcmp.eq.f32.partialorder %v2011_v41, 8.507059e+37  ;;  %v1672_v41 = vmul.f32 1.442695, %v1613_v29  ;;  %v19565_v29 = vld [vmem:[#allocation94_spill] sm:$0xff] }
 0x548   : > { %6156 = vrot.lane.b32.xlu2 %v13805_v32, %s13422_s25 }
 0x54b   : > { %v12945_v0 = vpop.eup %12944 }
 0x54c   : > { %v2003_v3 = vmul.f32 %v12945_v0, %v1732_v4  ;;  %vm2008_vm15 = vweird.f32 %v12945_v0  ;;  %v1662_v4 = vmul.f32 1.442695, %v1608_v42 }
 0x54d   : > { %vm2009_vm3 = vmor %vm2007_vm2, %vm2008_vm15 }
 0x54e   : > { %v2004_v16 = vsub.f32 1.0, %v2003_v3 }
 0x550   : > { %v2005_v11 = vmul.f32 %v12945_v0, %v2004_v16  ;;  %6184 = vrot.lane.b32.xlu2 %v19557_v33, %s13422_s25  ;;  %v19564_v16 = vld [vmem:[#allocation93_spill] sm:$0xff] }
 0x551   : > { %v1747_v22 = vpop.xlane.xlu0 %1746  ;;  %v12629_v23 = vunpack.i.l.bf16 %v19564_v16 }
 0x552   : > { %v2006_v57 = vadd.f32 %v12945_v0, %v2005_v11  ;;  %12946 = vrcp.f32 %v1747_v22  ;;  %v2081_v19 = vand.u32 2147483647, %v1747_v22  ;;  %vm2077_vm6 = vweird.f32 %v1747_v22 }
 0x554   : > { %v2010_v45 = vsel %vm2009_vm3, %v12945_v0, %v2006_v57  ;;  %v2083_v57 = vand.u32 2147483648, %v1747_v22  ;;  %vm2082_vm8 = vcmp.eq.f32.partialorder %v2081_v19, 8.507059e+37 }
 0x555   : > { %v2015_v31 = vsel %vm2012_vm4, %v2014_v34, %v2010_v45 }
 0x556   : > { %v2242_v3 = vmul.f32 %v14672_v12, %v2015_v31  ;;  %v2084_v34 = vor.u32 1.1754944e-38, %v2083_v57  ;;  %v19566_v57 = vld [vmem:[#allocation121_spill] sm:$0xff] }
 0x558   : > { %v12947_v55 = vpop.eup %12946  ;;  %12124 = vmatmul.msk.f32.vlgmr.msra.gmra.mxu1 %vm564_vm1, %v2242_v3  ;;  %v12640_v3 = vunpack.i.h.bf16 %v19565_v29 }
 0x559   : > { %v2073_v11 = vmul.f32 %v12947_v55, %v1747_v22  ;;  %2851 = vmatpush.msra.mxu1 %v12629_v23  ;;  %vm2078_vm5 = vweird.f32 %v12947_v55 }
 0x55a   : > { %v1735_v60 = vpop.xlane.xlu2 %1734  ;;  %vm2079_vm7 = vmor %vm2077_vm6, %vm2078_vm5 }
 0x55b   : > { %v2074_v0 = vsub.f32 1.0, %v2073_v11  ;;  %12948 = vrcp.f32 %v1735_v60  ;;  %v2027_v11 = vand.u32 2147483648, %v1735_v60  ;;  %vm2021_vm10 = vweird.f32 %v1735_v60 }
 0x55c   : > { %12950 = vpow2.f32 %v1662_v4 }
 0x55d   : > { %v2075_v52 = vmul.f32 %v12947_v55, %v2074_v0  ;;  %12952 = vpow2.f32 %v1672_v41  ;;  %v2025_v41 = vand.u32 2147483647, %v1735_v60  ;;  %v2028_v19 = vor.u32 1.1754944e-38, %v2027_v11  ;;  %v19572_v11 = vld [vmem:[#allocation24_spill] sm:$0xff] }
 0x55f   : > { %v2076_v12 = vadd.f32 %v12947_v55, %v2075_v52  ;;  %v1609_v52 = vsub.f32 %v19566_v57, %v14549_v17  ;;  %vm2026_vm12 = vcmp.eq.f32.partialorder %v2025_v41, 8.507059e+37 }
 0x561   : > { %v12949_v21 = vpop.eup %12948  ;;  %v2080_v36 = vsel %vm2079_vm7, %v12947_v55, %v2076_v12 }
 0x562   : > { %v2017_v45 = vmul.f32 %v12949_v21, %v1735_v60  ;;  %v2085_v42 = vsel %vm2082_vm8, %v2084_v34, %v2080_v36  ;;  %v14778_v23 = vpop.eup %12950  ;;  %vm2022_vm9 = vweird.f32 %v12949_v21  ;;  %v1664_v36 = vmul.f32 1.442695, %v1609_v52 }
 0x563   : > { %v2247_v31 = vmul.f32 %v14686_v47, %v2085_v42  ;;  %v14783_v0 = vpop.eup %12952  ;;  %v1748_v55 = vsel %vm564_vm1, %v14778_v23, 0.0  ;;  %vm2023_vm11 = vmor %vm2021_vm10, %vm2022_vm9 }
 0x564   : > { %v2018_v4 = vsub.f32 1.0, %v2017_v45  ;;  %v1763_v12 = vsel %vm564_vm1, %v14783_v0, 0.0  ;;  %12954 = vpow2.f32 %v1664_v36 }
 0x565   : > { %12129 = vmatmul.msk.f32.vlgmr.msra.gmra.mxu3 %vm564_vm1, %v2247_v31  ;;  %v12630_v31 = vunpack.i.h.bf16 %v19564_v16  ;;  %v19570_v16 = vld [vmem:[#allocation59_spill] sm:$0xff] }
 0x566   : > { %v2019_v22 = vmul.f32 %v12949_v21, %v2018_v4  ;;  %2981 = vmatpush.msra.mxu3 %v12640_v3  ;;  %v14798_v3 = vpop.permute.xlu1 %5960 }
 0x567   : > { %1749 = vadd.xlane.f32.xlu1 %v1748_v55  ;;  %19567 = vst [vmem:[#allocation93_spill] sm:$0xff] %v14798_v3  ;;  %v14814_v55 = vpop.permute.xlu2 %5988 }
 0x568   : > { %v2020_v47 = vadd.f32 %v12949_v21, %v2019_v22  ;;  %19574 = vst [vmem:[#allocation148_spill] sm:$0xff] %v14814_v55 }
 0x56a   : > { %v2024_v34 = vsel %vm2023_vm11, %v12949_v21, %v2020_v47  ;;  %1764 = vadd.xlane.f32.xlu0 %v1763_v12  ;;  %v14794_v17 = vpop.eup %12954  ;;  %v19568_v21 = vld [vmem:[#allocation56_spill] sm:$0xff] }
 0x56b   : > { %v2029_v45 = vsel %vm2026_vm12, %v2028_v19, %v2024_v34  ;;  %v1751_v60 = vsel %vm564_vm1, %v14794_v17, 0.0 }
 0x56c   : > { %v2243_v42 = vmul.f32 %v14690_v61, %v2029_v45  ;;  %v14804_v61 = vpop.permute.xlu0 %6240 }
 0x56d   : > { %19569 = vst [vmem:[#allocation94_spill] sm:$0xff] %v14804_v61 }
 0x56e   : > { %12125 = vmatmul.msk.f32.vlgmr.msra.gmra.mxu2 %vm564_vm1, %v2243_v42  ;;  %v14808_v4 = vpop.permute.xlu1 %5874 }
 0x56f   : > { %2877 = vmatpush.msra.mxu2 %v12630_v31  ;;  %19571 = vst [vmem:[#allocation121_spill] sm:$0xff] %v14808_v4  ;;  %v14820_v34 = vpop.permute.xlu2 %6126 }
 0x570   : > { %19575 = vst [vmem:[#allocation149_spill] sm:$0xff] %v14820_v34  ;;  %v12635_v34 = vunpack.i.h.bf16 %v19555_v14 }
 0x574   : > { %v14812_v22 = vpop.permute.xlu0 %6154 }
 0x575   : > { %19573 = vst [vmem:[#allocation24_spill] sm:$0xff] %v14812_v22  ;;  %v1611_v22 = vsub.f32 %v14520_v5, %v14653_v44 }
 0x579   : > { %1752 = vadd.xlane.f32.xlu2 %v1751_v60  ;;  %v1616_v60 = vsub.f32 %v14623_v59, %v14745_v51  ;;  %v1668_v51 = vmul.f32 1.442695, %v1611_v22 }
 0x57e   : > { %6350 = vrot.lane.b32.xlu0 %v19568_v21, %s13423_s26 }
 0x580   : > { %6070 = vrot.lane.b32.xlu1 %v13746_v10, %s13423_s26 }
 0x586   : > { %6380 = vrot.lane.b32.xlu0 %v19570_v16, %s13422_s25 }
 0x588   : > { %6100 = vrot.lane.b32.xlu1 %v19572_v11, %s13422_s25 }
 0x58f   : > { %v1741_v41 = vpop.xlane.xlu1 %1740 }
 0x590   : > { %12956 = vrcp.f32 %v1741_v41  ;;  %v2055_v12 = vand.u32 2147483648, %v1741_v41  ;;  %v2053_v45 = vand.u32 2147483647, %v1741_v41  ;;  %vm2049_vm14 = vweird.f32 %v1741_v41 }
 0x591   : > { %6098 = vrot.lane.b32.xlu2 %v19572_v11, %s13423_s26 }
 0x592   : > { %v2056_v15 = vor.u32 1.1754944e-38, %v2055_v12  ;;  %vm2054_vm2 = vcmp.eq.f32.partialorder %v2053_v45, 8.507059e+37 }
 0x596   : > { %v12957_v57 = vpop.eup %12956 }
 0x597   : > { %v2045_v52 = vmul.f32 %v12957_v57, %v1741_v41  ;;  %v1756_v47 = vpop.xlane.xlu0 %1755  ;;  %vm2050_vm13 = vweird.f32 %v12957_v57 }
 0x598   : > { %12958 = vrcp.f32 %v1756_v47  ;;  %vm2051_vm15 = vmor %vm2049_vm14, %vm2050_vm13  ;;  %v2125_v41 = vand.u32 2147483648, %v1756_v47  ;;  %v2123_v20 = vand.u32 2147483647, %v1756_v47  ;;  %vm2119_vm4 = vweird.f32 %v1756_v47 }
 0x599   : > { %v2046_v19 = vsub.f32 1.0, %v2045_v52  ;;  %6352 = vrot.lane.b32.xlu2 %v19568_v21, %s13422_s25 }
 0x59a   : > { %v2126_v5 = vor.u32 1.1754944e-38, %v2125_v41  ;;  %vm2124_vm6 = vcmp.eq.f32.partialorder %v2123_v20, 8.507059e+37 }
 0x59b   : > { %v2047_v36 = vmul.f32 %v12957_v57, %v2046_v19 }
 0x59d   : > { %v2048_v42 = vadd.f32 %v12957_v57, %v2047_v36  ;;  %v1678_v36 = vmul.f32 1.442695, %v1616_v60 }
 0x59e   : > { %v12959_v31 = vpop.eup %12958 }
 0x59f   : > { %v2052_v3 = vsel %vm2051_vm15, %v12957_v57, %v2048_v42  ;;  %v2115_v52 = vmul.f32 %v12959_v31, %v1756_v47  ;;  %vm2120_vm3 = vweird.f32 %v12959_v31 }
 0x5a0   : > { %v2057_v61 = vsel %vm2054_vm2, %v2056_v15, %v2052_v3  ;;  %vm2121_vm5 = vmor %vm2119_vm4, %vm2120_vm3  ;;  %v19576_v15 = vld [vmem:[#allocation110_spill] sm:$0xff] }
 0x5a1   : > { %v2116_v54 = vsub.f32 1.0, %v2115_v52  ;;  %v2245_v19 = vmul.f32 %v14725_v1, %v2057_v61  ;;  %v12649_v3 = vunpack.i.l.bf16 %v19576_v15 }
 0x5a3   : > { %v2117_v48 = vmul.f32 %v12959_v31, %v2116_v54  ;;  %v1744_v59 = vpop.xlane.xlu2 %1743  ;;  %12127 = vmatmul.msk.f32.vlgmr.msrb.gmra.mxu1 %vm564_vm1, %v2245_v19 }
 0x5a4   : > { %12960 = vrcp.f32 %v1744_v59  ;;  %2929 = vmatpush.msrb.mxu1 %v12635_v34  ;;  %v2069_v12 = vand.u32 2147483648, %v1744_v59  ;;  %v2067_v20 = vand.u32 2147483647, %v1744_v59  ;;  %vm2063_vm8 = vweird.f32 %v1744_v59 }
 0x5a5   : > { %v2118_v57 = vadd.f32 %v12959_v31, %v2117_v48  ;;  %12962 = vpow2.f32 %v1678_v36 }
 0x5a6   : > { %12964 = vpow2.f32 %v1668_v51  ;;  %v2070_v52 = vor.u32 1.1754944e-38, %v2069_v12  ;;  %vm2068_vm10 = vcmp.eq.f32.partialorder %v2067_v20, 8.507059e+37 }
 0x5a7   : > { %v2122_v44 = vsel %vm2121_vm5, %v12959_v31, %v2118_v57  ;;  %v12639_v57 = vunpack.i.l.bf16 %v19565_v29 }
 0x5a8   : > { %v2127_v1 = vsel %vm2124_vm6, %v2126_v5, %v2122_v44  ;;  %v19578_v5 = vld [vmem:[#allocation64_spill] sm:$0xff]  ;;  %v14851_v44 = vpop.permute.xlu1 %6128 }
 0x5a9   : > { %v2250_v14 = vmul.f32 %v14737_v26, %v2127_v1  ;;  %v19577_v26 = vld [vmem:[#allocation131_spill] sm:$0xff]  ;;  %19579 = vst [vmem:[#allocation110_spill] sm:$0xff] %v14851_v44 }
 0x5aa   : > { %v12961_v54 = vpop.eup %12960  ;;  %v1612_v42 = vsub.f32 %v19577_v26, %v14604_v8  ;;  %v14853_v1 = vpop.permute.xlu0 %6182  ;;  %v12721_v26 = vpack.i.bf16 %v13630_v43, %v13641_v46 }
 0x5ab   : > { %v2059_v61 = vmul.f32 %v12961_v54, %v1744_v59  ;;  %12132 = vmatmul.msk.f32.vlgmr.msrb.gmra.mxu3 %vm564_vm1, %v2250_v14  ;;  %v14832_v22 = vpop.eup %12962  ;;  %vm2064_vm7 = vweird.f32 %v12961_v54  ;;  %19580 = vst [vmem:[#allocation131_spill] sm:$0xff] %v14853_v1  ;;  %v19583_v14 = vld [vmem:[#allocation46_spill] sm:$0xff] }
 0x5ac   : > { %3059 = vmatpush.msrb.mxu3 %v12649_v3  ;;  %v14834_v47 = vpop.eup %12964  ;;  %v1772_v45 = vsel %vm564_vm1, %v14832_v22, 0.0  ;;  %vm2065_vm9 = vmor %vm2063_vm8, %vm2064_vm7  ;;  %v1670_v36 = vmul.f32 1.442695, %v1612_v42 }
 0x5ad   : > { %v2060_v48 = vsub.f32 1.0, %v2059_v61  ;;  %v1757_v60 = vsel %vm564_vm1, %v14834_v47, 0.0  ;;  %v14867_v61 = vpop.permute.xlu2 %6156 }
 0x5ae   : > { %12966 = vpow2.f32 %v1670_v36  ;;  %19586 = vst [vmem:[#allocation152_spill] sm:$0xff] %v14867_v61 }
 0x5af   : > { %v2061_v34 = vmul.f32 %v12961_v54, %v2060_v48 }
 0x5b0   : > { %1773 = vadd.xlane.f32.xlu0 %v1772_v45  ;;  %v14859_v29 = vpop.permute.xlu1 %6042  ;;  %v19587_v45 = vld [vmem:[#allocation49_spill] sm:$0xff] }
 0x5b1   : > { %v2062_v31 = vadd.f32 %v12961_v54, %v2061_v34  ;;  %19582 = vst [vmem:[#allocation150_spill] sm:$0xff] %v14859_v29 }
 0x5b2   : > { %1758 = vadd.xlane.f32.xlu1 %v1757_v60  ;;  %v14865_v3 = vpop.permute.xlu0 %6212 }
 0x5b3   : > { %v2066_v19 = vsel %vm2065_vm9, %v12961_v54, %v2062_v31  ;;  %v19584_v54 = vld [vmem:[#allocation67_spill] sm:$0xff]  ;;  %19585 = vst [vmem:[#allocation151_spill] sm:$0xff] %v14865_v3 }
 0x5b4   : > { %v2071_v41 = vsel %vm2068_vm10, %v2070_v52, %v2066_v19  ;;  %v14845_v8 = vpop.eup %12966 }
 0x5b5   : > { %v2246_v51 = vmul.f32 %v14741_v24, %v2071_v41  ;;  %v1760_v59 = vsel %vm564_vm1, %v14845_v8, 0.0  ;;  %v19581_v24 = vld [vmem:[#allocation53_spill] sm:$0xff]  ;;  %v14877_v31 = vpop.permute.xlu2 %6184 }
 0x5b6   : > { %19588 = vst [vmem:[#allocation153_spill] sm:$0xff] %v14877_v31 }
 0x5b7   : > { %12128 = vmatmul.msk.f32.vlgmr.msrb.gmra.mxu2 %vm564_vm1, %v2246_v51 }
 0x5b8   : > { %2955 = vmatpush.msrb.mxu2 %v12639_v57 }
 0x5c2   : > { %1761 = vadd.xlane.f32.xlu2 %v1760_v59 }
 0x5c4   : > { %6408 = vrot.lane.b32.xlu0 %v19578_v5, %s13422_s25 }
 0x5cb   : > { %6238 = vrot.lane.b32.xlu1 %v13869_v62, %s13423_s26 }
 0x5cc   : > { %6322 = vrot.lane.b32.xlu0 %v19581_v24, %s13423_s26 }
 0x5d3   : > { %6268 = vrot.lane.b32.xlu1 %v19583_v14, %s13422_s25 }
 0x5d4   : > { %6436 = vrot.lane.b32.xlu0 %v19584_v54, %s13422_s25 }
 0x5da   : > { %6266 = vrot.lane.b32.xlu2 %v19583_v14, %s13423_s26  ;;  %v1750_v48 = vpop.xlane.xlu1 %1749 }
 0x5db   : > { %12968 = vrcp.f32 %v1750_v48  ;;  %v2097_v52 = vand.u32 2147483648, %v1750_v48  ;;  %v2095_v41 = vand.u32 2147483647, %v1750_v48  ;;  %vm2091_vm12 = vweird.f32 %v1750_v48 }
 0x5dc   : > { %6434 = vrot.lane.b32.xlu0 %v19584_v54, %s13423_s26 }
 0x5dd   : > { %v1765_v12 = vpop.xlane.xlu0 %1764  ;;  %v2098_v1 = vor.u32 1.1754944e-38, %v2097_v52  ;;  %vm2096_vm15 = vcmp.eq.f32.partialorder %v2095_v41, 8.507059e+37 }
 0x5de   : > { %12970 = vrcp.f32 %v1765_v12  ;;  %v2167_v59 = vand.u32 2147483648, %v1765_v12  ;;  %v2165_v61 = vand.u32 2147483647, %v1765_v12  ;;  %vm2161_vm2 = vweird.f32 %v1765_v12 }
 0x5e0   : > { %vm2166_vm4 = vcmp.eq.f32.partialorder %v2165_v61, 8.507059e+37 }
 0x5e1   : > { %v12969_v34 = vpop.eup %12968 }
 0x5e2   : > { %v2087_v20 = vmul.f32 %v12969_v34, %v1750_v48  ;;  %6294 = vrot.lane.b32.xlu2 %v19587_v45, %s13423_s26  ;;  %vm2092_vm11 = vweird.f32 %v12969_v34 }
 0x5e3   : > { %vm2093_vm13 = vmor %vm2091_vm12, %vm2092_vm11 }
 0x5e4   : > { %v12971_v42 = vpop.eup %12970  ;;  %v2088_v60 = vsub.f32 1.0, %v2087_v20  ;;  %12722 = vrot.lane.b32.xlu0 %v12721_v26, %s13424_s28  ;;  %v12736_v20 = vpack.i.bf16 %v13726_v6, %v13746_v10  ;;  %v1614_v26 = vsub.f32 %v14582_v9, %v14704_v13  ;;  %v19590_v13 = vld [vmem:[#allocation12_spill] sm:$0xff] }
 0x5e5   : > { %v2157_v19 = vmul.f32 %v12971_v42, %v1765_v12  ;;  %vm2162_vm14 = vweird.f32 %v12971_v42 }
 0x5e6   : > { %v2089_v36 = vmul.f32 %v12969_v34, %v2088_v60  ;;  %vm2163_vm3 = vmor %vm2161_vm2, %vm2162_vm14 }
 0x5e7   : > { %v2158_v51 = vsub.f32 1.0, %v2157_v19  ;;  %v2168_v19 = vor.u32 1.1754944e-38, %v2167_v59 }
 0x5e8   : > { %v2090_v57 = vadd.f32 %v12969_v34, %v2089_v36  ;;  %v19589_v36 = vld [vmem:[#allocation104_spill] sm:$0xff] }
 0x5e9   : > { %v2159_v29 = vmul.f32 %v12971_v42, %v2158_v51  ;;  %v12644_v51 = vunpack.i.l.bf16 %v19589_v36 }
 0x5ea   : > { %v2094_v3 = vsel %vm2093_vm13, %v12969_v34, %v2090_v57  ;;  %v1674_v57 = vmul.f32 1.442695, %v1614_v26  ;;  %v19592_v26 = vld [vmem:[#allocation75_spill] sm:$0xff] }
 0x5eb   : > { %v2160_v60 = vadd.f32 %v12971_v42, %v2159_v29  ;;  %v2099_v31 = vsel %vm2096_vm15, %v2098_v1, %v2094_v3 }
 0x5ec   : > { %12737 = vrot.lane.b32.xlu0 %v12736_v20, %s13424_s28  ;;  %v1753_v48 = vpop.xlane.xlu2 %1752  ;;  %v2248_v52 = vmul.f32 %v14778_v23, %v2099_v31  ;;  %v12746_v23 = vpack.i.bf16 %v13805_v32, %v19557_v33  ;;  %v19591_v20 = vld [vmem:[#allocation77_spill] sm:$0xff] }
 0x5ed   : > { %v2164_v34 = vsel %vm2163_vm3, %v12971_v42, %v2160_v60  ;;  %12972 = vrcp.f32 %v1753_v48  ;;  %v2111_v61 = vand.u32 2147483648, %v1753_v48  ;;  %v2109_v42 = vand.u32 2147483647, %v1753_v48 }
 0x5ee   : > { %12130 = vmatmul.msk.f32.vlgmr.msra.gmra.mxu1 %vm564_vm1, %v2248_v52  ;;  %v2169_v41 = vsel %vm2166_vm4, %v2168_v19, %v2164_v34  ;;  %12974 = vpow2.f32 %v1674_v57  ;;  %vm2105_vm6 = vweird.f32 %v1753_v48  ;;  %v12776_v60 = vpack.i.bf16 %v19592_v26, %v19591_v20 }
 0x5ef   : > { %3007 = vmatpush.msra.mxu1 %v12644_v51  ;;  %v2253_v9 = vmul.f32 %v14783_v0, %v2169_v41  ;;  %v1615_v0 = vsub.f32 %v14531_v49, %v14657_v37  ;;  %v2112_v19 = vor.u32 1.1754944e-38, %v2111_v61  ;;  %vm2110_vm8 = vcmp.eq.f32.partialorder %v2109_v42, 8.507059e+37  ;;  %v19593_v37 = vld [vmem:[#allocation2_spill] sm:$0xff] }
 0x5f0   : > { %v12645_v49 = vunpack.i.h.bf16 %v19589_v36 }
 0x5f1   : > { %12135 = vmatmul.msk.f32.vlgmr.msra.gmra.mxu3 %vm564_vm1, %v2253_v9  ;;  %v1676_v34 = vmul.f32 1.442695, %v1615_v0 }
 0x5f2   : > { %12142 = vmatpush.xpose.msk.msra.mxu3 %vm564_vm1, %v19590_v13  ;;  %v19594_v13 = vld [vmem:[#allocation7_spill] sm:$0xff]  ;;  %v14917_v36 = vpop.permute.xlu1 %6070 }
 0x5f3   : > { %v12973_v1 = vpop.eup %12972  ;;  %12976 = vpow2.f32 %v1676_v34  ;;  %19596 = vst [vmem:[#allocation12_spill] sm:$0xff] %v14917_v36 }
 0x5f4   : > { %v2101_v29 = vmul.f32 %v12973_v1, %v1753_v48  ;;  %12747 = vrot.lane.b32.xlu0 %v12746_v23, %s13424_s28  ;;  %vm2106_vm5 = vweird.f32 %v12973_v1  ;;  %v14895_v31 = vpop.eup %12974 }
 0x5f5   : > { %vm2107_vm7 = vmor %vm2105_vm6, %vm2106_vm5  ;;  %v1766_v51 = vsel %vm564_vm1, %v14895_v31, 0.0 }
 0x5f6   : > { %v2102_v3 = vsub.f32 1.0, %v2101_v29 }
 0x5f8   : > { %v2103_v12 = vmul.f32 %v12973_v1, %v2102_v3  ;;  %v14931_v3 = vpop.permute.xlu2 %6098 }
 0x5f9   : > { %v14909_v48 = vpop.eup %12976  ;;  %19600 = vst [vmem:[#allocation156_spill] sm:$0xff] %v14931_v3 }
 0x5fa   : > { %v2104_v59 = vadd.f32 %v12973_v1, %v2103_v12  ;;  %v1769_v9 = vsel %vm564_vm1, %v14909_v48, 0.0  ;;  %v14927_v29 = vpop.permute.xlu1 %6100 }
 0x5fb   : > { %19599 = vst [vmem:[#allocation155_spill] sm:$0xff] %v14927_v29 }
 0x5fc   : > { %v2108_v52 = vsel %vm2107_vm7, %v12973_v1, %v2104_v59  ;;  %12777 = vrot.lane.b32.xlu0 %v12776_v60, %s13424_s28  ;;  %v19598_v1 = vld [vmem:[#allocation9_spill] sm:$0xff]  ;;  %v19601_v59 = vld [vmem:[#allocation72_spill] sm:$0xff] }
 0x5fd   : > { %1767 = vadd.xlane.f32.xlu1 %v1766_v51  ;;  %v2113_v41 = vsel %vm2110_vm8, %v2112_v19, %v2108_v52 }
 0x5fe   : > { %v2249_v57 = vmul.f32 %v14794_v17, %v2113_v41  ;;  %v14915_v17 = vpop.permute.xlu0 %6350 }
 0x5ff   : > { %19595 = vst [vmem:[#allocation104_spill] sm:$0xff] %v14915_v17 }
 0x600   : > { %12131 = vmatmul.msk.f32.vlgmr.msra.gmra.mxu2 %vm564_vm1, %v2249_v57  ;;  %v14937_v19 = vpop.permute.xlu2 %6352 }
 0x601   : > { %3033 = vmatpush.msra.mxu2 %v12645_v49  ;;  %19602 = vst [vmem:[#allocation157_spill] sm:$0xff] %v14937_v19 }
 0x604   : > { %8210 = vrot.lane.b32.xlu0 %v19593_v37, %s13425_s29 }
 0x606   : > { %v14923_v23 = vpop.permute.xlu0 %6380 }
 0x607   : > { %19597 = vst [vmem:[#allocation154_spill] sm:$0xff] %v14923_v23 }
 0x60b   : > { %1770 = vadd.xlane.f32.xlu2 %v1769_v9 }
 0x60c   : > { %8352 = vrot.lane.b32.xlu0 %v19594_v13, %s13426_s30 }
 0x614   : > { %8324 = vrot.lane.b32.xlu0 %v13578_v30, %s13426_s30 }
 0x616   : > { %6296 = vrot.lane.b32.xlu1 %v19587_v45, %s13422_s25 }
 0x61c   : > { %8406 = vrot.lane.b32.xlu0 %v19598_v1, %s13425_s29 }
 0x61e   : > { %6210 = vrot.lane.b32.xlu1 %v19560_v2, %s13423_s26 }
 0x623   : > { %v1774_v61 = vpop.xlane.xlu0 %1773  ;;  %6324 = vrot.lane.b32.xlu2 %v19581_v24, %s13422_s25 }
 0x624   : > { %12978 = vrcp.f32 %v1774_v61  ;;  %v2209_v34 = vand.u32 2147483648, %v1774_v61  ;;  %v2207_v57 = vand.u32 2147483647, %v1774_v61  ;;  %vm2203_vm10 = vweird.f32 %v1774_v61 }
 0x625   : > { %v1759_v12 = vpop.xlane.xlu1 %1758 }
 0x626   : > { %12980 = vrcp.f32 %v1759_v12  ;;  %v2139_v17 = vand.u32 2147483648, %v1759_v12  ;;  %v2210_v23 = vor.u32 1.1754944e-38, %v2209_v34  ;;  %v2137_v3 = vand.u32 2147483647, %v1759_v12 }
 0x627   : > { %vm2208_vm13 = vcmp.eq.f32.partialorder %v2207_v57, 8.507059e+37  ;;  %vm2133_vm14 = vweird.f32 %v1759_v12 }
 0x628   : > { %v2140_v19 = vor.u32 1.1754944e-38, %v2139_v17  ;;  %vm2138_vm2 = vcmp.eq.f32.partialorder %v2137_v3, 8.507059e+37  ;;  %v19604_v17 = vld [vmem:[#allocation19_spill] sm:$0xff]  ;;  %v19605_v3 = vld [vmem:[#allocation30_spill] sm:$0xff] }
 0x62a   : > { %v12979_v42 = vpop.eup %12978 }
 0x62b   : > { %v2199_v0 = vmul.f32 %v12979_v42, %v1774_v61  ;;  %6462 = vrot.lane.b32.xlu2 %v19601_v59, %s13423_s26  ;;  %vm2204_vm9 = vweird.f32 %v12979_v42 }
 0x62c   : > { %v12981_v60 = vpop.eup %12980  ;;  %vm2205_vm12 = vmor %vm2203_vm10, %vm2204_vm9 }
 0x62d   : > { %v2200_v52 = vsub.f32 1.0, %v2199_v0  ;;  %v2129_v51 = vmul.f32 %v12981_v60, %v1759_v12  ;;  %vm2134_vm11 = vweird.f32 %v12981_v60 }
 0x62e   : > { %vm2135_vm15 = vmor %vm2133_vm14, %vm2134_vm11 }
 0x62f   : > { %v2201_v41 = vmul.f32 %v12979_v42, %v2200_v52  ;;  %v2130_v49 = vsub.f32 1.0, %v2129_v51 }
 0x631   : > { %v2202_v9 = vadd.f32 %v12979_v42, %v2201_v41  ;;  %v2131_v36 = vmul.f32 %v12981_v60, %v2130_v49  ;;  %v1617_v41 = vsub.f32 %v14641_v40, %v14755_v7 }
 0x633   : > { %v2206_v44 = vsel %vm2205_vm12, %v12979_v42, %v2202_v9  ;;  %v2132_v28 = vadd.f32 %v12981_v60, %v2131_v36  ;;  %6492 = vrot.lane.b32.xlu2 %v19592_v26, %s13422_s25  ;;  %v19603_v36 = vld [vmem:[#allocation22_spill] sm:$0xff] }
 0x634   : > { %v2211_v0 = vsel %vm2208_vm13, %v2210_v23, %v2206_v44  ;;  %v12650_v44 = vunpack.i.h.bf16 %v19576_v15 }
 0x635   : > { %v2136_v52 = vsel %vm2135_vm15, %v12981_v60, %v2132_v28  ;;  %v1762_v51 = vpop.xlane.xlu2 %1761  ;;  %v2256_v61 = vmul.f32 %v14832_v22, %v2211_v0  ;;  %v1680_v28 = vmul.f32 1.442695, %v1617_v41  ;;  %v19606_v60 = vld [vmem:[#allocation5_spill] sm:$0xff] }
 0x636   : > { %12982 = vrcp.f32 %v1762_v51  ;;  %v2141_v42 = vsel %vm2138_vm2, %v2140_v19, %v2136_v52  ;;  %v2153_v23 = vand.u32 2147483648, %v1762_v51  ;;  %v2151_v15 = vand.u32 2147483647, %v1762_v51  ;;  %v19607_v19 = vld [vmem:[#allocation4_spill] sm:$0xff] }
 0x637   : > { %12138 = vmatmul.msk.f32.vlgmr.msrb.gmra.mxu3 %vm564_vm1, %v2256_v61  ;;  %v2251_v12 = vmul.f32 %v14834_v47, %v2141_v42  ;;  %12984 = vpow2.f32 %v1680_v28  ;;  %v12706_v34 = vpack.i.bf16 %v19607_v19, %v19606_v60  ;;  %vm2147_vm4 = vweird.f32 %v1762_v51  ;;  %v19608_v61 = vld [vmem:[#allocation26_spill] sm:$0xff]  ;;  %v19612_v28 = vld [vmem:[#allocation52_spill] sm:$0xff] }
 0x638   : > { %12148 = vmatpush.xpose.msk.msrb.mxu3 %vm564_vm1, %v19603_v36  ;;  %v2154_v9 = vor.u32 1.1754944e-38, %v2153_v23  ;;  %vm2152_vm6 = vcmp.eq.f32.partialorder %v2151_v15, 8.507059e+37  ;;  %v19609_v36 = vld [vmem:[#allocation41_spill] sm:$0xff] }
 0x639   : > { %12133 = vmatmul.msk.f32.vlgmr.msrb.gmra.mxu1 %vm564_vm1, %v2251_v12  ;;  %v19610_v12 = vld [vmem:[#allocation14_spill] sm:$0xff]  ;;  %v19616_v23 = vld [vmem:[#allocation61_spill] sm:$0xff] }
 0x63a   : > { %3085 = vmatpush.msrb.mxu1 %v12650_v44  ;;  %v19611_v44 = vld [vmem:[#allocation40_spill] sm:$0xff] }
 0x63b   : > { %6490 = vrot.lane.b32.xlu2 %v19592_v26, %s13423_s26 }
 0x63c   : > { %v12983_v40 = vpop.eup %12982 }
 0x63d   : > { %v2143_v7 = vmul.f32 %v12983_v40, %v1762_v51  ;;  %vm2148_vm3 = vweird.f32 %v12983_v40  ;;  %v14959_v49 = vpop.eup %12984  ;;  %v12726_v51 = vpack.i.bf16 %v13656_v50, %v13672_v53 }
 0x63e   : > { %vm2149_vm5 = vmor %vm2147_vm4, %vm2148_vm3  ;;  %v1775_v41 = vsel %vm564_vm1, %v14959_v49, 0.0 }
 0x63f   : > { %v2144_v22 = vsub.f32 1.0, %v2143_v7  ;;  %12143 = vmatmul.msk.f32.vlgmr.msra.gmra.mxu3 %vm564_vm1, %v19604_v17  ;;  %v19614_v7 = vld [vmem:[#allocation62_spill] sm:$0xff]  ;;  %v14988_v17 = vpop.permute.xlu1 %6238 }
 0x640   : > { %12154 = vmatpush.xpose.msk.msra.mxu3 %vm564_vm1, %v19605_v3  ;;  %19615 = vst [vmem:[#allocation22_spill] sm:$0xff] %v14988_v17  ;;  %v19617_v3 = vld [vmem:[#allocation71_spill] sm:$0xff] }
 0x641   : > { %v2145_v47 = vmul.f32 %v12983_v40, %v2144_v22  ;;  %v12766_v22 = vpack.i.bf16 %v19570_v16, %v19578_v5 }
 0x643   : > { %v2146_v57 = vadd.f32 %v12983_v40, %v2145_v47  ;;  %12707 = vrot.lane.b32.xlu2 %v12706_v34, %s13424_s28  ;;  %v19618_v47 = vld [vmem:[#allocation74_spill] sm:$0xff]  ;;  %v19620_v34 = vld [vmem:[#allocation80_spill] sm:$0xff] }
 0x645   : > { %v2150_v0 = vsel %vm2149_vm5, %v12983_v40, %v2146_v57  ;;  %v19613_v40 = vld [vmem:[#allocation51_spill] sm:$0xff]  ;;  %v15006_v57 = vpop.f32.mrf.mxu3 }
 0x646   : > { %v2155_v52 = vsel %vm2152_vm6, %v2154_v9, %v2150_v0  ;;  %19621 = vst [vmem:[#allocation30_spill] sm:$0xff] %v15006_v57  ;;  %v15010_v9 = vpop.permute.xlu2 %6266  ;;  %v19623_v0 = vld [vmem:[#allocation83_spill] sm:$0xff] }
 0x647   : > { %12149 = vmatmul.msk.f32.vlgmr.msrb.gmra.mxu3 %vm564_vm1, %v19608_v61  ;;  %v2252_v42 = vmul.f32 %v14845_v8, %v2155_v52  ;;  %v12741_v8 = vpack.i.bf16 %v19572_v11, %v19553_v39  ;;  %v15000_v15 = vpop.permute.xlu1 %6268  ;;  %19622 = vst [vmem:[#allocation26_spill] sm:$0xff] %v15010_v9  ;;  %v19624_v52 = vld [vmem:[#allocation99_spill] sm:$0xff] }
 0x648   : > { %12160 = vmatpush.xpose.msk.msrb.mxu3 %vm564_vm1, %v19609_v36  ;;  %1776 = vadd.xlane.f32.xlu1 %v1775_v41  ;;  %19619 = vst [vmem:[#allocation19_spill] sm:$0xff] %v15000_v15  ;;  %v19639_v57 = vld [vmem:[#allocation107_spill] sm:$0xff] }
 0x649   : > { %12134 = vmatmul.msk.f32.vlgmr.msrb.gmra.mxu2 %vm564_vm1, %v2252_v42 }
 0x64a   : > { %12140 = vmatpush.xpose.msk.msrb.mxu2 %vm564_vm1, %v19610_v12 }
 0x64b   : > { %12727 = vrot.lane.b32.xlu2 %v12726_v51, %s13424_s28  ;;  %v19627_v51 = vld [vmem:[#allocation90_spill] sm:$0xff] }
 0x64d   : > { %v15018_v41 = vpop.f32.mrf.mxu3 }
 0x64e   : > { %19625 = vst [vmem:[#allocation41_spill] sm:$0xff] %v15018_v41  ;;  %v15022_v42 = vpop.permute.xlu2 %6294 }
 0x64f   : > { %12155 = vmatmul.msk.f32.vlgmr.msra.gmra.mxu3 %vm564_vm1, %v19611_v44  ;;  %19626 = vst [vmem:[#allocation14_spill] sm:$0xff] %v15022_v42  ;;  %v19628_v44 = vld [vmem:[#allocation103_spill] sm:$0xff] }
 0x650   : > { %12166 = vmatpush.xpose.msk.msra.mxu3 %vm564_vm1, %v19612_v28 }
 0x653   : > { %12742 = vrot.lane.b32.xlu2 %v12741_v8, %s13424_s28 }
 0x655   : > { %v15030_v28 = vpop.f32.mrf.mxu3 }
 0x656   : > { %19629 = vst [vmem:[#allocation40_spill] sm:$0xff] %v15030_v28  ;;  %v19638_v28 = vld [vmem:[#allocation34_spill] sm:$0xff] }
 0x657   : > { %12161 = vmatmul.msk.f32.vlgmr.msrb.gmra.mxu3 %vm564_vm1, %v19613_v40  ;;  %v12570_v41 = vunpack.i.h.bf16 %v19638_v28  ;;  %v19642_v28 = vld [vmem:[#allocation8_spill] sm:$0xff] }
 0x658   : > { %12172 = vmatpush.xpose.msk.msrb.mxu3 %vm564_vm1, %v19614_v7 }
 0x65b   : > { %12767 = vrot.lane.b32.xlu2 %v12766_v22, %s13424_s28 }
 0x65f   : > { %12167 = vmatmul.msk.f32.vlgmr.msra.gmra.mxu3 %vm564_vm1, %v19616_v23 }
 0x660   : > { %12178 = vmatpush.xpose.msk.msra.mxu3 %vm564_vm1, %v19617_v3 }
 0x661   : > { %6464 = vrot.lane.b32.xlu1 %v19601_v59, %s13422_s25 }
 0x663   : > { %8212 = vrot.lane.b32.xlu2 %v19593_v37, %s13426_s30 }
 0x667   : > { %12173 = vmatmul.msk.f32.vlgmr.msrb.gmra.mxu3 %vm564_vm1, %v19618_v47 }
 0x668   : > { %12184 = vmatpush.xpose.msk.msrb.mxu3 %vm564_vm1, %v19620_v34  ;;  %v19630_v34 = vld [vmem:[#allocation88_spill] sm:$0xff] }
 0x669   : > { %6378 = vrot.lane.b32.xlu1 %v19570_v16, %s13423_s26  ;;  %v19708_v16 = vld [vmem:[#allocation95_spill] sm:$0xff] }
 0x66b   : > { %8294 = vrot.lane.b32.xlu2 %v19606_v60, %s13425_s29 }
 0x66f   : > { %12179 = vmatmul.msk.f32.vlgmr.msra.gmra.mxu3 %vm564_vm1, %v19623_v0 }
 0x670   : > { %12190 = vmatpush.xpose.msk.msra.mxu3 %vm564_vm1, %v19624_v52  ;;  %v1768_v61 = vpop.xlane.xlu1 %1767  ;;  %v19631_v52 = vld [vmem:[#allocation116_spill] sm:$0xff] }
 0x671   : > { %12986 = vrcp.f32 %v1768_v61  ;;  %6406 = vrot.lane.b32.xlu1 %v19578_v5, %s13423_s26  ;;  %v2181_v40 = vand.u32 2147483648, %v1768_v61  ;;  %v2179_v22 = vand.u32 2147483647, %v1768_v61  ;;  %vm2175_vm8 = vweird.f32 %v1768_v61 }
 0x673   : > { %8266 = vrot.lane.b32.xlu2 %v19607_v19, %s13425_s29  ;;  %v2182_v47 = vor.u32 1.1754944e-38, %v2181_v40  ;;  %vm2180_vm10 = vcmp.eq.f32.partialorder %v2179_v22, 8.507059e+37  ;;  %v19634_v40 = vld [vmem:[#allocation13_spill] sm:$0xff] }
 0x674   : > { %v19635_v22 = vld [vmem:[#allocation97_spill] sm:$0xff] }
 0x677   : > { %v12987_v36 = vpop.eup %12986  ;;  %12185 = vmatmul.msk.f32.vlgmr.msrb.gmra.mxu3 %vm564_vm1, %v19627_v51 }
 0x678   : > { %v2171_v12 = vmul.f32 %v12987_v36, %v1768_v61  ;;  %12196 = vmatpush.xpose.msk.msrb.mxu3 %vm564_vm1, %v19628_v44  ;;  %vm2176_vm7 = vweird.f32 %v12987_v36 }
 0x679   : > { %6520 = vrot.lane.b32.xlu1 %v19591_v20, %s13422_s25  ;;  %vm2177_vm9 = vmor %vm2175_vm8, %vm2176_vm7 }
 0x67a   : > { %v2172_v8 = vsub.f32 1.0, %v2171_v12  ;;  %v15040_v12 = vpop.f32.mrf.mxu3 }
 0x67b   : > { %8408 = vrot.lane.b32.xlu2 %v19598_v1, %s13426_s30  ;;  %19632 = vst [vmem:[#allocation52_spill] sm:$0xff] %v15040_v12 }
 0x67c   : > { %v2173_v7 = vmul.f32 %v12987_v36, %v2172_v8  ;;  %v19633_v8 = vld [vmem:[#allocation21_spill] sm:$0xff] }
 0x67e   : > { %v2174_v23 = vadd.f32 %v12987_v36, %v2173_v7  ;;  %v1771_v3 = vpop.xlane.xlu2 %1770 }
 0x67f   : > { %12988 = vrcp.f32 %v1771_v3  ;;  %12191 = vmatmul.msk.f32.vlgmr.msra.gmra.mxu3 %vm564_vm1, %v19630_v34  ;;  %vm2189_vm12 = vweird.f32 %v1771_v3 }
 0x680   : > { %v2178_v0 = vsel %vm2177_vm9, %v12987_v36, %v2174_v23  ;;  %12202 = vmatpush.xpose.msk.msra.mxu3 %vm564_vm1, %v19631_v52  ;;  %v12550_v36 = vunpack.i.h.bf16 %v19634_v40  ;;  %v19636_v23 = vld [vmem:[#allocation3_spill] sm:$0xff] }
 0x681   : > { %6518 = vrot.lane.b32.xlu1 %v19591_v20, %s13423_s26  ;;  %v2183_v51 = vsel %vm2180_vm10, %v2182_v47, %v2178_v0  ;;  %v12701_v34 = vpack.i.bf16 %v19593_v37, %v19636_v23  ;;  %v2195_v0 = vand.u32 2147483648, %v1771_v3  ;;  %v15133_v20 = vpop.f32.mrf.mxu2 }
 0x682   : > { %v2254_v61 = vmul.f32 %v14895_v31, %v2183_v51  ;;  %v15052_v31 = vpop.f32.mrf.mxu3  ;;  %v2193_v51 = vand.u32 2147483647, %v1771_v3  ;;  %19664 = vst [vmem:[#allocation103_spill] sm:$0xff] %v15133_v20 }
 0x683   : > { %19637 = vst [vmem:[#allocation51_spill] sm:$0xff] %v15052_v31 }
 0x684   : > { %12136 = vmatmul.msk.f32.vlgmr.msra.gmra.mxu1 %vm564_vm1, %v2254_v61  ;;  %vm2194_vm14 = vcmp.eq.f32.partialorder %v2193_v51, 8.507059e+37  ;;  %v19647_v51 = vld [vmem:[#allocation15_spill] sm:$0xff] }
 0x685   : > { %v12989_v44 = vpop.eup %12988  ;;  %12144 = vmatpush.xpose.msk.msra.mxu1 %vm564_vm1, %v19633_v8  ;;  %v2196_v8 = vor.u32 1.1754944e-38, %v2195_v0  ;;  %v19644_v0 = vld [vmem:[#allocation11_spill] sm:$0xff] }
 0x686   : > { %v2185_v7 = vmul.f32 %v12989_v44, %v1771_v3  ;;  %vm2190_vm11 = vweird.f32 %v12989_v44  ;;  %v19641_v3 = vld [vmem:[#allocation25_spill] sm:$0xff] }
 0x687   : > { %12197 = vmatmul.msk.f32.vlgmr.msrb.gmra.mxu3 %vm564_vm1, %v19635_v22  ;;  %vm2191_vm13 = vmor %vm2189_vm12, %vm2190_vm11 }
 0x688   : > { %v2186_v47 = vsub.f32 1.0, %v2185_v7  ;;  %4891 = vmatpush.msrb.mxu3 %v12550_v36  ;;  %v12711_v36 = vpack.i.bf16 %v13578_v30, %v19594_v13 }
 0x689   : > { %12702 = vrot.lane.b32.xlu1 %v12701_v34, %s13424_s28 }
 0x68a   : > { %v2187_v52 = vmul.f32 %v12989_v44, %v2186_v47  ;;  %v15061_v47 = vpop.f32.mrf.mxu3 }
 0x68b   : > { %19640 = vst [vmem:[#allocation62_spill] sm:$0xff] %v15061_v47 }
 0x68c   : > { %v2188_v61 = vadd.f32 %v12989_v44, %v2187_v52 }
 0x68e   : > { %v2192_v22 = vsel %vm2191_vm13, %v12989_v44, %v2188_v61  ;;  %v12716_v44 = vpack.i.bf16 %v19642_v28, %v19598_v1  ;;  %v19648_v61 = vld [vmem:[#allocation47_spill] sm:$0xff] }
 0x68f   : > { %12203 = vmatmul.msk.f32.vlgmr.msra.gmra.mxu3 %vm564_vm1, %v19639_v57  ;;  %v2197_v7 = vsel %vm2194_vm14, %v2196_v8, %v2192_v22  ;;  %v12751_v8 = vpack.i.bf16 %v19560_v2, %v13869_v62  ;;  %v15086_v22 = vpop.permute.xlu1 %6296 }
 0x690   : > { %4995 = vmatpush.msra.mxu3 %v12570_v41  ;;  %v2255_v34 = vmul.f32 %v14909_v48, %v2197_v7  ;;  %v19645_v48 = vld [vmem:[#allocation36_spill] sm:$0xff]  ;;  %v12731_v41 = vpack.i.bf16 %v13687_v58, %v13702_v63  ;;  %19649 = vst [vmem:[#allocation74_spill] sm:$0xff] %v15086_v22  ;;  %v19651_v7 = vld [vmem:[#allocation27_spill] sm:$0xff] }
 0x691   : > { %12712 = vrot.lane.b32.xlu1 %v12711_v36, %s13424_s28 }
 0x692   : > { %12137 = vmatmul.msk.f32.vlgmr.msra.gmra.mxu2 %vm564_vm1, %v2255_v34  ;;  %v15069_v57 = vpop.f32.mrf.mxu3  ;;  %v19652_v34 = vld [vmem:[#allocation65_spill] sm:$0xff] }
 0x693   : > { %12146 = vmatpush.xpose.msk.msra.mxu2 %vm564_vm1, %v19641_v3  ;;  %19643 = vst [vmem:[#allocation61_spill] sm:$0xff] %v15069_v57  ;;  %v12756_v3 = vpack.i.bf16 %v19583_v14, %v19587_v45 }
 0x699   : > { %12717 = vrot.lane.b32.xlu1 %v12716_v44, %s13424_s28 }
 0x69a   : > { %12141 = vmatmul.msk.f32.vlgmr.msrb.gmra.mxu2 %vm564_vm1, %v19644_v0  ;;  %v15078_v52 = vpop.f32.mrf.mxu3  ;;  %v19654_v0 = vld [vmem:[#allocation38_spill] sm:$0xff] }
 0x69b   : > { %12152 = vmatpush.xpose.msk.msrb.mxu2 %vm564_vm1, %v19645_v48  ;;  %19646 = vst [vmem:[#allocation71_spill] sm:$0xff] %v15078_v52  ;;  %v15102_v48 = vpop.permute.xlu1 %6210 }
 0x69c   : > { %19655 = vst [vmem:[#allocation99_spill] sm:$0xff] %v15102_v48 }
 0x6a1   : > { %12732 = vrot.lane.b32.xlu1 %v12731_v41, %s13424_s28  ;;  %v19656_v41 = vld [vmem:[#allocation73_spill] sm:$0xff] }
 0x6a2   : > { %12147 = vmatmul.msk.f32.vlgmr.msra.gmra.mxu2 %vm564_vm1, %v19647_v51  ;;  %v15089_v36 = vpop.f32.mrf.mxu3  ;;  %v12761_v51 = vpack.i.bf16 %v19581_v24, %v19568_v21 }
 0x6a3   : > { %12158 = vmatpush.xpose.msk.msra.mxu2 %vm564_vm1, %v19648_v61  ;;  %19650 = vst [vmem:[#allocation80_spill] sm:$0xff] %v15089_v36  ;;  %v19661_v36 = vld [vmem:[#allocation89_spill] sm:$0xff] }
 0x6a9   : > { %12752 = vrot.lane.b32.xlu1 %v12751_v8, %s13424_s28  ;;  %v19658_v8 = vld [vmem:[#allocation48_spill] sm:$0xff] }
 0x6aa   : > { %12153 = vmatmul.msk.f32.vlgmr.msrb.gmra.mxu2 %vm564_vm1, %v19651_v7  ;;  %v15098_v44 = vpop.f32.mrf.mxu3  ;;  %v19659_v7 = vld [vmem:[#allocation82_spill] sm:$0xff] }
 0x6ab   : > { %12164 = vmatpush.xpose.msk.msrb.mxu2 %vm564_vm1, %v19652_v34  ;;  %19653 = vst [vmem:[#allocation83_spill] sm:$0xff] %v15098_v44  ;;  %v19660_v44 = vld [vmem:[#allocation58_spill] sm:$0xff] }
 0x6b1   : > { %12757 = vrot.lane.b32.xlu1 %v12756_v3, %s13424_s28  ;;  %v12771_v3 = vpack.i.bf16 %v19584_v54, %v19601_v59  ;;  %v19688_v59 = vld [vmem:[#allocation76_spill] sm:$0xff] }
 0x6b2   : > { %12159 = vmatmul.msk.f32.vlgmr.msra.gmra.mxu2 %vm564_vm1, %v19654_v0 }
 0x6b3   : > { %12170 = vmatpush.xpose.msk.msra.mxu2 %vm564_vm1, %v19656_v41 }
 0x6b9   : > { %12762 = vrot.lane.b32.xlu1 %v12761_v51, %s13424_s28 }
 0x6ba   : > { %v15109_v61 = vpop.f32.mrf.mxu3  ;;  %12165 = vmatmul.msk.f32.vlgmr.msrb.gmra.mxu2 %vm564_vm1, %v19658_v8 }
 0x6bb   : > { %19657 = vst [vmem:[#allocation90_spill] sm:$0xff] %v15109_v61  ;;  %12176 = vmatpush.xpose.msk.msrb.mxu2 %vm564_vm1, %v19659_v7  ;;  %v1777_v34 = vpop.xlane.xlu1 %1776 }
 0x6bc   : > { %12990 = vrcp.f32 %v1777_v34  ;;  %v2223_v52 = vand.u32 2147483648, %v1777_v34  ;;  %v2221_v47 = vand.u32 2147483647, %v1777_v34  ;;  %vm2217_vm2 = vweird.f32 %v1777_v34 }
 0x6be   : > { %vm2222_vm4 = vcmp.eq.f32.partialorder %v2221_v47, 8.507059e+37 }
 0x6c1   : > { %12772 = vrot.lane.b32.xlu1 %v12771_v3, %s13424_s28 }
 0x6c2   : > { %v12991_v0 = vpop.eup %12990  ;;  %v3143_v41 = vpop.f32.mrf.mxu3  ;;  %12171 = vmatmul.msk.f32.vlgmr.msra.gmra.mxu2 %vm564_vm1, %v19660_v44  ;;  %v2224_v44 = vor.u32 1.1754944e-38, %v2223_v52 }
 0x6c3   : > { %v2213_v51 = vmul.f32 %v12991_v0, %v1777_v34  ;;  %v3987_v61 = vmul.f32 0.17677669, %v3143_v41  ;;  %12182 = vmatpush.xpose.msk.msra.mxu2 %vm564_vm1, %v19661_v36  ;;  %vm2218_vm15 = vweird.f32 %v12991_v0  ;;  %v19662_v41 = vld [vmem:[#allocation69_spill] sm:$0xff] }
 0x6c4   : > { %vm2219_vm3 = vmor %vm2217_vm2, %vm2218_vm15 }
 0x6c5   : > { %v2214_v8 = vsub.f32 1.0, %v2213_v51  ;;  %v15123_v7 = vadd.f32 %v3987_v61, %v14111_v56 }
 0x6c7   : > { %v2215_v57 = vmul.f32 %v12991_v0, %v2214_v8  ;;  %v4053_v3 = vsel %vm564_vm1, %v15123_v7, -inf  ;;  %v19663_v8 = vld [vmem:[#allocation85_spill] sm:$0xff] }
 0x6c8   : > { %4054 = vmax.xlane.f32.xlu0 %v4053_v3 }
 0x6c9   : > { %v2216_v31 = vadd.f32 %v12991_v0, %v2215_v57  ;;  %8240 = vrot.lane.b32.xlu1 %v19636_v23, %s13426_s30 }
 0x6ca   : > { %v3227_v36 = vpop.f32.mrf.mxu3  ;;  %12177 = vmatmul.msk.f32.vlgmr.msrb.gmra.mxu2 %vm564_vm1, %v19662_v41  ;;  %v19669_v41 = vld [vmem:[#allocation20_spill] sm:$0xff] }
 0x6cb   : > { %v2220_v61 = vsel %vm2219_vm3, %v12991_v0, %v2216_v31  ;;  %v3990_v51 = vmul.f32 0.17677669, %v3227_v36  ;;  %12188 = vmatpush.xpose.msk.msrb.mxu2 %vm564_vm1, %v19663_v8  ;;  %v19665_v31 = vld [vmem:[#allocation29_spill] sm:$0xff]  ;;  %v19666_v0 = vld [vmem:[#allocation78_spill] sm:$0xff] }
 0x6cc   : > { %v2225_v12 = vsel %vm2222_vm4, %v2224_v44, %v2220_v61  ;;  %v19667_v44 = vld [vmem:[#allocation101_spill] sm:$0xff] }
 0x6cd   : > { %v15136_v57 = vadd.f32 %v3990_v51, %v14111_v56  ;;  %v2257_v34 = vmul.f32 %v14959_v49, %v2225_v12  ;;  %v15150_v49 = vpop.f32.mrf.mxu2  ;;  %v19670_v61 = vld [vmem:[#allocation45_spill] sm:$0xff] }
 0x6ce   : > { %19668 = vst [vmem:[#allocation88_spill] sm:$0xff] %v15150_v49  ;;  %v19682_v49 = vld [vmem:[#allocation68_spill] sm:$0xff] }
 0x6cf   : > { %v4062_v52 = vsel %vm564_vm1, %v15136_v57, -inf  ;;  %12139 = vmatmul.msk.f32.vlgmr.msrb.gmra.mxu1 %vm564_vm1, %v2257_v34  ;;  %v19672_v34 = vld [vmem:[#allocation96_spill] sm:$0xff] }
 0x6d0   : > { %4063 = vmax.xlane.f32.xlu0 %v4062_v52  ;;  %12150 = vmatpush.xpose.msk.msrb.mxu1 %vm564_vm1, %v19665_v31  ;;  %v19673_v31 = vld [vmem:[#allocation108_spill] sm:$0xff] }
 0x6d1   : > { %8238 = vrot.lane.b32.xlu1 %v19636_v23, %s13425_s29  ;;  %v19697_v23 = vld [vmem:[#allocation79_spill] sm:$0xff] }
 0x6d2   : > { %v3311_v47 = vpop.f32.mrf.mxu3  ;;  %12183 = vmatmul.msk.f32.vlgmr.msra.gmra.mxu2 %vm564_vm1, %v19666_v0 }
 0x6d3   : > { %v3993_v3 = vmul.f32 0.17677669, %v3311_v47  ;;  %12194 = vmatpush.xpose.msk.msra.mxu2 %vm564_vm1, %v19667_v44  ;;  %v15163_v51 = vpop.permute.xlu1 %6464  ;;  %v19675_v44 = vld [vmem:[#allocation31_spill] sm:$0xff] }
 0x6d4   : > { %19671 = vst [vmem:[#allocation116_spill] sm:$0xff] %v15163_v51 }
 0x6d5   : > { %v15153_v12 = vadd.f32 %v3993_v3, %v14111_v56  ;;  %v15169_v47 = vpop.f32.mrf.mxu2 }
 0x6d6   : > { %19674 = vst [vmem:[#allocation21_spill] sm:$0xff] %v15169_v47  ;;  %v19687_v47 = vld [vmem:[#allocation60_spill] sm:$0xff] }
 0x6d7   : > { %v4071_v36 = vsel %vm564_vm1, %v15153_v12, -inf  ;;  %12145 = vmatmul.msk.f32.vlgmr.msra.gmra.mxu1 %vm564_vm1, %v19669_v41  ;;  %v12549_v41 = vunpack.i.l.bf16 %v19634_v40  ;;  %v19680_v40 = vld [vmem:[#allocation44_spill] sm:$0xff] }
 0x6d8   : > { %4072 = vmax.xlane.f32.xlu0 %v4071_v36  ;;  %12156 = vmatpush.xpose.msk.msra.mxu1 %vm564_vm1, %v19670_v61  ;;  %v19676_v36 = vld [vmem:[#allocation54_spill] sm:$0xff] }
 0x6d9   : > { %8296 = vrot.lane.b32.xlu1 %v19606_v60, %s13426_s30 }
 0x6da   : > { %v3395_v8 = vpop.f32.mrf.mxu3  ;;  %12189 = vmatmul.msk.f32.vlgmr.msrb.gmra.mxu2 %vm564_vm1, %v19672_v34 }
 0x6db   : > { %v3996_v52 = vmul.f32 0.17677669, %v3395_v8  ;;  %12200 = vmatpush.xpose.msk.msrb.mxu2 %vm564_vm1, %v19673_v31  ;;  %v19677_v8 = vld [vmem:[#allocation102_spill] sm:$0xff] }
 0x6dd   : > { %v15172_v0 = vadd.f32 %v3996_v52, %v14111_v56  ;;  %v15185_v52 = vpop.permute.xlu1 %6378  ;;  %v15187_v31 = vpop.f32.mrf.mxu2 }
 0x6de   : > { %19678 = vst [vmem:[#allocation13_spill] sm:$0xff] %v15185_v52 }
 0x6df   : > { %v4080_v3 = vsel %vm564_vm1, %v15172_v0, -inf  ;;  %12151 = vmatmul.msk.f32.vlgmr.msrb.gmra.mxu1 %vm564_vm1, %v19675_v44  ;;  %19679 = vst [vmem:[#allocation97_spill] sm:$0xff] %v15187_v31 }
 0x6e0   : > { %4081 = vmax.xlane.f32.xlu0 %v4080_v3  ;;  %12162 = vmatpush.xpose.msk.msrb.mxu1 %vm564_vm1, %v19676_v36  ;;  %v15196_v36 = vpop.permute.xlu0 %6408 }
 0x6e1   : > { %8268 = vrot.lane.b32.xlu1 %v19607_v19, %s13426_s30  ;;  %19681 = vst [vmem:[#allocation34_spill] sm:$0xff] %v15196_v36 }
 0x6e2   : > { %v3479_v61 = vpop.f32.mrf.mxu3  ;;  %12195 = vmatmul.msk.f32.vlgmr.msra.gmra.mxu2 %vm564_vm1, %v19677_v8 }
 0x6e3   : > { %v3999_v34 = vmul.f32 0.17677669, %v3479_v61  ;;  %4865 = vmatpush.msra.mxu2 %v12549_v41  ;;  %v19683_v41 = vld [vmem:[#allocation33_spill] sm:$0xff] }
 0x6e4   : > { %v12564_v61 = vunpack.i.l.bf16 %v19683_v41  ;;  %v12565_v24 = vunpack.i.h.bf16 %v19683_v41 }
 0x6e5   : > { %v15190_v3 = vadd.f32 %v3999_v34, %v14111_v56  ;;  %v19684_v34 = vld [vmem:[#allocation109_spill] sm:$0xff]  ;;  %v15205_v31 = vpop.f32.mrf.mxu2 }
 0x6e6   : > { %19685 = vst [vmem:[#allocation107_spill] sm:$0xff] %v15205_v31 }
 0x6e7   : > { %v4089_v44 = vsel %vm564_vm1, %v15190_v3, -inf  ;;  %12157 = vmatmul.msk.f32.vlgmr.msra.gmra.mxu1 %vm564_vm1, %v19680_v40 }
 0x6e8   : > { %4090 = vmax.xlane.f32.xlu0 %v4089_v44  ;;  %12168 = vmatpush.xpose.msk.msra.mxu1 %vm564_vm1, %v19682_v49  ;;  %v15210_v44 = vpop.permute.xlu1 %6406 }
 0x6e9   : > { %8350 = vrot.lane.b32.xlu1 %v19594_v13, %s13425_s29  ;;  %19686 = vst [vmem:[#allocation25_spill] sm:$0xff] %v15210_v44  ;;  %v19718_v44 = vld [vmem:[#allocation106_spill] sm:$0xff] }
 0x6ea   : > { %v3563_v8 = vpop.f32.mrf.mxu3  ;;  %12201 = vmatmul.msk.f32.vlgmr.msrb.gmra.mxu2 %vm564_vm1, %v19684_v34 }
 0x6eb   : > { %v4002_v20 = vmul.f32 0.17677669, %v3563_v8  ;;  %4969 = vmatpush.msrb.mxu2 %v12564_v61  ;;  %v15220_v61 = vpop.permute.xlu0 %6322 }
 0x6ec   : > { %19689 = vst [vmem:[#allocation11_spill] sm:$0xff] %v15220_v61 }
 0x6ed   : > { %v15208_v40 = vadd.f32 %v4002_v20, %v14111_v56  ;;  %v15222_v34 = vpop.f32.mrf.mxu2 }
 0x6ee   : > { %19690 = vst [vmem:[#allocation36_spill] sm:$0xff] %v15222_v34 }
 0x6ef   : > { %v4098_v49 = vsel %vm564_vm1, %v15208_v40, -inf  ;;  %12163 = vmatmul.msk.f32.vlgmr.msrb.gmra.mxu1 %vm564_vm1, %v19687_v47  ;;  %v19691_v47 = vld [vmem:[#allocation70_spill] sm:$0xff] }
 0x6f0   : > { %4099 = vmax.xlane.f32.xlu0 %v4098_v49  ;;  %12174 = vmatpush.xpose.msk.msrb.mxu1 %vm564_vm1, %v19688_v59  ;;  %v15231_v49 = vpop.permute.xlu1 %6520  ;;  %v19693_v59 = vld [vmem:[#allocation84_spill] sm:$0xff] }
 0x6f1   : > { %8322 = vrot.lane.b32.xlu1 %v13578_v30, %s13425_s29  ;;  %19692 = vst [vmem:[#allocation15_spill] sm:$0xff] %v15231_v49 }
 0x6f2   : > { %v3647_v8 = vpop.f32.mrf.mxu3 }
 0x6f3   : > { %v4005_v20 = vmul.f32 0.17677669, %v3647_v8  ;;  %v15235_v8 = vpop.f32.mrf.mxu1  ;;  %v15237_v34 = vpop.permute.xlu0 %6436 }
 0x6f4   : > { %19694 = vst [vmem:[#allocation47_spill] sm:$0xff] %v15235_v8 }
 0x6f5   : > { %v15225_v31 = vadd.f32 %v4005_v20, %v14111_v56  ;;  %19695 = vst [vmem:[#allocation27_spill] sm:$0xff] %v15237_v34  ;;  %v15239_v20 = vpop.f32.mrf.mxu2 }
 0x6f6   : > { %19696 = vst [vmem:[#allocation65_spill] sm:$0xff] %v15239_v20 }
 0x6f7   : > { %v4107_v13 = vsel %vm564_vm1, %v15225_v31, -inf  ;;  %12169 = vmatmul.msk.f32.vlgmr.msra.gmra.mxu1 %vm564_vm1, %v19691_v47 }
 0x6f8   : > { %4108 = vmax.xlane.f32.xlu0 %v4107_v13  ;;  %12180 = vmatpush.xpose.msk.msra.mxu1 %vm564_vm1, %v19693_v59  ;;  %v19698_v13 = vld [vmem:[#allocation91_spill] sm:$0xff] }
 0x6fa   : > { %v3731_v19 = vpop.f32.mrf.mxu3 }
 0x6fb   : > { %v4008_v1 = vmul.f32 0.17677669, %v3731_v19  ;;  %v15250_v19 = vpop.permute.xlu1 %6518  ;;  %v15252_v60 = vpop.f32.mrf.mxu1 }
 0x6fc   : > { %19699 = vst [vmem:[#allocation38_spill] sm:$0xff] %v15250_v19  ;;  %v15259_v37 = vpop.permute.xlu0 %6434 }
 0x6fd   : > { %v15242_v30 = vadd.f32 %v4008_v1, %v14111_v56  ;;  %19700 = vst [vmem:[#allocation73_spill] sm:$0xff] %v15252_v60  ;;  %v15254_v20 = vpop.f32.mrf.mxu2 }
 0x6fe   : > { %19701 = vst [vmem:[#allocation48_spill] sm:$0xff] %v15254_v20 }
 0x6ff   : > { %v4116_v47 = vsel %vm564_vm1, %v15242_v30, -inf  ;;  %12175 = vmatmul.msk.f32.vlgmr.msrb.gmra.mxu1 %vm564_vm1, %v19697_v23  ;;  %19702 = vst [vmem:[#allocation82_spill] sm:$0xff] %v15259_v37 }
 0x700   : > { %4117 = vmax.xlane.f32.xlu0 %v4116_v47  ;;  %12186 = vmatpush.xpose.msk.msrb.mxu1 %vm564_vm1, %v19698_v13  ;;  %v19703_v47 = vld [vmem:[#allocation86_spill] sm:$0xff]  ;;  %v19704_v13 = vld [vmem:[#allocation100_spill] sm:$0xff] }
 0x702   : > { %v3815_v59 = vpop.f32.mrf.mxu3 }
 0x703   : > { %v4011_v8 = vmul.f32 0.17677669, %v3815_v59  ;;  %v15267_v60 = vpop.f32.mrf.mxu1  ;;  %v15269_v20 = vpop.permute.xlu1 %12702 }
 0x704   : > { %19705 = vst [vmem:[#allocation58_spill] sm:$0xff] %v15267_v60 }
 0x705   : > { %v15257_v1 = vadd.f32 %v4011_v8, %v14111_v56  ;;  %19706 = vst [vmem:[#allocation89_spill] sm:$0xff] %v15269_v20  ;;  %v15271_v8 = vpop.f32.mrf.mxu2 }
 0x706   : > { %19707 = vst [vmem:[#allocation69_spill] sm:$0xff] %v15271_v8 }
 0x707   : > { %v4125_v23 = vsel %vm564_vm1, %v15257_v1, -inf  ;;  %12181 = vmatmul.msk.f32.vlgmr.msra.gmra.mxu1 %vm564_vm1, %v19703_v47  ;;  %v19710_v47 = vld [vmem:[#allocation105_spill] sm:$0xff] }
 0x708   : > { %4126 = vmax.xlane.f32.xlu0 %v4125_v23  ;;  %12192 = vmatpush.xpose.msk.msra.mxu1 %vm564_vm1, %v19704_v13  ;;  %v15280_v23 = vpop.permute.xlu0 %12722 }
 0x709   : > { %19709 = vst [vmem:[#allocation85_spill] sm:$0xff] %v15280_v23 }
 0x70a   : > { %v3899_v59 = vpop.f32.mrf.mxu3 }
 0x70b   : > { %v4014_v26 = vmul.f32 0.17677669, %v3899_v59  ;;  %v15284_v60 = vpop.f32.mrf.mxu1  ;;  %v15292_v19 = vpop.permute.xlu1 %12712 }
 0x70c   : > { %19711 = vst [vmem:[#allocation29_spill] sm:$0xff] %v15284_v60  ;;  %v19717_v60 = vld [vmem:[#allocation50_spill] sm:$0xff] }
 0x70d   : > { %v15274_v5 = vadd.f32 %v4014_v26, %v14111_v56  ;;  %19713 = vst [vmem:[#allocation101_spill] sm:$0xff] %v15292_v19 }
 0x70f   : > { %v4134_v54 = vsel %vm564_vm1, %v15274_v5, -inf  ;;  %12187 = vmatmul.msk.f32.vlgmr.msrb.gmra.mxu1 %vm564_vm1, %v19708_v16 }
 0x710   : > { %4135 = vmax.xlane.f32.xlu0 %v4134_v54  ;;  %12198 = vmatpush.xpose.msk.msrb.mxu1 %vm564_vm1, %v19710_v47  ;;  %v19714_v54 = vld [vmem:[#allocation92_spill] sm:$0xff]  ;;  %v15298_v47 = vpop.permute.xlu0 %12737 }
 0x711   : > { %19715 = vst [vmem:[#allocation20_spill] sm:$0xff] %v15298_v47 }
 0x712   : > { %v3983_v13 = vpop.f32.mrf.mxu3 }
 0x713   : > { %v4017_v59 = vmul.f32 0.17677669, %v3983_v13  ;;  %v15300_v13 = vpop.f32.mrf.mxu1  ;;  %v15305_v41 = vpop.permute.xlu1 %12717 }
 0x714   : > { %19716 = vst [vmem:[#allocation45_spill] sm:$0xff] %v15300_v13 }
 0x715   : > { %v15286_v8 = vpop.f32.mrf.mxu2  ;;  %v15289_v26 = vadd.f32 %v4017_v59, %v14111_v56  ;;  %v12585_v59 = vunpack.i.h.bf16 %v19717_v60  ;;  %19719 = vst [vmem:[#allocation96_spill] sm:$0xff] %v15305_v41 }
 0x716   : > { %19712 = vst [vmem:[#allocation78_spill] sm:$0xff] %v15286_v8 }
 0x717   : > { %v4143_v16 = vsel %vm564_vm1, %v15289_v26, -inf  ;;  %12193 = vmatmul.msk.f32.vlgmr.msra.gmra.mxu1 %vm564_vm1, %v19714_v54 }
 0x718   : > { %4144 = vmax.xlane.f32.xlu0 %v4143_v16  ;;  %4839 = vmatpush.msra.mxu1 %v12565_v24  ;;  %v15314_v54 = vpop.permute.xlu0 %12747 }
 0x719   : > { %19721 = vst [vmem:[#allocation31_spill] sm:$0xff] %v15314_v54 }
 0x71b   : > { %v15312_v16 = vpop.f32.mrf.mxu1 }
 0x71c   : > { %19720 = vst [vmem:[#allocation108_spill] sm:$0xff] %v15312_v16 }
 0x71d   : > { %v3115_v8 = vpop.f32.mrf.mxu2 }
 0x71e   : > { %v3986_v23 = vmul.f32 0.17677669, %v3115_v8 }
 0x71f   : > { %12199 = vmatmul.msk.f32.vlgmr.msrb.gmra.mxu1 %vm564_vm1, %v19718_v44  ;;  %v15319_v44 = vpop.permute.xlu1 %12732 }
 0x720   : > { %4943 = vmatpush.msrb.mxu1 %v12585_v59  ;;  %v15308_v49 = vadd.f32 %v3986_v23, %v14111_v56  ;;  %19722 = vst [vmem:[#allocation54_spill] sm:$0xff] %v15319_v44  ;;  %v15325_v36 = vpop.permute.xlu0 %12777 }
 0x721   : > { %19724 = vst [vmem:[#allocation44_spill] sm:$0xff] %v15325_v36 }
 0x722   : > { %v4050_v24 = vsel %vm564_vm1, %v15308_v49, -inf }
 0x723   : > { %4051 = vmax.xlane.f32.xlu1 %v4050_v24  ;;  %v15323_v23 = vpop.f32.mrf.mxu1 }
 0x724   : > { %19723 = vst [vmem:[#allocation102_spill] sm:$0xff] %v15323_v23 }
 0x725   : > { %v3199_v13 = vpop.f32.mrf.mxu2 }
 0x726   : > { %v3989_v47 = vmul.f32 0.17677669, %v3199_v13 }
 0x727   : > { %v15334_v54 = vpop.permute.xlu1 %12752 }
 0x728   : > { %v15317_v8 = vadd.f32 %v3989_v47, %v14111_v56  ;;  %19726 = vst [vmem:[#allocation33_spill] sm:$0xff] %v15334_v54 }
 0x72a   : > { %v4059_v59 = vsel %vm564_vm1, %v15317_v8, -inf }
 0x72b   : > { %4060 = vmax.xlane.f32.xlu1 %v4059_v59  ;;  %v15332_v47 = vpop.f32.mrf.mxu1  ;;  %v15336_v59 = vpop.permute.xlu0 %8210 }
 0x72c   : > { %19725 = vst [vmem:[#allocation68_spill] sm:$0xff] %v15332_v47 }
 0x72d   : > { %v3283_v42 = vpop.f32.mrf.mxu2  ;;  %19727 = vst [vmem:[#allocation109_spill] sm:$0xff] %v15336_v59 }
 0x72e   : > { %v3992_v24 = vmul.f32 0.17677669, %v3283_v42 }
 0x72f   : > { %v15345_v41 = vpop.permute.xlu1 %12757 }
 0x730   : > { %v15328_v16 = vadd.f32 %v3992_v24, %v14111_v56  ;;  %19729 = vst [vmem:[#allocation76_spill] sm:$0xff] %v15345_v41 }
 0x732   : > { %v4068_v13 = vsel %vm564_vm1, %v15328_v16, -inf }
 0x733   : > { %4069 = vmax.xlane.f32.xlu1 %v4068_v13  ;;  %v15343_v24 = vpop.f32.mrf.mxu1  ;;  %v15350_v54 = vpop.permute.xlu0 %8352 }
 0x734   : > { %19728 = vst [vmem:[#allocation60_spill] sm:$0xff] %v15343_v24 }
 0x735   : > { %v3367_v44 = vpop.f32.mrf.mxu2  ;;  %19730 = vst [vmem:[#allocation70_spill] sm:$0xff] %v15350_v54 }
 0x736   : > { %v3995_v22 = vmul.f32 0.17677669, %v3367_v44 }
 0x738   : > { %v15339_v23 = vadd.f32 %v3995_v22, %v14111_v56 }
 0x73a   : > { %v4077_v42 = vsel %vm564_vm1, %v15339_v23, -inf }
 0x73b   : > { %4078 = vmax.xlane.f32.xlu1 %v4077_v42  ;;  %v15354_v22 = vpop.f32.mrf.mxu1  ;;  %v15356_v42 = vpop.permute.xlu1 %12762 }
 0x73c   : > { %19731 = vst [vmem:[#allocation84_spill] sm:$0xff] %v15354_v22 }
 0x73d   : > { %v3451_v36 = vpop.f32.mrf.mxu2  ;;  %19732 = vst [vmem:[#allocation79_spill] sm:$0xff] %v15356_v42 }
 0x73e   : > { %v3998_v13 = vmul.f32 0.17677669, %v3451_v36 }
 0x740   : > { %v15348_v47 = vadd.f32 %v3998_v13, %v14111_v56  ;;  %v15363_v13 = vpop.permute.xlu0 %8324 }
 0x741   : > { %19733 = vst [vmem:[#allocation91_spill] sm:$0xff] %v15363_v13  ;;  %v15376_v13 = vpop.permute.xlu2 %6324 }
 0x742   : > { %v4086_v44 = vsel %vm564_vm1, %v15348_v47, -inf  ;;  %19737 = vst [vmem:[#allocation105_spill] sm:$0xff] %v15376_v13 }
 0x743   : > { %4087 = vmax.xlane.f32.xlu1 %v4086_v44  ;;  %v15370_v22 = vpop.permute.xlu1 %12772 }
 0x744   : > { %19735 = vst [vmem:[#allocation100_spill] sm:$0xff] %v15370_v22 }
 0x745   : > { %v3535_v59 = vpop.f32.mrf.mxu2 }
 0x746   : > { %v4001_v52 = vmul.f32 0.17677669, %v3535_v59 }
 0x748   : > { %v15359_v24 = vadd.f32 %v4001_v52, %v14111_v56  ;;  %v15374_v9 = vpop.permute.xlu0 %8406 }
 0x749   : > { %19736 = vst [vmem:[#allocation95_spill] sm:$0xff] %v15374_v9  ;;  %v15396_v20 = vpop.permute.xlu2 %6462 }
 0x74a   : > { %v4095_v36 = vsel %vm564_vm1, %v15359_v24, -inf  ;;  %19739 = vst [vmem:[#allocation50_spill] sm:$0xff] %v15396_v20 }
 0x74b   : > { %4096 = vmax.xlane.f32.xlu1 %v4095_v36 }
 0x74c   : > { %v15365_v54 = vpop.f32.mrf.mxu1 }
 0x74d   : > { %19734 = vst [vmem:[#allocation86_spill] sm:$0xff] %v15365_v54  ;;  %v3619_v41 = vpop.f32.mrf.mxu2 }
 0x74e   : > { %v4004_v37 = vmul.f32 0.17677669, %v3619_v41 }
 0x750   : > { %v15368_v44 = vadd.f32 %v4004_v37, %v14111_v56  ;;  %v4055_v61 = vpop.xlane.xlu0 %4054 }
 0x751   : > { %v4147_v48 = vsub.f32 %v15123_v7, %v4055_v61 }
 0x752   : > { %v4104_v59 = vsel %vm564_vm1, %v15368_v44, -inf }
 0x753   : > { %4105 = vmax.xlane.f32.xlu1 %v4104_v59 }
 0x754   : > { %v3171_v52 = vpop.f32.mrf.mxu1 }
 0x755   : > { %v3988_v42 = vmul.f32 0.17677669, %v3171_v52  ;;  %v3703_v19 = vpop.f32.mrf.mxu2  ;;  %v15388_v52 = vpop.permute.xlu1 %8240 }
 0x756   : > { %v4007_v36 = vmul.f32 0.17677669, %v3703_v19  ;;  %19738 = vst [vmem:[#allocation92_spill] sm:$0xff] %v15388_v52 }
 0x757   : > { %v15379_v54 = vadd.f32 %v3988_v42, %v14111_v56 }
 0x758   : > { %v15382_v37 = vadd.f32 %v4007_v36, %v14111_v56 }
 0x759   : > { %v4056_v41 = vsel %vm564_vm1, %v15379_v54, -inf }
 0x75a   : > { %4057 = vmax.xlane.f32.xlu2 %v4056_v41  ;;  %v4113_v59 = vsel %vm564_vm1, %v15382_v37, -inf }
 0x75b   : > { %4114 = vmax.xlane.f32.xlu1 %v4113_v59 }
 0x75c   : > { %v3255_v9 = vpop.f32.mrf.mxu1 }
 0x75d   : > { %v3991_v19 = vmul.f32 0.17677669, %v3255_v9  ;;  %v3787_v22 = vpop.f32.mrf.mxu2 }
 0x75e   : > { %v4010_v51 = vmul.f32 0.17677669, %v3787_v22  ;;  %v15402_v22 = vpop.permute.xlu1 %8238 }
 0x75f   : > { %v15391_v42 = vadd.f32 %v3991_v19, %v14111_v56  ;;  %19740 = vst [vmem:[#allocation106_spill] sm:$0xff] %v15402_v22  ;;  %v4180_v22 = vmul.f32 1.442695, %v4147_v48 }
 0x760   : > { %v15394_v36 = vadd.f32 %v4010_v51, %v14111_v56  ;;  %v4064_v51 = vpop.xlane.xlu0 %4063 }
 0x761   : > { %v4065_v41 = vsel %vm564_vm1, %v15391_v42, -inf  ;;  %12992 = vpow2.f32 %v4180_v22  ;;  %v4150_v61 = vsub.f32 %v15136_v57, %v4064_v51 }
 0x762   : > { %4066 = vmax.xlane.f32.xlu2 %v4065_v41  ;;  %v4122_v59 = vsel %vm564_vm1, %v15394_v36, -inf }
 0x763   : > { %4123 = vmax.xlane.f32.xlu1 %v4122_v59 }
 0x764   : > { %v3339_v9 = vpop.f32.mrf.mxu1 }
 0x765   : > { %v3994_v52 = vmul.f32 0.17677669, %v3339_v9  ;;  %v3871_v17 = vpop.f32.mrf.mxu2  ;;  %v15415_v9 = vpop.permute.xlu2 %6492 }
 0x766   : > { %v4013_v19 = vmul.f32 0.17677669, %v3871_v17  ;;  %19741 = vst [vmem:[#allocation158_spill] sm:$0xff] %v15415_v9  ;;  %v15420_v29 = vpop.permute.xlu1 %8296 }
 0x767   : > { %v15405_v34 = vadd.f32 %v3994_v52, %v14111_v56  ;;  %19742 = vst [vmem:[#allocation159_spill] sm:$0xff] %v15420_v29  ;;  %v15432_v9 = vpop.eup %12992 }
 0x768   : > { %v15408_v20 = vadd.f32 %v4013_v19, %v14111_v56 }
 0x769   : > { %v4074_v41 = vsel %vm564_vm1, %v15405_v34, -inf }
 0x76a   : > { %4075 = vmax.xlane.f32.xlu2 %v4074_v41  ;;  %v4131_v59 = vsel %vm564_vm1, %v15408_v20, -inf }
 0x76b   : > { %4132 = vmax.xlane.f32.xlu1 %v4131_v59  ;;  %v4073_v59 = vpop.xlane.xlu0 %4072 }
 0x76c   : > { %v3423_v17 = vpop.f32.mrf.mxu1  ;;  %v4153_v57 = vsub.f32 %v15153_v12, %v4073_v59 }
 0x76d   : > { %v3997_v52 = vmul.f32 0.17677669, %v3423_v17  ;;  %v3955_v15 = vpop.f32.mrf.mxu2  ;;  %v15430_v17 = vpop.permute.xlu2 %6490 }
 0x76e   : > { %v4016_v13 = vmul.f32 0.17677669, %v3955_v15  ;;  %19743 = vst [vmem:[#allocation160_spill] sm:$0xff] %v15430_v17  ;;  %v15440_v51 = vpop.permute.xlu1 %8268 }
 0x76f   : > { %v15418_v19 = vadd.f32 %v3997_v52, %v14111_v56  ;;  %v4186_v52 = vmul.f32 1.442695, %v4150_v61  ;;  %19744 = vst [vmem:[#allocation161_spill] sm:$0xff] %v15440_v51 }
 0x770   : > { %v15423_v7 = vadd.f32 %v4016_v13, %v14111_v56 }
 0x771   : > { %v4083_v41 = vsel %vm564_vm1, %v15418_v19, -inf  ;;  %12994 = vpow2.f32 %v4186_v52 }
 0x772   : > { %4084 = vmax.xlane.f32.xlu2 %v4083_v41  ;;  %v4140_v48 = vsel %vm564_vm1, %v15423_v7, -inf  ;;  %v4245_v41 = vsel %vm564_vm1, %v15432_v9, 0.0 }
 0x773   : > { %4141 = vmax.xlane.f32.xlu1 %v4140_v48  ;;  %v4082_v61 = vpop.xlane.xlu0 %4081 }
 0x774   : > { %v3507_v15 = vpop.f32.mrf.mxu1  ;;  %v4156_v59 = vsub.f32 %v15172_v0, %v4082_v61 }
 0x775   : > { %v4000_v29 = vmul.f32 0.17677669, %v3507_v15  ;;  %v4192_v15 = vmul.f32 1.442695, %v4153_v57 }
 0x776   : > { %v15456_v57 = vpop.permute.xlu1 %8350 }
 0x777   : > { %v15435_v13 = vadd.f32 %v4000_v29, %v14111_v56  ;;  %v15444_v4 = vpop.eup %12994  ;;  %v15446_v29 = vpop.permute.xlu2 %12707  ;;  %12996 = vpow2.f32 %v4192_v15  ;;  %19746 = vst [vmem:[#allocation163_spill] sm:$0xff] %v15456_v57 }
 0x778   : > { %19745 = vst [vmem:[#allocation162_spill] sm:$0xff] %v15446_v29 }
 0x779   : > { %v4092_v22 = vsel %vm564_vm1, %v15435_v13, -inf }
 0x77a   : > { %4093 = vmax.xlane.f32.xlu2 %v4092_v22  ;;  %v4254_v22 = vsel %vm564_vm1, %v15444_v4, 0.0 }
 0x77b   : > { %4246 = vadd.xlane.f32.xlu1 %v4245_v41  ;;  %v4091_v29 = vpop.xlane.xlu0 %4090 }
 0x77c   : > { %v3591_v48 = vpop.f32.mrf.mxu1  ;;  %v4159_v61 = vsub.f32 %v15190_v3, %v4091_v29 }
 0x77d   : > { %v4003_v17 = vmul.f32 0.17677669, %v3591_v48  ;;  %v4198_v48 = vmul.f32 1.442695, %v4156_v59  ;;  %v15458_v25 = vpop.eup %12996 }
 0x77e   : > { %v15470_v57 = vpop.permute.xlu1 %8322 }
 0x77f   : > { %v15449_v12 = vadd.f32 %v4003_v17, %v14111_v56  ;;  %v15463_v0 = vpop.permute.xlu2 %12727  ;;  %12998 = vpow2.f32 %v4198_v48  ;;  %19748 = vst [vmem:[#allocation165_spill] sm:$0xff] %v15470_v57 }
 0x780   : > { %19747 = vst [vmem:[#allocation164_spill] sm:$0xff] %v15463_v0 }
 0x781   : > { %v4101_v52 = vsel %vm564_vm1, %v15449_v12, -inf }
 0x782   : > { %4102 = vmax.xlane.f32.xlu2 %v4101_v52  ;;  %v4263_v52 = vsel %vm564_vm1, %v15458_v25, 0.0 }
 0x783   : > { %4255 = vadd.xlane.f32.xlu1 %v4254_v22  ;;  %v4204_v22 = vmul.f32 1.442695, %v4159_v61 }
 0x784   : > { %v3675_v41 = vpop.f32.mrf.mxu1 }
 0x785   : > { %v4006_v51 = vmul.f32 0.17677669, %v3675_v41  ;;  %13000 = vpow2.f32 %v4204_v22 }
 0x787   : > { %v15461_v17 = vadd.f32 %v4006_v51, %v14111_v56  ;;  %v15472_v51 = vpop.eup %12998  ;;  %v15481_v48 = vpop.permute.xlu2 %12742 }
 0x788   : > { %v4272_v29 = vsel %vm564_vm1, %v15472_v51, 0.0  ;;  %19749 = vst [vmem:[#allocation166_spill] sm:$0xff] %v15481_v48 }
 0x789   : > { %v4110_v15 = vsel %vm564_vm1, %v15461_v17, -inf }
 0x78a   : > { %4111 = vmax.xlane.f32.xlu2 %v4110_v15 }
 0x78b   : > { %4264 = vadd.xlane.f32.xlu1 %v4263_v52 }
 0x78c   : > { %v3759_v59 = vpop.f32.mrf.mxu1 }
 0x78d   : > { %v4009_v41 = vmul.f32 0.17677669, %v3759_v59  ;;  %v15483_v59 = vpop.eup %13000 }
 0x78f   : > { %v15475_v0 = vadd.f32 %v4009_v41, %v14111_v56  ;;  %v15493_v18 = vpop.permute.xlu2 %12767 }
 0x790   : > { %19750 = vst [vmem:[#allocation167_spill] sm:$0xff] %v15493_v18 }
 0x791   : > { %v4119_v3 = vsel %vm564_vm1, %v15475_v0, -inf }
 0x792   : > { %4120 = vmax.xlane.f32.xlu2 %v4119_v3  ;;  %v4281_v3 = vsel %vm564_vm1, %v15483_v59, 0.0 }
 0x793   : > { %4273 = vadd.xlane.f32.xlu1 %v4272_v29 }
 0x794   : > { %v3843_v61 = vpop.f32.mrf.mxu1 }
 0x795   : > { %v4012_v15 = vmul.f32 0.17677669, %v3843_v61 }
 0x796   : > { %v4052_v52 = vpop.xlane.xlu1 %4051 }
 0x797   : > { %v15486_v57 = vadd.f32 %v4012_v15, %v14111_v56  ;;  %v4146_v22 = vsub.f32 %v15308_v49, %v4052_v52 }
 0x799   : > { %v4128_v41 = vsel %vm564_vm1, %v15486_v57, -inf  ;;  %v4178_v48 = vmul.f32 1.442695, %v4146_v22  ;;  %v15503_v22 = vpop.permute.xlu2 %8212 }
 0x79a   : > { %4129 = vmax.xlane.f32.xlu2 %v4128_v41  ;;  %19751 = vst [vmem:[#allocation168_spill] sm:$0xff] %v15503_v22 }
 0x79b   : > { %4282 = vadd.xlane.f32.xlu1 %v4281_v3  ;;  %13002 = vpow2.f32 %v4178_v48 }
 0x79c   : > { %v3927_v29 = vpop.f32.mrf.mxu1 }
 0x79d   : > { %v4015_v61 = vmul.f32 0.17677669, %v3927_v29 }
 0x79e   : > { %v4061_v55 = vpop.xlane.xlu1 %4060 }
 0x79f   : > { %v15496_v27 = vadd.f32 %v4015_v61, %v14111_v56  ;;  %v4149_v49 = vsub.f32 %v15317_v8, %v4061_v55  ;;  %v15510_v8 = vpop.xlane.xlu0 %4099 }
 0x7a1   : > { %v4137_v15 = vsel %vm564_vm1, %v15496_v27, -inf  ;;  %v4184_v52 = vmul.f32 1.442695, %v4149_v49  ;;  %v15501_v41 = vpop.eup %13002 }
 0x7a2   : > { %4138 = vmax.xlane.f32.xlu2 %v4137_v15  ;;  %v4242_v61 = vsel %vm564_vm1, %v15501_v41, 0.0  ;;  %v15513_v15 = vpop.permute.xlu2 %8294 }
 0x7a3   : > { %13004 = vpow2.f32 %v4184_v52  ;;  %19752 = vst [vmem:[#allocation169_spill] sm:$0xff] %v15513_v15 }
 0x7a6   : > { %v4070_v3 = vpop.xlane.xlu1 %4069 }
 0x7a7   : > { %v4152_v29 = vsub.f32 %v15328_v16, %v4070_v3  ;;  %v15522_v56 = vpop.xlane.xlu0 %4108 }
 0x7a9   : > { %v4190_v48 = vmul.f32 1.442695, %v4152_v29  ;;  %v15508_v18 = vpop.eup %13004 }
 0x7aa   : > { %4243 = vadd.xlane.f32.xlu2 %v4242_v61  ;;  %v4251_v52 = vsel %vm564_vm1, %v15508_v18, 0.0 }
 0x7ab   : > { %13006 = vpow2.f32 %v4190_v48 }
 0x7ae   : > { %v4079_v55 = vpop.xlane.xlu1 %4078 }
 0x7af   : > { %v4155_v49 = vsub.f32 %v15339_v23, %v4079_v55  ;;  %v15524_v23 = vpop.permute.xlu2 %8266 }
 0x7b0   : > { %19753 = vst [vmem:[#allocation170_spill] sm:$0xff] %v15524_v23 }
 0x7b1   : > { %v4196_v16 = vmul.f32 1.442695, %v4155_v49  ;;  %v15517_v3 = vpop.eup %13006 }
 0x7b2   : > { %4252 = vadd.xlane.f32.xlu2 %v4251_v52  ;;  %v4260_v61 = vsel %vm564_vm1, %v15517_v3, 0.0  ;;  %v4118_v52 = vpop.xlane.xlu0 %4117 }
 0x7b3   : > { %13008 = vpow2.f32 %v4196_v16 }
 0x7b6   : > { %v4088_v22 = vpop.xlane.xlu1 %4087 }
 0x7b7   : > { %v4158_v29 = vsub.f32 %v15348_v47, %v4088_v22  ;;  %v15530_v16 = vpop.permute.xlu2 %8408 }
 0x7b8   : > { %19754 = vst [vmem:[#allocation171_spill] sm:$0xff] %v15530_v16 }
 0x7b9   : > { %v4202_v48 = vmul.f32 1.442695, %v4158_v29  ;;  %v15526_v55 = vpop.eup %13008 }
 0x7ba   : > { %4261 = vadd.xlane.f32.xlu2 %v4260_v61  ;;  %v4269_v49 = vsel %vm564_vm1, %v15526_v55, 0.0  ;;  %v4168_v61 = vsub.f32 %v15242_v30, %v4118_v52  ;;  %v4127_v21 = vpop.xlane.xlu0 %4126 }
 0x7bb   : > { %13010 = vpow2.f32 %v4202_v48 }
 0x7bc   : > { %v4222_v48 = vmul.f32 1.442695, %v4168_v61 }
 0x7be   : > { %v4097_v15 = vpop.xlane.xlu1 %4096 }
 0x7c1   : > { %v15532_v47 = vpop.eup %13010 }
 0x7c2   : > { %4270 = vadd.xlane.f32.xlu2 %v4269_v49  ;;  %v4278_v29 = vsel %vm564_vm1, %v15532_v47, 0.0 }
 0x7c6   : > { %v4106_v22 = vpop.xlane.xlu1 %4105 }
 0x7c7   : > { %v4164_v35 = vsub.f32 %v15368_v44, %v4106_v22  ;;  %v4171_v44 = vsub.f32 %v15257_v1, %v4127_v21 }
 0x7c9   : > { %v4214_v23 = vmul.f32 1.442695, %v4164_v35  ;;  %v4228_v35 = vmul.f32 1.442695, %v4171_v44 }
 0x7ca   : > { %4279 = vadd.xlane.f32.xlu2 %v4278_v29 }
 0x7cb   : > { %13012 = vpow2.f32 %v4214_v23 }
 0x7cc   : > { %13014 = vpow2.f32 %v4222_v48 }
 0x7cd   : > { %v4058_v38 = vpop.xlane.xlu2 %4057 }
 0x7ce   : > { %v4148_v49 = vsub.f32 %v15379_v54, %v4058_v38  ;;  %v15539_v45 = vpop.xlane.xlu1 %4114 }
 0x7d0   : > { %v4182_v16 = vmul.f32 1.442695, %v4148_v49 }
 0x7d1   : > { %v15541_v14 = vpop.eup %13012 }
 0x7d2   : > { %13016 = vpow2.f32 %v4182_v16  ;;  %v4296_v30 = vsel %vm564_vm1, %v15541_v14, 0.0  ;;  %v15549_v38 = vpop.eup %13014 }
 0x7d3   : > { %4297 = vadd.xlane.f32.xlu1 %v4296_v30  ;;  %19755 = vst [vmem:[#allocation172_spill] sm:$0xff] %v15549_v38  ;;  %13018 = vpow2.f32 %v4228_v35  ;;  %v4308_v1 = vsel %vm564_vm1, %v15549_v38, 0.0 }
 0x7d5   : > { %v4067_v23 = vpop.xlane.xlu2 %4066 }
 0x7d6   : > { %v4151_v52 = vsub.f32 %v15391_v42, %v4067_v23  ;;  %v15547_v22 = vpop.xlane.xlu1 %4123 }
 0x7d8   : > { %v15551_v54 = vpop.eup %13016  ;;  %v4188_v61 = vmul.f32 1.442695, %v4151_v52 }
 0x7d9   : > { %v4248_v21 = vsel %vm564_vm1, %v15551_v54, 0.0  ;;  %v15560_v48 = vpop.eup %13018 }
 0x7da   : > { %13020 = vpow2.f32 %v4188_v61  ;;  %4249 = vadd.xlane.f32.xlu0 %v4248_v21  ;;  %19756 = vst [vmem:[#allocation173_spill] sm:$0xff] %v15560_v48  ;;  %v4317_v35 = vsel %vm564_vm1, %v15560_v48, 0.0  ;;  %v4161_v21 = vsub.f32 %v15359_v24, %v4097_v15 }
 0x7db   : > { %4309 = vadd.xlane.f32.xlu1 %v4308_v1 }
 0x7dd   : > { %v4076_v16 = vpop.xlane.xlu2 %4075 }
 0x7de   : > { %v4154_v42 = vsub.f32 %v15405_v34, %v4076_v16  ;;  %v15558_v29 = vpop.xlane.xlu1 %4132 }
 0x7e0   : > { %v15562_v49 = vpop.eup %13020  ;;  %v4194_v44 = vmul.f32 1.442695, %v4154_v42  ;;  %v4208_v42 = vmul.f32 1.442695, %v4161_v21 }
 0x7e1   : > { %v4257_v30 = vsel %vm564_vm1, %v15562_v49, 0.0 }
 0x7e2   : > { %13022 = vpow2.f32 %v4194_v44  ;;  %4258 = vadd.xlane.f32.xlu0 %v4257_v30 }
 0x7e3   : > { %4318 = vadd.xlane.f32.xlu1 %v4317_v35 }
 0x7e5   : > { %v4085_v23 = vpop.xlane.xlu2 %4084 }
 0x7e6   : > { %v4157_v52 = vsub.f32 %v15418_v19, %v4085_v23  ;;  %v15569_v34 = vpop.xlane.xlu1 %4141 }
 0x7e8   : > { %v15571_v61 = vpop.eup %13022  ;;  %v4200_v1 = vmul.f32 1.442695, %v4157_v52 }
 0x7e9   : > { %v4266_v16 = vsel %vm564_vm1, %v15571_v61, 0.0 }
 0x7ea   : > { %13024 = vpow2.f32 %v4200_v1  ;;  %4267 = vadd.xlane.f32.xlu0 %v4266_v16  ;;  %v4162_v16 = vsub.f32 %v15208_v40, %v15510_v8 }
 0x7ec   : > { %v4210_v62 = vmul.f32 1.442695, %v4162_v16  ;;  %v4167_v16 = vsub.f32 %v15382_v37, %v15539_v45 }
 0x7ed   : > { %v4094_v44 = vpop.xlane.xlu2 %4093 }
 0x7ee   : > { %v4247_v30 = vpop.xlane.xlu1 %4246  ;;  %v4160_v19 = vsub.f32 %v15435_v13, %v4094_v44 }
 0x7ef   : > { %13026 = vrcp.f32 %v4247_v30  ;;  %v4363_v2 = vand.u32 2147483648, %v4247_v30  ;;  %v4361_v38 = vand.u32 2147483647, %v4247_v30  ;;  %vm4357_vm6 = vweird.f32 %v4247_v30 }
 0x7f0   : > { %v15576_v35 = vpop.eup %13024  ;;  %13028 = vpow2.f32 %v4208_v42  ;;  %v4206_v24 = vmul.f32 1.442695, %v4160_v19  ;;  %v4165_v42 = vsub.f32 %v15225_v31, %v15522_v56 }
 0x7f1   : > { %v4275_v23 = vsel %vm564_vm1, %v15576_v35, 0.0  ;;  %v4364_v40 = vor.u32 1.1754944e-38, %v4363_v2  ;;  %vm4362_vm8 = vcmp.eq.f32.partialorder %v4361_v38, 8.507059e+37  ;;  %v12584_v38 = vunpack.i.l.bf16 %v19717_v60 }
 0x7f2   : > { %4276 = vadd.xlane.f32.xlu0 %v4275_v23  ;;  %13030 = vpow2.f32 %v4206_v24  ;;  %v4170_v60 = vsub.f32 %v15394_v36, %v15547_v22 }
 0x7f5   : > { %v13027_v15 = vpop.eup %13026  ;;  %v4103_v52 = vpop.xlane.xlu2 %4102 }
 0x7f6   : > { %v15581_v48 = vpop.eup %13028  ;;  %v4353_v1 = vmul.f32 %v13027_v15, %v4247_v30  ;;  %v4163_v21 = vsub.f32 %v15449_v12, %v4103_v52  ;;  %vm4358_vm5 = vweird.f32 %v13027_v15  ;;  %v4216_v12 = vmul.f32 1.442695, %v4165_v42 }
 0x7f7   : > { %v4287_v19 = vsel %vm564_vm1, %v15581_v48, 0.0  ;;  %vm4359_vm7 = vmor %vm4357_vm6, %vm4358_vm5 }
 0x7f8   : > { %v4354_v13 = vsub.f32 1.0, %v4353_v1  ;;  %v4212_v44 = vmul.f32 1.442695, %v4163_v21  ;;  %v15590_v56 = vpop.eup %13030 }
 0x7f9   : > { %v4284_v30 = vsel %vm564_vm1, %v15590_v56, 0.0 }
 0x7fa   : > { %v4355_v23 = vmul.f32 %v13027_v15, %v4354_v13  ;;  %13032 = vpow2.f32 %v4212_v44  ;;  %4288 = vadd.xlane.f32.xlu0 %v4287_v19 }
 0x7fb   : > { %13034 = vpow2.f32 %v4210_v62  ;;  %v4136_v62 = vpop.xlane.xlu0 %4135 }
 0x7fc   : > { %v4356_v52 = vadd.f32 %v13027_v15, %v4355_v23  ;;  %13036 = vpow2.f32 %v4216_v12  ;;  %v4174_v44 = vsub.f32 %v15274_v5, %v4136_v62  ;;  %v4176_v62 = vsub.f32 %v15423_v7, %v15569_v34 }
 0x7fd   : > { %v4112_v8 = vpop.xlane.xlu2 %4111 }
 0x7fe   : > { %v4360_v31 = vsel %vm4359_vm7, %v13027_v15, %v4356_v52  ;;  %v4166_v13 = vsub.f32 %v15461_v17, %v4112_v8  ;;  %v4220_v17 = vmul.f32 1.442695, %v4167_v16  ;;  %v4234_v52 = vmul.f32 1.442695, %v4174_v44  ;;  %v15631_v16 = vpop.xlane.xlu1 %4255 }
 0x7ff   : > { %v4365_v24 = vsel %vm4362_vm8, %v4364_v40, %v4360_v31  ;;  %v4226_v40 = vmul.f32 1.442695, %v4170_v60  ;;  %v4173_v31 = vsub.f32 %v15408_v20, %v15558_v29  ;;  %vm4399_vm14 = vweird.f32 %v15631_v16 }
 0x800   : > { %v15592_v1 = vpop.eup %13032  ;;  %v4787_v21 = vmul.f32 %v15432_v9, %v4365_v24  ;;  %v4218_v15 = vmul.f32 1.442695, %v4166_v13 }
 0x801   : > { %v4293_v2 = vsel %vm564_vm1, %v15592_v1, 0.0  ;;  %v15604_v9 = vpop.eup %13034 }
 0x802   : > { %4294 = vadd.xlane.f32.xlu2 %v4293_v2  ;;  %4285 = vadd.xlane.f32.xlu0 %v4284_v30  ;;  %19757 = vst [vmem:[#allocation174_spill] sm:$0xff] %v15604_v9  ;;  %v15606_v45 = vpop.eup %13036  ;;  %13038 = vpow2.f32 %v4218_v15  ;;  %v4290_v12 = vsel %vm564_vm1, %v15604_v9, 0.0  ;;  %v4232_v2 = vmul.f32 1.442695, %v4173_v31 }
 0x803   : > { %12205 = vmatmul.msk.f32.vlgmr.msra.gmra.mxu2 %vm564_vm1, %v4787_v21  ;;  %19758 = vst [vmem:[#allocation175_spill] sm:$0xff] %v15606_v45  ;;  %13040 = vpow2.f32 %v4220_v17  ;;  %v4299_v23 = vsel %vm564_vm1, %v15606_v45, 0.0 }
 0x804   : > { %5073 = vmatpush.msra.mxu2 %v12584_v38 }
 0x805   : > { %v4121_v42 = vpop.xlane.xlu2 %4120 }
 0x806   : > { %v4169_v37 = vsub.f32 %v15475_v0, %v4121_v42  ;;  %v15651_v34 = vpop.xlane.xlu1 %4264 }
 0x807   : > { %vm4441_vm8 = vweird.f32 %v15651_v34 }
 0x808   : > { %v4224_v19 = vmul.f32 1.442695, %v4169_v37  ;;  %v15616_v8 = vpop.eup %13038 }
 0x809   : > { %19759 = vst [vmem:[#allocation176_spill] sm:$0xff] %v15616_v8  ;;  %v15619_v36 = vpop.eup %13040  ;;  %v4302_v21 = vsel %vm564_vm1, %v15616_v8, 0.0 }
 0x80a   : > { %13042 = vpow2.f32 %v4224_v19  ;;  %4300 = vadd.xlane.f32.xlu2 %v4299_v23  ;;  %4291 = vadd.xlane.f32.xlu0 %v4290_v12  ;;  %19760 = vst [vmem:[#allocation177_spill] sm:$0xff] %v15619_v36 }
 0x80b   : > { %13044 = vpow2.f32 %v4234_v52 }
 0x80c   : > { %13046 = vpow2.f32 %v4226_v40 }
 0x80d   : > { %v4130_v0 = vpop.xlane.xlu2 %4129 }
 0x80e   : > { %v4172_v5 = vsub.f32 %v15486_v57, %v4130_v0  ;;  %v4305_v57 = vsel %vm564_vm1, %v15619_v36, 0.0 }
 0x810   : > { %v15621_v22 = vpop.eup %13042  ;;  %v4230_v24 = vmul.f32 1.442695, %v4172_v5 }
 0x811   : > { %19761 = vst [vmem:[#allocation178_spill] sm:$0xff] %v15621_v22  ;;  %v4311_v13 = vsel %vm564_vm1, %v15621_v22, 0.0  ;;  %v15633_v30 = vpop.eup %13044 }
 0x812   : > { %13048 = vpow2.f32 %v4230_v24  ;;  %4303 = vadd.xlane.f32.xlu0 %v4302_v21  ;;  %4312 = vadd.xlane.f32.xlu1 %v4311_v13  ;;  %19762 = vst [vmem:[#allocation179_spill] sm:$0xff] %v15633_v30  ;;  %v15635_v29 = vpop.eup %13046  ;;  %v4326_v42 = vsel %vm564_vm1, %v15633_v30, 0.0 }
 0x813   : > { %4306 = vadd.xlane.f32.xlu2 %v4305_v57  ;;  %19763 = vst [vmem:[#allocation180_spill] sm:$0xff] %v15635_v29  ;;  %13050 = vrcp.f32 %v15631_v16  ;;  %v4314_v44 = vsel %vm564_vm1, %v15635_v29, 0.0  ;;  %v19781_v29 = vld [vmem:[#allocation124_spill] sm:$0xff] }
 0x814   : > { %13052 = vpow2.f32 %v4232_v2 }
 0x815   : > { %v4139_v20 = vpop.xlane.xlu2 %4138 }
 0x816   : > { %v4175_v38 = vsub.f32 %v15496_v27, %v4139_v20  ;;  %v4238_v27 = vmul.f32 1.442695, %v4176_v62 }
 0x818   : > { %v15641_v15 = vpop.eup %13048  ;;  %v4236_v17 = vmul.f32 1.442695, %v4175_v38 }
 0x819   : > { %19764 = vst [vmem:[#allocation181_spill] sm:$0xff] %v15641_v15  ;;  %v4320_v37 = vsel %vm564_vm1, %v15641_v15, 0.0  ;;  %v15649_v7 = vpop.eup %13050 }
 0x81a   : > { %13054 = vpow2.f32 %v4236_v17  ;;  %4327 = vadd.xlane.f32.xlu1 %v4326_v42  ;;  %4315 = vadd.xlane.f32.xlu0 %v4314_v44  ;;  %v15653_v19 = vpop.eup %13052  ;;  %v4395_v12 = vmul.f32 %v15649_v7, %v15631_v16  ;;  %vm4400_vm11 = vweird.f32 %v15649_v7 }
 0x81b   : > { %4321 = vadd.xlane.f32.xlu2 %v4320_v37  ;;  %19765 = vst [vmem:[#allocation182_spill] sm:$0xff] %v15653_v19  ;;  %v4323_v40 = vsel %vm564_vm1, %v15653_v19, 0.0  ;;  %vm15677_vm15 = vmor %vm4399_vm14, %vm4400_vm11 }
 0x81c   : > { %v4396_v5 = vsub.f32 1.0, %v4395_v12 }
 0x81d   : > { %v4244_v60 = vpop.xlane.xlu2 %4243 }
 0x81e   : > { %13056 = vrcp.f32 %v4244_v60  ;;  %v4397_v2 = vmul.f32 %v15649_v7, %v4396_v5  ;;  %v4349_v20 = vand.u32 2147483648, %v4244_v60  ;;  %v4347_v42 = vand.u32 2147483647, %v4244_v60 }
 0x81f   : > { %13058 = vpow2.f32 %v4238_v27  ;;  %vm4343_vm10 = vweird.f32 %v4244_v60 }
 0x820   : > { %v15655_v23 = vpop.eup %13054  ;;  %13060 = vrcp.f32 %v15651_v34  ;;  %v4398_v27 = vadd.f32 %v15649_v7, %v4397_v2  ;;  %v4350_v12 = vor.u32 1.1754944e-38, %v4349_v20  ;;  %vm4348_vm13 = vcmp.eq.f32.partialorder %v4347_v42, 8.507059e+37 }
 0x821   : > { %19766 = vst [vmem:[#allocation183_spill] sm:$0xff] %v15655_v23  ;;  %v4329_v52 = vsel %vm564_vm1, %v15655_v23, 0.0 }
 0x822   : > { %4330 = vadd.xlane.f32.xlu1 %v4329_v52  ;;  %4324 = vadd.xlane.f32.xlu0 %v4323_v40 }
 0x824   : > { %v13057_v0 = vpop.eup %13056 }
 0x825   : > { %v15664_v31 = vpop.eup %13058  ;;  %v4339_v24 = vmul.f32 %v13057_v0, %v4244_v60  ;;  %v4253_v21 = vpop.xlane.xlu2 %4252  ;;  %vm4344_vm9 = vweird.f32 %v13057_v0  ;;  %v4403_v60 = vand.u32 2147483647, %v15631_v16 }
 0x826   : > { %19767 = vst [vmem:[#allocation184_spill] sm:$0xff] %v15664_v31  ;;  %v15666_v13 = vpop.eup %13060  ;;  %13062 = vrcp.f32 %v4253_v21  ;;  %v4332_v38 = vsel %vm564_vm1, %v15664_v31, 0.0  ;;  %vm4345_vm12 = vmor %vm4343_vm10, %vm4344_vm9  ;;  %v19770_v31 = vld [vmem:[#allocation66_spill] sm:$0xff]  ;;  %vm4385_vm4 = vweird.f32 %v4253_v21 }
 0x827   : > { %v4340_v57 = vsub.f32 1.0, %v4339_v24  ;;  %v4437_v62 = vmul.f32 %v15666_v13, %v15651_v34  ;;  %v4405_v24 = vand.u32 2147483648, %v15631_v16  ;;  %v12605_v20 = vunpack.i.h.bf16 %v19770_v31 }
 0x828   : > { %vm4404_vm3 = vcmp.eq.f32.partialorder %v4403_v60, 8.507059e+37  ;;  %vm4442_vm6 = vweird.f32 %v15666_v13  ;;  %v19771_v60 = vld [vmem:[#allocation111_spill] sm:$0xff] }
 0x829   : > { %v4341_v17 = vmul.f32 %v13057_v0, %v4340_v57  ;;  %v4438_v52 = vsub.f32 1.0, %v4437_v62  ;;  %v4391_v62 = vand.u32 2147483648, %v4253_v21  ;;  %vm4443_vm9 = vmor %vm4441_vm8, %vm4442_vm6 }
 0x82a   : > { %4333 = vadd.xlane.f32.xlu0 %v4332_v38 }
 0x82b   : > { %v4342_v37 = vadd.f32 %v13057_v0, %v4341_v17  ;;  %v4439_v42 = vmul.f32 %v15666_v13, %v4438_v52  ;;  %v4447_v52 = vand.u32 2147483648, %v15651_v34 }
 0x82c   : > { %v13063_v44 = vpop.eup %13062 }
 0x82d   : > { %v4346_v40 = vsel %vm4345_vm12, %v13057_v0, %v4342_v37  ;;  %v4381_v5 = vmul.f32 %v13063_v44, %v4253_v21  ;;  %v4402_v0 = vsel %vm15677_vm15, %v15649_v7, %v4398_v27  ;;  %vm4386_vm2 = vweird.f32 %v13063_v44 }
 0x82e   : > { %v4351_v57 = vsel %vm4348_vm13, %v4350_v12, %v4346_v40  ;;  %v4389_v12 = vand.u32 2147483647, %v4253_v21  ;;  %v4406_v40 = vor.u32 1.1754944e-38, %v4405_v24  ;;  %vm4387_vm5 = vmor %vm4385_vm4, %vm4386_vm2  ;;  %v4440_v7 = vadd.f32 %v15666_v13, %v4439_v42 }
 0x82f   : > { %v4786_v2 = vmul.f32 %v15501_v41, %v4351_v57  ;;  %v4382_v17 = vsub.f32 1.0, %v4381_v5  ;;  %v4392_v5 = vor.u32 1.1754944e-38, %v4391_v62  ;;  %v4445_v21 = vand.u32 2147483647, %v15651_v34  ;;  %v15707_v34 = vpop.xlane.xlu2 %4261  ;;  %v19773_v62 = vld [vmem:[#allocation118_spill] sm:$0xff] }
 0x830   : > { %v4407_v41 = vsel %vm4404_vm3, %v4406_v40, %v4402_v0  ;;  %vm4390_vm7 = vcmp.eq.f32.partialorder %v4389_v12, 8.507059e+37  ;;  %v4444_v0 = vsel %vm4443_vm9, %v15666_v13, %v4440_v7  ;;  %v12664_v42 = vunpack.i.l.bf16 %v19773_v62  ;;  %v4145_v12 = vpop.xlane.xlu0 %4144 }
 0x831   : > { %v4383_v37 = vmul.f32 %v13063_v44, %v4382_v17  ;;  %12204 = vmatmul.msk.f32.vlgmr.msra.gmra.mxu1 %vm564_vm1, %v4786_v2  ;;  %v4790_v24 = vmul.f32 %v15444_v4, %v4407_v41  ;;  %v12654_v2 = vunpack.i.l.bf16 %v19771_v60  ;;  %v19772_v17 = vld [vmem:[#allocation122_spill] sm:$0xff]  ;;  %vm4446_vm10 = vcmp.eq.f32.partialorder %v4445_v21, 8.507059e+37  ;;  %v15703_v4 = vpop.xlane.xlu1 %4273 }
 0x832   : > { %5047 = vmatpush.msra.mxu1 %v12605_v20  ;;  %v12660_v20 = vunpack.i.h.bf16 %v19772_v17  ;;  %13064 = vrcp.f32 %v15703_v4  ;;  %vm4483_vm12 = vweird.f32 %v15703_v4 }
 0x833   : > { %v4384_v16 = vadd.f32 %v13063_v44, %v4383_v37  ;;  %8380 = vrot.lane.b32.xlu2 %v19642_v28, %s13426_s30  ;;  %13066 = vrcp.f32 %v15707_v34 }
 0x835   : > { %v4388_v27 = vsel %vm4387_vm5, %v13063_v44, %v4384_v16  ;;  %v4448_v44 = vor.u32 1.1754944e-38, %v4447_v52 }
 0x836   : > { %v4393_v57 = vsel %vm4390_vm7, %v4392_v5, %v4388_v27  ;;  %vm4427_vm7 = vweird.f32 %v15707_v34 }
 0x837   : > { %v4789_v38 = vmul.f32 %v15508_v18, %v4393_v57  ;;  %v4449_v18 = vsel %vm4446_vm10, %v4448_v44, %v4444_v0  ;;  %v15721_v16 = vpop.xlane.xlu2 %4270  ;;  %v19774_v57 = vld [vmem:[#allocation55_spill] sm:$0xff] }
 0x838   : > { %v4793_v13 = vmul.f32 %v15458_v25, %v4449_v18  ;;  %v15717_v37 = vpop.eup %13064  ;;  %v4177_v25 = vsub.f32 %v15289_v26, %v4145_v12  ;;  %v4489_v12 = vand.u32 2147483648, %v15703_v4 }
 0x839   : > { %12207 = vmatmul.msk.f32.vlgmr.msra.gmra.mxu0 %vm564_vm1, %v4789_v38  ;;  %12208 = vmatmul.msk.f32.vlgmr.msrb.gmra.mxu1 %vm564_vm1, %v4790_v24  ;;  %v15719_v40 = vpop.xlane.xlu1 %4282  ;;  %v4479_v41 = vmul.f32 %v15717_v37, %v15703_v4  ;;  %v15732_v27 = vpop.eup %13066  ;;  %vm4484_vm11 = vweird.f32 %v15717_v37 }
 0x83a   : > { %5125 = vmatpush.msra.mxu0 %v12654_v2  ;;  %5151 = vmatpush.msrb.mxu1 %v12660_v20  ;;  %13068 = vrcp.f32 %v15719_v40  ;;  %v4240_v5 = vmul.f32 1.442695, %v4177_v25  ;;  %v19775_v20 = vld [vmem:[#allocation112_spill] sm:$0xff]  ;;  %v4423_v44 = vmul.f32 %v15732_v27, %v15707_v34  ;;  %v19779_v2 = vld [vmem:[#allocation123_spill] sm:$0xff]  ;;  %vm15784_vm13 = vmor %vm4483_vm12, %vm4484_vm11  ;;  %v4490_v8 = vor.u32 1.1754944e-38, %v4489_v12 }
 0x83b   : > { %8464 = vrot.lane.b32.xlu1 %v13641_v46, %s13426_s30  ;;  %v4480_v7 = vsub.f32 1.0, %v4479_v41  ;;  %13070 = vrcp.f32 %v15721_v16  ;;  %v4531_v41 = vand.u32 2147483648, %v15719_v40  ;;  %vm4428_vm3 = vweird.f32 %v15732_v27 }
 0x83c   : > { %v4424_v23 = vsub.f32 1.0, %v4423_v44  ;;  %vm15832_vm8 = vmor %vm4427_vm7, %vm4428_vm3  ;;  %vm4525_vm9 = vweird.f32 %v15719_v40  ;;  %vm4469_vm12 = vweird.f32 %v15721_v16 }
 0x83d   : > { %v4481_v21 = vmul.f32 %v15717_v37, %v4480_v7  ;;  %v19777_v7 = vld [vmem:[#allocation120_spill] sm:$0xff]  ;;  %v15807_v12 = vor.u32 1.1754944e-38, %v4531_v41  ;;  %v4433_v41 = vand.u32 2147483648, %v15707_v34 }
 0x83e   : > { %8378 = vrot.lane.b32.xlu0 %v19642_v28, %s13425_s29 }
 0x83f   : > { %v15749_v18 = vpop.xlane.xlu2 %4279 }
 0x840   : > { %v15740_v26 = vpop.eup %13068 }
 0x841   : > { %12211 = vmatmul.msk.f32.vlgmr.msrb.gmra.mxu0 %vm564_vm1, %v4793_v13  ;;  %v4521_v0 = vmul.f32 %v15740_v26, %v15719_v40  ;;  %v15762_v28 = vpop.eup %13070  ;;  %v19778_v13 = vld [vmem:[#allocation126_spill] sm:$0xff]  ;;  %vm4526_vm6 = vweird.f32 %v15740_v26 }
 0x842   : > { %5229 = vmatpush.msrb.mxu0 %v12664_v42  ;;  %v4482_v42 = vadd.f32 %v15717_v37, %v4481_v21  ;;  %v4487_v21 = vand.u32 2147483647, %v15703_v4 }
 0x843   : > { %8436 = vrot.lane.b32.xlu1 %v13630_v43, %s13426_s30  ;;  %v4522_v44 = vsub.f32 1.0, %v4521_v0  ;;  %v4425_v0 = vmul.f32 %v15732_v27, %v4424_v23 }
 0x844   : > { %v4486_v22 = vsel %vm15784_vm13, %v15717_v37, %v4482_v42  ;;  %vm4488_vm14 = vcmp.eq.f32.partialorder %v4487_v21, 8.507059e+37  ;;  %vm4470_vm13 = vweird.f32 %v15762_v28 }
 0x845   : > { %v4491_v37 = vsel %vm4488_vm14, %v4490_v8, %v4486_v22  ;;  %v4523_v42 = vmul.f32 %v15740_v26, %v4522_v44  ;;  %v4426_v21 = vadd.f32 %v15732_v27, %v4425_v0  ;;  %v4431_v0 = vand.u32 2147483647, %v15707_v34  ;;  %vm15878_vm3 = vmor %vm4469_vm12, %vm4470_vm13 }
 0x846   : > { %8434 = vrot.lane.b32.xlu0 %v13630_v43, %s13425_s29  ;;  %v15760_v24 = vpop.xlane.xlu1 %4297  ;;  %v4465_v43 = vmul.f32 %v15762_v28, %v15721_v16  ;;  %v15840_v34 = vmul.f32 %v15472_v51, %v4491_v37 }
 0x847   : > { %v15852_v51 = vadd.f32 %v15740_v26, %v4523_v42  ;;  %vm4432_vm11 = vcmp.eq.f32.partialorder %v4431_v0, 8.507059e+37  ;;  %v4473_v42 = vand.u32 2147483647, %v15721_v16 }
 0x848   : > { %v4466_v23 = vsub.f32 1.0, %v4465_v43 }
 0x84b   : > { %8490 = vrot.lane.b32.xlu1 %v13656_v50, %s13425_s29 }
 0x84d   : > { %v15735_v52 = vpop.xlane.xlu0 %4249 }
 0x84e   : > { %13072 = vrcp.f32 %v15735_v52  ;;  %8520 = vrot.lane.b32.xlu0 %v13672_v53, %s13426_s30  ;;  %v4377_v25 = vand.u32 2147483648, %v15735_v52  ;;  %v4375_v38 = vand.u32 2147483647, %v15735_v52  ;;  %vm4371_vm2 = vweird.f32 %v15735_v52  ;;  %v15818_v43 = vpop.xlane.xlu1 %4309 }
 0x84f   : > { %13074 = vpow2.f32 %v4240_v5 }
 0x850   : > { %13076 = vrcp.f32 %v15749_v18  ;;  %v4378_v22 = vor.u32 1.1754944e-38, %v4377_v25  ;;  %vm4376_vm5 = vcmp.eq.f32.partialorder %v4375_v38, 8.507059e+37  ;;  %v4467_v25 = vmul.f32 %v15762_v28, %v4466_v23 }
 0x851   : > { %v4430_v38 = vsel %vm15832_vm8, %v15732_v27, %v4426_v21  ;;  %v4434_v23 = vor.u32 1.1754944e-38, %v4433_v41  ;;  %v19786_v27 = vunpack.i.h.bf16 %v19774_v57 }
 0x853   : > { %8576 = vrot.lane.b32.xlu1 %v13702_v63, %s13426_s30  ;;  %v4435_v37 = vsel %vm4432_vm11, %v4434_v23, %v4430_v38  ;;  %v4515_v38 = vand.u32 2147483647, %v15749_v18 }
 0x854   : > { %v13073_v5 = vpop.eup %13072 }
 0x855   : > { %v15773_v19 = vpop.eup %13074  ;;  %v4367_v30 = vmul.f32 %v13073_v5, %v15735_v52  ;;  %v15779_v15 = vpop.xlane.xlu0 %4258  ;;  %vm4372_vm15 = vweird.f32 %v13073_v5  ;;  %vm15931_vm11 = vcmp.eq.f32.partialorder %v4515_v38, 8.507059e+37 }
 0x856   : > { %19780 = vst [vmem:[#allocation66_spill] sm:$0xff] %v15773_v19  ;;  %13078 = vrcp.f32 %v15779_v15  ;;  %8574 = vrot.lane.b32.xlu0 %v13702_v63, %s13425_s29  ;;  %v4335_v9 = vsel %vm564_vm1, %v15773_v19, 0.0  ;;  %v15802_v45 = vpop.eup %13076  ;;  %vm4373_vm4 = vmor %vm4371_vm2, %vm4372_vm15  ;;  %vm4413_vm14 = vweird.f32 %v15779_v15 }
 0x857   : > { %v4368_v36 = vsub.f32 1.0, %v4367_v30  ;;  %13080 = vrcp.f32 %v15760_v24  ;;  %v4507_v8 = vmul.f32 %v15802_v45, %v15749_v18 }
 0x859   : > { %v4369_v63 = vmul.f32 %v13073_v5, %v4368_v36 }
 0x85b   : > { %v4370_v4 = vadd.f32 %v13073_v5, %v4369_v63  ;;  %8546 = vrot.lane.b32.xlu1 %v13687_v58, %s13425_s29 }
 0x85c   : > { %v13079_v36 = vpop.eup %13078  ;;  %4336 = vadd.xlane.f32.xlu2 %v4335_v9 }
 0x85d   : > { %v4374_v52 = vsel %vm4373_vm4, %v13073_v5, %v4370_v4  ;;  %v4409_v44 = vmul.f32 %v13079_v36, %v15779_v15  ;;  %v15822_v63 = vpop.xlane.xlu0 %4267  ;;  %v15847_v19 = vpop.eup %13080  ;;  %vm4414_vm10 = vweird.f32 %v13079_v36  ;;  %vm4512_vm4 = vweird.f32 %v15802_v45 }
 0x85e   : > { %v4379_v30 = vsel %vm4376_vm5, %v4378_v22, %v4374_v52  ;;  %13082 = vrcp.f32 %v15822_v63  ;;  %8604 = vrot.lane.b32.xlu0 %v13726_v6, %s13426_s30  ;;  %v4508_v22 = vsub.f32 1.0, %v4507_v8  ;;  %v4419_v52 = vand.u32 2147483648, %v15779_v15  ;;  %vm4415_vm15 = vmor %vm4413_vm14, %vm4414_vm10 }
 0x85f   : > { %v4788_v5 = vmul.f32 %v15551_v54, %v4379_v30  ;;  %13084 = vrcp.f32 %v15818_v43  ;;  %v4410_v4 = vsub.f32 1.0, %v4409_v44  ;;  %v4417_v54 = vand.u32 2147483647, %v15779_v15  ;;  %vm15901_vm5 = vmor %vm4525_vm9, %vm4526_vm6 }
 0x860   : > { %v4468_v30 = vadd.f32 %v15762_v28, %v4467_v25  ;;  %v4509_v41 = vmul.f32 %v15802_v45, %v4508_v22  ;;  %v4591_v44 = vmul.f32 %v15847_v19, %v15760_v24  ;;  %v4420_v57 = vor.u32 1.1754944e-38, %v4419_v52  ;;  %v15883_v52 = vpop.xlane.xlu1 %4318 }
 0x861   : > { %v4411_v6 = vmul.f32 %v13079_v36, %v4410_v4  ;;  %12206 = vmatmul.msk.f32.vlgmr.msrb.gmra.mxu3 %vm564_vm1, %v4788_v5  ;;  %vm4418_vm2 = vcmp.eq.f32.partialorder %v4417_v54, 8.507059e+37  ;;  %v4792_v5 = vmul.f32 %v15517_v3, %v4435_v37  ;;  %v4461_v37 = vand.u32 2147483648, %v15822_v63 }
 0x862   : > { %5099 = vmatpush.msrb.mxu3 %v19786_v27  ;;  %v4472_v3 = vsel %vm15878_vm3, %v15762_v28, %v4468_v30  ;;  %v4510_v23 = vadd.f32 %v15802_v45, %v4509_v41  ;;  %v4592_v54 = vsub.f32 1.0, %v4591_v44  ;;  %v19791_v28 = vand.u32 2147483647, %v15719_v40 }
 0x863   : > { %v4412_v21 = vadd.f32 %v13079_v36, %v4411_v6  ;;  %8632 = vrot.lane.b32.xlu1 %v13746_v10, %s13426_s30  ;;  %v4475_v6 = vand.u32 2147483648, %v15721_v16  ;;  %v4528_v41 = vsel %vm15901_vm5, %v15740_v26, %v15852_v51  ;;  %vm4511_vm6 = vweird.f32 %v15749_v18 }
 0x864   : > { %v13083_v8 = vpop.eup %13082  ;;  %vm15907_vm7 = vcmp.eq.f32.partialorder %v19791_v28, 8.507059e+37  ;;  %v4517_v44 = vand.u32 2147483648, %v15749_v18  ;;  %vm4474_vm9 = vcmp.eq.f32.partialorder %v4473_v42, 8.507059e+37  ;;  %vm15927_vm10 = vmor %vm4511_vm6, %vm4512_vm4  ;;  %vm4455_vm12 = vweird.f32 %v15822_v63 }
 0x865   : > { %v15867_v0 = vpop.eup %13084  ;;  %v4416_v9 = vsel %vm4415_vm15, %v13079_v36, %v4412_v21  ;;  %v4451_v15 = vmul.f32 %v13083_v8, %v15822_v63  ;;  %v15871_v25 = vpop.xlane.xlu0 %4276  ;;  %vm4456_vm8 = vweird.f32 %v13083_v8  ;;  %v4459_v21 = vand.u32 2147483647, %v15822_v63 }
 0x866   : > { %v4421_v22 = vsel %vm4418_vm2, %v4420_v57, %v4416_v9  ;;  %13086 = vrcp.f32 %v15871_v25  ;;  %8630 = vrot.lane.b32.xlu0 %v13746_v10, %s13425_s29  ;;  %v4647_v27 = vmul.f32 %v15867_v0, %v15818_v43  ;;  %v4476_v40 = vor.u32 1.1754944e-38, %v4475_v6  ;;  %vm4457_vm13 = vmor %vm4455_vm12, %vm4456_vm8 }
 0x867   : > { %v4791_v16 = vmul.f32 %v15562_v49, %v4421_v22  ;;  %v4452_v36 = vsub.f32 1.0, %v4451_v15  ;;  %13088 = vrcp.f32 %v15883_v52  ;;  %v19794_v57 = vunpack.i.l.bf16 %v19770_v31 }
 0x868   : > { %v19795_v9 = vunpack.i.h.bf16 %v19771_v60  ;;  %v4477_v60 = vsel %vm4474_vm9, %v4476_v40, %v4472_v3  ;;  %v4514_v18 = vsel %vm15927_vm10, %v15802_v45, %v4510_v23  ;;  %v4593_v42 = vmul.f32 %v15847_v19, %v4592_v54 }
 0x869   : > { %v4453_v30 = vmul.f32 %v13083_v8, %v4452_v36  ;;  %12209 = vmatmul.msk.f32.vlgmr.msrb.gmra.mxu2 %vm564_vm1, %v4791_v16  ;;  %12210 = vmatmul.msk.f32.vlgmr.msra.gmra.mxu3 %vm564_vm1, %v4792_v5  ;;  %v4462_v6 = vor.u32 1.1754944e-38, %v4461_v37  ;;  %v4648_v5 = vsub.f32 1.0, %v4647_v27  ;;  %vm4460_vm14 = vcmp.eq.f32.partialorder %v4459_v21, 8.507059e+37 }
 0x86a   : > { %5177 = vmatpush.msrb.mxu2 %v19794_v57  ;;  %5203 = vmatpush.msra.mxu3 %v19795_v9  ;;  %v4518_v22 = vor.u32 1.1754944e-38, %v4517_v44  ;;  %v4599_v16 = vand.u32 2147483647, %v15760_v24  ;;  %v4795_v36 = vmul.f32 %v15526_v55, %v4477_v60  ;;  %v4594_v37 = vadd.f32 %v15847_v19, %v4593_v42 }
 0x86b   : > { %v4454_v51 = vadd.f32 %v13083_v8, %v4453_v30  ;;  %8686 = vrot.lane.b32.xlu1 %v19553_v39, %s13425_s29  ;;  %vm4596_vm15 = vweird.f32 %v15847_v19  ;;  %v4503_v10 = vand.u32 2147483648, %v15871_v25  ;;  %v4649_v28 = vmul.f32 %v15867_v0, %v4648_v5  ;;  %v19807_v5 = vld [vmem:[#allocation128_spill] sm:$0xff] }
 0x86c   : > { %v13087_v31 = vpop.eup %13086  ;;  %v4519_v27 = vsel %vm15931_vm11, %v4518_v22, %v4514_v18  ;;  %v4501_v55 = vand.u32 2147483647, %v15871_v25  ;;  %vm4595_vm3 = vweird.f32 %v15760_v24  ;;  %vm15968_vm4 = vcmp.eq.f32.partialorder %v4599_v16, 8.507059e+37 }
 0x86d   : > { %v4458_v4 = vsel %vm4457_vm13, %v13083_v8, %v4454_v51  ;;  %v4493_v38 = vmul.f32 %v13087_v31, %v15871_v25  ;;  %v15944_v63 = vpop.xlane.xlu0 %4288  ;;  %v15950_v45 = vpop.eup %13088  ;;  %v4601_v8 = vand.u32 2147483648, %v15760_v24  ;;  %vm4498_vm2 = vweird.f32 %v13087_v31  ;;  %vm15981_vm5 = vmor %vm4595_vm3, %vm4596_vm15 }
 0x86e   : > { %v4463_v3 = vsel %vm4460_vm14, %v4462_v6, %v4458_v4  ;;  %13090 = vrcp.f32 %v15944_v63  ;;  %8660 = vrot.lane.b32.xlu0 %v19572_v11, %s13426_s30  ;;  %v4689_v40 = vmul.f32 %v15950_v45, %v15883_v52  ;;  %v19802_v44 = vunpack.i.h.bf16 %v19775_v20 }
 0x86f   : > { %v4794_v23 = vmul.f32 %v15571_v61, %v4463_v3  ;;  %v4494_v54 = vsub.f32 1.0, %v4493_v38  ;;  %v4533_v61 = vsel %vm15907_vm7, %v15807_v12, %v4528_v41  ;;  %v4798_v57 = vmul.f32 %v15532_v47, %v4519_v27 }
 0x870   : > { %v4602_v24 = vor.u32 1.1754944e-38, %v4601_v8  ;;  %vm4497_vm7 = vweird.f32 %v15871_v25  ;;  %v19805_v41 = vunpack.i.l.bf16 %v19772_v17  ;;  %v4598_v47 = vsel %vm15981_vm5, %v15847_v19, %v4594_v37 }
 0x871   : > { %v4495_v30 = vmul.f32 %v13087_v31, %v4494_v54  ;;  %12212 = vmatmul.msk.f32.vlgmr.msra.gmra.mxu1 %vm564_vm1, %v4794_v23  ;;  %12213 = vmatmul.msk.f32.vlgmr.msra.gmra.mxu2 %vm564_vm1, %v4795_v36  ;;  %vm4652_vm8 = vweird.f32 %v15867_v0  ;;  %v4655_v15 = vand.u32 2147483647, %v15818_v43  ;;  %vm4499_vm6 = vmor %vm4497_vm7, %vm4498_vm2  ;;  %v4504_v26 = vor.u32 1.1754944e-38, %v4503_v10 }
 0x872   : > { %12214 = vmatmul.msk.f32.vlgmr.msrb.gmra.mxu3 %vm564_vm1, %v15840_v34  ;;  %5255 = vmatpush.msra.mxu1 %v19802_v44  ;;  %v19806_v34 = vunpack.i.h.bf16 %v19773_v62  ;;  %v4650_v17 = vadd.f32 %v15867_v0, %v4649_v28  ;;  %vm4502_vm9 = vcmp.eq.f32.partialorder %v4501_v55, 8.507059e+37  ;;  %v4657_v60 = vand.u32 2147483648, %v15818_v43 }
 0x873   : > { %v4496_v49 = vadd.f32 %v13087_v31, %v4495_v30  ;;  %5281 = vmatpush.msra.mxu2 %v19805_v41  ;;  %8716 = vrot.lane.b32.xlu1 %v13805_v32, %s13426_s30  ;;  %v4690_v18 = vsub.f32 1.0, %v4689_v40  ;;  %vm4651_vm10 = vweird.f32 %v15818_v43  ;;  %v12700_v4 = vunpack.i.h.bf16 %v19807_v5 }
 0x874   : > { %5307 = vmatpush.msrb.mxu3 %v19806_v34  ;;  %v15990_v9 = vpop.eup %13090  ;;  %8462 = vrot.lane.b32.xlu2 %v13641_v46, %s13425_s29  ;;  %v4799_v38 = vmul.f32 %v15483_v59, %v4533_v61  ;;  %v4603_v22 = vsel %vm15968_vm4, %v4602_v24, %v4598_v47  ;;  %vm16022_vm11 = vmor %vm4651_vm10, %vm4652_vm8  ;;  %v4557_v59 = vand.u32 2147483647, %v15944_v63  ;;  %v12699_v3 = vunpack.i.l.bf16 %v19807_v5 }
 0x875   : > { %v4500_v62 = vsel %vm4499_vm6, %v13087_v31, %v4496_v49  ;;  %v4549_v19 = vmul.f32 %v15990_v9, %v15944_v63  ;;  %v16005_v25 = vpop.xlane.xlu2 %4294  ;;  %v16007_v51 = vpop.xlane.xlu0 %4285  ;;  %vm4554_vm12 = vweird.f32 %v15990_v9  ;;  %vm4656_vm13 = vcmp.eq.f32.partialorder %v4655_v15, 8.507059e+37 }
 0x876   : > { %v4505_v42 = vsel %vm4502_vm9, %v4504_v26, %v4500_v62  ;;  %13092 = vrcp.f32 %v16005_v25  ;;  %8714 = vrot.lane.b32.xlu0 %v13805_v32, %s13425_s29  ;;  %v4559_v32 = vand.u32 2147483648, %v15944_v63  ;;  %v4658_v36 = vor.u32 1.1754944e-38, %v4657_v60 }
 0x877   : > { %v4797_v31 = vmul.f32 %v15576_v35, %v4505_v42  ;;  %v4550_v6 = vsub.f32 1.0, %v4549_v19  ;;  %13094 = vrcp.f32 %v16007_v51  ;;  %v4654_v35 = vsel %vm16022_vm11, %v15867_v0, %v4650_v17  ;;  %v19816_v17 = vld [vmem:[#allocation172_spill] sm:$0xff] }
 0x878   : > { %v4691_v8 = vmul.f32 %v15950_v45, %v4690_v18  ;;  %v19810_v0 = vunpack.i.l.bf16 %v19778_v13  ;;  %v16041_v23 = vmul.f32 %v15541_v14, %v4603_v22  ;;  %v4697_v54 = vand.u32 2147483647, %v15883_v52 }
 0x879   : > { %v4551_v43 = vmul.f32 %v15990_v9, %v4550_v6  ;;  %12215 = vmatmul.msk.f32.vlgmr.msra.gmra.mxu0 %vm564_vm1, %v4797_v31  ;;  %12216 = vmatmul.msk.f32.vlgmr.msrb.gmra.mxu1 %vm564_vm1, %v4798_v57  ;;  %vm4553_vm14 = vweird.f32 %v15944_v63  ;;  %v19811_v37 = vunpack.i.h.bf16 %v19777_v7  ;;  %v19812_v10 = vunpack.i.l.bf16 %v19775_v20  ;;  %v19833_v6 = vld [vmem:[#allocation175_spill] sm:$0xff] }
 0x87a   : > { %12217 = vmatmul.msk.f32.vlgmr.msrb.gmra.mxu2 %vm564_vm1, %v4799_v38  ;;  %5333 = vmatpush.msra.mxu0 %v19810_v0  ;;  %v4659_v30 = vsel %vm4656_vm13, %v4658_v36, %v4654_v35  ;;  %vm4693_vm15 = vweird.f32 %v15883_v52  ;;  %v4699_v55 = vand.u32 2147483648, %v15883_v52  ;;  %vm4555_vm2 = vmor %vm4553_vm14, %vm4554_vm12  ;;  %v4560_v14 = vor.u32 1.1754944e-38, %v4559_v32  ;;  %v19824_v35 = vld [vmem:[#allocation37_spill] sm:$0xff] }
 0x87b   : > { %v4552_v27 = vadd.f32 %v15990_v9, %v4551_v43  ;;  %5359 = vmatpush.msrb.mxu1 %v19811_v37  ;;  %5385 = vmatpush.msrb.mxu2 %v19812_v10  ;;  %vm4694_vm3 = vweird.f32 %v15950_v45  ;;  %vm4558_vm4 = vcmp.eq.f32.partialorder %v4557_v59, 8.507059e+37  ;;  %v4692_v44 = vadd.f32 %v15950_v45, %v4691_v8 }
 0x87c   : > { %v13093_v28 = vpop.eup %13092  ;;  %8742 = vrot.lane.b32.xlu1 %v19557_v33, %s13425_s29  ;;  %8492 = vrot.lane.b32.xlu2 %v13656_v50, %s13426_s30  ;;  %v19813_v50 = vld [vmem:[#allocation42_spill] sm:$0xff]  ;;  %vm16070_vm5 = vcmp.eq.f32.partialorder %v4697_v54, 8.507059e+37  ;;  %v4585_v34 = vand.u32 2147483647, %v16005_v25  ;;  %v4543_v15 = vand.u32 2147483647, %v16007_v51  ;;  %v16081_v62 = vmul.f32 %v19816_v17, %v4659_v30  ;;  %vm16087_vm7 = vmor %vm4693_vm15, %vm4694_vm3 }
 0x87d   : > { %v13095_v63 = vpop.eup %13094  ;;  %v4556_v20 = vsel %vm4555_vm2, %v15990_v9, %v4552_v27  ;;  %v4577_v61 = vmul.f32 %v13093_v28, %v16005_v25  ;;  %v16061_v21 = vpop.xlane.xlu2 %4300  ;;  %v4587_v9 = vand.u32 2147483648, %v16005_v25  ;;  %v4545_v26 = vand.u32 2147483648, %v16007_v51 }
 0x87e   : > { %v16063_v40 = vpop.xlane.xlu0 %4291  ;;  %v4561_v57 = vsel %vm4558_vm4, %v4560_v14, %v4556_v20  ;;  %v4535_v12 = vmul.f32 %v13095_v63, %v16007_v51  ;;  %13096 = vrcp.f32 %v16061_v21  ;;  %8800 = vrot.lane.b32.xlu0 %v19813_v50, %s13426_s30  ;;  %v4700_v19 = vor.u32 1.1754944e-38, %v4699_v55 }
 0x87f   : > { %v4801_v49 = vmul.f32 %v15581_v48, %v4561_v57  ;;  %v4578_v41 = vsub.f32 1.0, %v4577_v61  ;;  %13098 = vrcp.f32 %v16063_v40  ;;  %vm4582_vm8 = vweird.f32 %v13093_v28 }
 0x880   : > { %v4536_v47 = vsub.f32 1.0, %v4535_v12  ;;  %v4696_v18 = vsel %vm16087_vm7, %v15950_v45, %v4692_v44  ;;  %vm4581_vm6 = vweird.f32 %v16005_v25  ;;  %vm4540_vm9 = vweird.f32 %v13095_v63  ;;  %v19843_v44 = vld [vmem:[#allocation114_spill] sm:$0xff]  ;;  %v19845_v12 = vld [vmem:[#allocation56_spill] sm:$0xff] }
 0x881   : > { %v4579_v60 = vmul.f32 %v13093_v28, %v4578_v41  ;;  %12219 = vmatmul.msk.f32.vlgmr.msrb.gmra.mxu0 %vm564_vm1, %v4801_v49  ;;  %v19819_v31 = vunpack.i.l.bf16 %v19779_v2  ;;  %vm16098_vm10 = vcmp.eq.f32.partialorder %v4585_v34, 8.507059e+37  ;;  %v4588_v38 = vor.u32 1.1754944e-38, %v4587_v9  ;;  %vm4583_vm12 = vmor %vm4581_vm6, %vm4582_vm8 }
 0x882   : > { %v4537_v42 = vmul.f32 %v13095_v63, %v4536_v47  ;;  %vm4539_vm11 = vweird.f32 %v16007_v51  ;;  %vm16103_vm13 = vcmp.eq.f32.partialorder %v4543_v15, 8.507059e+37  ;;  %v4546_v25 = vor.u32 1.1754944e-38, %v4545_v26  ;;  %v19831_v26 = vld [vmem:[#allocation46_spill] sm:$0xff] }
 0x883   : > { %5437 = vmatpush.msrb.mxu0 %v19819_v31  ;;  %v4580_v52 = vadd.f32 %v13093_v28, %v4579_v60  ;;  %v4613_v32 = vand.u32 2147483647, %v16061_v21  ;;  %vm4541_vm14 = vmor %vm4539_vm11, %vm4540_vm9  ;;  %v4615_v59 = vand.u32 2147483648, %v16061_v21  ;;  %v4571_v36 = vand.u32 2147483647, %v16063_v40  ;;  %v19832_v31 = vld [vmem:[#allocation49_spill] sm:$0xff] }
 0x884   : > { %v13097_v22 = vpop.eup %13096  ;;  %v4538_v16 = vadd.f32 %v13095_v63, %v4537_v42  ;;  %8772 = vrot.lane.b32.xlu1 %v19824_v35, %s13426_s30  ;;  %8518 = vrot.lane.b32.xlu2 %v13672_v53, %s13425_s29  ;;  %v4573_v37 = vand.u32 2147483648, %v16063_v40  ;;  %vm4609_vm15 = vweird.f32 %v16061_v21  ;;  %vm4567_vm2 = vweird.f32 %v16063_v40 }
 0x885   : > { %v4584_v43 = vsel %vm4583_vm12, %v13093_v28, %v4580_v52  ;;  %v4605_v51 = vmul.f32 %v13097_v22, %v16061_v21  ;;  %v13099_v0 = vpop.eup %13098  ;;  %v16130_v14 = vpop.xlane.xlu1 %4312  ;;  %vm4610_vm3 = vweird.f32 %v13097_v22  ;;  %vm16141_vm4 = vcmp.eq.f32.partialorder %v4613_v32, 8.507059e+37 }
 0x886   : > { %v16116_v8 = vpop.xlane.xlu0 %4303  ;;  %v4589_v54 = vsel %vm16098_vm10, %v4588_v38, %v4584_v43  ;;  %v4542_v27 = vsel %vm4541_vm14, %v13095_v63, %v4538_v16  ;;  %v16122_v53 = vpop.xlane.xlu2 %4306  ;;  %8770 = vrot.lane.b32.xlu0 %v19824_v35, %s13425_s29  ;;  %v4563_v55 = vmul.f32 %v13099_v0, %v16063_v40  ;;  %v16134_v63 = vsel %vm16070_vm5, %v4700_v19, %v4696_v18  ;;  %vm4611_vm8 = vmor %vm4609_vm15, %vm4610_vm3  ;;  %v19836_v43 = vld [vmem:[#allocation174_spill] sm:$0xff] }
 0x887   : > { %13100 = vrcp.f32 %v16116_v8  ;;  %v4803_v10 = vmul.f32 %v15592_v1, %v4589_v54  ;;  %v4547_v28 = vsel %vm16103_vm13, %v4546_v25, %v4542_v27  ;;  %v4606_v30 = vsub.f32 1.0, %v4605_v51 }
 0x888   : > { %v4800_v20 = vmul.f32 %v15590_v56, %v4547_v28  ;;  %v4564_v1 = vsub.f32 1.0, %v4563_v55  ;;  %13102 = vrcp.f32 %v16122_v53  ;;  %v4616_v57 = vor.u32 1.1754944e-38, %v4615_v59 }
 0x889   : > { %v4607_v61 = vmul.f32 %v13097_v22, %v4606_v30  ;;  %12221 = vmatmul.msk.f32.vlgmr.msra.gmra.mxu2 %vm564_vm1, %v4803_v10  ;;  %vm16145_vm5 = vcmp.eq.f32.partialorder %v4571_v36, 8.507059e+37  ;;  %v4574_v56 = vor.u32 1.1754944e-38, %v4573_v37  ;;  %v19829_v24 = vunpack.i.l.bf16 %v19777_v7 }
 0x88a   : > { %12218 = vmatmul.msk.f32.vlgmr.msra.gmra.mxu3 %vm564_vm1, %v4800_v20  ;;  %v4565_v41 = vmul.f32 %v13099_v0, %v4564_v1  ;;  %vm4568_vm7 = vweird.f32 %v13099_v0  ;;  %13104 = vrcp.f32 %v16130_v14  ;;  %v19830_v34 = vunpack.i.h.bf16 %v19778_v13 }
 0x88b   : > { %5489 = vmatpush.msra.mxu2 %v19829_v24  ;;  %v4608_v49 = vadd.f32 %v13097_v22, %v4607_v61  ;;  %vm4623_vm6 = vweird.f32 %v16116_v8  ;;  %v4627_v47 = vand.u32 2147483647, %v16116_v8  ;;  %v4629_v7 = vand.u32 2147483648, %v16116_v8  ;;  %vm4569_vm9 = vmor %vm4567_vm2, %vm4568_vm7 }
 0x88c   : > { %5411 = vmatpush.msra.mxu3 %v19830_v34  ;;  %v4641_v15 = vand.u32 2147483647, %v16122_v53  ;;  %8826 = vrot.lane.b32.xlu1 %v19831_v26, %s13425_s29  ;;  %v4566_v17 = vadd.f32 %v13099_v0, %v4565_v41  ;;  %v4643_v48 = vand.u32 2147483648, %v16122_v53  ;;  %vm4637_vm10 = vweird.f32 %v16122_v53 }
 0x88d   : > { %v16155_v9 = vpop.eup %13100  ;;  %8548 = vrot.lane.b32.xlu2 %v13687_v58, %s13426_s30  ;;  %v4612_v13 = vsel %vm4611_vm8, %v13097_v22, %v4608_v49  ;;  %v4669_v58 = vand.u32 2147483647, %v16130_v14  ;;  %v4671_v18 = vand.u32 2147483648, %v16130_v14  ;;  %vm16190_vm11 = vcmp.eq.f32.partialorder %v4627_v47, 8.507059e+37  ;;  %v16199_v36 = vpop.xlane.xlu1 %4327  ;;  %v19846_v49 = vld [vmem:[#allocation18_spill] sm:$0xff] }
 0x88e   : > { %v4619_v21 = vmul.f32 %v16155_v9, %v16116_v8  ;;  %v16171_v19 = vpop.xlane.xlu0 %4315  ;;  %v4617_v60 = vsel %vm16141_vm4, %v4616_v57, %v4612_v13  ;;  %v16181_v42 = vpop.xlane.xlu2 %4321  ;;  %8856 = vrot.lane.b32.xlu0 %v19832_v31, %s13426_s30  ;;  %v4570_v22 = vsel %vm4569_vm9, %v13099_v0, %v4566_v17  ;;  %v4630_v25 = vor.u32 1.1754944e-38, %v4629_v7 }
 0x88f   : > { %13106 = vrcp.f32 %v16171_v19  ;;  %v13103_v52 = vpop.eup %13102  ;;  %v4805_v38 = vmul.f32 %v19833_v6, %v4617_v60  ;;  %v4575_v40 = vsel %vm16145_vm5, %v4574_v56, %v4570_v22  ;;  %vm4624_vm12 = vweird.f32 %v16155_v9 }
 0x890   : > { %v4620_v16 = vsub.f32 1.0, %v4619_v21  ;;  %13108 = vrcp.f32 %v16181_v42  ;;  %v4633_v32 = vmul.f32 %v13103_v52, %v16122_v53  ;;  %v13105_v35 = vpop.eup %13104  ;;  %v4802_v51 = vmul.f32 %v19836_v43, %v4575_v40  ;;  %vm4625_vm3 = vmor %vm4623_vm6, %vm4624_vm12 }
 0x891   : > { %vm4665_vm13 = vweird.f32 %v16130_v14  ;;  %12223 = vmatmul.msk.f32.vlgmr.msra.gmra.mxu0 %vm564_vm1, %v4805_v38  ;;  %vm16202_vm14 = vcmp.eq.f32.partialorder %v4641_v15, 8.507059e+37  ;;  %v4644_v27 = vor.u32 1.1754944e-38, %v4643_v48  ;;  %v4661_v37 = vmul.f32 %v13105_v35, %v16130_v14 }
 0x892   : > { %v4621_v59 = vmul.f32 %v16155_v9, %v4620_v16  ;;  %v4634_v0 = vsub.f32 1.0, %v4633_v32  ;;  %12222 = vmatmul.msk.f32.vlgmr.msrb.gmra.mxu3 %vm564_vm1, %v16041_v23  ;;  %v19839_v10 = vunpack.i.l.bf16 %v19781_v29  ;;  %vm4638_vm15 = vweird.f32 %v13103_v52  ;;  %12220 = vmatmul.msk.f32.vlgmr.msra.gmra.mxu1 %vm564_vm1, %v4802_v51  ;;  %v19848_v16 = vld [vmem:[#allocation177_spill] sm:$0xff]  ;;  %v19850_v51 = vld [vmem:[#allocation178_spill] sm:$0xff] }
 0x893   : > { %vm16212_vm2 = vcmp.eq.f32.partialorder %v4669_v58, 8.507059e+37  ;;  %v4672_v55 = vor.u32 1.1754944e-38, %v4671_v18  ;;  %v19842_v20 = vunpack.i.h.bf16 %v19779_v2  ;;  %v4662_v1 = vsub.f32 1.0, %v4661_v37  ;;  %vm4639_vm7 = vmor %vm4637_vm10, %vm4638_vm15 }
 0x894   : > { %5541 = vmatpush.msra.mxu0 %v19839_v10  ;;  %v4622_v28 = vadd.f32 %v16155_v9, %v4621_v59  ;;  %v4635_v23 = vmul.f32 %v13103_v52, %v4634_v0  ;;  %vm4707_vm4 = vweird.f32 %v16181_v42  ;;  %13110 = vrcp.f32 %v16199_v36  ;;  %8912 = vrot.lane.b32.xlu1 %v19845_v12, %s13426_s30 }
 0x895   : > { %5515 = vmatpush.msrb.mxu3 %v19842_v20  ;;  %v16219_v61 = vpop.eup %13106  ;;  %v19844_v57 = vunpack.i.h.bf16 %v19843_v44  ;;  %vm4666_vm5 = vweird.f32 %v13105_v35  ;;  %v4711_v24 = vand.u32 2147483647, %v16181_v42  ;;  %8602 = vrot.lane.b32.xlu2 %v19846_v49, %s13425_s29  ;;  %v4663_v7 = vmul.f32 %v13105_v35, %v4662_v1  ;;  %v16267_v43 = vpop.xlane.xlu1 %4330  ;;  %v19857_v49 = vld [vmem:[#allocation115_spill] sm:$0xff] }
 0x896   : > { %v13109_v2 = vpop.eup %13108  ;;  %v4626_v56 = vsel %vm4625_vm3, %v16155_v9, %v4622_v28  ;;  %v4675_v8 = vmul.f32 %v16219_v61, %v16171_v19  ;;  %v16237_v41 = vpop.xlane.xlu0 %4324  ;;  %v4636_v47 = vadd.f32 %v13103_v52, %v4635_v23  ;;  %8910 = vrot.lane.b32.xlu0 %v19845_v12, %s13425_s29  ;;  %v19847_v9 = vld [vmem:[#allocation176_spill] sm:$0xff]  ;;  %v4713_v17 = vand.u32 2147483648, %v16181_v42  ;;  %vm4667_vm8 = vmor %vm4665_vm13, %vm4666_vm5  ;;  %v19855_v23 = vld [vmem:[#allocation181_spill] sm:$0xff] }
 0x897   : > { %5463 = vmatpush.msra.mxu1 %v19844_v57  ;;  %v4631_v34 = vsel %vm16190_vm11, %v4630_v25, %v4626_v56  ;;  %v4703_v15 = vmul.f32 %v13109_v2, %v16181_v42  ;;  %v4683_v48 = vand.u32 2147483647, %v16171_v19  ;;  %v4664_v58 = vadd.f32 %v13105_v35, %v4663_v7  ;;  %v19854_v42 = vld [vmem:[#allocation180_spill] sm:$0xff] }
 0x898   : > { %v4806_v13 = vmul.f32 %v19847_v9, %v4631_v34  ;;  %v4676_v21 = vsub.f32 1.0, %v4675_v8  ;;  %v4640_v60 = vsel %vm4639_vm7, %v13103_v52, %v4636_v47  ;;  %v4685_v6 = vand.u32 2147483648, %v16171_v19  ;;  %v19859_v9 = vld [vmem:[#allocation129_spill] sm:$0xff] }
 0x899   : > { %v4704_v18 = vsub.f32 1.0, %v4703_v15  ;;  %v4645_v38 = vsel %vm16202_vm14, %v4644_v27, %v4640_v60  ;;  %vm4708_vm6 = vweird.f32 %v13109_v2  ;;  %vm4680_vm9 = vweird.f32 %v16219_v61 }
 0x89a   : > { %v4677_v53 = vmul.f32 %v16219_v61, %v4676_v21  ;;  %v13111_v22 = vpop.eup %13110  ;;  %v4807_v40 = vmul.f32 %v19848_v16, %v4645_v38  ;;  %v4668_v52 = vsel %vm4667_vm8, %v13105_v35, %v4664_v58  ;;  %13112 = vrcp.f32 %v16237_v41  ;;  %12226 = vmatmul.msk.f32.vlgmr.msra.gmra.mxu3 %vm564_vm1, %v16081_v62  ;;  %12224 = vmatmul.msk.f32.vlgmr.msrb.gmra.mxu1 %vm564_vm1, %v4806_v13  ;;  %vm4709_vm13 = vmor %vm4707_vm4, %vm4708_vm6  ;;  %v19861_v16 = vld [vmem:[#allocation182_spill] sm:$0xff] }
 0x89b   : > { %v4705_v45 = vmul.f32 %v13109_v2, %v4704_v18  ;;  %v4673_v25 = vsel %vm16212_vm2, %v4672_v55, %v4668_v52  ;;  %vm4679_vm10 = vweird.f32 %v16171_v19  ;;  %v4731_v32 = vmul.f32 %v13111_v22, %v16199_v36  ;;  %5567 = vmatpush.msrb.mxu1 %v12699_v3 }
 0x89c   : > { %v4678_v14 = vadd.f32 %v16219_v61, %v4677_v53  ;;  %v19849_v35 = vunpack.i.h.bf16 %v19781_v29  ;;  %v4809_v59 = vmul.f32 %v19850_v51, %v4673_v25  ;;  %vm16273_vm11 = vcmp.eq.f32.partialorder %v4711_v24, 8.507059e+37  ;;  %vm4681_vm12 = vmor %vm4679_vm10, %vm4680_vm9  ;;  %12225 = vmatmul.msk.f32.vlgmr.msrb.gmra.mxu2 %vm564_vm1, %v4807_v40 }
 0x89d   : > { %v4706_v0 = vadd.f32 %v13109_v2, %v4705_v45  ;;  %v4686_v19 = vor.u32 1.1754944e-38, %v4685_v6  ;;  %v4714_v29 = vor.u32 1.1754944e-38, %v4713_v17  ;;  %vm4684_vm14 = vcmp.eq.f32.partialorder %v4683_v48, 8.507059e+37  ;;  %8688 = vrot.lane.b32.xlu2 %v19553_v39, %s13426_s30  ;;  %v19860_v48 = vld [vmem:[#allocation179_spill] sm:$0xff] }
 0x89e   : > { %5619 = vmatpush.msra.mxu3 %v19849_v35  ;;  %v4682_v54 = vsel %vm4681_vm12, %v16219_v61, %v4678_v14  ;;  %v4732_v27 = vsub.f32 1.0, %v4731_v32  ;;  %v19853_v37 = vunpack.i.l.bf16 %v19843_v44  ;;  %v4741_v30 = vand.u32 2147483648, %v16199_v36  ;;  %12227 = vmatmul.msk.f32.vlgmr.msrb.gmra.mxu0 %vm564_vm1, %v4809_v59  ;;  %v16298_v61 = vpop.xlane.xlu0 %4333  ;;  %v19862_v14 = vld [vmem:[#allocation141_spill] sm:$0xff] }
 0x89f   : > { %v4710_v10 = vsel %vm4709_vm13, %v13109_v2, %v4706_v0  ;;  %v4687_v28 = vsel %vm4684_vm14, %v4686_v19, %v4682_v54  ;;  %13114 = vrcp.f32 %v16267_v43  ;;  %vm4736_vm15 = vweird.f32 %v13111_v22  ;;  %5645 = vmatpush.msrb.mxu0 %v12700_v4  ;;  %v19856_v2 = vld [vmem:[#allocation173_spill] sm:$0xff]  ;;  %v19864_v0 = vld [vmem:[#allocation183_spill] sm:$0xff] }
 0x8a0   : > { %5593 = vmatpush.msrb.mxu2 %v19853_v37  ;;  %v4715_v3 = vsel %vm16273_vm11, %v4714_v29, %v4710_v10  ;;  %v4810_v55 = vmul.f32 %v19854_v42, %v4687_v28  ;;  %v4733_v20 = vmul.f32 %v13111_v22, %v4732_v27  ;;  %v13113_v39 = vpop.eup %13112  ;;  %v4739_v44 = vand.u32 2147483647, %v16199_v36  ;;  %v19863_v59 = vld [vmem:[#allocation117_spill] sm:$0xff]  ;;  %v19865_v37 = vld [vmem:[#allocation130_spill] sm:$0xff]  ;;  %v19870_v42 = vld [vmem:[#allocation127_spill] sm:$0xff] }
 0x8a1   : > { %v4812_v1 = vmul.f32 %v19855_v23, %v4715_v3  ;;  %vm4735_vm2 = vweird.f32 %v16199_v36  ;;  %v4717_v12 = vmul.f32 %v13113_v39, %v16237_v41  ;;  %v4811_v56 = vmul.f32 %v19856_v2, %v16134_v63  ;;  %v19858_v63 = vld [vmem:[#allocation132_spill] sm:$0xff]  ;;  %v19867_v28 = vld [vmem:[#allocation125_spill] sm:$0xff]  ;;  %v16381_v2 = vpop.permute.xlu2 %8380 }
 0x8a2   : > { %v4734_v57 = vadd.f32 %v13111_v22, %v4733_v20  ;;  %vm4737_vm3 = vmor %vm4735_vm2, %vm4736_vm15  ;;  %13116 = vrcp.f32 %v16298_v61  ;;  %v4742_v4 = vor.u32 1.1754944e-38, %v4741_v30  ;;  %v4725_v8 = vand.u32 2147483647, %v16237_v41  ;;  %12228 = vmatmul.msk.f32.vlgmr.msra.gmra.mxu1 %vm564_vm1, %v4810_v55  ;;  %v19868_v30 = vld [vmem:[#allocation143_spill] sm:$0xff]  ;;  %v19869_v3 = vld [vmem:[#allocation136_spill] sm:$0xff]  ;;  %19882 = vst [vmem:[#allocation111_spill] sm:$0xff] %v16381_v2 }
 0x8a3   : > { %12230 = vmatmul.msk.f32.vlgmr.msrb.gmra.mxu3 %vm564_vm1, %v4812_v1  ;;  %v4718_v24 = vsub.f32 1.0, %v4717_v12  ;;  %vm4740_vm4 = vcmp.eq.f32.partialorder %v4739_v44, 8.507059e+37  ;;  %v4727_v34 = vand.u32 2147483648, %v16237_v41  ;;  %12236 = vmatpush.xpose.msk.msra.mxu1 %vm564_vm1, %v19858_v63  ;;  %vm4722_vm5 = vweird.f32 %v13113_v39  ;;  %v19871_v55 = vld [vmem:[#allocation134_spill] sm:$0xff]  ;;  %v19876_v23 = vld [vmem:[#allocation133_spill] sm:$0xff]  ;;  %v19891_v63 = vld [vmem:[#allocation156_spill] sm:$0xff] }
 0x8a4   : > { %v4738_v5 = vsel %vm4737_vm3, %v13111_v22, %v4734_v57  ;;  %12240 = vmatpush.xpose.msk.msrb.mxu3 %vm564_vm1, %v19857_v49  ;;  %12229 = vmatmul.msk.f32.vlgmr.msra.gmra.mxu2 %vm564_vm1, %v4811_v56  ;;  %vm4721_vm7 = vweird.f32 %v16237_v41  ;;  %vm4726_vm8 = vcmp.eq.f32.partialorder %v4725_v8, 8.507059e+37  ;;  %v4753_v18 = vand.u32 2147483647, %v16267_v43  ;;  %v19872_v20 = vld [vmem:[#allocation142_spill] sm:$0xff]  ;;  %v19878_v44 = vld [vmem:[#allocation121_spill] sm:$0xff]  ;;  %v19879_v57 = vld [vmem:[#allocation155_spill] sm:$0xff] }
 0x8a5   : > { %v13115_v36 = vpop.eup %13114  ;;  %v4743_v47 = vsel %vm4740_vm4, %v4742_v4, %v4738_v5  ;;  %v4719_v7 = vmul.f32 %v13113_v39, %v4718_v24  ;;  %12238 = vmatpush.xpose.msk.msra.mxu2 %vm564_vm1, %v19859_v9  ;;  %8658 = vrot.lane.b32.xlu2 %v19572_v11, %s13425_s29  ;;  %vm4723_vm6 = vmor %vm4721_vm7, %vm4722_vm5  ;;  %v4728_v58 = vor.u32 1.1754944e-38, %v4727_v34  ;;  %v4755_v6 = vand.u32 2147483648, %v16267_v43  ;;  %v19877_v1 = vld [vmem:[#allocation146_spill] sm:$0xff]  ;;  %v19880_v12 = vld [vmem:[#allocation137_spill] sm:$0xff] }
 0x8a6   : > { %v4745_v15 = vmul.f32 %v13115_v36, %v16267_v43  ;;  %v4814_v60 = vmul.f32 %v19860_v48, %v4743_v47  ;;  %vm4750_vm9 = vweird.f32 %v13115_v36  ;;  %vm4749_vm10 = vweird.f32 %v16267_v43  ;;  %v19883_v56 = vld [vmem:[#allocation144_spill] sm:$0xff]  ;;  %v19884_v5 = vld [vmem:[#allocation110_spill] sm:$0xff]  ;;  %v19885_v4 = vld [vmem:[#allocation113_spill] sm:$0xff] }
 0x8a7   : > { %v4720_v13 = vadd.f32 %v13113_v39, %v4719_v7  ;;  %vm4751_vm11 = vmor %vm4749_vm10, %vm4750_vm9  ;;  %vm4754_vm12 = vcmp.eq.f32.partialorder %v4753_v18, 8.507059e+37  ;;  %v4756_v45 = vor.u32 1.1754944e-38, %v4755_v6  ;;  %v4769_v25 = vand.u32 2147483648, %v16298_v61  ;;  %v19886_v24 = vld [vmem:[#allocation151_spill] sm:$0xff]  ;;  %v19887_v8 = vld [vmem:[#allocation98_spill] sm:$0xff] }
 0x8a8   : > { %v4746_v17 = vsub.f32 1.0, %v4745_v15  ;;  %v13117_v21 = vpop.eup %13116  ;;  %v4767_v51 = vand.u32 2147483647, %v16298_v61  ;;  %vm4763_vm14 = vweird.f32 %v16298_v61  ;;  %v19890_v34 = vld [vmem:[#allocation94_spill] sm:$0xff]  ;;  %v19892_v47 = vld [vmem:[#allocation105_spill] sm:$0xff]  ;;  %v19894_v9 = vld [vmem:[#allocation19_spill] sm:$0xff] }
 0x8a9   : > { %v4724_v38 = vsel %vm4723_vm6, %v13113_v39, %v4720_v13  ;;  %v4759_v22 = vmul.f32 %v13117_v21, %v16298_v61  ;;  %vm4764_vm13 = vweird.f32 %v13117_v21  ;;  %v4770_v29 = vor.u32 1.1754944e-38, %v4769_v25  ;;  %v19873_v61 = vld [vmem:[#allocation148_spill] sm:$0xff]  ;;  %v19874_v39 = vld [vmem:[#allocation135_spill] sm:$0xff]  ;;  %v19893_v7 = vld [vmem:[#allocation150_spill] sm:$0xff] }
 0x8aa   : > { %v4747_v53 = vmul.f32 %v13115_v36, %v4746_v17  ;;  %v4729_v11 = vsel %vm4726_vm8, %v4728_v58, %v4724_v38  ;;  %12232 = vmatmul.msk.f32.vlgmr.msrb.gmra.mxu1 %vm564_vm1, %v4814_v60  ;;  %vm4765_vm15 = vmor %vm4763_vm14, %vm4764_vm13  ;;  %vm4768_vm2 = vcmp.eq.f32.partialorder %v4767_v51, 8.507059e+37  ;;  %v19896_v60 = vld [vmem:[#allocation157_spill] sm:$0xff]  ;;  %v19897_v6 = vld [vmem:[#allocation99_spill] sm:$0xff] }
 0x8ab   : > { %v4813_v40 = vmul.f32 %v19861_v16, %v4729_v11  ;;  %v4760_v52 = vsub.f32 1.0, %v4759_v22  ;;  %12244 = vmatpush.xpose.msk.msrb.mxu1 %vm564_vm1, %v19862_v14  ;;  %v19898_v38 = vld [vmem:[#allocation27_spill] sm:$0xff]  ;;  %v19899_v22 = vld [vmem:[#allocation24_spill] sm:$0xff]  ;;  %v19900_v16 = vld [vmem:[#allocation154_spill] sm:$0xff] }
 0x8ac   : > { %v4748_v41 = vadd.f32 %v13115_v36, %v4747_v53  ;;  %v19902_v25 = vld [vmem:[#allocation22_spill] sm:$0xff]  ;;  %v19903_v14 = vld [vmem:[#allocation89_spill] sm:$0xff]  ;;  %v19905_v51 = vld [vmem:[#allocation11_spill] sm:$0xff] }
 0x8ad   : > { %v4761_v35 = vmul.f32 %v13117_v21, %v4760_v52  ;;  %12231 = vmatmul.msk.f32.vlgmr.msra.gmra.mxu0 %vm564_vm1, %v4813_v40  ;;  %8744 = vrot.lane.b32.xlu2 %v19557_v33, %s13426_s30  ;;  %v19866_v33 = vld [vmem:[#allocation184_spill] sm:$0xff]  ;;  %v19901_v52 = vld [vmem:[#allocation66_spill] sm:$0xff] }
 0x8ae   : > { %v4752_v32 = vsel %vm4751_vm11, %v13115_v36, %v4748_v41  ;;  %12242 = vmatpush.xpose.msk.msra.mxu0 %vm564_vm1, %v19863_v59  ;;  %v19889_v36 = vld [vmem:[#allocation145_spill] sm:$0xff]  ;;  %v19907_v59 = vld [vmem:[#allocation26_spill] sm:$0xff] }
 0x8af   : > { %v4757_v43 = vsel %vm4754_vm12, %v4756_v45, %v4752_v32  ;;  %v4762_v19 = vadd.f32 %v13117_v21, %v4761_v35  ;;  %v12705_v32 = vunpack.i.h.bf16 %v19903_v14  ;;  %v19904_v35 = vld [vmem:[#allocation116_spill] sm:$0xff] }
 0x8b0   : > { %v4815_v62 = vmul.f32 %v19864_v0, %v4757_v43  ;;  %v19906_v43 = vld [vmem:[#allocation139_spill] sm:$0xff]  ;;  %v19908_v0 = vld [vmem:[#allocation158_spill] sm:$0xff] }
 0x8b1   : > { %v4766_v54 = vsel %vm4765_vm15, %v13117_v21, %v4762_v19  ;;  %v19895_v21 = vld [vmem:[#allocation149_spill] sm:$0xff]  ;;  %v19909_v19 = vld [vmem:[#allocation104_spill] sm:$0xff] }
 0x8b2   : > { %12233 = vmatmul.msk.f32.vlgmr.msrb.gmra.mxu2 %vm564_vm1, %v4815_v62  ;;  %v4771_v27 = vsel %vm4768_vm2, %v4770_v29, %v4766_v54  ;;  %12237 = vmatmul.msk.f32.vlgmr.msra.gmra.mxu1 %vm564_vm1, %v19867_v28  ;;  %v12704_v62 = vunpack.i.l.bf16 %v19903_v14  ;;  %v19910_v29 = vld [vmem:[#allocation101_spill] sm:$0xff]  ;;  %v16443_v28 = vpop.f32.mrf.mxu1  ;;  %v19954_v14 = vld [vmem:[#allocation87_spill] sm:$0xff] }
 0x8b3   : > { %12246 = vmatpush.xpose.msk.msrb.mxu2 %vm564_vm1, %v19865_v37  ;;  %v4816_v10 = vmul.f32 %v19866_v33, %v4771_v27  ;;  %12252 = vmatpush.xpose.msk.msra.mxu1 %vm564_vm1, %v19868_v30  ;;  %v12715_v54 = vunpack.i.h.bf16 %v19910_v29  ;;  %v19911_v27 = vld [vmem:[#allocation82_spill] sm:$0xff]  ;;  %19914 = vst [vmem:[#allocation122_spill] sm:$0xff] %v16443_v28  ;;  %v19915_v30 = vld [vmem:[#allocation93_spill] sm:$0xff] }
 0x8b4   : > { %v19912_v37 = vld [vmem:[#allocation138_spill] sm:$0xff] }
 0x8b5   : > { %12234 = vmatmul.msk.f32.vlgmr.msra.gmra.mxu3 %vm564_vm1, %v4816_v10  ;;  %8798 = vrot.lane.b32.xlu2 %v19813_v50, %s13425_s29  ;;  %v19875_v50 = vld [vmem:[#allocation28_spill] sm:$0xff]  ;;  %v19913_v33 = vld [vmem:[#allocation162_spill] sm:$0xff] }
 0x8b6   : > { %12248 = vmatpush.xpose.msk.msra.mxu3 %vm564_vm1, %v19869_v3  ;;  %v12710_v10 = vunpack.i.h.bf16 %v19913_v33  ;;  %v19916_v3 = vld [vmem:[#allocation13_spill] sm:$0xff] }
 0x8ba   : > { %12239 = vmatmul.msk.f32.vlgmr.msra.gmra.mxu2 %vm564_vm1, %v19870_v42  ;;  %12245 = vmatmul.msk.f32.vlgmr.msrb.gmra.mxu1 %vm564_vm1, %v19872_v20  ;;  %v12714_v42 = vunpack.i.l.bf16 %v19910_v29  ;;  %v19918_v20 = vld [vmem:[#allocation140_spill] sm:$0xff] }
 0x8bb   : > { %12254 = vmatpush.xpose.msk.msra.mxu2 %vm564_vm1, %v19871_v55  ;;  %12260 = vmatpush.xpose.msk.msrb.mxu1 %vm564_vm1, %v19873_v61  ;;  %v19917_v55 = vld [vmem:[#allocation50_spill] sm:$0xff]  ;;  %v19919_v61 = vld [vmem:[#allocation96_spill] sm:$0xff] }
 0x8bd   : > { %12241 = vmatmul.msk.f32.vlgmr.msrb.gmra.mxu3 %vm564_vm1, %v19874_v39  ;;  %8828 = vrot.lane.b32.xlu2 %v19831_v26, %s13426_s30  ;;  %v19881_v26 = vld [vmem:[#allocation147_spill] sm:$0xff]  ;;  %v12720_v39 = vunpack.i.h.bf16 %v19919_v61 }
 0x8be   : > { %12256 = vmatpush.xpose.msk.msrb.mxu3 %vm564_vm1, %v19875_v50  ;;  %v16455_v50 = vpop.f32.mrf.mxu2 }
 0x8bf   : > { %19920 = vst [vmem:[#allocation118_spill] sm:$0xff] %v16455_v50 }
 0x8c2   : > { %12247 = vmatmul.msk.f32.vlgmr.msrb.gmra.mxu2 %vm564_vm1, %v19876_v23  ;;  %12253 = vmatmul.msk.f32.vlgmr.msra.gmra.mxu1 %vm564_vm1, %v19878_v44  ;;  %v19921_v23 = vld [vmem:[#allocation119_spill] sm:$0xff]  ;;  %v16461_v44 = vpop.f32.mrf.mxu1 }
 0x8c3   : > { %12262 = vmatpush.xpose.msk.msrb.mxu2 %vm564_vm1, %v19877_v1  ;;  %12268 = vmatpush.xpose.msk.msra.mxu1 %vm564_vm1, %v19879_v57  ;;  %v19922_v1 = vld [vmem:[#allocation160_spill] sm:$0xff]  ;;  %19923 = vst [vmem:[#allocation55_spill] sm:$0xff] %v16461_v44 }
 0x8c5   : > { %12249 = vmatmul.msk.f32.vlgmr.msra.gmra.mxu3 %vm564_vm1, %v19880_v12  ;;  %8854 = vrot.lane.b32.xlu2 %v19832_v31, %s13425_s29  ;;  %v19888_v31 = vld [vmem:[#allocation152_spill] sm:$0xff] }
 0x8c6   : > { %12264 = vmatpush.xpose.msk.msra.mxu3 %vm564_vm1, %v19881_v26  ;;  %v19925_v12 = vld [vmem:[#allocation32_spill] sm:$0xff] }
 0x8ca   : > { %12255 = vmatmul.msk.f32.vlgmr.msra.gmra.mxu2 %vm564_vm1, %v19883_v56  ;;  %12261 = vmatmul.msk.f32.vlgmr.msrb.gmra.mxu1 %vm564_vm1, %v19885_v4  ;;  %v19927_v56 = vld [vmem:[#allocation153_spill] sm:$0xff] }
 0x8cb   : > { %12270 = vmatpush.xpose.msk.msra.mxu2 %vm564_vm1, %v19884_v5  ;;  %12276 = vmatpush.xpose.msk.msrb.mxu1 %vm564_vm1, %v19886_v24  ;;  %v19930_v24 = vld [vmem:[#allocation12_spill] sm:$0xff] }
 0x8cd   : > { %12257 = vmatmul.msk.f32.vlgmr.msrb.gmra.mxu3 %vm564_vm1, %v19887_v8  ;;  %v19931_v8 = vld [vmem:[#allocation74_spill] sm:$0xff] }
 0x8ce   : > { %12272 = vmatpush.xpose.msk.msrb.mxu3 %vm564_vm1, %v19888_v31 }
 0x8cf   : > { %v4337_v49 = vpop.xlane.xlu2 %4336 }
 0x8d0   : > { %13118 = vrcp.f32 %v4337_v49  ;;  %v4783_v48 = vand.u32 2147483648, %v4337_v49  ;;  %v4781_v18 = vand.u32 2147483647, %v4337_v49  ;;  %vm4777_vm4 = vweird.f32 %v4337_v49 }
 0x8d2   : > { %12263 = vmatmul.msk.f32.vlgmr.msrb.gmra.mxu2 %vm564_vm1, %v19889_v36  ;;  %12269 = vmatmul.msk.f32.vlgmr.msra.gmra.mxu1 %vm564_vm1, %v19891_v63  ;;  %v4784_v11 = vor.u32 1.1754944e-38, %v4783_v48  ;;  %vm4782_vm7 = vcmp.eq.f32.partialorder %v4781_v18, 8.507059e+37  ;;  %v19936_v63 = vld [vmem:[#allocation34_spill] sm:$0xff]  ;;  %v12709_v48 = vunpack.i.l.bf16 %v19913_v33 }
 0x8d3   : > { %12278 = vmatpush.xpose.msk.msrb.mxu2 %vm564_vm1, %v19890_v34  ;;  %12284 = vmatpush.xpose.msk.msra.mxu1 %vm564_vm1, %v19892_v47  ;;  %v19935_v34 = vld [vmem:[#allocation131_spill] sm:$0xff] }
 0x8d5   : > { %12265 = vmatmul.msk.f32.vlgmr.msra.gmra.mxu3 %vm564_vm1, %v19893_v7 }
 0x8d6   : > { %v13119_v15 = vpop.eup %13118  ;;  %12280 = vmatpush.xpose.msk.msra.mxu3 %vm564_vm1, %v19894_v9  ;;  %v19940_v9 = vld [vmem:[#allocation14_spill] sm:$0xff] }
 0x8d7   : > { %v4773_v13 = vmul.f32 %v13119_v15, %v4337_v49  ;;  %vm4778_vm3 = vweird.f32 %v13119_v15 }
 0x8d8   : > { %vm4779_vm5 = vmor %vm4777_vm4, %vm4778_vm3 }
 0x8d9   : > { %v4774_v17 = vsub.f32 1.0, %v4773_v13  ;;  %v19941_v13 = vld [vmem:[#allocation15_spill] sm:$0xff] }
 0x8da   : > { %12271 = vmatmul.msk.f32.vlgmr.msra.gmra.mxu2 %vm564_vm1, %v19895_v21  ;;  %12277 = vmatmul.msk.f32.vlgmr.msrb.gmra.mxu1 %vm564_vm1, %v19897_v6 }
 0x8db   : > { %12286 = vmatpush.xpose.msk.msra.mxu2 %vm564_vm1, %v19896_v60  ;;  %v4775_v58 = vmul.f32 %v13119_v15, %v4774_v17  ;;  %12292 = vmatpush.xpose.msk.msrb.mxu1 %vm564_vm1, %v19898_v38  ;;  %v19944_v60 = vld [vmem:[#allocation25_spill] sm:$0xff]  ;;  %v12719_v38 = vunpack.i.l.bf16 %v19919_v61 }
 0x8dd   : > { %v4776_v53 = vadd.f32 %v13119_v15, %v4775_v58  ;;  %12273 = vmatmul.msk.f32.vlgmr.msrb.gmra.mxu3 %vm564_vm1, %v19899_v22  ;;  %v19949_v22 = vld [vmem:[#allocation38_spill] sm:$0xff] }
 0x8de   : > { %12288 = vmatpush.xpose.msk.msrb.mxu3 %vm564_vm1, %v19900_v16 }
 0x8df   : > { %v4780_v40 = vsel %vm4779_vm5, %v13119_v15, %v4776_v53  ;;  %v16513_v53 = vpop.f32.mrf.mxu0 }
 0x8e0   : > { %v4785_v41 = vsel %vm4782_vm7, %v4784_v11, %v4780_v40  ;;  %19948 = vst [vmem:[#allocation18_spill] sm:$0xff] %v16513_v53 }
 0x8e1   : > { %v4817_v45 = vmul.f32 %v19901_v52, %v4785_v41 }
 0x8e2   : > { %12279 = vmatmul.msk.f32.vlgmr.msrb.gmra.mxu2 %vm564_vm1, %v19902_v25  ;;  %12285 = vmatmul.msk.f32.vlgmr.msra.gmra.mxu1 %vm564_vm1, %v19905_v51 }
 0x8e3   : > { %12294 = vmatpush.xpose.msk.msrb.mxu2 %vm564_vm1, %v19904_v35  ;;  %12235 = vmatmul.msk.f32.vlgmr.msrb.gmra.mxu0 %vm564_vm1, %v4817_v45  ;;  %v16530_v35 = vpop.permute.xlu0 %8378 }
 0x8e4   : > { %7399 = vmatpush.msra.mxu1 %v12705_v32  ;;  %12250 = vmatpush.xpose.msk.msrb.mxu0 %vm564_vm1, %v19906_v43  ;;  %v16463_v57 = vpop.f32.mrf.mxu3  ;;  %19955 = vst [vmem:[#allocation181_spill] sm:$0xff] %v16530_v35 }
 0x8e5   : > { %12281 = vmatmul.msk.f32.vlgmr.msra.gmra.mxu3 %vm564_vm1, %v19907_v59  ;;  %19924 = vst [vmem:[#allocation112_spill] sm:$0xff] %v16463_v57 }
 0x8e6   : > { %12296 = vmatpush.xpose.msk.msra.mxu3 %vm564_vm1, %v19908_v0 }
 0x8e7   : > { %v16523_v41 = vpop.f32.mrf.mxu0 }
 0x8ea   : > { %12287 = vmatmul.msk.f32.vlgmr.msra.gmra.mxu2 %vm564_vm1, %v19909_v19  ;;  %12293 = vmatmul.msk.f32.vlgmr.msrb.gmra.mxu1 %vm564_vm1, %v19911_v27 }
 0x8eb   : > { %7425 = vmatpush.msra.mxu2 %v12704_v62  ;;  %12243 = vmatmul.msk.f32.vlgmr.msra.gmra.mxu0 %vm564_vm1, %v19912_v37  ;;  %v16540_v29 = vpop.permute.xlu0 %8434 }
 0x8ec   : > { %7503 = vmatpush.msrb.mxu1 %v12715_v54  ;;  %12258 = vmatpush.xpose.msk.msra.mxu0 %vm564_vm1, %v19915_v30  ;;  %v16467_v26 = vpop.f32.mrf.mxu2  ;;  %v16473_v4 = vpop.f32.mrf.mxu3  ;;  %19959 = vst [vmem:[#allocation129_spill] sm:$0xff] %v16540_v29 }
 0x8ed   : > { %12289 = vmatmul.msk.f32.vlgmr.msrb.gmra.mxu3 %vm564_vm1, %v19916_v3  ;;  %19926 = vst [vmem:[#allocation120_spill] sm:$0xff] %v16467_v26 }
 0x8ee   : > { %7451 = vmatpush.msrb.mxu3 %v12710_v10  ;;  %v16471_v5 = vpop.f32.mrf.mxu1  ;;  %19929 = vst [vmem:[#allocation123_spill] sm:$0xff] %v16473_v4 }
 0x8ef   : > { %19928 = vst [vmem:[#allocation126_spill] sm:$0xff] %v16471_v5 }
 0x8f2   : > { %12295 = vmatmul.msk.f32.vlgmr.msrb.gmra.mxu2 %vm564_vm1, %v19917_v55 }
 0x8f3   : > { %7529 = vmatpush.msrb.mxu2 %v12714_v42  ;;  %12251 = vmatmul.msk.f32.vlgmr.msrb.gmra.mxu0 %vm564_vm1, %v19918_v20 }
 0x8f4   : > { %12266 = vmatpush.xpose.msk.msrb.mxu0 %vm564_vm1, %v19921_v23  ;;  %v16479_v31 = vpop.f32.mrf.mxu2 }
 0x8f5   : > { %12297 = vmatmul.msk.f32.vlgmr.msra.gmra.mxu3 %vm564_vm1, %v19922_v1  ;;  %19932 = vst [vmem:[#allocation124_spill] sm:$0xff] %v16479_v31  ;;  %v16483_v36 = vpop.f32.mrf.mxu3  ;;  %v16561_v1 = vpop.permute.xlu2 %8462 }
 0x8f6   : > { %7555 = vmatpush.msra.mxu3 %v12720_v39  ;;  %v16481_v49 = vpop.f32.mrf.mxu1  ;;  %19934 = vst [vmem:[#allocation42_spill] sm:$0xff] %v16483_v36  ;;  %v16534_v43 = vpop.f32.mrf.mxu0 }
 0x8f7   : > { %19933 = vst [vmem:[#allocation128_spill] sm:$0xff] %v16481_v49  ;;  %v16559_v39 = vpop.permute.xlu0 %8520 }
 0x8f8   : > { %19957 = vst [vmem:[#allocation115_spill] sm:$0xff] %v16534_v43 }
 0x8f9   : > { %19962 = vst [vmem:[#allocation141_spill] sm:$0xff] %v16559_v39 }
 0x8fa   : > { %19963 = vst [vmem:[#allocation117_spill] sm:$0xff] %v16561_v1 }
 0x8fb   : > { %12259 = vmatmul.msk.f32.vlgmr.msra.gmra.mxu0 %vm564_vm1, %v19925_v12 }
 0x8fc   : > { %12274 = vmatpush.xpose.msk.msra.mxu0 %vm564_vm1, %v19927_v56 }
 0x8fd   : > { %v16489_v47 = vpop.f32.mrf.mxu2 }
 0x8fe   : > { %19937 = vst [vmem:[#allocation172_spill] sm:$0xff] %v16489_v47  ;;  %v16542_v54 = vpop.f32.mrf.mxu0 }
 0x8ff   : > { %19960 = vst [vmem:[#allocation179_spill] sm:$0xff] %v16542_v54 }
 0x903   : > { %12267 = vmatmul.msk.f32.vlgmr.msrb.gmra.mxu0 %vm564_vm1, %v19930_v24 }
 0x904   : > { %12282 = vmatpush.xpose.msk.msrb.mxu0 %vm564_vm1, %v19931_v8 }
 0x90b   : > { %12275 = vmatmul.msk.f32.vlgmr.msra.gmra.mxu0 %vm564_vm1, %v19935_v34 }
 0x90c   : > { %12290 = vmatpush.xpose.msk.msra.mxu0 %vm564_vm1, %v19936_v63  ;;  %v16499_v17 = vpop.f32.mrf.mxu2  ;;  %v16572_v63 = vpop.permute.xlu0 %8574 }
 0x90d   : > { %v16493_v15 = vpop.f32.mrf.mxu3  ;;  %19942 = vst [vmem:[#allocation49_spill] sm:$0xff] %v16499_v17 }
 0x90e   : > { %19939 = vst [vmem:[#allocation46_spill] sm:$0xff] %v16493_v15  ;;  %v16552_v55 = vpop.f32.mrf.mxu0 }
 0x90f   : > { %v16491_v7 = vpop.f32.mrf.mxu1  ;;  %19961 = vst [vmem:[#allocation182_spill] sm:$0xff] %v16552_v55 }
 0x910   : > { %19938 = vst [vmem:[#allocation37_spill] sm:$0xff] %v16491_v7 }
 0x911   : > { %19965 = vst [vmem:[#allocation130_spill] sm:$0xff] %v16572_v63 }
 0x913   : > { %12283 = vmatmul.msk.f32.vlgmr.msrb.gmra.mxu0 %vm564_vm1, %v19940_v9  ;;  %v16574_v9 = vpop.permute.xlu2 %8492 }
 0x914   : > { %12298 = vmatpush.xpose.msk.msrb.mxu0 %vm564_vm1, %v19941_v13  ;;  %19966 = vst [vmem:[#allocation184_spill] sm:$0xff] %v16574_v9 }
 0x915   : > { %v16506_v58 = vpop.f32.mrf.mxu3 }
 0x916   : > { %19945 = vst [vmem:[#allocation174_spill] sm:$0xff] %v16506_v58 }
 0x917   : > { %v16501_v21 = vpop.f32.mrf.mxu1 }
 0x918   : > { %19943 = vst [vmem:[#allocation175_spill] sm:$0xff] %v16501_v21 }
 0x91b   : > { %12291 = vmatmul.msk.f32.vlgmr.msra.gmra.mxu0 %vm564_vm1, %v19944_v60  ;;  %v16570_v34 = vpop.f32.mrf.mxu0  ;;  %v16580_v60 = vpop.permute.xlu2 %8518 }
 0x91c   : > { %7477 = vmatpush.msra.mxu0 %v12709_v48  ;;  %19964 = vst [vmem:[#allocation183_spill] sm:$0xff] %v16570_v34  ;;  %v16578_v48 = vpop.permute.xlu0 %8604 }
 0x91d   : > { %v16517_v11 = vpop.f32.mrf.mxu3  ;;  %19968 = vst [vmem:[#allocation143_spill] sm:$0xff] %v16578_v48 }
 0x91e   : > { %19950 = vst [vmem:[#allocation176_spill] sm:$0xff] %v16517_v11 }
 0x91f   : > { %v16508_v18 = vpop.f32.mrf.mxu2  ;;  %v16510_v6 = vpop.f32.mrf.mxu1  ;;  %19969 = vst [vmem:[#allocation136_spill] sm:$0xff] %v16580_v60 }
 0x920   : > { %19946 = vst [vmem:[#allocation114_spill] sm:$0xff] %v16508_v18 }
 0x921   : > { %19947 = vst [vmem:[#allocation56_spill] sm:$0xff] %v16510_v6 }
 0x923   : > { %12299 = vmatmul.msk.f32.vlgmr.msrb.gmra.mxu0 %vm564_vm1, %v19949_v22 }
 0x924   : > { %7581 = vmatpush.msrb.mxu0 %v12719_v38  ;;  %v16584_v22 = vpop.permute.xlu0 %8630 }
 0x925   : > { %19971 = vst [vmem:[#allocation134_spill] sm:$0xff] %v16584_v22 }
 0x926   : > { %v16525_v52 = vpop.f32.mrf.mxu3 }
 0x927   : > { %v16519_v16 = vpop.f32.mrf.mxu1  ;;  %v16521_v40 = vpop.f32.mrf.mxu2  ;;  %19953 = vst [vmem:[#allocation180_spill] sm:$0xff] %v16525_v52 }
 0x928   : > { %19951 = vst [vmem:[#allocation177_spill] sm:$0xff] %v16519_v16 }
 0x929   : > { %19952 = vst [vmem:[#allocation178_spill] sm:$0xff] %v16521_v40 }
 0x92a   : > { %v16576_v13 = vpop.f32.mrf.mxu0 }
 0x92b   : > { %19967 = vst [vmem:[#allocation125_spill] sm:$0xff] %v16576_v13 }
 0x92f   : > { %v5675_v45 = vpop.f32.mrf.mxu1 }
 0x930   : > { %v6546_v25 = vmul.f32 0.17677669, %v5675_v45  ;;  %v16586_v45 = vpop.permute.xlu2 %8548 }
 0x931   : > { %19972 = vst [vmem:[#allocation142_spill] sm:$0xff] %v16586_v45 }
 0x932   : > { %v16528_v32 = vadd.f32 %v6546_v25, %v19954_v14 }
 0x934   : > { %v6610_v59 = vsel %vm564_vm1, %v16528_v32, -inf }
 0x935   : > { %v16532_v51 = vpop.f32.mrf.mxu2  ;;  %6611 = vmax.xlane.f32.xlu0 %v6610_v59 }
 0x936   : > { %19956 = vst [vmem:[#allocation173_spill] sm:$0xff] %v16532_v51 }
 0x937   : > { %v5787_v25 = vpop.f32.mrf.mxu1 }
 0x938   : > { %v16538_v0 = vpop.f32.mrf.mxu3 }
 0x939   : > { %19958 = vst [vmem:[#allocation132_spill] sm:$0xff] %v16538_v0 }
 0x93d   : > { %v5703_v62 = vpop.f32.mrf.mxu2 }
 0x93e   : > { %v6547_v19 = vmul.f32 0.17677669, %v5703_v62 }
 0x940   : > { %v16545_v27 = vadd.f32 %v6547_v19, %v19954_v14  ;;  %v5731_v37 = vpop.f32.mrf.mxu3  ;;  %v16588_v19 = vpop.permute.xlu1 %8464 }
 0x941   : > { %v6548_v10 = vmul.f32 0.17677669, %v5731_v37  ;;  %19973 = vst [vmem:[#allocation148_spill] sm:$0xff] %v16588_v19  ;;  %v20018_v19 = vld [vmem:[#allocation4_spill] sm:$0xff] }
 0x942   : > { %v6613_v33 = vsel %vm564_vm1, %v16545_v27, -inf }
 0x943   : > { %6614 = vmax.xlane.f32.xlu2 %v6613_v33  ;;  %v16550_v30 = vadd.f32 %v6548_v10, %v19954_v14  ;;  %v6550_v33 = vmul.f32 0.17677669, %v5787_v25 }
 0x945   : > { %v5815_v3 = vpop.f32.mrf.mxu2  ;;  %v6616_v61 = vsel %vm564_vm1, %v16550_v30, -inf }
 0x946   : > { %v6551_v42 = vmul.f32 0.17677669, %v5815_v3  ;;  %v16595_v3 = vpop.permute.xlu0 %8660 }
 0x947   : > { %19974 = vst [vmem:[#allocation135_spill] sm:$0xff] %v16595_v3 }
 0x948   : > { %v16555_v20 = vadd.f32 %v6551_v42, %v19954_v14  ;;  %v5843_v23 = vpop.f32.mrf.mxu3  ;;  %v16605_v25 = vpop.permute.xlu1 %8436 }
 0x949   : > { %v6552_v56 = vmul.f32 0.17677669, %v5843_v23  ;;  %19976 = vst [vmem:[#allocation133_spill] sm:$0xff] %v16605_v25  ;;  %v20021_v25 = vld [vmem:[#allocation8_spill] sm:$0xff] }
 0x94a   : > { %v6625_v12 = vsel %vm564_vm1, %v16555_v20, -inf }
 0x94b   : > { %6626 = vmax.xlane.f32.xlu0 %v6625_v12  ;;  %6617 = vmax.xlane.f32.xlu2 %v6616_v61  ;;  %v16566_v24 = vadd.f32 %v6552_v56, %v19954_v14  ;;  %v16597_v61 = vpop.permute.xlu2 %8602  ;;  %v5899_v12 = vpop.f32.mrf.mxu1 }
 0x94c   : > { %19975 = vst [vmem:[#allocation28_spill] sm:$0xff] %v16597_v61 }
 0x94d   : > { %v6628_v8 = vsel %vm564_vm1, %v16566_v24, -inf  ;;  %v5927_v42 = vpop.f32.mrf.mxu2 }
 0x94e   : > { %v16614_v26 = vpop.permute.xlu0 %8714 }
 0x94f   : > { %19977 = vst [vmem:[#allocation146_spill] sm:$0xff] %v16614_v26 }
 0x950   : > { %v5955_v0 = vpop.f32.mrf.mxu3 }
 0x953   : > { %6629 = vmax.xlane.f32.xlu0 %v6628_v8  ;;  %v16600_v8 = vadd.f32 %v6550_v33, %v19954_v14  ;;  %v6011_v44 = vpop.f32.mrf.mxu1 }
 0x954   : > { %v6558_v13 = vmul.f32 0.17677669, %v6011_v44 }
 0x956   : > { %v16641_v50 = vpop.permute.xlu0 %8800 }
 0x957   : > { %19980 = vst [vmem:[#allocation137_spill] sm:$0xff] %v16641_v50 }
 0x960   : > { %v16582_v38 = vpop.f32.mrf.mxu0 }
 0x961   : > { %19970 = vst [vmem:[#allocation127_spill] sm:$0xff] %v16582_v38  ;;  %v6555_v38 = vmul.f32 0.17677669, %v5927_v42  ;;  %v16619_v42 = vpop.permute.xlu2 %8688 }
 0x962   : > { %19978 = vst [vmem:[#allocation121_spill] sm:$0xff] %v16619_v42 }
 0x963   : > { %v16617_v51 = vadd.f32 %v6555_v38, %v19954_v14  ;;  %v16630_v38 = vpop.permute.xlu1 %8490 }
 0x964   : > { %19979 = vst [vmem:[#allocation155_spill] sm:$0xff] %v16630_v38 }
 0x968   : > { %v5759_v59 = vpop.f32.mrf.mxu0 }
 0x969   : > { %v6549_v62 = vmul.f32 0.17677669, %v5759_v59  ;;  %v16643_v44 = vpop.permute.xlu2 %8658 }
 0x96a   : > { %19981 = vst [vmem:[#allocation147_spill] sm:$0xff] %v16643_v44 }
 0x96b   : > { %v16591_v37 = vadd.f32 %v6549_v62, %v19954_v14  ;;  %v6554_v62 = vmul.f32 0.17677669, %v5899_v12  ;;  %v16651_v34 = vpop.permute.xlu1 %8576 }
 0x96c   : > { %19982 = vst [vmem:[#allocation144_spill] sm:$0xff] %v16651_v34 }
 0x96d   : > { %v6619_v10 = vsel %vm564_vm1, %v16591_v37, -inf  ;;  %v16612_v33 = vadd.f32 %v6554_v62, %v19954_v14  ;;  %v6637_v62 = vsel %vm564_vm1, %v16617_v51, -inf }
 0x96e   : > { %6620 = vmax.xlane.f32.xlu1 %v6619_v10  ;;  %v6622_v10 = vsel %vm564_vm1, %v16600_v8, -inf }
 0x970   : > { %v5871_v23 = vpop.f32.mrf.mxu0 }
 0x971   : > { %v6553_v56 = vmul.f32 0.17677669, %v5871_v23  ;;  %v16668_v55 = vpop.permute.xlu2 %8744 }
 0x972   : > { %19984 = vst [vmem:[#allocation113_spill] sm:$0xff] %v16668_v55  ;;  %v20022_v55 = vld [vmem:[#allocation20_spill] sm:$0xff] }
 0x973   : > { %v16603_v59 = vadd.f32 %v6553_v56, %v19954_v14  ;;  %v6039_v56 = vpop.f32.mrf.mxu2  ;;  %v16681_v54 = vpop.permute.xlu1 %8546 }
 0x974   : > { %v6559_v53 = vmul.f32 0.17677669, %v6039_v56  ;;  %v16639_v56 = vadd.f32 %v6558_v13, %v19954_v14  ;;  %v6123_v13 = vpop.f32.mrf.mxu1  ;;  %19985 = vst [vmem:[#allocation151_spill] sm:$0xff] %v16681_v54 }
 0x975   : > { %v6631_v4 = vsel %vm564_vm1, %v16603_v59, -inf }
 0x976   : > { %6623 = vmax.xlane.f32.xlu1 %v6622_v10  ;;  %6632 = vmax.xlane.f32.xlu2 %v6631_v4  ;;  %v6634_v4 = vsel %vm564_vm1, %v16612_v33, -inf  ;;  %v6556_v10 = vmul.f32 0.17677669, %v5955_v0  ;;  %v16636_v0 = vadd.f32 %v6559_v53, %v19954_v14  ;;  %v6646_v53 = vsel %vm564_vm1, %v16639_v56, -inf }
 0x978   : > { %v5983_v23 = vpop.f32.mrf.mxu0  ;;  %v16633_v52 = vadd.f32 %v6556_v10, %v19954_v14  ;;  %v6649_v10 = vsel %vm564_vm1, %v16636_v0, -inf }
 0x979   : > { %v6557_v12 = vmul.f32 0.17677669, %v5983_v23 }
 0x97b   : > { %v16622_v16 = vadd.f32 %v6557_v12, %v19954_v14  ;;  %v6067_v12 = vpop.f32.mrf.mxu3  ;;  %v6151_v40 = vpop.f32.mrf.mxu2 }
 0x97c   : > { %v6563_v28 = vmul.f32 0.17677669, %v6151_v40  ;;  %v6235_v17 = vpop.f32.mrf.mxu1  ;;  %v16702_v43 = vpop.permute.xlu1 %8632 }
 0x97d   : > { %v6643_v23 = vsel %vm564_vm1, %v16622_v16, -inf  ;;  %19988 = vst [vmem:[#allocation145_spill] sm:$0xff] %v16702_v43 }
 0x97e   : > { %6638 = vmax.xlane.f32.xlu1 %v6637_v62  ;;  %6635 = vmax.xlane.f32.xlu2 %v6634_v4  ;;  %v6560_v4 = vmul.f32 0.17677669, %v6067_v12  ;;  %v16660_v11 = vadd.f32 %v6563_v28, %v19954_v14 }
 0x97f   : > { %6644 = vmax.xlane.f32.xlu0 %v6643_v23  ;;  %v6640_v23 = vsel %vm564_vm1, %v16633_v52, -inf }
 0x980   : > { %v6095_v57 = vpop.f32.mrf.mxu0  ;;  %v16654_v12 = vadd.f32 %v6560_v4, %v19954_v14 }
 0x981   : > { %v6561_v62 = vmul.f32 0.17677669, %v6095_v57 }
 0x983   : > { %v16657_v57 = vadd.f32 %v6561_v62, %v19954_v14  ;;  %v6179_v40 = vpop.f32.mrf.mxu3  ;;  %v6661_v62 = vsel %vm564_vm1, %v16660_v11, -inf  ;;  %v6263_v28 = vpop.f32.mrf.mxu2 }
 0x984   : > { %v6564_v4 = vmul.f32 0.17677669, %v6179_v40  ;;  %v6566_v40 = vmul.f32 0.17677669, %v6235_v17  ;;  %v6347_v49 = vpop.f32.mrf.mxu1 }
 0x985   : > { %v6655_v21 = vsel %vm564_vm1, %v16657_v57, -inf }
 0x986   : > { %6641 = vmax.xlane.f32.xlu1 %v6640_v23  ;;  %6650 = vmax.xlane.f32.xlu2 %v6649_v10  ;;  %v16662_v23 = vpop.permute.xlu0 %8770  ;;  %v6562_v10 = vmul.f32 0.17677669, %v6123_v13  ;;  %v16679_v7 = vadd.f32 %v6564_v4, %v19954_v14  ;;  %v16691_v4 = vpop.permute.xlu2 %8798  ;;  %v16697_v5 = vadd.f32 %v6566_v40, %v19954_v14 }
 0x987   : > { %6647 = vmax.xlane.f32.xlu0 %v6646_v53  ;;  %19983 = vst [vmem:[#allocation110_spill] sm:$0xff] %v16662_v23  ;;  %v6652_v53 = vsel %vm564_vm1, %v16654_v12, -inf }
 0x988   : > { %v6207_v6 = vpop.f32.mrf.mxu0  ;;  %19987 = vst [vmem:[#allocation152_spill] sm:$0xff] %v16691_v4  ;;  %v6670_v31 = vsel %vm564_vm1, %v16697_v5, -inf }
 0x989   : > { %v6565_v18 = vmul.f32 0.17677669, %v6207_v6  ;;  %v16673_v6 = vadd.f32 %v6562_v10, %v19954_v14  ;;  %v6664_v10 = vsel %vm564_vm1, %v16679_v7, -inf }
 0x98b   : > { %v16676_v13 = vadd.f32 %v6565_v18, %v19954_v14  ;;  %v6291_v15 = vpop.f32.mrf.mxu3  ;;  %v6375_v36 = vpop.f32.mrf.mxu2 }
 0x98e   : > { %6653 = vmax.xlane.f32.xlu2 %v6652_v53  ;;  %6656 = vmax.xlane.f32.xlu1 %v6655_v21  ;;  %v6567_v53 = vmul.f32 0.17677669, %v6263_v28  ;;  %v6658_v21 = vsel %vm564_vm1, %v16673_v6, -inf  ;;  %v16689_v18 = vpop.permute.xlu0 %8856 }
 0x98f   : > { %6662 = vmax.xlane.f32.xlu0 %v6661_v62  ;;  %v6667_v62 = vsel %vm564_vm1, %v16676_v13, -inf  ;;  %19986 = vst [vmem:[#allocation98_spill] sm:$0xff] %v16689_v18  ;;  %v20020_v18 = vld [vmem:[#allocation10_spill] sm:$0xff] }
 0x990   : > { %v6319_v58 = vpop.f32.mrf.mxu0  ;;  %v16694_v28 = vadd.f32 %v6567_v53, %v19954_v14  ;;  %v6570_v53 = vmul.f32 0.17677669, %v6347_v49 }
 0x991   : > { %v6569_v47 = vmul.f32 0.17677669, %v6319_v58 }
 0x992   : > { %v16721_v49 = vadd.f32 %v6570_v53, %v19954_v14 }
 0x993   : > { %v16700_v58 = vadd.f32 %v6569_v47, %v19954_v14  ;;  %v6403_v47 = vpop.f32.mrf.mxu3 }
 0x994   : > { %v6572_v50 = vmul.f32 0.17677669, %v6403_v47 }
 0x995   : > { %v6679_v40 = vsel %vm564_vm1, %v16700_v58, -inf }
 0x996   : > { %6659 = vmax.xlane.f32.xlu1 %v6658_v21  ;;  %6668 = vmax.xlane.f32.xlu2 %v6667_v62  ;;  %v6568_v21 = vmul.f32 0.17677669, %v6291_v15  ;;  %v6571_v62 = vmul.f32 0.17677669, %v6375_v36  ;;  %v16710_v4 = vpop.permute.xlu0 %8910  ;;  %v16718_v15 = vpop.permute.xlu2 %8828 }
 0x997   : > { %6665 = vmax.xlane.f32.xlu0 %v6664_v10  ;;  %v6673_v10 = vsel %vm564_vm1, %v16694_v28, -inf  ;;  %19989 = vst [vmem:[#allocation94_spill] sm:$0xff] %v16710_v4 }
 0x998   : > { %v6431_v17 = vpop.f32.mrf.mxu0  ;;  %v16713_v23 = vadd.f32 %v6568_v21, %v19954_v14  ;;  %v16716_v36 = vadd.f32 %v6571_v62, %v19954_v14  ;;  %19990 = vst [vmem:[#allocation156_spill] sm:$0xff] %v16718_v15  ;;  %v6682_v21 = vsel %vm564_vm1, %v16721_v49, -inf  ;;  %v16729_v62 = vpop.permute.xlu1 %8686  ;;  %v16738_v15 = vadd.f32 %v6572_v50, %v19954_v14 }
 0x999   : > { %19991 = vst [vmem:[#allocation105_spill] sm:$0xff] %v16729_v62 }
 0x99a   : > { %v6685_v4 = vsel %vm564_vm1, %v16716_v36, -inf }
 0x99b   : > { %v6515_v44 = vpop.f32.mrf.mxu3 }
 0x99c   : > { %v6576_v61 = vmul.f32 0.17677669, %v6515_v44 }
 0x99e   : > { %6674 = vmax.xlane.f32.xlu1 %v6673_v10  ;;  %6671 = vmax.xlane.f32.xlu2 %v6670_v31  ;;  %v6573_v31 = vmul.f32 0.17677669, %v6431_v17  ;;  %v6459_v17 = vpop.f32.mrf.mxu1  ;;  %v16740_v47 = vpop.permute.xlu2 %8854 }
 0x99f   : > { %6680 = vmax.xlane.f32.xlu0 %v6679_v40  ;;  %v6676_v40 = vsel %vm564_vm1, %v16713_v23, -inf  ;;  %19992 = vst [vmem:[#allocation150_spill] sm:$0xff] %v16740_v47 }
 0x9a0   : > { %v6543_v26 = vpop.f32.mrf.mxu0  ;;  %v16732_v53 = vadd.f32 %v6573_v31, %v19954_v14  ;;  %v16749_v62 = vpop.permute.xlu1 %8716 }
 0x9a1   : > { %v6577_v10 = vmul.f32 0.17677669, %v6543_v26  ;;  %19993 = vst [vmem:[#allocation19_spill] sm:$0xff] %v16749_v62 }
 0x9a3   : > { %v16735_v26 = vadd.f32 %v6577_v10, %v19954_v14  ;;  %v6688_v10 = vsel %vm564_vm1, %v16738_v15, -inf }
 0x9a5   : > { %v6703_v31 = vsel %vm564_vm1, %v16735_v26, -inf }
 0x9a6   : > { %6677 = vmax.xlane.f32.xlu1 %v6676_v40  ;;  %6686 = vmax.xlane.f32.xlu2 %v6685_v4  ;;  %v6574_v40 = vmul.f32 0.17677669, %v6459_v17 }
 0x9a7   : > { %6683 = vmax.xlane.f32.xlu0 %v6682_v21  ;;  %v6691_v21 = vsel %vm564_vm1, %v16732_v53, -inf }
 0x9a8   : > { %v6612_v63 = vpop.xlane.xlu0 %6611  ;;  %v16752_v42 = vadd.f32 %v6574_v40, %v19954_v14 }
 0x9a9   : > { %v6706_v4 = vsub.f32 %v16528_v32, %v6612_v63  ;;  %v16755_v32 = vadd.f32 %v6576_v61, %v19954_v14  ;;  %v6487_v63 = vpop.f32.mrf.mxu2 }
 0x9aa   : > { %v6575_v17 = vmul.f32 0.17677669, %v6487_v63 }
 0x9ab   : > { %v6738_v50 = vmul.f32 1.442695, %v6706_v4  ;;  %v6700_v4 = vsel %vm564_vm1, %v16755_v32, -inf }
 0x9ac   : > { %v16763_v40 = vadd.f32 %v6575_v17, %v19954_v14 }
 0x9ad   : > { %13120 = vpow2.f32 %v6738_v50 }
 0x9ae   : > { %6692 = vmax.xlane.f32.xlu1 %v6691_v21  ;;  %6704 = vmax.xlane.f32.xlu2 %v6703_v31  ;;  %v6694_v21 = vsel %vm564_vm1, %v16752_v42, -inf }
 0x9af   : > { %6689 = vmax.xlane.f32.xlu0 %v6688_v10  ;;  %v16767_v10 = vpop.permute.xlu1 %8742 }
 0x9b0   : > { %19994 = vst [vmem:[#allocation149_spill] sm:$0xff] %v16767_v10  ;;  %v20017_v10 = vld [vmem:[#allocation9_spill] sm:$0xff] }
 0x9b3   : > { %v16765_v61 = vpop.eup %13120 }
 0x9b4   : > { %v6802_v50 = vsel %vm564_vm1, %v16765_v61, 0.0 }
 0x9b6   : > { %v6615_v44 = vpop.xlane.xlu2 %6614  ;;  %6695 = vmax.xlane.f32.xlu1 %v6694_v21  ;;  %6701 = vmax.xlane.f32.xlu2 %v6700_v4 }
 0x9b7   : > { %v6707_v1 = vsub.f32 %v16545_v27, %v6615_v44  ;;  %v6697_v27 = vsel %vm564_vm1, %v16763_v40, -inf  ;;  %v16775_v44 = vpop.permute.xlu1 %8772 }
 0x9b8   : > { %19995 = vst [vmem:[#allocation157_spill] sm:$0xff] %v16775_v44 }
 0x9b9   : > { %v6740_v31 = vmul.f32 1.442695, %v6707_v1 }
 0x9bb   : > { %13122 = vpow2.f32 %v6740_v31 }
 0x9be   : > { %6698 = vmax.xlane.f32.xlu1 %v6697_v27  ;;  %6803 = vadd.xlane.f32.xlu2 %v6802_v50  ;;  %v6627_v4 = vpop.xlane.xlu0 %6626  ;;  %v6618_v31 = vpop.xlane.xlu2 %6617 }
 0x9bf   : > { %v16779_v17 = vpop.permute.xlu1 %8826  ;;  %v6711_v3 = vsub.f32 %v16555_v20, %v6627_v4 }
 0x9c0   : > { %19996 = vst [vmem:[#allocation99_spill] sm:$0xff] %v16779_v17 }
 0x9c1   : > { %v16773_v63 = vpop.eup %13122 }
 0x9c2   : > { %v6805_v1 = vsel %vm564_vm1, %v16773_v63, 0.0 }
 0x9c6   : > { %6806 = vadd.xlane.f32.xlu2 %v6805_v1  ;;  %v6630_v38 = vpop.xlane.xlu0 %6629  ;;  %v6708_v1 = vsub.f32 %v16550_v30, %v6618_v31 }
 0x9c7   : > { %v16781_v21 = vpop.permute.xlu1 %8912 }
 0x9c8   : > { %19997 = vst [vmem:[#allocation27_spill] sm:$0xff] %v16781_v21 }
 0x9e1   : > { %v6621_v14 = vpop.xlane.xlu1 %6620 }
 0x9e2   : > { %v6709_v54 = vsub.f32 %v16591_v37, %v6621_v14  ;;  %v6748_v37 = vmul.f32 1.442695, %v6711_v3 }
 0x9e4   : > { %v6744_v62 = vmul.f32 1.442695, %v6709_v54  ;;  %v6742_v54 = vmul.f32 1.442695, %v6708_v1 }
 0x9e6   : > { %13124 = vpow2.f32 %v6744_v62 }
 0x9e9   : > { %v6624_v27 = vpop.xlane.xlu1 %6623  ;;  %v6633_v50 = vpop.xlane.xlu2 %6632 }
 0x9ea   : > { %v6710_v44 = vsub.f32 %v16600_v8, %v6624_v27  ;;  %v6713_v47 = vsub.f32 %v16603_v59, %v6633_v50 }
 0x9ec   : > { %v16786_v34 = vpop.eup %13124  ;;  %v6746_v17 = vmul.f32 1.442695, %v6710_v44  ;;  %v6752_v21 = vmul.f32 1.442695, %v6713_v47  ;;  %v6712_v44 = vsub.f32 %v16566_v24, %v6630_v38 }
 0x9ed   : > { %v6811_v14 = vsel %vm564_vm1, %v16786_v34, 0.0 }
 0x9ee   : > { %13126 = vpow2.f32 %v6746_v17  ;;  %6812 = vadd.xlane.f32.xlu0 %v6811_v14 }
 0x9ef   : > { %13128 = vpow2.f32 %v6752_v21  ;;  %v6750_v21 = vmul.f32 1.442695, %v6712_v44 }
 0x9f0   : > { %13130 = vpow2.f32 %v6742_v54 }
 0x9f1   : > { %v6639_v62 = vpop.xlane.xlu1 %6638  ;;  %v6636_v8 = vpop.xlane.xlu2 %6635  ;;  %13132 = vpow2.f32 %v6748_v37 }
 0x9f2   : > { %v6714_v59 = vsub.f32 %v16612_v33, %v6636_v8  ;;  %v6645_v27 = vpop.xlane.xlu0 %6644 }
 0x9f3   : > { %v6717_v47 = vsub.f32 %v16622_v16, %v6645_v27 }
 0x9f4   : > { %v16793_v50 = vpop.eup %13126  ;;  %v6754_v30 = vmul.f32 1.442695, %v6714_v59 }
 0x9f5   : > { %v16796_v20 = vpop.eup %13128  ;;  %v6814_v17 = vsel %vm564_vm1, %v16793_v50, 0.0  ;;  %v6760_v33 = vmul.f32 1.442695, %v6717_v47 }
 0x9f6   : > { %6815 = vadd.xlane.f32.xlu0 %v6814_v17  ;;  %v6823_v3 = vsel %vm564_vm1, %v16796_v20, 0.0  ;;  %13134 = vpow2.f32 %v6754_v30  ;;  %v16805_v16 = vpop.eup %13130 }
 0x9f7   : > { %6824 = vadd.xlane.f32.xlu1 %v6823_v3  ;;  %v16807_v14 = vpop.eup %13132  ;;  %13136 = vpow2.f32 %v6760_v33  ;;  %v6808_v54 = vsel %vm564_vm1, %v16805_v16, 0.0  ;;  %v6715_v33 = vsub.f32 %v16617_v51, %v6639_v62 }
 0x9f8   : > { %13138 = vpow2.f32 %v6750_v21  ;;  %v6817_v37 = vsel %vm564_vm1, %v16807_v14, 0.0 }
 0x9f9   : > { %v6642_v4 = vpop.xlane.xlu1 %6641  ;;  %v16803_v31 = vpop.xlane.xlu2 %6650 }
 0x9fa   : > { %v6648_v1 = vpop.xlane.xlu0 %6647 }
 0x9fb   : > { %v6718_v24 = vsub.f32 %v16639_v56, %v6648_v1 }
 0x9fc   : > { %v16810_v38 = vpop.eup %13134 }
 0x9fd   : > { %v6826_v8 = vsel %vm564_vm1, %v16810_v38, 0.0  ;;  %v6762_v59 = vmul.f32 1.442695, %v6718_v24  ;;  %v16820_v56 = vpop.eup %13136 }
 0x9fe   : > { %6809 = vadd.xlane.f32.xlu0 %v6808_v54  ;;  %6827 = vadd.xlane.f32.xlu2 %v6826_v8  ;;  %v16823_v17 = vpop.eup %13138  ;;  %v6835_v24 = vsel %vm564_vm1, %v16820_v56, 0.0 }
 0x9ff   : > { %6818 = vadd.xlane.f32.xlu1 %v6817_v37  ;;  %13140 = vpow2.f32 %v6762_v59  ;;  %v6820_v54 = vsel %vm564_vm1, %v16823_v17, 0.0  ;;  %v6756_v37 = vmul.f32 1.442695, %v6715_v33  ;;  %v6716_v59 = vsub.f32 %v16633_v52, %v6642_v4 }
 0xa01   : > { %v16818_v27 = vpop.xlane.xlu2 %6653  ;;  %v6657_v30 = vpop.xlane.xlu1 %6656 }
 0xa02   : > { %v6663_v47 = vpop.xlane.xlu0 %6662  ;;  %v6721_v44 = vsub.f32 %v16657_v57, %v6657_v30 }
 0xa03   : > { %v6723_v3 = vsub.f32 %v16660_v11, %v6663_v47 }
 0xa04   : > { %v6768_v21 = vmul.f32 1.442695, %v6721_v44 }
 0xa05   : > { %v6772_v1 = vmul.f32 1.442695, %v6723_v3  ;;  %v16831_v30 = vpop.eup %13140 }
 0xa06   : > { %6836 = vadd.xlane.f32.xlu0 %v6835_v24  ;;  %6821 = vadd.xlane.f32.xlu2 %v6820_v54  ;;  %v6838_v33 = vsel %vm564_vm1, %v16831_v30, 0.0 }
 0xa07   : > { %13142 = vpow2.f32 %v6772_v1 }
 0xa08   : > { %13144 = vpow2.f32 %v6768_v21 }
 0xa09   : > { %v6660_v57 = vpop.xlane.xlu1 %6659  ;;  %v6669_v8 = vpop.xlane.xlu2 %6668  ;;  %13146 = vpow2.f32 %v6756_v37 }
 0xa0a   : > { %v6666_v11 = vpop.xlane.xlu0 %6665  ;;  %v6725_v51 = vsub.f32 %v16676_v13, %v6669_v8  ;;  %v6758_v13 = vmul.f32 1.442695, %v6716_v59  ;;  %v6722_v8 = vsub.f32 %v16673_v6, %v6660_v57 }
 0xa0b   : > { %v6724_v62 = vsub.f32 %v16679_v7, %v6666_v11 }
 0xa0c   : > { %v6776_v47 = vmul.f32 1.442695, %v6725_v51 }
 0xa0d   : > { %v16836_v44 = vpop.eup %13142  ;;  %v6774_v3 = vmul.f32 1.442695, %v6724_v62 }
 0xa0e   : > { %v16840_v21 = vpop.eup %13144  ;;  %6839 = vadd.xlane.f32.xlu0 %v6838_v33  ;;  %v6853_v1 = vsel %vm564_vm1, %v16836_v44, 0.0 }
 0xa0f   : > { %13148 = vpow2.f32 %v6774_v3  ;;  %6854 = vadd.xlane.f32.xlu1 %v6853_v1  ;;  %v6847_v7 = vsel %vm564_vm1, %v16840_v21, 0.0  ;;  %v16848_v24 = vpop.eup %13146 }
 0xa10   : > { %13150 = vpow2.f32 %v6776_v47  ;;  %6848 = vadd.xlane.f32.xlu2 %v6847_v7  ;;  %v6829_v62 = vsel %vm564_vm1, %v16848_v24, 0.0 }
 0xa11   : > { %v6675_v52 = vpop.xlane.xlu1 %6674  ;;  %v16846_v4 = vpop.xlane.xlu2 %6671  ;;  %13152 = vpow2.f32 %v6758_v13  ;;  %v6719_v13 = vsub.f32 %v16636_v0, %v16803_v31  ;;  %v6720_v31 = vsub.f32 %v16654_v12, %v16818_v27 }
 0xa12   : > { %v6681_v54 = vpop.xlane.xlu0 %6680 }
 0xa13   : > { %v6729_v37 = vsub.f32 %v16700_v58, %v6681_v54  ;;  %v6770_v58 = vmul.f32 1.442695, %v6722_v8  ;;  %v6727_v54 = vsub.f32 %v16694_v28, %v6675_v52 }
 0xa15   : > { %v16852_v11 = vpop.eup %13148  ;;  %v6784_v51 = vmul.f32 1.442695, %v6729_v37 }
 0xa16   : > { %v16856_v59 = vpop.eup %13150  ;;  %6830 = vadd.xlane.f32.xlu0 %v6829_v62  ;;  %v6856_v47 = vsel %vm564_vm1, %v16852_v11, 0.0 }
 0xa17   : > { %6857 = vadd.xlane.f32.xlu1 %v6856_v47  ;;  %v6859_v3 = vsel %vm564_vm1, %v16856_v59, 0.0  ;;  %13154 = vpow2.f32 %v6784_v51  ;;  %v16864_v33 = vpop.eup %13152  ;;  %v6764_v47 = vmul.f32 1.442695, %v6719_v13 }
 0xa18   : > { %6860 = vadd.xlane.f32.xlu2 %v6859_v3  ;;  %13156 = vpow2.f32 %v6770_v58  ;;  %v6832_v8 = vsel %vm564_vm1, %v16864_v33, 0.0 }
 0xa19   : > { %v6678_v6 = vpop.xlane.xlu1 %6677  ;;  %v16862_v57 = vpop.xlane.xlu2 %6686 }
 0xa1a   : > { %v6684_v1 = vpop.xlane.xlu0 %6683 }
 0xa1b   : > { %v6730_v7 = vsub.f32 %v16721_v49, %v6684_v1  ;;  %v6780_v49 = vmul.f32 1.442695, %v6727_v54  ;;  %v6728_v54 = vsub.f32 %v16713_v23, %v6678_v6 }
 0xa1d   : > { %v6786_v37 = vmul.f32 1.442695, %v6730_v7  ;;  %v16872_v51 = vpop.eup %13154 }
 0xa1e   : > { %6833 = vadd.xlane.f32.xlu0 %v6832_v8  ;;  %v6871_v62 = vsel %vm564_vm1, %v16872_v51, 0.0  ;;  %v16876_v0 = vpop.eup %13156 }
 0xa1f   : > { %13158 = vpow2.f32 %v6786_v37  ;;  %v6850_v7 = vsel %vm564_vm1, %v16876_v0, 0.0  ;;  %v6766_v37 = vmul.f32 1.442695, %v6720_v31 }
 0xa20   : > { %6872 = vadd.xlane.f32.xlu2 %v6871_v62  ;;  %13160 = vpow2.f32 %v6764_v47 }
 0xa21   : > { %v6693_v3 = vpop.xlane.xlu1 %6692  ;;  %v6705_v1 = vpop.xlane.xlu2 %6704  ;;  %13162 = vpow2.f32 %v6780_v49  ;;  %v6726_v49 = vsub.f32 %v16697_v5, %v16846_v4 }
 0xa22   : > { %v6733_v28 = vsub.f32 %v16732_v53, %v6693_v3  ;;  %v6737_v58 = vsub.f32 %v16735_v26, %v6705_v1  ;;  %v6782_v26 = vmul.f32 1.442695, %v6728_v54  ;;  %v6690_v23 = vpop.xlane.xlu0 %6689 }
 0xa23   : > { %v6732_v31 = vsub.f32 %v16738_v15, %v6690_v23 }
 0xa24   : > { %v6792_v52 = vmul.f32 1.442695, %v6733_v28  ;;  %v6800_v8 = vmul.f32 1.442695, %v6737_v58 }
 0xa25   : > { %v16884_v13 = vpop.eup %13158  ;;  %v6790_v54 = vmul.f32 1.442695, %v6732_v31 }
 0xa26   : > { %19998 = vst [vmem:[#allocation24_spill] sm:$0xff] %v16884_v13  ;;  %13164 = vpow2.f32 %v6792_v52  ;;  %6851 = vadd.xlane.f32.xlu0 %v6850_v7  ;;  %v6874_v53 = vsel %vm564_vm1, %v16884_v13, 0.0  ;;  %v16889_v62 = vpop.eup %13160  ;;  %v6778_v52 = vmul.f32 1.442695, %v6726_v49 }
 0xa27   : > { %6875 = vadd.xlane.f32.xlu1 %v6874_v53  ;;  %v16891_v47 = vpop.eup %13162  ;;  %13166 = vpow2.f32 %v6766_v37  ;;  %v6841_v1 = vsel %vm564_vm1, %v16889_v62, 0.0 }
 0xa28   : > { %13168 = vpow2.f32 %v6800_v8  ;;  %v6865_v5 = vsel %vm564_vm1, %v16891_v47, 0.0 }
 0xa29   : > { %v6696_v12 = vpop.xlane.xlu1 %6695  ;;  %v6702_v27 = vpop.xlane.xlu2 %6701  ;;  %13170 = vpow2.f32 %v6782_v26 }
 0xa2a   : > { %v6736_v3 = vsub.f32 %v16755_v32, %v6702_v27  ;;  %v6734_v15 = vsub.f32 %v16752_v42, %v6696_v12 }
 0xa2c   : > { %v16895_v6 = vpop.eup %13164  ;;  %v6798_v4 = vmul.f32 1.442695, %v6736_v3  ;;  %v6794_v3 = vmul.f32 1.442695, %v6734_v15 }
 0xa2d   : > { %v6883_v28 = vsel %vm564_vm1, %v16895_v6, 0.0  ;;  %v16905_v58 = vpop.eup %13166 }
 0xa2e   : > { %6842 = vadd.xlane.f32.xlu0 %v6841_v1  ;;  %6884 = vadd.xlane.f32.xlu2 %v6883_v28  ;;  %v16907_v7 = vpop.eup %13168  ;;  %v6844_v8 = vsel %vm564_vm1, %v16905_v58, 0.0 }
 0xa2f   : > { %6866 = vadd.xlane.f32.xlu1 %v6865_v5  ;;  %19999 = vst [vmem:[#allocation154_spill] sm:$0xff] %v16907_v7  ;;  %v16909_v53 = vpop.eup %13170  ;;  %v6895_v27 = vsel %vm564_vm1, %v16907_v7, 0.0 }
 0xa30   : > { %20000 = vst [vmem:[#allocation66_spill] sm:$0xff] %v16909_v53  ;;  %v6868_v49 = vsel %vm564_vm1, %v16909_v53, 0.0 }
 0xa31   : > { %v6804_v32 = vpop.xlane.xlu2 %6803  ;;  %v6699_v37 = vpop.xlane.xlu1 %6698 }
 0xa32   : > { %13172 = vrcp.f32 %v6804_v32  ;;  %v6735_v26 = vsub.f32 %v16763_v40, %v6699_v37  ;;  %v6731_v40 = vsub.f32 %v16716_v36, %v16862_v57  ;;  %v6907_v15 = vand.u32 2147483647, %v6804_v32 }
 0xa33   : > { %13174 = vpow2.f32 %v6778_v52  ;;  %vm6903_vm6 = vweird.f32 %v6804_v32 }
 0xa34   : > { %13176 = vpow2.f32 %v6798_v4  ;;  %v6796_v31 = vmul.f32 1.442695, %v6735_v26  ;;  %v6909_v4 = vand.u32 2147483648, %v6804_v32  ;;  %v6788_v57 = vmul.f32 1.442695, %v6731_v40 }
 0xa35   : > { %13178 = vpow2.f32 %v6790_v54  ;;  %vm6908_vm10 = vcmp.eq.f32.partialorder %v6907_v15, 8.507059e+37 }
 0xa36   : > { %6845 = vadd.xlane.f32.xlu0 %v6844_v8  ;;  %6896 = vadd.xlane.f32.xlu2 %v6895_v27 }
 0xa37   : > { %6869 = vadd.xlane.f32.xlu1 %v6868_v49  ;;  %v6910_v49 = vor.u32 1.1754944e-38, %v6909_v4 }
 0xa38   : > { %v13173_v23 = vpop.eup %13172 }
 0xa39   : > { %v16919_v1 = vpop.eup %13174  ;;  %v6899_v42 = vmul.f32 %v13173_v23, %v6804_v32  ;;  %v6807_v12 = vpop.xlane.xlu2 %6806  ;;  %vm6904_vm8 = vweird.f32 %v13173_v23  ;;  %v20006_v32 = vld [vmem:[#allocation85_spill] sm:$0xff] }
 0xa3a   : > { %20001 = vst [vmem:[#allocation22_spill] sm:$0xff] %v16919_v1  ;;  %v16921_v28 = vpop.eup %13176  ;;  %13180 = vrcp.f32 %v6807_v12  ;;  %v6862_v54 = vsel %vm564_vm1, %v16919_v1, 0.0  ;;  %vm6905_vm9 = vmor %vm6903_vm6, %vm6904_vm8  ;;  %v6923_v48 = vand.u32 2147483648, %v6807_v12  ;;  %v6921_v40 = vand.u32 2147483647, %v6807_v12 }
 0xa3b   : > { %20002 = vst [vmem:[#allocation89_spill] sm:$0xff] %v16921_v28  ;;  %v6900_v52 = vsub.f32 1.0, %v6899_v42  ;;  %v16923_v5 = vpop.eup %13178  ;;  %13182 = vpow2.f32 %v6794_v3  ;;  %v6892_v8 = vsel %vm564_vm1, %v16921_v28, 0.0  ;;  %vm6917_vm12 = vweird.f32 %v6807_v12 }
 0xa3c   : > { %20003 = vst [vmem:[#allocation116_spill] sm:$0xff] %v16923_v5  ;;  %13184 = vpow2.f32 %v6796_v31  ;;  %v6880_v26 = vsel %vm564_vm1, %v16923_v5, 0.0  ;;  %vm6922_vm14 = vcmp.eq.f32.partialorder %v6921_v40, 8.507059e+37  ;;  %v20025_v5 = vld [vmem:[#allocation54_spill] sm:$0xff] }
 0xa3d   : > { %v6901_v37 = vmul.f32 %v13173_v23, %v6900_v52  ;;  %13186 = vpow2.f32 %v6788_v57  ;;  %v12735_v39 = vunpack.i.h.bf16 %v20025_v5 }
 0xa3e   : > { %6863 = vadd.xlane.f32.xlu0 %v6862_v54  ;;  %6893 = vadd.xlane.f32.xlu2 %v6892_v8 }
 0xa3f   : > { %v6902_v27 = vadd.f32 %v13173_v23, %v6901_v37  ;;  %6881 = vadd.xlane.f32.xlu1 %v6880_v26  ;;  %v12725_v37 = vunpack.i.h.bf16 %v20006_v32 }
 0xa40   : > { %v13181_v36 = vpop.eup %13180 }
 0xa41   : > { %v6906_v3 = vsel %vm6905_vm9, %v13173_v23, %v6902_v27  ;;  %v6913_v42 = vmul.f32 %v13181_v36, %v6807_v12  ;;  %v16933_v52 = vpop.eup %13182  ;;  %vm6918_vm11 = vweird.f32 %v13181_v36  ;;  %v20008_v12 = vld [vmem:[#allocation53_spill] sm:$0xff] }
 0xa42   : > { %20004 = vst [vmem:[#allocation11_spill] sm:$0xff] %v16933_v52  ;;  %v6911_v29 = vsel %vm6908_vm10, %v6910_v49, %v6906_v3  ;;  %v16936_v8 = vpop.eup %13184  ;;  %v6886_v23 = vsel %vm564_vm1, %v16933_v52, 0.0  ;;  %vm6919_vm13 = vmor %vm6917_vm12, %vm6918_vm11  ;;  %v12724_v49 = vunpack.i.l.bf16 %v20006_v32  ;;  %v20011_v32 = vld [vmem:[#allocation64_spill] sm:$0xff] }
 0xa43   : > { %v7346_v31 = vmul.f32 %v16765_v61, %v6911_v29  ;;  %v6914_v54 = vsub.f32 1.0, %v6913_v42  ;;  %20005 = vst [vmem:[#allocation139_spill] sm:$0xff] %v16936_v8  ;;  %v6889_v29 = vsel %vm564_vm1, %v16936_v8, 0.0  ;;  %v6924_v61 = vor.u32 1.1754944e-38, %v6923_v48  ;;  %v16944_v27 = vpop.eup %13186  ;;  %v20009_v48 = vld [vmem:[#allocation59_spill] sm:$0xff] }
 0xa44   : > { %20007 = vst [vmem:[#allocation26_spill] sm:$0xff] %v16944_v27 }
 0xa45   : > { %v6915_v35 = vmul.f32 %v13181_v36, %v6914_v54  ;;  %12300 = vmatmul.msk.f32.vlgmr.msra.gmra.mxu1 %vm564_vm1, %v7346_v31 }
 0xa46   : > { %7607 = vmatpush.msra.mxu1 %v12725_v37  ;;  %6887 = vadd.xlane.f32.xlu0 %v6886_v23 }
 0xa47   : > { %v6916_v4 = vadd.f32 %v13181_v36, %v6915_v35  ;;  %6890 = vadd.xlane.f32.xlu1 %v6889_v29  ;;  %v6877_v35 = vsel %vm564_vm1, %v16944_v27, 0.0  ;;  %v20012_v29 = vld [vmem:[#allocation75_spill] sm:$0xff] }
 0xa49   : > { %v6920_v15 = vsel %vm6919_vm13, %v13181_v36, %v6916_v4 }
 0xa4a   : > { %v6925_v26 = vsel %vm6922_vm14, %v6924_v61, %v6920_v15  ;;  %v20013_v61 = vld [vmem:[#allocation2_spill] sm:$0xff]  ;;  %v20014_v15 = vld [vmem:[#allocation5_spill] sm:$0xff] }
 0xa4b   : > { %v7347_v57 = vmul.f32 %v16773_v63, %v6925_v26  ;;  %v20010_v63 = vld [vmem:[#allocation67_spill] sm:$0xff] }
 0xa4d   : > { %12301 = vmatmul.msk.f32.vlgmr.msra.gmra.mxu2 %vm564_vm1, %v7347_v57 }
 0xa4e   : > { %7633 = vmatpush.msra.mxu2 %v12724_v49  ;;  %6878 = vadd.xlane.f32.xlu0 %v6877_v35  ;;  %v20015_v49 = vld [vmem:[#allocation3_spill] sm:$0xff]  ;;  %v20016_v35 = vld [vmem:[#allocation6_spill] sm:$0xff] }
 0xa56   : > { %8884 = vrot.lane.b32.xlu2 %v20008_v12, %s13426_s30 }
 0xa5e   : > { %8938 = vrot.lane.b32.xlu2 %v20009_v48, %s13425_s29 }
 0xa60   : > { %8882 = vrot.lane.b32.xlu1 %v20008_v12, %s13425_s29 }
 0xa61   : > { %v6813_v36 = vpop.xlane.xlu0 %6812 }
 0xa62   : > { %13188 = vrcp.f32 %v6813_v36  ;;  %8940 = vrot.lane.b32.xlu0 %v20009_v48, %s13426_s30  ;;  %v6951_v40 = vand.u32 2147483648, %v6813_v36  ;;  %v6949_v4 = vand.u32 2147483647, %v6813_v36  ;;  %vm6945_vm2 = vweird.f32 %v6813_v36 }
 0xa64   : > { %v6952_v9 = vor.u32 1.1754944e-38, %v6951_v40  ;;  %vm6950_vm4 = vcmp.eq.f32.partialorder %v6949_v4, 8.507059e+37 }
 0xa66   : > { %8994 = vrot.lane.b32.xlu2 %v20010_v63, %s13425_s29 }
 0xa68   : > { %v13189_v3 = vpop.eup %13188  ;;  %8996 = vrot.lane.b32.xlu1 %v20010_v63, %s13426_s30 }
 0xa69   : > { %v6941_v42 = vmul.f32 %v13189_v3, %v6813_v36  ;;  %v6816_v31 = vpop.xlane.xlu0 %6815  ;;  %vm6946_vm15 = vweird.f32 %v13189_v3 }
 0xa6a   : > { %13190 = vrcp.f32 %v6816_v31  ;;  %v16963_v54 = vpop.xlane.xlu1 %6824  ;;  %8968 = vrot.lane.b32.xlu0 %v20011_v32, %s13426_s30  ;;  %vm6947_vm3 = vmor %vm6945_vm2, %vm6946_vm15  ;;  %v6963_v26 = vand.u32 2147483647, %v6816_v31  ;;  %v6965_v27 = vand.u32 2147483648, %v6816_v31  ;;  %vm6959_vm7 = vweird.f32 %v6816_v31 }
 0xa6b   : > { %v6942_v37 = vsub.f32 1.0, %v6941_v42  ;;  %13192 = vrcp.f32 %v16963_v54  ;;  %v20023_v42 = vld [vmem:[#allocation164_spill] sm:$0xff]  ;;  %v7005_v43 = vand.u32 2147483647, %v16963_v54  ;;  %vm7001_vm9 = vweird.f32 %v16963_v54 }
 0xa6c   : > { %v12729_v60 = vunpack.i.l.bf16 %v20023_v42  ;;  %vm17004_vm6 = vcmp.eq.f32.partialorder %v6963_v26, 8.507059e+37 }
 0xa6d   : > { %v6943_v23 = vmul.f32 %v13189_v3, %v6942_v37  ;;  %v20019_v37 = vld [vmem:[#allocation7_spill] sm:$0xff]  ;;  %vm17009_vm11 = vcmp.eq.f32.partialorder %v7005_v43, 8.507059e+37 }
 0xa6e   : > { %9052 = vrot.lane.b32.xlu2 %v20012_v29, %s13426_s30 }
 0xa6f   : > { %v6944_v57 = vadd.f32 %v13189_v3, %v6943_v23 }
 0xa70   : > { %v13191_v45 = vpop.eup %13190  ;;  %8966 = vrot.lane.b32.xlu1 %v20011_v32, %s13425_s29 }
 0xa71   : > { %v13193_v2 = vpop.eup %13192  ;;  %v6948_v23 = vsel %vm6947_vm3, %v13189_v3, %v6944_v57  ;;  %v6955_v36 = vmul.f32 %v13191_v45, %v6816_v31  ;;  %v16983_v12 = vpop.xlane.xlu0 %6809  ;;  %v20024_v3 = vld [vmem:[#allocation72_spill] sm:$0xff]  ;;  %vm6960_vm5 = vweird.f32 %v13191_v45 }
 0xa72   : > { %v6953_v40 = vsel %vm6950_vm4, %v6952_v9, %v6948_v23  ;;  %v6997_v28 = vmul.f32 %v13193_v2, %v16963_v54  ;;  %13194 = vrcp.f32 %v16983_v12  ;;  %v16988_v22 = vpop.xlane.xlu1 %6818  ;;  %v16990_v8 = vpop.xlane.xlu2 %6827  ;;  %9024 = vrot.lane.b32.xlu0 %v20024_v3, %s13426_s30  ;;  %v7007_v9 = vand.u32 2147483648, %v16963_v54  ;;  %vm6961_vm10 = vmor %vm6959_vm7, %vm6960_vm5 }
 0xa73   : > { %v7349_v4 = vmul.f32 %v16786_v34, %v6953_v40  ;;  %v6956_v57 = vsub.f32 1.0, %v6955_v36  ;;  %13196 = vrcp.f32 %v16988_v22  ;;  %vm7002_vm8 = vweird.f32 %v13193_v2 }
 0xa74   : > { %v6998_v52 = vsub.f32 1.0, %v6997_v28  ;;  %13198 = vrcp.f32 %v16990_v8  ;;  %v20026_v28 = vld [vmem:[#allocation77_spill] sm:$0xff]  ;;  %v6966_v23 = vor.u32 1.1754944e-38, %v6965_v27  ;;  %v7008_v31 = vor.u32 1.1754944e-38, %v7007_v9  ;;  %vm7003_vm12 = vmor %vm7001_vm9, %vm7002_vm8 }
 0xa75   : > { %v6957_v13 = vmul.f32 %v13191_v45, %v6956_v57  ;;  %12303 = vmatmul.msk.f32.vlgmr.msra.gmra.mxu0 %vm564_vm1, %v7349_v4  ;;  %vm6931_vm13 = vweird.f32 %v16983_v12  ;;  %v6937_v27 = vand.u32 2147483648, %v16983_v12  ;;  %vm6973_vm14 = vweird.f32 %v16988_v22 }
 0xa76   : > { %v6999_v34 = vmul.f32 %v13193_v2, %v6998_v52  ;;  %7685 = vmatpush.msra.mxu0 %v12729_v60  ;;  %9078 = vrot.lane.b32.xlu2 %v20026_v28, %s13425_s29  ;;  %v6935_v60 = vand.u32 2147483647, %v16983_v12  ;;  %vm7015_vm7 = vweird.f32 %v16990_v8 }
 0xa77   : > { %v6958_v36 = vadd.f32 %v13191_v45, %v6957_v13 }
 0xa78   : > { %v13195_v57 = vpop.eup %13194  ;;  %v7000_v4 = vadd.f32 %v13193_v2, %v6999_v34  ;;  %9080 = vrot.lane.b32.xlu1 %v20026_v28, %s13426_s30  ;;  %vm17035_vm15 = vcmp.eq.f32.partialorder %v6935_v60, 8.507059e+37 }
 0xa79   : > { %v6962_v53 = vsel %vm6961_vm10, %v13191_v45, %v6958_v36  ;;  %v6927_v13 = vmul.f32 %v13195_v57, %v16983_v12  ;;  %v17020_v54 = vpop.xlane.xlu0 %6836  ;;  %v13197_v43 = vpop.eup %13196  ;;  %vm6932_vm2 = vweird.f32 %v13195_v57 }
 0xa7a   : > { %v6967_v26 = vsel %vm17004_vm6, %v6966_v23, %v6962_v53  ;;  %v7004_v9 = vsel %vm7003_vm12, %v13193_v2, %v7000_v4  ;;  %13200 = vrcp.f32 %v17020_v54  ;;  %v17026_v45 = vpop.xlane.xlu2 %6821  ;;  %9022 = vrot.lane.b32.xlu0 %v20024_v3, %s13425_s29  ;;  %v6969_v1 = vmul.f32 %v13197_v43, %v16988_v22  ;;  %v13199_v40 = vpop.eup %13198  ;;  %vm6933_vm4 = vmor %vm6931_vm13, %vm6932_vm2 }
 0xa7b   : > { %v7350_v34 = vmul.f32 %v16793_v50, %v6967_v26  ;;  %v7009_v28 = vsel %vm17009_vm11, %v7008_v31, %v7004_v9  ;;  %v6928_v36 = vsub.f32 1.0, %v6927_v13  ;;  %v6977_v23 = vand.u32 2147483647, %v16988_v22 }
 0xa7c   : > { %v7353_v2 = vmul.f32 %v16796_v20, %v7009_v28  ;;  %v6979_v4 = vand.u32 2147483648, %v16988_v22  ;;  %v6970_v50 = vsub.f32 1.0, %v6969_v1  ;;  %v7011_v52 = vmul.f32 %v13199_v40, %v16990_v8 }
 0xa7d   : > { %v6929_v7 = vmul.f32 %v13195_v57, %v6928_v36  ;;  %12304 = vmatmul.msk.f32.vlgmr.msrb.gmra.mxu1 %vm564_vm1, %v7350_v34  ;;  %v6938_v31 = vor.u32 1.1754944e-38, %v6937_v27  ;;  %v7019_v13 = vand.u32 2147483647, %v16990_v8  ;;  %v7021_v20 = vand.u32 2147483648, %v16990_v8 }
 0xa7e   : > { %13202 = vrcp.f32 %v17026_v45  ;;  %12307 = vmatmul.msk.f32.vlgmr.msrb.gmra.mxu0 %vm564_vm1, %v7353_v2  ;;  %7711 = vmatpush.msrb.mxu1 %v12735_v39  ;;  %v6971_v26 = vmul.f32 %v13197_v43, %v6970_v50  ;;  %vm6974_vm3 = vweird.f32 %v13197_v43  ;;  %v7012_v9 = vsub.f32 1.0, %v7011_v52 }
 0xa7f   : > { %v6930_v60 = vadd.f32 %v13195_v57, %v6929_v7  ;;  %v20033_v1 = vunpack.i.l.bf16 %v20022_v55  ;;  %v20034_v27 = vpack.i.bf16 %v20014_v15, %v20013_v61  ;;  %vm17056_vm5 = vcmp.eq.f32.partialorder %v6977_v23, 8.507059e+37  ;;  %vm6975_vm6 = vmor %vm6973_vm14, %vm6974_vm3 }
 0xa80   : > { %v13201_v34 = vpop.eup %13200  ;;  %v6980_v7 = vor.u32 1.1754944e-38, %v6979_v4  ;;  %vm7016_vm8 = vweird.f32 %v13199_v40  ;;  %v6972_v36 = vadd.f32 %v13197_v43, %v6971_v26  ;;  %v7013_v2 = vmul.f32 %v13199_v40, %v7012_v9  ;;  %v20040_v26 = vld [vmem:[#allocation166_spill] sm:$0xff] }
 0xa81   : > { %7789 = vmatpush.msrb.mxu0 %v20033_v1  ;;  %12782 = vrot.lane.b32.xlu2 %v20034_v27, %s13427_s9  ;;  %v6934_v28 = vsel %vm6933_vm4, %v13195_v57, %v6930_v60  ;;  %v7053_v50 = vmul.f32 %v13201_v34, %v17020_v54  ;;  %v20037_v61 = vpack.i.bf16 %v20016_v35, %v20015_v49  ;;  %v17066_v15 = vpop.xlane.xlu0 %6839  ;;  %vm17073_vm9 = vcmp.eq.f32.partialorder %v7019_v13, 8.507059e+37  ;;  %vm7017_vm10 = vmor %vm7015_vm7, %vm7016_vm8 }
 0xa82   : > { %v6939_v12 = vsel %vm17035_vm15, %v6938_v31, %v6934_v28  ;;  %v7022_v23 = vor.u32 1.1754944e-38, %v7021_v20  ;;  %v7061_v4 = vand.u32 2147483647, %v17020_v54  ;;  %9050 = vrot.lane.b32.xlu0 %v20012_v29, %s13425_s29  ;;  %v6976_v35 = vsel %vm6975_vm6, %v13197_v43, %v6972_v36  ;;  %v17097_v27 = vpop.xlane.xlu1 %6854  ;;  %v20042_v28 = vld [vmem:[#allocation17_spill] sm:$0xff] }
 0xa83   : > { %12787 = vrot.lane.b32.xlu1 %v20037_v61, %s13427_s9  ;;  %v7348_v49 = vmul.f32 %v16805_v16, %v6939_v12  ;;  %v7014_v52 = vadd.f32 %v13199_v40, %v7013_v2  ;;  %v7054_v53 = vsub.f32 1.0, %v7053_v50  ;;  %v6981_v22 = vsel %vm17056_vm5, %v6980_v7, %v6976_v35  ;;  %v17088_v20 = vpop.xlane.xlu2 %6848 }
 0xa84   : > { %v13203_v31 = vpop.eup %13202  ;;  %vm7058_vm11 = vweird.f32 %v13201_v34  ;;  %v7063_v13 = vand.u32 2147483648, %v17020_v54  ;;  %13204 = vrcp.f32 %v17066_v15  ;;  %v7351_v16 = vmul.f32 %v16807_v14, %v6981_v22 }
 0xa85   : > { %v7018_v29 = vsel %vm7017_vm10, %v13199_v40, %v7014_v52  ;;  %v7055_v43 = vmul.f32 %v13201_v34, %v7054_v53  ;;  %v6983_v60 = vmul.f32 %v13203_v31, %v17026_v45  ;;  %12302 = vmatmul.msk.f32.vlgmr.msrb.gmra.mxu3 %vm564_vm1, %v7348_v49  ;;  %v12745_v9 = vunpack.i.h.bf16 %v20040_v26  ;;  %v20045_v49 = vld [vmem:[#allocation31_spill] sm:$0xff] }
 0xa86   : > { %v12734_v8 = vunpack.i.l.bf16 %v20025_v5  ;;  %v7023_v1 = vsel %vm17073_vm9, %v7022_v23, %v7018_v29  ;;  %v20041_v39 = vunpack.i.h.bf16 %v20023_v42  ;;  %vm7057_vm12 = vweird.f32 %v17020_v54  ;;  %12305 = vmatmul.msk.f32.vlgmr.msrb.gmra.mxu2 %vm564_vm1, %v7351_v16  ;;  %v20046_v16 = vld [vmem:[#allocation57_spill] sm:$0xff] }
 0xa87   : > { %v7354_v14 = vmul.f32 %v16810_v38, %v7023_v1  ;;  %v7056_v40 = vadd.f32 %v13201_v34, %v7055_v43  ;;  %v6984_v7 = vsub.f32 1.0, %v6983_v60  ;;  %vm7059_vm13 = vmor %vm7057_vm12, %vm7058_vm11  ;;  %vm7062_vm14 = vcmp.eq.f32.partialorder %v7061_v4, 8.507059e+37 }
 0xa88   : > { %7659 = vmatpush.msrb.mxu3 %v20041_v39  ;;  %v7064_v5 = vor.u32 1.1754944e-38, %v7063_v13  ;;  %v6991_v36 = vand.u32 2147483647, %v17026_v45  ;;  %v6993_v42 = vand.u32 2147483648, %v17026_v45  ;;  %7737 = vmatpush.msrb.mxu2 %v12734_v8  ;;  %vm6988_vm15 = vweird.f32 %v13203_v31 }
 0xa89   : > { %12807 = vrot.lane.b32.xlu2 %v20042_v28, %s13427_s9  ;;  %v7060_v2 = vsel %vm7059_vm13, %v13201_v34, %v7056_v40  ;;  %v6985_v38 = vmul.f32 %v13203_v31, %v6984_v7  ;;  %13206 = vrcp.f32 %v17088_v20  ;;  %12308 = vmatmul.msk.f32.vlgmr.msra.gmra.mxu1 %vm564_vm1, %v7354_v14  ;;  %v20043_v54 = vpack.i.bf16 %v20020_v18, %v20019_v37  ;;  %v17115_v50 = vpop.xlane.xlu0 %6830 }
 0xa8a   : > { %v13205_v61 = vpop.eup %13204  ;;  %v7065_v12 = vsel %vm7062_vm14, %v7064_v5, %v7060_v2  ;;  %7815 = vmatpush.msra.mxu1 %v12745_v9  ;;  %v20044_v34 = vpack.i.bf16 %v20018_v19, %v20017_v10  ;;  %vm6987_vm2 = vweird.f32 %v17026_v45  ;;  %v12749_v18 = vunpack.i.l.bf16 %v20045_v49  ;;  %v17136_v43 = vpop.xlane.xlu1 %6857 }
 0xa8b   : > { %12797 = vrot.lane.b32.xlu1 %v20043_v54, %s13427_s9  ;;  %v7357_v57 = vmul.f32 %v16820_v56, %v7065_v12  ;;  %v6986_v23 = vadd.f32 %v13203_v31, %v6985_v38  ;;  %v7067_v4 = vmul.f32 %v13205_v61, %v17066_v15  ;;  %vm6989_vm3 = vmor %vm6987_vm2, %vm6988_vm15  ;;  %v6994_v37 = vor.u32 1.1754944e-38, %v6993_v42  ;;  %v17129_v53 = vpop.xlane.xlu2 %6860  ;;  %v20049_v42 = vld [vmem:[#allocation44_spill] sm:$0xff]  ;;  %v20050_v38 = vld [vmem:[#allocation33_spill] sm:$0xff] }
 0xa8c   : > { %12792 = vrot.lane.b32.xlu0 %v20044_v34, %s13427_s9  ;;  %13208 = vrcp.f32 %v17115_v50  ;;  %vm6992_vm4 = vcmp.eq.f32.partialorder %v6991_v36, 8.507059e+37  ;;  %v7075_v10 = vand.u32 2147483647, %v17066_v15  ;;  %v7077_v56 = vand.u32 2147483648, %v17066_v15 }
 0xa8d   : > { %v6990_v35 = vsel %vm6989_vm3, %v13203_v31, %v6986_v23  ;;  %v7068_v52 = vsub.f32 1.0, %v7067_v4  ;;  %12311 = vmatmul.msk.f32.vlgmr.msra.gmra.mxu0 %vm564_vm1, %v7357_v57  ;;  %vm7072_vm5 = vweird.f32 %v13205_v61  ;;  %v12740_v31 = vunpack.i.h.bf16 %v20022_v55 }
 0xa8e   : > { %v6995_v19 = vsel %vm6992_vm4, %v6994_v37, %v6990_v35  ;;  %7893 = vmatpush.msra.mxu0 %v12749_v18  ;;  %v12846_v60 = vpack.i.bf16 %v20010_v63, %v20009_v48  ;;  %v12851_v9 = vpack.i.bf16 %v20024_v3, %v20011_v32  ;;  %v12750_v8 = vunpack.i.h.bf16 %v20045_v49 }
 0xa8f   : > { %v13207_v45 = vpop.eup %13206  ;;  %v7352_v22 = vmul.f32 %v16823_v17, %v6995_v19  ;;  %v7069_v13 = vmul.f32 %v13205_v61, %v7068_v52  ;;  %vm7071_vm7 = vweird.f32 %v17066_v15  ;;  %13210 = vrcp.f32 %v17097_v27  ;;  %v20048_v15 = vld [vmem:[#allocation16_spill] sm:$0xff]  ;;  %v20053_v52 = vld [vmem:[#allocation167_spill] sm:$0xff] }
 0xa90   : > { %v7109_v29 = vmul.f32 %v13207_v45, %v17088_v20  ;;  %v20047_v55 = vpack.i.bf16 %v13641_v46, %v20021_v25  ;;  %vm7073_vm8 = vmor %vm7071_vm7, %vm7072_vm5  ;;  %vm7076_vm6 = vcmp.eq.f32.partialorder %v7075_v10, 8.507059e+37  ;;  %v7078_v14 = vor.u32 1.1754944e-38, %v7077_v56 }
 0xa91   : > { %12837 = vrot.lane.b32.xlu2 %v20046_v16, %s13427_s9  ;;  %v7070_v17 = vadd.f32 %v13205_v61, %v7069_v13  ;;  %12306 = vmatmul.msk.f32.vlgmr.msra.gmra.mxu3 %vm564_vm1, %v7352_v22  ;;  %v17150_v1 = vpop.xlane.xlu0 %6833  ;;  %13212 = vrcp.f32 %v17129_v53  ;;  %v7119_v28 = vand.u32 2147483648, %v17088_v20  ;;  %vm7114_vm9 = vweird.f32 %v13207_v45 }
 0xa92   : > { %v13209_v39 = vpop.eup %13208  ;;  %v7110_v40 = vsub.f32 1.0, %v7109_v29  ;;  %7763 = vmatpush.msra.mxu3 %v12740_v31  ;;  %13214 = vrcp.f32 %v17136_v43  ;;  %v7117_v36 = vand.u32 2147483647, %v17088_v20  ;;  %v12779_v2 = vunpack.i.l.bf16 %v20049_v42  ;;  %v20054_v31 = vld [vmem:[#allocation23_spill] sm:$0xff]  ;;  %v20055_v29 = vld [vmem:[#allocation76_spill] sm:$0xff] }
 0xa93   : > { %12802 = vrot.lane.b32.xlu1 %v20047_v55, %s13427_s9  ;;  %v7074_v7 = vsel %vm7073_vm8, %v13205_v61, %v7070_v17  ;;  %v7025_v46 = vmul.f32 %v13209_v39, %v17115_v50  ;;  %v12755_v54 = vunpack.i.h.bf16 %v20050_v38  ;;  %vm7113_vm10 = vweird.f32 %v17088_v20  ;;  %v17180_v56 = vpop.xlane.xlu2 %6872 }
 0xa94   : > { %12812 = vrot.lane.b32.xlu0 %v20048_v15, %s13427_s9  ;;  %v7079_v25 = vsel %vm7076_vm6, %v7078_v14, %v7074_v7  ;;  %v7111_v5 = vmul.f32 %v13207_v45, %v7110_v40  ;;  %v7035_v61 = vand.u32 2147483648, %v17115_v50  ;;  %13216 = vrcp.f32 %v17150_v1  ;;  %vm17168_vm11 = vmor %vm7113_vm10, %vm7114_vm9  ;;  %v20056_v40 = vld [vmem:[#allocation35_spill] sm:$0xff] }
 0xa95   : > { %v7358_v12 = vmul.f32 %v16831_v30, %v7079_v25  ;;  %v7026_v34 = vsub.f32 1.0, %v7025_v46  ;;  %v17166_v23 = vpop.eup %13210  ;;  %v7120_v18 = vor.u32 1.1754944e-38, %v7119_v28  ;;  %vm7030_vm12 = vweird.f32 %v13209_v39 }
 0xa96   : > { %v7112_v57 = vadd.f32 %v13207_v45, %v7111_v5  ;;  %v7033_v35 = vand.u32 2147483647, %v17115_v50  ;;  %v12744_v20 = vunpack.i.l.bf16 %v20040_v26  ;;  %v12769_v19 = vunpack.i.l.bf16 %v20053_v52 }
 0xa97   : > { %v7027_v37 = vmul.f32 %v13209_v39, %v7026_v34  ;;  %12312 = vmatmul.msk.f32.vlgmr.msrb.gmra.mxu1 %vm564_vm1, %v7358_v12  ;;  %v13213_v30 = vpop.eup %13212  ;;  %vm7118_vm13 = vcmp.eq.f32.partialorder %v7117_v36, 8.507059e+37  ;;  %vm7029_vm14 = vweird.f32 %v17115_v50  ;;  %v12759_v17 = vunpack.i.l.bf16 %v20055_v29  ;;  %v20057_v12 = vld [vmem:[#allocation79_spill] sm:$0xff] }
 0xa98   : > { %v7116_v10 = vsel %vm17168_vm11, %v13207_v45, %v7112_v57  ;;  %7919 = vmatpush.msrb.mxu1 %v12755_v54  ;;  %v17182_v22 = vpop.eup %13214  ;;  %v7137_v45 = vmul.f32 %v17166_v23, %v17097_v27  ;;  %vm7031_vm15 = vmor %vm7029_vm14, %vm7030_vm12  ;;  %v7036_v14 = vor.u32 1.1754944e-38, %v7035_v61  ;;  %vm7034_vm2 = vcmp.eq.f32.partialorder %v7033_v35, 8.507059e+37 }
 0xa99   : > { %10816 = vrot.lane.b32.xlu2 %v16523_v41, %s13428_s10  ;;  %v7121_v13 = vsel %vm7118_vm13, %v7120_v18, %v7116_v10  ;;  %v7028_v16 = vadd.f32 %v13209_v39, %v7027_v37  ;;  %v7165_v41 = vmul.f32 %v13213_v30, %v17129_v53  ;;  %v17188_v26 = vpop.xlane.xlu0 %6851  ;;  %13218 = vrcp.f32 %v17180_v56 }
 0xa9a   : > { %v7361_v55 = vmul.f32 %v16840_v21, %v7121_v13  ;;  %v17198_v7 = vpop.xlane.xlu1 %6875  ;;  %v13217_v28 = vpop.eup %13216  ;;  %v7151_v25 = vmul.f32 %v17182_v22, %v17136_v43  ;;  %v7173_v21 = vand.u32 2147483647, %v17129_v53  ;;  %v7175_v5 = vand.u32 2147483648, %v17129_v53 }
 0xa9b   : > { %12817 = vrot.lane.b32.xlu1 %v20054_v31, %s13427_s9  ;;  %v7032_v50 = vsel %vm7031_vm15, %v13209_v39, %v7028_v16  ;;  %v7166_v15 = vsub.f32 1.0, %v7165_v41  ;;  %vm7170_vm3 = vweird.f32 %v13213_v30  ;;  %v7039_v54 = vmul.f32 %v13217_v28, %v17150_v1 }
 0xa9c   : > { %12822 = vrot.lane.b32.xlu0 %v20056_v40, %s13427_s9  ;;  %v7037_v46 = vsel %vm7034_vm2, %v7036_v14, %v7032_v50  ;;  %12315 = vmatmul.msk.f32.vlgmr.msrb.gmra.mxu0 %vm564_vm1, %v7361_v55  ;;  %v12765_v34 = vunpack.i.h.bf16 %v20057_v12  ;;  %v7145_v57 = vand.u32 2147483647, %v17097_v27  ;;  %v7147_v61 = vand.u32 2147483648, %v17097_v27 }
 0xa9d   : > { %v7355_v36 = vmul.f32 %v16848_v24, %v7037_v46  ;;  %v7167_v39 = vmul.f32 %v13213_v30, %v7166_v15  ;;  %7997 = vmatpush.msrb.mxu0 %v12759_v17  ;;  %13220 = vrcp.f32 %v17188_v26  ;;  %v7138_v4 = vsub.f32 1.0, %v7137_v45  ;;  %v20058_v17 = vld [vmem:[#allocation43_spill] sm:$0xff] }
 0xa9e   : > { %vm7169_vm4 = vweird.f32 %v17129_v53  ;;  %v7040_v37 = vsub.f32 1.0, %v7039_v54  ;;  %v7152_v24 = vsub.f32 1.0, %v7151_v25  ;;  %v7176_v35 = vor.u32 1.1754944e-38, %v7175_v5 }
 0xa9f   : > { %v7168_v18 = vadd.f32 %v13213_v30, %v7167_v39  ;;  %12309 = vmatmul.msk.f32.vlgmr.msra.gmra.mxu2 %vm564_vm1, %v7355_v36  ;;  %vm7171_vm5 = vmor %vm7169_vm4, %vm7170_vm3  ;;  %v7047_v10 = vand.u32 2147483647, %v17150_v1  ;;  %v7049_v13 = vand.u32 2147483648, %v17150_v1  ;;  %v13219_v16 = vpop.eup %13218  ;;  %vm7174_vm7 = vcmp.eq.f32.partialorder %v7173_v21, 8.507059e+37 }
 0xaa0   : > { %7841 = vmatpush.msra.mxu2 %v12744_v20  ;;  %v7041_v31 = vmul.f32 %v13217_v28, %v7040_v37  ;;  %vm7044_vm8 = vweird.f32 %v13217_v28  ;;  %vm7141_vm6 = vweird.f32 %v17097_v27  ;;  %vm7142_vm9 = vweird.f32 %v17166_v23  ;;  %v20059_v20 = vld [vmem:[#allocation39_spill] sm:$0xff] }
 0xaa1   : > { %v7172_v41 = vsel %vm7171_vm5, %v13213_v30, %v7168_v18  ;;  %v17219_v53 = vor.u32 1.1754944e-38, %v7147_v61  ;;  %v7221_v55 = vmul.f32 %v13219_v16, %v17180_v56  ;;  %v17222_v14 = vpop.xlane.xlu0 %6842  ;;  %v7139_v30 = vmul.f32 %v17166_v23, %v7138_v4 }
 0xaa2   : > { %v7177_v45 = vsel %vm7174_vm7, %v7176_v35, %v7172_v41  ;;  %v7042_v50 = vadd.f32 %v13217_v28, %v7041_v31  ;;  %vm7043_vm10 = vweird.f32 %v17150_v1  ;;  %v7153_v46 = vmul.f32 %v17182_v22, %v7152_v24  ;;  %vm17274_vm7 = vmor %vm7141_vm6, %vm7142_vm9 }
 0xaa3   : > { %12832 = vrot.lane.b32.xlu1 %v20058_v17, %s13427_s9  ;;  %v7365_v40 = vmul.f32 %v16856_v59, %v7177_v45  ;;  %v13221_v15 = vpop.eup %13220  ;;  %vm7045_vm11 = vmor %vm7043_vm10, %vm7044_vm8  ;;  %vm7048_vm12 = vcmp.eq.f32.partialorder %v7047_v10, 8.507059e+37  ;;  %v7050_v25 = vor.u32 1.1754944e-38, %v7049_v13  ;;  %v7222_v21 = vsub.f32 1.0, %v7221_v55  ;;  %v17235_v59 = vpop.xlane.xlu1 %6866  ;;  %v20064_v17 = vld [vmem:[#allocation63_spill] sm:$0xff] }
 0xaa4   : > { %12827 = vrot.lane.b32.xlu0 %v20059_v20, %s13427_s9  ;;  %v7046_v5 = vsel %vm7045_vm11, %v13217_v28, %v7042_v50  ;;  %v7231_v36 = vand.u32 2147483648, %v17180_v56  ;;  %v7123_v39 = vmul.f32 %v13221_v15, %v17188_v26  ;;  %13222 = vrcp.f32 %v17222_v14 }
 0xaa5   : > { %12319 = vmatmul.msk.f32.vlgmr.msra.gmra.mxu0 %vm564_vm1, %v7365_v40  ;;  %v7051_v1 = vsel %vm7048_vm12, %v7050_v25, %v7046_v5  ;;  %v7223_v54 = vmul.f32 %v13219_v16, %v7222_v21  ;;  %vm7226_vm13 = vweird.f32 %v13219_v16  ;;  %v7229_v61 = vand.u32 2147483647, %v17180_v56 }
 0xaa6   : > { %8101 = vmatpush.msra.mxu0 %v12769_v19  ;;  %v7140_v28 = vadd.f32 %v17166_v23, %v7139_v30  ;;  %v7161_v4 = vand.u32 2147483648, %v17136_v43  ;;  %v7356_v18 = vmul.f32 %v16864_v33, %v7051_v1  ;;  %v7124_v37 = vsub.f32 1.0, %v7123_v39 }
 0xaa7   : > { %vm17243_vm14 = vcmp.eq.f32.partialorder %v7145_v57, 8.507059e+37  ;;  %v7224_v35 = vadd.f32 %v13219_v16, %v7223_v54  ;;  %vm7225_vm15 = vweird.f32 %v17180_v56  ;;  %v7133_v10 = vand.u32 2147483648, %v17188_v26  ;;  %v17255_v57 = vpop.xlane.xlu2 %6884  ;;  %v20069_v54 = vld [vmem:[#allocation100_spill] sm:$0xff] }
 0xaa8   : > { %13224 = vrcp.f32 %v17235_v59  ;;  %vm17250_vm2 = vmor %vm7225_vm15, %vm7226_vm13  ;;  %v7232_v13 = vor.u32 1.1754944e-38, %v7231_v36  ;;  %v7125_v41 = vmul.f32 %v13221_v15, %v7124_v37  ;;  %vm7128_vm3 = vweird.f32 %v13221_v15  ;;  %12310 = vmatmul.msk.f32.vlgmr.msrb.gmra.mxu3 %vm564_vm1, %v7356_v18 }
 0xaa9   : > { %v7131_v33 = vand.u32 2147483647, %v17188_v26  ;;  %v7154_v56 = vadd.f32 %v17182_v22, %v7153_v46  ;;  %vm7156_vm4 = vweird.f32 %v17182_v22  ;;  %v7228_v31 = vsel %vm17250_vm2, %v13219_v16, %v7224_v35  ;;  %7867 = vmatpush.msrb.mxu3 %v12750_v8  ;;  %v17284_v27 = vpop.xlane.xlu0 %6845 }
 0xaaa   : > { %vm7230_vm5 = vcmp.eq.f32.partialorder %v7229_v61, 8.507059e+37  ;;  %v13223_v45 = vpop.eup %13222  ;;  %vm7155_vm8 = vweird.f32 %v17136_v43  ;;  %vm7127_vm10 = vweird.f32 %v17188_v26  ;;  %v7159_v49 = vand.u32 2147483647, %v17136_v43 }
 0xaab   : > { %12847 = vrot.lane.b32.xlu1 %v12846_v60, %s13427_s9  ;;  %v7233_v63 = vsel %vm7230_vm5, %v7232_v13, %v7228_v31  ;;  %v7126_v60 = vadd.f32 %v13221_v15, %v7125_v41  ;;  %vm7129_vm11 = vmor %vm7127_vm10, %vm7128_vm3  ;;  %v7134_v16 = vor.u32 1.1754944e-38, %v7133_v10  ;;  %v7081_v55 = vmul.f32 %v13223_v45, %v17222_v14 }
 0xaac   : > { %12842 = vrot.lane.b32.xlu0 %v20064_v17, %s13427_s9  ;;  %v7369_v8 = vmul.f32 %v16872_v51, %v7233_v63  ;;  %vm17288_vm6 = vmor %vm7155_vm8, %vm7156_vm4  ;;  %v7162_v30 = vor.u32 1.1754944e-38, %v7161_v4  ;;  %vm7132_vm9 = vcmp.eq.f32.partialorder %v7131_v33, 8.507059e+37  ;;  %13226 = vrcp.f32 %v17255_v57 }
 0xaad   : > { %v7130_v40 = vsel %vm7129_vm11, %v13221_v15, %v7126_v60  ;;  %v7144_v51 = vsel %vm17274_vm7, %v17166_v23, %v7140_v28  ;;  %v7158_v26 = vsel %vm17288_vm6, %v17182_v22, %v7154_v56  ;;  %v7082_v46 = vsub.f32 1.0, %v7081_v55  ;;  %v17309_v23 = vpop.xlane.xlu1 %6869 }
 0xaae   : > { %v17293_v43 = vpop.eup %13224  ;;  %v7135_v50 = vsel %vm7132_vm9, %v7134_v16, %v7130_v40  ;;  %12323 = vmatmul.msk.f32.vlgmr.msrb.gmra.mxu0 %vm564_vm1, %v7369_v8  ;;  %13228 = vrcp.f32 %v17198_v7  ;;  %v7091_v15 = vand.u32 2147483648, %v17222_v14  ;;  %vm7086_vm12 = vweird.f32 %v13223_v45  ;;  %v20078_v40 = vld [vmem:[#allocation171_spill] sm:$0xff] }
 0xaaf   : > { %v7362_v25 = vmul.f32 %v16876_v0, %v7135_v50  ;;  %v7193_v21 = vmul.f32 %v17293_v43, %v17235_v59  ;;  %8205 = vmatpush.msrb.mxu0 %v12779_v2  ;;  %v7083_v5 = vmul.f32 %v13223_v45, %v7082_v46  ;;  %v7089_v22 = vand.u32 2147483647, %v17222_v14  ;;  %v17330_v32 = vpop.xlane.xlu2 %6896 }
 0xab0   : > { %13230 = vrcp.f32 %v17284_v27  ;;  %v12754_v0 = vunpack.i.l.bf16 %v20050_v38  ;;  %v12760_v36 = vunpack.i.h.bf16 %v20055_v29  ;;  %v7149_v39 = vsel %vm17243_vm14, %v17219_v53, %v7144_v51  ;;  %v20075_v29 = vld [vmem:[#allocation154_spill] sm:$0xff] }
 0xab1   : > { %vm7160_vm13 = vcmp.eq.f32.partialorder %v7159_v49, 8.507059e+37  ;;  %12316 = vmatmul.msk.f32.vlgmr.msra.gmra.mxu1 %vm564_vm1, %v7362_v25  ;;  %v7084_v1 = vadd.f32 %v13223_v45, %v7083_v5  ;;  %vm7085_vm15 = vweird.f32 %v17222_v14  ;;  %13232 = vrcp.f32 %v17309_v23  ;;  %v17346_v13 = vpop.xlane.xlu0 %6863 }
 0xab2   : > { %v7163_v2 = vsel %vm7160_vm13, %v7162_v30, %v7158_v26  ;;  %8023 = vmatpush.msra.mxu1 %v12765_v34  ;;  %v13227_v38 = vpop.eup %13226  ;;  %v12764_v53 = vunpack.i.l.bf16 %v20057_v12  ;;  %v12774_v61 = vunpack.i.l.bf16 %v20069_v54  ;;  %vm7087_vm14 = vmor %vm7085_vm15, %vm7086_vm12  ;;  %v7092_v28 = vor.u32 1.1754944e-38, %v7091_v15 }
 0xab3   : > { %12852 = vrot.lane.b32.xlu1 %v12851_v9, %s13427_s9  ;;  %v7194_v4 = vsub.f32 1.0, %v7193_v21  ;;  %v17333_v3 = vmul.f32 %v16836_v44, %v7149_v39  ;;  %v7088_v9 = vsel %vm7087_vm14, %v13223_v45, %v7084_v1  ;;  %vm7090_vm2 = vcmp.eq.f32.partialorder %v7089_v22, 8.507059e+37 }
 0xab4   : > { %v7277_v14 = vmul.f32 %v13227_v38, %v17255_v57  ;;  %v17336_v18 = vpop.eup %13228  ;;  %v17339_v34 = vmul.f32 %v16852_v11, %v7163_v2  ;;  %v7245_v37 = vand.u32 2147483648, %v17198_v7  ;;  %v7093_v24 = vsel %vm7090_vm2, %v7092_v28, %v7088_v9 }
 0xab5   : > { %v7287_v35 = vand.u32 2147483648, %v17255_v57  ;;  %v7359_v19 = vmul.f32 %v16889_v62, %v7093_v24  ;;  %vm7197_vm3 = vweird.f32 %v17235_v59  ;;  %13234 = vrcp.f32 %v17330_v32  ;;  %v17360_v60 = vpop.xlane.xlu1 %6881  ;;  %v20074_v24 = vld [vmem:[#allocation159_spill] sm:$0xff] }
 0xab6   : > { %v13231_v10 = vpop.eup %13230  ;;  %v7278_v44 = vsub.f32 1.0, %v7277_v14  ;;  %v7195_v41 = vmul.f32 %v17293_v43, %v7194_v4  ;;  %v7201_v11 = vand.u32 2147483647, %v17235_v59  ;;  %v7203_v33 = vand.u32 2147483648, %v17235_v59 }
 0xab7   : > { %v7095_v56 = vmul.f32 %v13231_v10, %v17284_v27  ;;  %v17352_v31 = vpop.eup %13232  ;;  %v7235_v62 = vmul.f32 %v17336_v18, %v17198_v7  ;;  %vm7282_vm4 = vweird.f32 %v13227_v38  ;;  %v7285_v45 = vand.u32 2147483647, %v17255_v57  ;;  %12313 = vmatmul.msk.f32.vlgmr.msrb.gmra.mxu2 %vm564_vm1, %v7359_v19  ;;  %v17387_v2 = vpop.xlane.xlu2 %6893 }
 0xab8   : > { %v7279_v17 = vmul.f32 %v13227_v38, %v7278_v44  ;;  %vm7198_vm5 = vweird.f32 %v17293_v43  ;;  %vm7281_vm7 = vweird.f32 %v17255_v57  ;;  %v7288_v48 = vor.u32 1.1754944e-38, %v7287_v35  ;;  %7945 = vmatpush.msrb.mxu2 %v12754_v0 }
 0xab9   : > { %v7096_v63 = vsub.f32 1.0, %v7095_v56  ;;  %v7103_v8 = vand.u32 2147483647, %v17284_v27  ;;  %v7105_v16 = vand.u32 2147483648, %v17284_v27  ;;  %13236 = vrcp.f32 %v17346_v13  ;;  %vm7283_vm8 = vmor %vm7281_vm7, %vm7282_vm4  ;;  %v17395_v4 = vpop.xlane.xlu0 %6887 }
 0xaba   : > { %v7280_v49 = vadd.f32 %v13227_v38, %v7279_v17  ;;  %v7196_v55 = vadd.f32 %v17293_v43, %v7195_v41  ;;  %vm7100_vm10 = vweird.f32 %v13231_v10  ;;  %v7207_v57 = vmul.f32 %v17352_v31, %v17309_v23  ;;  %vm17377_vm9 = vmor %vm7197_vm3, %vm7198_vm5 }
 0xabb   : > { %v7097_v20 = vmul.f32 %v13231_v10, %v7096_v63  ;;  %v13235_v30 = vpop.eup %13234  ;;  %vm17368_vm11 = vcmp.eq.f32.partialorder %v7201_v11, 8.507059e+37  ;;  %vm7286_vm6 = vcmp.eq.f32.partialorder %v7285_v45, 8.507059e+37  ;;  %13238 = vrcp.f32 %v17360_v60 }
 0xabc   : > { %v7284_v51 = vsel %vm7283_vm8, %v13227_v38, %v7280_v49  ;;  %vm7099_vm12 = vweird.f32 %v17284_v27  ;;  %v7333_v25 = vmul.f32 %v13235_v30, %v17330_v32  ;;  %v7236_v15 = vsub.f32 1.0, %v7235_v62 }
 0xabd   : > { %v7289_v50 = vsel %vm7286_vm6, %v7288_v48, %v7284_v51  ;;  %v7098_v46 = vadd.f32 %v13231_v10, %v7097_v20  ;;  %vm7101_vm13 = vmor %vm7099_vm12, %vm7100_vm10  ;;  %vm7104_vm15 = vcmp.eq.f32.partialorder %v7103_v8, 8.507059e+37  ;;  %v7106_v5 = vor.u32 1.1754944e-38, %v7105_v16  ;;  %v17424_v56 = vpop.xlane.xlu1 %6890 }
 0xabe   : > { %v7373_v21 = vmul.f32 %v16895_v6, %v7289_v50  ;;  %v7200_v59 = vsel %vm17377_vm9, %v17293_v43, %v7196_v55  ;;  %v7208_v0 = vsub.f32 1.0, %v7207_v57  ;;  %v7334_v39 = vsub.f32 1.0, %v7333_v25  ;;  %v20081_v50 = vld [vmem:[#allocation22_spill] sm:$0xff] }
 0xabf   : > { %v7102_v22 = vsel %vm7101_vm13, %v13231_v10, %v7098_v46  ;;  %v17389_v1 = vpop.eup %13236  ;;  %vm7240_vm14 = vweird.f32 %v17336_v18  ;;  %v7204_v27 = vor.u32 1.1754944e-38, %v7203_v33  ;;  %v7341_v6 = vand.u32 2147483647, %v17330_v32  ;;  %12317 = vmatmul.msk.f32.vlgmr.msra.gmra.mxu2 %vm564_vm1, %v17333_v3 }
 0xac0   : > { %v7107_v38 = vsel %vm7104_vm15, %v7106_v5, %v7102_v22  ;;  %v7343_v28 = vand.u32 2147483648, %v17330_v32  ;;  %12327 = vmatmul.msk.f32.vlgmr.msra.gmra.mxu0 %vm564_vm1, %v7373_v21  ;;  %v7335_v9 = vmul.f32 %v13235_v30, %v7334_v39  ;;  %vm7338_vm2 = vweird.f32 %v13235_v30  ;;  %8049 = vmatpush.msra.mxu2 %v12764_v53  ;;  %v17472_v21 = vpop.permute.xlu2 %8884 }
 0xac1   : > { %v7360_v43 = vmul.f32 %v16905_v58, %v7107_v38  ;;  %v7179_v14 = vmul.f32 %v17389_v1, %v17346_v13  ;;  %12338 = vmatpush.xpose.msk.msra.mxu0 %vm564_vm1, %v20074_v24  ;;  %v17404_v35 = vpop.eup %13238  ;;  %v7237_v10 = vmul.f32 %v17336_v18, %v7236_v15  ;;  %v7205_v19 = vsel %vm17368_vm11, %v7204_v27, %v7200_v59  ;;  %v17455_v51 = vpop.xlane.xlu0 %6878  ;;  %v20084_v24 = vld [vmem:[#allocation24_spill] sm:$0xff] }
 0xac2   : > { %vm7337_vm3 = vweird.f32 %v17330_v32  ;;  %13240 = vrcp.f32 %v17387_v2  ;;  %v7209_v58 = vmul.f32 %v17352_v31, %v7208_v0  ;;  %v7336_v3 = vadd.f32 %v13235_v30, %v7335_v9  ;;  %v20083_v9 = vld [vmem:[#allocation169_spill] sm:$0xff] }
 0xac3   : > { %v7180_v44 = vsub.f32 1.0, %v7179_v14  ;;  %v7263_v41 = vmul.f32 %v17404_v35, %v17360_v60  ;;  %12314 = vmatmul.msk.f32.vlgmr.msra.gmra.mxu3 %vm564_vm1, %v7360_v43  ;;  %vm7339_vm4 = vmor %vm7337_vm3, %vm7338_vm2  ;;  %vm7342_vm5 = vcmp.eq.f32.partialorder %v7341_v6, 8.507059e+37  ;;  %v7344_v11 = vor.u32 1.1754944e-38, %v7343_v28  ;;  %v20082_v6 = vld [vmem:[#allocation66_spill] sm:$0xff] }
 0xac4   : > { %v7187_v33 = vand.u32 2147483647, %v17346_v13  ;;  %v7189_v32 = vand.u32 2147483648, %v17346_v13  ;;  %7971 = vmatpush.msra.mxu3 %v12760_v36  ;;  %v7340_v12 = vsel %vm7339_vm4, %v13235_v30, %v7336_v3  ;;  %vm7184_vm7 = vweird.f32 %v17389_v1 }
 0xac5   : > { %v7181_v53 = vmul.f32 %v17389_v1, %v7180_v44  ;;  %13242 = vrcp.f32 %v17395_v4  ;;  %v7367_v62 = vmul.f32 %v16891_v47, %v7205_v19  ;;  %vm7212_vm8 = vweird.f32 %v17352_v31  ;;  %v20087_v44 = vld [vmem:[#allocation141_spill] sm:$0xff]  ;;  %v20106_v19 = vld [vmem:[#allocation139_spill] sm:$0xff] }
 0xac6   : > { %v7345_v17 = vsel %vm7342_vm5, %v7344_v11, %v7340_v12  ;;  %vm7183_vm10 = vweird.f32 %v17346_v13  ;;  %v7210_v45 = vadd.f32 %v17352_v31, %v7209_v58  ;;  %v7264_v63 = vsub.f32 1.0, %v7263_v41 }
 0xac7   : > { %v7377_v36 = vmul.f32 %v20075_v29, %v7345_v17  ;;  %v7182_v48 = vadd.f32 %v17389_v1, %v7181_v53  ;;  %v7238_v8 = vadd.f32 %v17336_v18, %v7237_v10  ;;  %v7217_v16 = vand.u32 2147483648, %v17309_v23  ;;  %vm7185_vm11 = vmor %vm7183_vm10, %vm7184_vm7  ;;  %12321 = vmatmul.msk.f32.vlgmr.msrb.gmra.mxu2 %vm564_vm1, %v7367_v62 }
 0xac8   : > { %v17432_v49 = vpop.eup %13240  ;;  %v7190_v47 = vor.u32 1.1754944e-38, %v7189_v32  ;;  %13244 = vrcp.f32 %v17424_v56  ;;  %vm7211_vm6 = vweird.f32 %v17309_v23  ;;  %v7215_v13 = vand.u32 2147483647, %v17309_v23  ;;  %8153 = vmatpush.msrb.mxu2 %v12774_v61  ;;  %v17530_v17 = vpop.permute.xlu2 %8938  ;;  %v20113_v32 = vld [vmem:[#allocation165_spill] sm:$0xff] }
 0xac9   : > { %v7186_v55 = vsel %vm7185_vm11, %v17389_v1, %v7182_v48  ;;  %vm7188_vm9 = vcmp.eq.f32.partialorder %v7187_v33, 8.507059e+37  ;;  %12331 = vmatmul.msk.f32.vlgmr.msrb.gmra.mxu0 %vm564_vm1, %v7377_v36  ;;  %v12770_v20 = vunpack.i.h.bf16 %v20053_v52  ;;  %vm7239_vm12 = vweird.f32 %v17198_v7  ;;  %vm17449_vm13 = vmor %vm7211_vm6, %vm7212_vm8  ;;  %v20090_v48 = vld [vmem:[#allocation168_spill] sm:$0xff]  ;;  %v20095_v52 = vld [vmem:[#allocation145_spill] sm:$0xff] }
 0xaca   : > { %v7243_v57 = vand.u32 2147483647, %v17198_v7  ;;  %v7191_v23 = vsel %vm7188_vm9, %v7190_v47, %v7186_v55  ;;  %12346 = vmatpush.xpose.msk.msrb.mxu0 %vm564_vm1, %v20078_v40  ;;  %vm17461_vm15 = vmor %vm7239_vm12, %vm7240_vm14  ;;  %v7214_v61 = vsel %vm17449_vm13, %v17352_v31, %v7210_v45  ;;  %v7265_v25 = vmul.f32 %v17404_v35, %v7264_v63 }
 0xacb   : > { %v17457_v26 = vpop.eup %13242  ;;  %v7366_v46 = vmul.f32 %v20081_v50, %v7191_v23  ;;  %v7319_v15 = vmul.f32 %v17432_v49, %v17387_v2  ;;  %12318 = vmatmul.msk.f32.vlgmr.msrb.gmra.mxu3 %vm564_vm1, %v17339_v34  ;;  %v12775_v5 = vunpack.i.h.bf16 %v20069_v54  ;;  %v7242_v59 = vsel %vm17461_vm15, %v17336_v18, %v7238_v8  ;;  %v20092_v23 = vld [vmem:[#allocation95_spill] sm:$0xff] }
 0xacc   : > { %v7218_v22 = vor.u32 1.1754944e-38, %v7217_v16  ;;  %v7291_v31 = vmul.f32 %v17457_v26, %v17395_v4  ;;  %8075 = vmatpush.msrb.mxu3 %v12770_v20  ;;  %v7246_v0 = vor.u32 1.1754944e-38, %v7245_v37  ;;  %vm7216_vm14 = vcmp.eq.f32.partialorder %v7215_v13, 8.507059e+37  ;;  %v20091_v20 = vld [vmem:[#allocation116_spill] sm:$0xff]  ;;  %v20096_v50 = vld [vmem:[#allocation11_spill] sm:$0xff] }
 0xacd   : > { %13246 = vrcp.f32 %v17455_v51  ;;  %12320 = vmatmul.msk.f32.vlgmr.msrb.gmra.mxu1 %vm564_vm1, %v7366_v46  ;;  %vm7244_vm2 = vcmp.eq.f32.partialorder %v7243_v57, 8.507059e+37  ;;  %v7266_v1 = vadd.f32 %v17404_v35, %v7265_v25  ;;  %vm7268_vm3 = vweird.f32 %v17404_v35 }
 0xace   : > { %v17486_v34 = vpop.eup %13244  ;;  %v7219_v54 = vsel %vm7216_vm14, %v7218_v22, %v7214_v61  ;;  %v7292_v39 = vsub.f32 1.0, %v7291_v31  ;;  %8127 = vmatpush.msrb.mxu1 %v12775_v5  ;;  %v7247_v18 = vsel %vm7244_vm2, %v7246_v0, %v7242_v59  ;;  %v7320_v27 = vsub.f32 1.0, %v7319_v15  ;;  %v20097_v59 = vld [vmem:[#allocation161_spill] sm:$0xff] }
 0xacf   : > { %v7273_v7 = vand.u32 2147483648, %v17360_v60  ;;  %v7305_v38 = vmul.f32 %v17486_v34, %v17424_v56  ;;  %v7368_v28 = vmul.f32 %v20082_v6, %v7219_v54  ;;  %vm7267_vm4 = vweird.f32 %v17360_v60 }
 0xad0   : > { %v7293_v37 = vmul.f32 %v17457_v26, %v7292_v39  ;;  %v7271_v43 = vand.u32 2147483647, %v17360_v60  ;;  %vm7296_vm5 = vweird.f32 %v17457_v26  ;;  %v12780_v14 = vunpack.i.h.bf16 %v20049_v42  ;;  %vm17502_vm7 = vmor %vm7267_vm4, %vm7268_vm3  ;;  %v20098_v39 = vld [vmem:[#allocation26_spill] sm:$0xff] }
 0xad1   : > { %12339 = vmatmul.msk.f32.vlgmr.msra.gmra.mxu0 %vm564_vm1, %v20083_v9  ;;  %v7370_v10 = vmul.f32 %v20084_v24, %v7247_v18  ;;  %v7301_v3 = vand.u32 2147483648, %v17395_v4  ;;  %v7270_v41 = vsel %vm17502_vm7, %v17404_v35, %v7266_v1  ;;  %v7321_v42 = vmul.f32 %v17432_v49, %v7320_v27  ;;  %v20099_v1 = vld [vmem:[#allocation91_spill] sm:$0xff]  ;;  %v17572_v27 = vpop.permute.xlu2 %8994  ;;  %v20105_v24 = vld [vmem:[#allocation109_spill] sm:$0xff] }
 0xad2   : > { %v7294_v58 = vadd.f32 %v17457_v26, %v7293_v37  ;;  %12354 = vmatpush.xpose.msk.msra.mxu0 %vm564_vm1, %v20087_v44  ;;  %vm7295_vm8 = vweird.f32 %v17395_v4  ;;  %v7299_v11 = vand.u32 2147483647, %v17395_v4  ;;  %v7274_v33 = vor.u32 1.1754944e-38, %v7273_v7  ;;  %v17558_v15 = vpop.permute.xlu1 %8882  ;;  %v20100_v37 = vld [vmem:[#allocation89_spill] sm:$0xff] }
 0xad3   : > { %v13247_v60 = vpop.eup %13246  ;;  %12322 = vmatmul.msk.f32.vlgmr.msra.gmra.mxu3 %vm564_vm1, %v7368_v28  ;;  %vm17519_vm10 = vmor %vm7295_vm8, %vm7296_vm5  ;;  %v7306_v12 = vsub.f32 1.0, %v7305_v38  ;;  %vm7272_vm11 = vcmp.eq.f32.partialorder %v7271_v43, 8.507059e+37  ;;  %v7329_v62 = vand.u32 2147483648, %v17387_v2  ;;  %vm7324_vm6 = vweird.f32 %v17432_v49  ;;  %v20101_v28 = vld [vmem:[#allocation92_spill] sm:$0xff] }
 0xad4   : > { %v7249_v53 = vmul.f32 %v13247_v60, %v17455_v51  ;;  %8179 = vmatpush.msra.mxu3 %v12780_v14  ;;  %v17524_v35 = vpop.permute.xlu0 %8940  ;;  %v7298_v4 = vsel %vm17519_vm10, %v17457_v26, %v7294_v58  ;;  %v7275_v45 = vsel %vm7272_vm11, %v7274_v33, %v7270_v41  ;;  %v7302_v29 = vor.u32 1.1754944e-38, %v7301_v3  ;;  %v20102_v43 = vld [vmem:[#allocation136_spill] sm:$0xff]  ;;  %v20104_v14 = vld [vmem:[#allocation111_spill] sm:$0xff]  ;;  %v20107_v3 = vld [vmem:[#allocation133_spill] sm:$0xff] }
 0xad5   : > { %12324 = vmatmul.msk.f32.vlgmr.msra.gmra.mxu1 %vm564_vm1, %v7370_v10  ;;  %v7322_v63 = vadd.f32 %v17432_v49, %v7321_v42  ;;  %vm7300_vm9 = vcmp.eq.f32.partialorder %v7299_v11, 8.507059e+37  ;;  %v7257_v8 = vand.u32 2147483647, %v17455_v51  ;;  %v7259_v16 = vand.u32 2147483648, %v17455_v51  ;;  %v20109_v41 = vld [vmem:[#allocation134_spill] sm:$0xff]  ;;  %v20112_v33 = vld [vmem:[#allocation184_spill] sm:$0xff] }
 0xad6   : > { %v7250_v36 = vsub.f32 1.0, %v7249_v53  ;;  %12332 = vmatpush.xpose.msk.msra.mxu1 %vm564_vm1, %v20090_v48  ;;  %v7303_v47 = vsel %vm7300_vm9, %v7302_v29, %v7298_v4  ;;  %v7307_v13 = vmul.f32 %v17486_v34, %v7306_v12  ;;  %vm7254_vm12 = vweird.f32 %v13247_v60  ;;  %v20110_v42 = vld [vmem:[#allocation98_spill] sm:$0xff]  ;;  %v20117_v29 = vld [vmem:[#allocation149_spill] sm:$0xff] }
 0xad7   : > { %v7372_v57 = vmul.f32 %v20091_v20, %v7275_v45  ;;  %vm7323_vm13 = vweird.f32 %v17387_v2  ;;  %v7327_v30 = vand.u32 2147483647, %v17387_v2  ;;  %vm7253_vm14 = vweird.f32 %v17455_v51  ;;  %v20111_v11 = vld [vmem:[#allocation170_spill] sm:$0xff]  ;;  %v20116_v45 = vld [vmem:[#allocation148_spill] sm:$0xff]  ;;  %v20118_v48 = vld [vmem:[#allocation181_spill] sm:$0xff] }
 0xad8   : > { %v7251_v55 = vmul.f32 %v13247_v60, %v7250_v36  ;;  %vm17547_vm15 = vmor %vm7323_vm13, %vm7324_vm6  ;;  %v7330_v2 = vor.u32 1.1754944e-38, %v7329_v62  ;;  %v7374_v46 = vmul.f32 %v20096_v50, %v7303_v47  ;;  %v7260_v25 = vor.u32 1.1754944e-38, %v7259_v16  ;;  %v20114_v12 = vld [vmem:[#allocation142_spill] sm:$0xff]  ;;  %v20121_v16 = vld [vmem:[#allocation135_spill] sm:$0xff] }
 0xad9   : > { %12347 = vmatmul.msk.f32.vlgmr.msrb.gmra.mxu0 %vm564_vm1, %v20092_v23  ;;  %v7326_v61 = vsel %vm17547_vm15, %v17432_v49, %v7322_v63  ;;  %vm7255_vm2 = vmor %vm7253_vm14, %vm7254_vm12  ;;  %v7308_v5 = vadd.f32 %v17486_v34, %v7307_v13  ;;  %vm7310_vm3 = vweird.f32 %v17486_v34  ;;  %vm7258_vm4 = vcmp.eq.f32.partialorder %v7257_v8, 8.507059e+37  ;;  %v9053_v44 = vpop.permute.xlu2 %9052  ;;  %v20115_v4 = vld [vmem:[#allocation106_spill] sm:$0xff]  ;;  %v20119_v63 = vld [vmem:[#allocation143_spill] sm:$0xff] }
 0xada   : > { %v7252_v26 = vadd.f32 %v13247_v60, %v7251_v55  ;;  %12362 = vmatpush.xpose.msk.msrb.mxu0 %vm564_vm1, %v20095_v52  ;;  %vm7328_vm5 = vcmp.eq.f32.partialorder %v7327_v30, 8.507059e+37  ;;  %v7315_v49 = vand.u32 2147483648, %v17424_v56  ;;  %vm7309_vm7 = vweird.f32 %v17424_v56  ;;  %v20120_v8 = vld [vmem:[#allocation129_spill] sm:$0xff]  ;;  %v20122_v47 = vld [vmem:[#allocation163_spill] sm:$0xff]  ;;  %v20123_v55 = vld [vmem:[#allocation144_spill] sm:$0xff] }
 0xadb   : > { %12326 = vmatmul.msk.f32.vlgmr.msrb.gmra.mxu3 %vm564_vm1, %v7372_v57  ;;  %v7331_v0 = vsel %vm7328_vm5, %v7330_v2, %v7326_v61  ;;  %v7313_v54 = vand.u32 2147483647, %v17424_v56  ;;  %vm7311_vm8 = vmor %vm7309_vm7, %vm7310_vm3  ;;  %v20103_v56 = vld [vmem:[#allocation113_spill] sm:$0xff]  ;;  %v20124_v20 = vld [vmem:[#allocation150_spill] sm:$0xff] }
 0xadc   : > { %v7256_v51 = vsel %vm7255_vm2, %v13247_v60, %v7252_v26  ;;  %12336 = vmatpush.xpose.msk.msrb.mxu3 %vm564_vm1, %v20097_v59  ;;  %v8969_v22 = vpop.permute.xlu0 %8968  ;;  %v7312_v7 = vsel %vm7311_vm8, %v17486_v34, %v7308_v5  ;;  %v7376_v38 = vmul.f32 %v20100_v37, %v7331_v0  ;;  %v7316_v6 = vor.u32 1.1754944e-38, %v7315_v49  ;;  %v8997_v34 = vpop.permute.xlu1 %8996  ;;  %v20108_v60 = vld [vmem:[#allocation70_spill] sm:$0xff]  ;;  %v20125_v30 = vld [vmem:[#allocation155_spill] sm:$0xff]  ;;  %v20128_v52 = vld [vmem:[#allocation157_spill] sm:$0xff] }
 0xadd   : > { %v7261_v31 = vsel %vm7258_vm4, %v7260_v25, %v7256_v51  ;;  %12328 = vmatmul.msk.f32.vlgmr.msrb.gmra.mxu1 %vm564_vm1, %v7374_v46  ;;  %vm7314_vm10 = vcmp.eq.f32.partialorder %v7313_v54, 8.507059e+37  ;;  %v20126_v23 = vld [vmem:[#allocation19_spill] sm:$0xff]  ;;  %v20129_v2 = vld [vmem:[#allocation117_spill] sm:$0xff]  ;;  %v20131_v25 = vld [vmem:[#allocation28_spill] sm:$0xff] }
 0xade   : > { %v7371_v18 = vmul.f32 %v20098_v39, %v7261_v31  ;;  %12340 = vmatpush.xpose.msk.msrb.mxu1 %vm564_vm1, %v20099_v1  ;;  %v7317_v9 = vsel %vm7314_vm10, %v7316_v6, %v7312_v7  ;;  %v20127_v26 = vld [vmem:[#allocation151_spill] sm:$0xff]  ;;  %v20130_v50 = vld [vmem:[#allocation121_spill] sm:$0xff]  ;;  %v20132_v5 = vld [vmem:[#allocation156_spill] sm:$0xff] }
 0xadf   : > { %v7375_v58 = vmul.f32 %v20106_v19, %v7317_v9  ;;  %v20134_v59 = vld [vmem:[#allocation147_spill] sm:$0xff]  ;;  %v20135_v49 = vld [vmem:[#allocation130_spill] sm:$0xff]  ;;  %v20136_v31 = vld [vmem:[#allocation137_spill] sm:$0xff]  ;;  %v17692_v9 = vpop.f32.mrf.mxu1 }
 0xae0   : > { %12325 = vmatmul.msk.f32.vlgmr.msra.gmra.mxu2 %vm564_vm1, %v7371_v18  ;;  %v20137_v54 = vld [vmem:[#allocation146_spill] sm:$0xff]  ;;  %v20139_v18 = vld [vmem:[#allocation105_spill] sm:$0xff]  ;;  %v20140_v1 = vld [vmem:[#allocation27_spill] sm:$0xff]  ;;  %20144 = vst [vmem:[#allocation101_spill] sm:$0xff] %v17692_v9 }
 0xae1   : > { %12334 = vmatpush.xpose.msk.msra.mxu2 %vm564_vm1, %v20101_v28  ;;  %12355 = vmatmul.msk.f32.vlgmr.msra.gmra.mxu0 %vm564_vm1, %v20102_v43  ;;  %v9079_v36 = vpop.permute.xlu2 %9078  ;;  %v20138_v39 = vld [vmem:[#allocation110_spill] sm:$0xff]  ;;  %v20141_v7 = vld [vmem:[#allocation99_spill] sm:$0xff]  ;;  %v20143_v6 = vld [vmem:[#allocation152_spill] sm:$0xff] }
 0xae2   : > { %12370 = vmatpush.xpose.msk.msra.mxu0 %vm564_vm1, %v20103_v56 }
 0xae3   : > { %12330 = vmatmul.msk.f32.vlgmr.msra.gmra.mxu3 %vm564_vm1, %v7376_v38 }
 0xae4   : > { %12344 = vmatpush.xpose.msk.msra.mxu3 %vm564_vm1, %v20104_v14  ;;  %v17588_v10 = vpop.permute.xlu0 %9024  ;;  %v8967_v53 = vpop.permute.xlu1 %8966  ;;  %v20145_v14 = vld [vmem:[#allocation94_spill] sm:$0xff] }
 0xae5   : > { %12333 = vmatmul.msk.f32.vlgmr.msra.gmra.mxu1 %vm564_vm1, %v20105_v24 }
 0xae6   : > { %12348 = vmatpush.xpose.msk.msra.mxu1 %vm564_vm1, %v20107_v3 }
 0xae8   : > { %12329 = vmatmul.msk.f32.vlgmr.msrb.gmra.mxu2 %vm564_vm1, %v7375_v58  ;;  %v17709_v58 = vpop.f32.mrf.mxu2 }
 0xae9   : > { %12342 = vmatpush.xpose.msk.msrb.mxu2 %vm564_vm1, %v20108_v60  ;;  %12363 = vmatmul.msk.f32.vlgmr.msrb.gmra.mxu0 %vm564_vm1, %v20109_v41  ;;  %v12783_v40 = vpop.permute.xlu2 %12782  ;;  %20150 = vst [vmem:[#allocation13_spill] sm:$0xff] %v17709_v58 }
 0xaea   : > { %12378 = vmatpush.xpose.msk.msrb.mxu0 %vm564_vm1, %v20110_v42  ;;  %v12785_v61 = vunpack.i.h.bf16 %v12783_v40  ;;  %v12784_v37 = vunpack.i.l.bf16 %v12783_v40 }
 0xaeb   : > { %12337 = vmatmul.msk.f32.vlgmr.msrb.gmra.mxu3 %vm564_vm1, %v20111_v11 }
 0xaec   : > { %12352 = vmatpush.xpose.msk.msrb.mxu3 %vm564_vm1, %v20112_v33  ;;  %v17608_v62 = vpop.permute.xlu0 %9022  ;;  %v9081_v13 = vpop.permute.xlu1 %9080 }
 0xaed   : > { %12341 = vmatmul.msk.f32.vlgmr.msrb.gmra.mxu1 %vm564_vm1, %v20113_v32 }
 0xaee   : > { %12356 = vmatpush.xpose.msk.msrb.mxu1 %vm564_vm1, %v20114_v12 }
 0xaf0   : > { %12335 = vmatmul.msk.f32.vlgmr.msra.gmra.mxu2 %vm564_vm1, %v20115_v4 }
 0xaf1   : > { %12350 = vmatpush.xpose.msk.msra.mxu2 %vm564_vm1, %v20116_v45  ;;  %12371 = vmatmul.msk.f32.vlgmr.msra.gmra.mxu0 %vm564_vm1, %v20117_v29 }
 0xaf2   : > { %12386 = vmatpush.xpose.msk.msra.mxu0 %vm564_vm1, %v8969_v22  ;;  %v17649_v51 = vpop.f32.mrf.mxu0 }
 0xaf3   : > { %12345 = vmatmul.msk.f32.vlgmr.msra.gmra.mxu3 %vm564_vm1, %v20118_v48  ;;  %20133 = vst [vmem:[#allocation158_spill] sm:$0xff] %v17649_v51 }
 0xaf4   : > { %12360 = vmatpush.xpose.msk.msra.mxu3 %vm564_vm1, %v20119_v63  ;;  %v9051_v57 = vpop.permute.xlu0 %9050 }
 0xaf5   : > { %12349 = vmatmul.msk.f32.vlgmr.msra.gmra.mxu1 %vm564_vm1, %v20120_v8  ;;  %v12788_v0 = vpop.permute.xlu1 %12787  ;;  %v20161_v8 = vld [vmem:[#allocation87_spill] sm:$0xff] }
 0xaf6   : > { %12364 = vmatpush.xpose.msk.msra.mxu1 %vm564_vm1, %v20121_v16  ;;  %v12790_v43 = vunpack.i.h.bf16 %v12788_v0 }
 0xaf8   : > { %12343 = vmatmul.msk.f32.vlgmr.msrb.gmra.mxu2 %vm564_vm1, %v20122_v47 }
 0xaf9   : > { %12358 = vmatpush.xpose.msk.msrb.mxu2 %vm564_vm1, %v20123_v55  ;;  %12379 = vmatmul.msk.f32.vlgmr.msrb.gmra.mxu0 %vm564_vm1, %v20124_v20 }
 0xafa   : > { %12394 = vmatpush.xpose.msk.msrb.mxu0 %vm564_vm1, %v9081_v13 }
 0xafb   : > { %12353 = vmatmul.msk.f32.vlgmr.msrb.gmra.mxu3 %vm564_vm1, %v20125_v30 }
 0xafc   : > { %12368 = vmatpush.xpose.msk.msrb.mxu3 %vm564_vm1, %v20126_v23 }
 0xafd   : > { %12357 = vmatmul.msk.f32.vlgmr.msrb.gmra.mxu1 %vm564_vm1, %v20127_v26 }
 0xafe   : > { %12372 = vmatpush.xpose.msk.msrb.mxu1 %vm564_vm1, %v20128_v52  ;;  %v12793_v46 = vpop.permute.xlu0 %12792 }
 0xaff   : > { %v12794_v22 = vunpack.i.l.bf16 %v12793_v46  ;;  %v12795_v28 = vunpack.i.h.bf16 %v12793_v46 }
 0xb00   : > { %12351 = vmatmul.msk.f32.vlgmr.msra.gmra.mxu2 %vm564_vm1, %v20129_v2 }
 0xb01   : > { %12366 = vmatpush.xpose.msk.msra.mxu2 %vm564_vm1, %v20130_v50  ;;  %12387 = vmatmul.msk.f32.vlgmr.msra.gmra.mxu0 %vm564_vm1, %v8967_v53 }
 0xb02   : > { %10037 = vmatpush.msra.mxu0 %v12785_v61 }
 0xb03   : > { %12361 = vmatmul.msk.f32.vlgmr.msra.gmra.mxu3 %vm564_vm1, %v20131_v25 }
 0xb04   : > { %12376 = vmatpush.xpose.msk.msra.mxu3 %vm564_vm1, %v20132_v5 }
 0xb05   : > { %12365 = vmatmul.msk.f32.vlgmr.msra.gmra.mxu1 %vm564_vm1, %v20134_v59 }
 0xb06   : > { %12380 = vmatpush.xpose.msk.msra.mxu1 %vm564_vm1, %v17472_v21  ;;  %v17667_v21 = vpop.f32.mrf.mxu0 }
 0xb08   : > { %12359 = vmatmul.msk.f32.vlgmr.msrb.gmra.mxu2 %vm564_vm1, %v20135_v49  ;;  %v17707_v19 = vpop.f32.mrf.mxu3 }
 0xb09   : > { %12374 = vmatpush.xpose.msk.msrb.mxu2 %vm564_vm1, %v20136_v31  ;;  %12395 = vmatmul.msk.f32.vlgmr.msrb.gmra.mxu0 %vm564_vm1, %v9079_v36  ;;  %20149 = vst [vmem:[#allocation93_spill] sm:$0xff] %v17707_v19  ;;  %v17717_v41 = vpop.f32.mrf.mxu2 }
 0xb0a   : > { %10141 = vmatpush.msrb.mxu0 %v12794_v22  ;;  %20153 = vst [vmem:[#allocation96_spill] sm:$0xff] %v17717_v41 }
 0xb0b   : > { %12369 = vmatmul.msk.f32.vlgmr.msrb.gmra.mxu3 %vm564_vm1, %v20137_v54 }
 0xb0c   : > { %12384 = vmatpush.xpose.msk.msrb.mxu3 %vm564_vm1, %v17524_v35  ;;  %v17676_v35 = vpop.permute.xlu1 %12797 }
 0xb0d   : > { %12373 = vmatmul.msk.f32.vlgmr.msrb.gmra.mxu1 %vm564_vm1, %v20138_v39 }
 0xb0e   : > { %12388 = vmatpush.xpose.msk.msrb.mxu1 %vm564_vm1, %v8997_v34  ;;  %v17680_v38 = vpop.f32.mrf.mxu0 }
 0xb0f   : > { %20142 = vst [vmem:[#allocation104_spill] sm:$0xff] %v17680_v38 }
 0xb10   : > { %12367 = vmatmul.msk.f32.vlgmr.msra.gmra.mxu2 %vm564_vm1, %v20139_v18 }
 0xb11   : > { %12382 = vmatpush.xpose.msk.msra.mxu2 %vm564_vm1, %v20140_v1 }
 0xb13   : > { %12377 = vmatmul.msk.f32.vlgmr.msra.gmra.mxu3 %vm564_vm1, %v20141_v7 }
 0xb14   : > { %12392 = vmatpush.xpose.msk.msra.mxu3 %vm564_vm1, %v9053_v44  ;;  %v17690_v56 = vpop.permute.xlu1 %12802  ;;  %v17715_v60 = vpop.f32.mrf.mxu3 }
 0xb15   : > { %12381 = vmatmul.msk.f32.vlgmr.msra.gmra.mxu1 %vm564_vm1, %v17558_v15  ;;  %v12789_v15 = vunpack.i.l.bf16 %v12788_v0  ;;  %v12804_v24 = vunpack.i.l.bf16 %v17690_v56  ;;  %20152 = vst [vmem:[#allocation140_spill] sm:$0xff] %v17715_v60 }
 0xb16   : > { %9959 = vmatpush.msra.mxu1 %v12784_v37 }
 0xb18   : > { %12375 = vmatmul.msk.f32.vlgmr.msrb.gmra.mxu2 %vm564_vm1, %v20143_v6 }
 0xb19   : > { %12390 = vmatpush.xpose.msk.msrb.mxu2 %vm564_vm1, %v17588_v10  ;;  %v17696_v34 = vpop.f32.mrf.mxu0 }
 0xb1a   : > { %20146 = vst [vmem:[#allocation82_spill] sm:$0xff] %v17696_v34 }
 0xb1b   : > { %12385 = vmatmul.msk.f32.vlgmr.msrb.gmra.mxu3 %vm564_vm1, %v17530_v17  ;;  %v12799_v17 = vunpack.i.l.bf16 %v17676_v35 }
 0xb1c   : > { %10011 = vmatpush.msrb.mxu3 %v12795_v28 }
 0xb1d   : > { %12389 = vmatmul.msk.f32.vlgmr.msrb.gmra.mxu1 %vm564_vm1, %v17572_v27  ;;  %v17701_v27 = vpop.f32.mrf.mxu1 }
 0xb1e   : > { %10063 = vmatpush.msrb.mxu1 %v12790_v43  ;;  %20147 = vst [vmem:[#allocation138_spill] sm:$0xff] %v17701_v27 }
 0xb20   : > { %12383 = vmatmul.msk.f32.vlgmr.msra.gmra.mxu2 %vm564_vm1, %v20145_v14 }
 0xb21   : > { %9985 = vmatpush.msra.mxu2 %v12789_v15 }
 0xb22   : > { %v17705_v10 = vpop.f32.mrf.mxu0  ;;  %v17725_v32 = vpop.f32.mrf.mxu2 }
 0xb23   : > { %12393 = vmatmul.msk.f32.vlgmr.msra.gmra.mxu3 %vm564_vm1, %v9051_v57  ;;  %20148 = vst [vmem:[#allocation162_spill] sm:$0xff] %v17705_v10 }
 0xb24   : > { %10115 = vmatpush.msra.mxu3 %v12804_v24 }
 0xb25   : > { %v17711_v3 = vpop.f32.mrf.mxu1 }
 0xb28   : > { %12391 = vmatmul.msk.f32.vlgmr.msrb.gmra.mxu2 %vm564_vm1, %v17608_v62 }
 0xb29   : > { %10089 = vmatpush.msrb.mxu2 %v12799_v17 }
 0xb2b   : > { %v17713_v44 = vpop.f32.mrf.mxu0  ;;  %v17723_v33 = vpop.f32.mrf.mxu3 }
 0xb2c   : > { %20151 = vst [vmem:[#allocation50_spill] sm:$0xff] %v17713_v44 }
 0xb2d   : > { %v17719_v42 = vpop.f32.mrf.mxu1 }
 0xb35   : > { %v17727_v12 = vpop.f32.mrf.mxu1 }
 0xb36   : > { %20155 = vst [vmem:[#allocation160_spill] sm:$0xff] %v17727_v12 }
 0xb3a   : > { %v17733_v4 = vpop.f32.mrf.mxu2 }
 0xb3d   : > { %v17721_v11 = vpop.f32.mrf.mxu0 }
 0xb3e   : > { %20154 = vst [vmem:[#allocation119_spill] sm:$0xff] %v17721_v11 }
 0xb42   : > { %v17739_v63 = vpop.f32.mrf.mxu2 }
 0xb43   : > { %20160 = vst [vmem:[#allocation131_spill] sm:$0xff] %v17739_v63 }
 0xb46   : > { %v17729_v53 = vpop.f32.mrf.mxu0  ;;  %v17731_v62 = vpop.f32.mrf.mxu3 }
 0xb47   : > { %20156 = vst [vmem:[#allocation32_spill] sm:$0xff] %v17729_v53 }
 0xb48   : > { %20157 = vst [vmem:[#allocation153_spill] sm:$0xff] %v17731_v62 }
 0xb4a   : > { %v17735_v45 = vpop.f32.mrf.mxu1  ;;  %v17752_v57 = vpop.f32.mrf.mxu2 }
 0xb4b   : > { %20158 = vst [vmem:[#allocation12_spill] sm:$0xff] %v17735_v45 }
 0xb4c   : > { %20165 = vst [vmem:[#allocation25_spill] sm:$0xff] %v17752_v57 }
 0xb4e   : > { %v8319_v29 = vpop.f32.mrf.mxu0  ;;  %v17737_v36 = vpop.f32.mrf.mxu3 }
 0xb4f   : > { %20159 = vst [vmem:[#allocation74_spill] sm:$0xff] %v17737_v36  ;;  %v9109_v48 = vmul.f32 0.17677669, %v8319_v29 }
 0xb51   : > { %v17742_v16 = vadd.f32 %v9109_v48, %v20161_v8 }
 0xb52   : > { %v17744_v47 = vpop.f32.mrf.mxu1 }
 0xb53   : > { %20162 = vst [vmem:[#allocation34_spill] sm:$0xff] %v17744_v47  ;;  %v9179_v13 = vsel %vm564_vm1, %v17742_v16, -inf }
 0xb54   : > { %9180 = vmax.xlane.f32.xlu1 %v9179_v13 }
 0xb56   : > { %v17748_v55 = vpop.f32.mrf.mxu3  ;;  %v8431_v23 = vpop.f32.mrf.mxu0 }
 0xb57   : > { %20163 = vst [vmem:[#allocation14_spill] sm:$0xff] %v17748_v55  ;;  %v9113_v49 = vmul.f32 0.17677669, %v8431_v23 }
 0xb59   : > { %v17773_v18 = vadd.f32 %v9113_v49, %v20161_v8 }
 0xb5a   : > { %v17750_v20 = vpop.f32.mrf.mxu1 }
 0xb5b   : > { %20164 = vst [vmem:[#allocation15_spill] sm:$0xff] %v17750_v20  ;;  %v9191_v28 = vsel %vm564_vm1, %v17773_v18, -inf }
 0xb5e   : > { %v17754_v30 = vpop.f32.mrf.mxu3  ;;  %v8543_v59 = vpop.f32.mrf.mxu0 }
 0xb5f   : > { %20166 = vst [vmem:[#allocation38_spill] sm:$0xff] %v17754_v30  ;;  %v9117_v43 = vmul.f32 0.17677669, %v8543_v59 }
 0xb61   : > { %v17786_v13 = vadd.f32 %v9117_v43, %v20161_v8 }
 0xb62   : > { %v8235_v40 = vpop.f32.mrf.mxu1 }
 0xb63   : > { %v17756_v26 = vpop.f32.mrf.mxu2  ;;  %v9106_v52 = vmul.f32 0.17677669, %v8235_v40  ;;  %v9203_v59 = vsel %vm564_vm1, %v17786_v13, -inf }
 0xb64   : > { %20167 = vst [vmem:[#allocation85_spill] sm:$0xff] %v17756_v26 }
 0xb65   : > { %v17759_v61 = vadd.f32 %v9106_v52, %v20161_v8 }
 0xb66   : > { %v17761_v2 = vpop.f32.mrf.mxu3  ;;  %v8655_v7 = vpop.f32.mrf.mxu0 }
 0xb67   : > { %20168 = vst [vmem:[#allocation53_spill] sm:$0xff] %v17761_v2  ;;  %v9170_v50 = vsel %vm564_vm1, %v17759_v61, -inf }
 0xb68   : > { %9171 = vmax.xlane.f32.xlu2 %v9170_v50 }
 0xb6a   : > { %v8347_v46 = vpop.f32.mrf.mxu1 }
 0xb6b   : > { %v17765_v25 = vpop.f32.mrf.mxu2  ;;  %v9110_v5 = vmul.f32 0.17677669, %v8347_v46 }
 0xb6c   : > { %20169 = vst [vmem:[#allocation59_spill] sm:$0xff] %v17765_v25 }
 0xb6d   : > { %v17768_v22 = vadd.f32 %v9110_v5, %v20161_v8 }
 0xb6e   : > { %v8291_v0 = vpop.f32.mrf.mxu3  ;;  %v8767_v50 = vpop.f32.mrf.mxu0 }
 0xb6f   : > { %v9182_v31 = vsel %vm564_vm1, %v17768_v22, -inf  ;;  %v9108_v40 = vmul.f32 0.17677669, %v8291_v0  ;;  %v9125_v41 = vmul.f32 0.17677669, %v8767_v50 }
 0xb70   : > { %9183 = vmax.xlane.f32.xlu1 %v9182_v31 }
 0xb72   : > { %v8459_v54 = vpop.f32.mrf.mxu1 }
 0xb73   : > { %v8263_v39 = vpop.f32.mrf.mxu2  ;;  %v9114_v6 = vmul.f32 0.17677669, %v8459_v54 }
 0xb74   : > { %v9107_v1 = vmul.f32 0.17677669, %v8263_v39  ;;  %v17798_v39 = vadd.f32 %v9108_v40, %v20161_v8 }
 0xb75   : > { %v17783_v29 = vadd.f32 %v9114_v6, %v20161_v8 }
 0xb76   : > { %v17776_v37 = vadd.f32 %v9107_v1, %v20161_v8  ;;  %v8403_v14 = vpop.f32.mrf.mxu3 }
 0xb77   : > { %v9194_v52 = vsel %vm564_vm1, %v17783_v29, -inf  ;;  %v9112_v46 = vmul.f32 0.17677669, %v8403_v14  ;;  %v9121_v14 = vmul.f32 0.17677669, %v8655_v7 }
 0xb78   : > { %v9173_v15 = vsel %vm564_vm1, %v17776_v37, -inf  ;;  %9192 = vmax.xlane.f32.xlu1 %v9191_v28 }
 0xb79   : > { %9174 = vmax.xlane.f32.xlu0 %v9173_v15  ;;  %v17801_v1 = vadd.f32 %v9112_v46, %v20161_v8  ;;  %v9176_v15 = vsel %vm564_vm1, %v17798_v39, -inf }
 0xb7a   : > { %v8571_v24 = vpop.f32.mrf.mxu1 }
 0xb7b   : > { %v8375_v17 = vpop.f32.mrf.mxu2  ;;  %v9118_v28 = vmul.f32 0.17677669, %v8571_v24  ;;  %v17818_v24 = vadd.f32 %v9121_v14, %v20161_v8 }
 0xb7c   : > { %v9111_v48 = vmul.f32 0.17677669, %v8375_v17  ;;  %v9188_v17 = vsel %vm564_vm1, %v17801_v1, -inf }
 0xb7d   : > { %v17815_v46 = vadd.f32 %v9118_v28, %v20161_v8 }
 0xb7e   : > { %v17789_v23 = vadd.f32 %v9111_v48, %v20161_v8  ;;  %v8515_v0 = vpop.f32.mrf.mxu3  ;;  %v17812_v48 = vpop.f32.mrf.mxu0 }
 0xb7f   : > { %v9206_v7 = vsel %vm564_vm1, %v17815_v46, -inf }
 0xb80   : > { %v9185_v5 = vsel %vm564_vm1, %v17789_v23, -inf  ;;  %9195 = vmax.xlane.f32.xlu1 %v9194_v52 }
 0xb81   : > { %9186 = vmax.xlane.f32.xlu2 %v9185_v5  ;;  %9204 = vmax.xlane.f32.xlu0 %v9203_v59 }
 0xb82   : > { %v8683_v49 = vpop.f32.mrf.mxu1 }
 0xb83   : > { %v8487_v31 = vpop.f32.mrf.mxu2  ;;  %v9122_v54 = vmul.f32 0.17677669, %v8683_v49 }
 0xb84   : > { %v9115_v59 = vmul.f32 0.17677669, %v8487_v31 }
 0xb85   : > { %v17804_v6 = vadd.f32 %v9122_v54, %v20161_v8  ;;  %v9215_v54 = vsel %vm564_vm1, %v17818_v24, -inf }
 0xb86   : > { %v8627_v5 = vpop.f32.mrf.mxu3  ;;  %v17825_v28 = vadd.f32 %v9115_v59, %v20161_v8  ;;  %v8991_v53 = vpop.f32.mrf.mxu0 }
 0xb87   : > { %v9218_v43 = vsel %vm564_vm1, %v17804_v6, -inf  ;;  %v9133_v60 = vmul.f32 0.17677669, %v8991_v53 }
 0xb88   : > { %9177 = vmax.xlane.f32.xlu1 %v9176_v15  ;;  %v9197_v2 = vsel %vm564_vm1, %v17825_v28, -inf }
 0xb89   : > { %9189 = vmax.xlane.f32.xlu0 %v9188_v17  ;;  %9219 = vmax.xlane.f32.xlu2 %v9218_v43  ;;  %v17843_v53 = vadd.f32 %v9133_v60, %v20161_v8 }
 0xb8a   : > { %v8795_v40 = vpop.f32.mrf.mxu1 }
 0xb8b   : > { %v8599_v52 = vpop.f32.mrf.mxu2  ;;  %v9126_v20 = vmul.f32 0.17677669, %v8795_v40 }
 0xb8c   : > { %v9119_v49 = vmul.f32 0.17677669, %v8599_v52  ;;  %v9116_v52 = vmul.f32 0.17677669, %v8515_v0 }
 0xb8e   : > { %v17828_v14 = vadd.f32 %v9119_v49, %v20161_v8 }
 0xb90   : > { %9207 = vmax.xlane.f32.xlu1 %v9206_v7  ;;  %v9209_v59 = vsel %vm564_vm1, %v17828_v14, -inf }
 0xb91   : > { %9216 = vmax.xlane.f32.xlu0 %v9215_v54  ;;  %v9120_v54 = vmul.f32 0.17677669, %v8627_v5 }
 0xb92   : > { %v8907_v43 = vpop.f32.mrf.mxu1 }
 0xb93   : > { %v8711_v15 = vpop.f32.mrf.mxu2  ;;  %v9130_v17 = vmul.f32 0.17677669, %v8907_v43  ;;  %v8739_v43 = vpop.f32.mrf.mxu3  ;;  %v17846_v0 = vadd.f32 %v9120_v54, %v20161_v8  ;;  %v17857_v54 = vadd.f32 %v9125_v41, %v20161_v8 }
 0xb95   : > { %v17831_v31 = vadd.f32 %v9130_v17, %v20161_v8  ;;  %v17840_v17 = vadd.f32 %v9116_v52, %v20161_v8  ;;  %v17854_v52 = vpop.permute.xlu1 %12817 }
 0xb97   : > { %v9242_v7 = vsel %vm564_vm1, %v17831_v31, -inf  ;;  %v9200_v5 = vsel %vm564_vm1, %v17840_v17, -inf }
 0xb98   : > { %9198 = vmax.xlane.f32.xlu1 %v9197_v2  ;;  %9243 = vmax.xlane.f32.xlu2 %v9242_v7  ;;  %v9251_v2 = vsel %vm564_vm1, %v17843_v53, -inf  ;;  %v9123_v7 = vmul.f32 0.17677669, %v8711_v15  ;;  %v9103_v15 = vpop.f32.mrf.mxu0 }
 0xb99   : > { %9210 = vmax.xlane.f32.xlu0 %v9209_v59  ;;  %v9212_v59 = vsel %vm564_vm1, %v17846_v0, -inf }
 0xb9a   : > { %v17863_v27 = vadd.f32 %v9123_v7, %v20161_v8  ;;  %v17874_v7 = vadd.f32 %v9126_v20, %v20161_v8 }
 0xb9b   : > { %v8823_v49 = vpop.f32.mrf.mxu2  ;;  %v8851_v60 = vpop.f32.mrf.mxu3 }
 0xb9c   : > { %v9127_v25 = vmul.f32 0.17677669, %v8823_v49  ;;  %v9221_v41 = vsel %vm564_vm1, %v17863_v27, -inf  ;;  %v9128_v44 = vmul.f32 0.17677669, %v8851_v60 }
 0xb9e   : > { %v17860_v50 = vadd.f32 %v9127_v25, %v20161_v8  ;;  %v17871_v25 = vpop.permute.xlu1 %12832 }
 0xba0   : > { %9201 = vmax.xlane.f32.xlu1 %v9200_v5  ;;  %9252 = vmax.xlane.f32.xlu2 %v9251_v2  ;;  %v9227_v5 = vsel %vm564_vm1, %v17857_v54, -inf  ;;  %v9233_v2 = vsel %vm564_vm1, %v17860_v50, -inf }
 0xba1   : > { %9213 = vmax.xlane.f32.xlu0 %v9212_v59  ;;  %v9137_v59 = vmul.f32 0.17677669, %v9103_v15  ;;  %v9129_v15 = vmul.f32 0.17677669, %v17812_v48 }
 0xba3   : > { %v8935_v49 = vpop.f32.mrf.mxu2  ;;  %v17880_v11 = vadd.f32 %v9137_v59, %v20161_v8 }
 0xba4   : > { %v9131_v51 = vmul.f32 0.17677669, %v8935_v49  ;;  %v8963_v49 = vpop.f32.mrf.mxu3 }
 0xba5   : > { %v9132_v19 = vmul.f32 0.17677669, %v8963_v49  ;;  %v9263_v20 = vsel %vm564_vm1, %v17880_v11, -inf  ;;  %v9124_v49 = vmul.f32 0.17677669, %v8739_v43 }
 0xba6   : > { %v17877_v40 = vadd.f32 %v9131_v51, %v20161_v8  ;;  %v17890_v51 = vadd.f32 %v9129_v15, %v20161_v8 }
 0xba7   : > { %v17893_v59 = vadd.f32 %v9132_v19, %v20161_v8  ;;  %v9019_v19 = vpop.f32.mrf.mxu1 }
 0xba8   : > { %9228 = vmax.xlane.f32.xlu1 %v9227_v5  ;;  %9234 = vmax.xlane.f32.xlu2 %v9233_v2  ;;  %v9230_v5 = vsel %vm564_vm1, %v17874_v7, -inf  ;;  %v9245_v2 = vsel %vm564_vm1, %v17877_v40, -inf  ;;  %v9239_v58 = vsel %vm564_vm1, %v17890_v51, -inf }
 0xba9   : > { %9222 = vmax.xlane.f32.xlu0 %v9221_v41  ;;  %v17895_v41 = vpop.permute.xlu1 %12847  ;;  %v9248_v26 = vsel %vm564_vm1, %v17893_v59, -inf }
 0xbab   : > { %v9047_v48 = vpop.f32.mrf.mxu2 }
 0xbac   : > { %v9135_v30 = vmul.f32 0.17677669, %v9047_v48  ;;  %v9134_v48 = vmul.f32 0.17677669, %v9019_v19 }
 0xbae   : > { %v17905_v15 = vadd.f32 %v9135_v30, %v20161_v8 }
 0xbb0   : > { %9231 = vmax.xlane.f32.xlu1 %v9230_v5  ;;  %9246 = vmax.xlane.f32.xlu2 %v9245_v2  ;;  %v17902_v5 = vadd.f32 %v9124_v49, %v20161_v8  ;;  %v9075_v2 = vpop.f32.mrf.mxu3  ;;  %v17921_v49 = vpop.permute.xlu0 %12812 }
 0xbb1   : > { %9264 = vmax.xlane.f32.xlu0 %v9263_v20  ;;  %v17907_v20 = vpop.permute.xlu2 %12807  ;;  %v17909_v43 = vpop.permute.xlu1 %12852  ;;  %v9136_v9 = vmul.f32 0.17677669, %v9075_v2 }
 0xbb2   : > { %v9224_v47 = vsel %vm564_vm1, %v17902_v5, -inf }
 0xbb3   : > { %v17919_v30 = vadd.f32 %v9136_v9, %v20161_v8  ;;  %v17931_v9 = vadd.f32 %v9128_v44, %v20161_v8 }
 0xbb5   : > { %v9260_v2 = vsel %vm564_vm1, %v17919_v30, -inf  ;;  %v9236_v60 = vsel %vm564_vm1, %v17931_v9, -inf }
 0xbb8   : > { %9240 = vmax.xlane.f32.xlu1 %v9239_v58  ;;  %9249 = vmax.xlane.f32.xlu2 %v9248_v26  ;;  %v9257_v58 = vsel %vm564_vm1, %v17905_v15, -inf  ;;  %v17916_v26 = vadd.f32 %v9134_v48, %v20161_v8 }
 0xbba   : > { %v9254_v19 = vsel %vm564_vm1, %v17916_v26, -inf }
 0xbc0   : > { %9225 = vmax.xlane.f32.xlu1 %v9224_v47  ;;  %9258 = vmax.xlane.f32.xlu2 %v9257_v58  ;;  %v17928_v47 = vpop.permute.xlu2 %12837  ;;  %v17935_v58 = vpop.permute.xlu0 %12822 }
 0xbc7   : > { %v9181_v55 = vpop.xlane.xlu1 %9180 }
 0xbc8   : > { %v9269_v57 = vsub.f32 %v17742_v16, %v9181_v55  ;;  %9255 = vmax.xlane.f32.xlu1 %v9254_v19  ;;  %9261 = vmax.xlane.f32.xlu2 %v9260_v2  ;;  %v17939_v10 = vpop.permute.xlu2 %10816  ;;  %v17943_v55 = vpop.permute.xlu0 %12827 }
 0xbc9   : > { %20170 = vst [vmem:[#allocation67_spill] sm:$0xff] %v17939_v10 }
 0xbca   : > { %v9304_v48 = vmul.f32 1.442695, %v9269_v57 }
 0xbcc   : > { %13248 = vpow2.f32 %v9304_v48 }
 0xbd0   : > { %9237 = vmax.xlane.f32.xlu1 %v9236_v60  ;;  %v17946_v2 = vpop.permute.xlu0 %12842 }
 0xbd2   : > { %v17937_v45 = vpop.eup %13248 }
 0xbd3   : > { %v9371_v16 = vsel %vm564_vm1, %v17937_v45, 0.0 }
 0xbd4   : > { %9372 = vadd.xlane.f32.xlu0 %v9371_v16 }
 0xbdb   : > { %v9172_v57 = vpop.xlane.xlu2 %9171 }
 0xbdc   : > { %v9266_v44 = vsub.f32 %v17759_v61, %v9172_v57 }
 0xbde   : > { %v9298_v8 = vmul.f32 1.442695, %v9266_v44 }
 0xbe0   : > { %13250 = vpow2.f32 %v9298_v8 }
 0xbe3   : > { %v9184_v19 = vpop.xlane.xlu1 %9183 }
 0xbe4   : > { %v9270_v48 = vsub.f32 %v17768_v22, %v9184_v19 }
 0xbe6   : > { %v17949_v60 = vpop.eup %13250  ;;  %v9306_v36 = vmul.f32 1.442695, %v9270_v48 }
 0xbe7   : > { %v9362_v10 = vsel %vm564_vm1, %v17949_v60, 0.0 }
 0xbe8   : > { %13252 = vpow2.f32 %v9306_v36  ;;  %9363 = vadd.xlane.f32.xlu2 %v9362_v10 }
 0xbeb   : > { %v9193_v16 = vpop.xlane.xlu1 %9192 }
 0xbec   : > { %v9175_v63 = vpop.xlane.xlu0 %9174  ;;  %v9273_v12 = vsub.f32 %v17773_v18, %v9193_v16 }
 0xbed   : > { %v9267_v61 = vsub.f32 %v17776_v37, %v9175_v63 }
 0xbee   : > { %v17955_v57 = vpop.eup %13252  ;;  %v9312_v44 = vmul.f32 1.442695, %v9273_v12 }
 0xbef   : > { %v9300_v8 = vmul.f32 1.442695, %v9267_v61  ;;  %v9374_v22 = vsel %vm564_vm1, %v17955_v57, 0.0 }
 0xbf0   : > { %13254 = vpow2.f32 %v9312_v44  ;;  %9375 = vadd.xlane.f32.xlu0 %v9374_v22 }
 0xbf1   : > { %13256 = vpow2.f32 %v9300_v8 }
 0xbf3   : > { %v9196_v19 = vpop.xlane.xlu1 %9195 }
 0xbf4   : > { %v9205_v48 = vpop.xlane.xlu0 %9204  ;;  %v9187_v36 = vpop.xlane.xlu2 %9186  ;;  %v9274_v10 = vsub.f32 %v17783_v29, %v9196_v19 }
 0xbf5   : > { %v9271_v38 = vsub.f32 %v17789_v23, %v9187_v36  ;;  %v9277_v63 = vsub.f32 %v17786_v13, %v9205_v48 }
 0xbf6   : > { %v17961_v18 = vpop.eup %13254  ;;  %v9314_v37 = vmul.f32 1.442695, %v9274_v10 }
 0xbf7   : > { %v17964_v12 = vpop.eup %13256  ;;  %v9308_v16 = vmul.f32 1.442695, %v9271_v38  ;;  %v9383_v61 = vsel %vm564_vm1, %v17961_v18, 0.0  ;;  %v9320_v29 = vmul.f32 1.442695, %v9277_v63 }
 0xbf8   : > { %13258 = vpow2.f32 %v9314_v37  ;;  %9384 = vadd.xlane.f32.xlu1 %v9383_v61  ;;  %v9365_v44 = vsel %vm564_vm1, %v17964_v12, 0.0 }
 0xbf9   : > { %9366 = vadd.xlane.f32.xlu0 %v9365_v44  ;;  %13260 = vpow2.f32 %v9308_v16 }
 0xbfa   : > { %13262 = vpow2.f32 %v9320_v29 }
 0xbfb   : > { %v9178_v23 = vpop.xlane.xlu1 %9177 }
 0xbfc   : > { %v9190_v8 = vpop.xlane.xlu0 %9189  ;;  %v9268_v22 = vsub.f32 %v17798_v39, %v9178_v23 }
 0xbfd   : > { %v9272_v44 = vsub.f32 %v17801_v1, %v9190_v8 }
 0xbfe   : > { %v17971_v13 = vpop.eup %13258  ;;  %v9302_v19 = vmul.f32 1.442695, %v9268_v22 }
 0xbff   : > { %v9386_v38 = vsel %vm564_vm1, %v17971_v13, 0.0  ;;  %v17975_v48 = vpop.eup %13260 }
 0xc00   : > { %13264 = vpow2.f32 %v9302_v19  ;;  %9387 = vadd.xlane.f32.xlu2 %v9386_v38  ;;  %v9377_v36 = vsel %vm564_vm1, %v17975_v48, 0.0  ;;  %v17979_v63 = vpop.eup %13262  ;;  %v9310_v38 = vmul.f32 1.442695, %v9272_v44 }
 0xc01   : > { %9378 = vadd.xlane.f32.xlu1 %v9377_v36  ;;  %v9395_v19 = vsel %vm564_vm1, %v17979_v63, 0.0 }
 0xc03   : > { %v9208_v10 = vpop.xlane.xlu1 %9207 }
 0xc04   : > { %v9217_v37 = vpop.xlane.xlu0 %9216  ;;  %v9278_v39 = vsub.f32 %v17815_v46, %v9208_v10  ;;  %v9220_v46 = vpop.xlane.xlu2 %9219 }
 0xc05   : > { %v9281_v16 = vsub.f32 %v17818_v24, %v9217_v37  ;;  %v9282_v1 = vsub.f32 %v17804_v6, %v9220_v46 }
 0xc06   : > { %v17983_v61 = vpop.eup %13264  ;;  %v9322_v29 = vmul.f32 1.442695, %v9278_v39 }
 0xc07   : > { %v9328_v23 = vmul.f32 1.442695, %v9281_v16  ;;  %v9368_v22 = vsel %vm564_vm1, %v17983_v61, 0.0  ;;  %v9330_v44 = vmul.f32 1.442695, %v9282_v1 }
 0xc08   : > { %13266 = vpow2.f32 %v9322_v29  ;;  %9369 = vadd.xlane.f32.xlu0 %v9368_v22  ;;  %9396 = vadd.xlane.f32.xlu2 %v9395_v19 }
 0xc09   : > { %13268 = vpow2.f32 %v9328_v23 }
 0xc0a   : > { %13270 = vpow2.f32 %v9310_v38 }
 0xc0b   : > { %v9199_v36 = vpop.xlane.xlu1 %9198 }
 0xc0c   : > { %v9275_v24 = vsub.f32 %v17825_v28, %v9199_v36  ;;  %v18004_v6 = vpop.xlane.xlu2 %9243  ;;  %v9211_v19 = vpop.xlane.xlu0 %9210 }
 0xc0e   : > { %v17991_v10 = vpop.eup %13266  ;;  %v9316_v8 = vmul.f32 1.442695, %v9275_v24 }
 0xc0f   : > { %v17994_v37 = vpop.eup %13268  ;;  %v9398_v39 = vsel %vm564_vm1, %v17991_v10, 0.0 }
 0xc10   : > { %13272 = vpow2.f32 %v9316_v8  ;;  %v9407_v16 = vsel %vm564_vm1, %v17994_v37, 0.0  ;;  %9399 = vadd.xlane.f32.xlu0 %v9398_v39  ;;  %v18000_v28 = vpop.eup %13270  ;;  %v9279_v39 = vsub.f32 %v17828_v14, %v9211_v19 }
 0xc11   : > { %9408 = vadd.xlane.f32.xlu1 %v9407_v16  ;;  %13274 = vpow2.f32 %v9330_v44  ;;  %v9380_v38 = vsel %vm564_vm1, %v18000_v28, 0.0 }
 0xc12   : > { %v9324_v34 = vmul.f32 1.442695, %v9279_v39 }
 0xc13   : > { %v9202_v29 = vpop.xlane.xlu1 %9201 }
 0xc14   : > { %v9276_v22 = vsub.f32 %v17840_v17, %v9202_v29  ;;  %v9253_v44 = vpop.xlane.xlu2 %9252  ;;  %v9214_v29 = vpop.xlane.xlu0 %9213 }
 0xc15   : > { %v9280_v14 = vsub.f32 %v17846_v0, %v9214_v29  ;;  %v9293_v0 = vsub.f32 %v17843_v53, %v9253_v44 }
 0xc16   : > { %v18002_v23 = vpop.eup %13272  ;;  %v9318_v36 = vmul.f32 1.442695, %v9276_v22 }
 0xc17   : > { %v9389_v46 = vsel %vm564_vm1, %v18002_v23, 0.0  ;;  %v18011_v1 = vpop.eup %13274 }
 0xc18   : > { %9381 = vadd.xlane.f32.xlu0 %v9380_v38  ;;  %13276 = vpow2.f32 %v9318_v36  ;;  %v9410_v17 = vsel %vm564_vm1, %v18011_v1, 0.0 }
 0xc19   : > { %9390 = vadd.xlane.f32.xlu1 %v9389_v46 }
 0xc1b   : > { %v9229_v24 = vpop.xlane.xlu1 %9228 }
 0xc1c   : > { %v9285_v8 = vsub.f32 %v17857_v54, %v9229_v24  ;;  %v9326_v24 = vmul.f32 1.442695, %v9280_v14  ;;  %v9223_v39 = vpop.xlane.xlu0 %9222 }
 0xc1d   : > { %v9283_v29 = vsub.f32 %v17863_v27, %v9223_v39 }
 0xc1e   : > { %v9336_v16 = vmul.f32 1.442695, %v9285_v8  ;;  %v18017_v46 = vpop.eup %13276  ;;  %v9235_v8 = vpop.xlane.xlu2 %9234 }
 0xc1f   : > { %v9392_v36 = vsel %vm564_vm1, %v18017_v46, 0.0  ;;  %v9287_v27 = vsub.f32 %v17860_v50, %v9235_v8 }
 0xc20   : > { %13278 = vpow2.f32 %v9336_v16  ;;  %9411 = vadd.xlane.f32.xlu0 %v9410_v17 }
 0xc21   : > { %13280 = vpow2.f32 %v9324_v34 }
 0xc23   : > { %v9232_v38 = vpop.xlane.xlu1 %9231 }
 0xc24   : > { %v9286_v22 = vsub.f32 %v17874_v7, %v9232_v38  ;;  %v18056_v8 = vpop.xlane.xlu0 %9264 }
 0xc26   : > { %v18020_v62 = vpop.eup %13278  ;;  %v9338_v54 = vmul.f32 1.442695, %v9286_v22  ;;  %v18043_v44 = vpop.xlane.xlu2 %9246 }
 0xc27   : > { %v9419_v19 = vsel %vm564_vm1, %v18020_v62, 0.0  ;;  %v18027_v7 = vpop.eup %13280 }
 0xc28   : > { %13282 = vpow2.f32 %v9338_v54  ;;  %9420 = vadd.xlane.f32.xlu2 %v9419_v19  ;;  %9393 = vadd.xlane.f32.xlu0 %v9392_v36  ;;  %v9401_v14 = vsel %vm564_vm1, %v18027_v7, 0.0  ;;  %v9352_v54 = vmul.f32 1.442695, %v9293_v0  ;;  %v9332_v19 = vmul.f32 1.442695, %v9283_v29 }
 0xc29   : > { %13284 = vpow2.f32 %v9326_v24 }
 0xc2b   : > { %v9241_v16 = vpop.xlane.xlu1 %9240 }
 0xc2c   : > { %v9289_v34 = vsub.f32 %v17890_v51, %v9241_v16 }
 0xc2e   : > { %v18031_v17 = vpop.eup %13282  ;;  %v9344_v38 = vmul.f32 1.442695, %v9289_v34  ;;  %v18058_v29 = vpop.xlane.xlu2 %9249 }
 0xc2f   : > { %v9422_v22 = vsel %vm564_vm1, %v18031_v17, 0.0  ;;  %v18040_v51 = vpop.eup %13284 }
 0xc30   : > { %13286 = vpow2.f32 %v9344_v38  ;;  %9423 = vadd.xlane.f32.xlu2 %v9422_v22  ;;  %9402 = vadd.xlane.f32.xlu0 %v9401_v14  ;;  %v9404_v16 = vsel %vm564_vm1, %v18040_v51, 0.0 }
 0xc31   : > { %13288 = vpow2.f32 %v9352_v54 }
 0xc32   : > { %10944 = vrot.lane.b32.xlu1 %v17667_v21, %s13429_s12  ;;  %13290 = vpow2.f32 %v9332_v19  ;;  %v9340_v21 = vmul.f32 1.442695, %v9287_v27 }
 0xc33   : > { %v9226_v53 = vpop.xlane.xlu1 %9225 }
 0xc34   : > { %v9284_v24 = vsub.f32 %v17902_v5, %v9226_v53  ;;  %13292 = vpow2.f32 %v9340_v21 }
 0xc36   : > { %v18045_v36 = vpop.eup %13286  ;;  %v9334_v34 = vmul.f32 1.442695, %v9284_v24  ;;  %v18072_v27 = vpop.xlane.xlu2 %9258  ;;  %v9290_v24 = vsub.f32 %v17831_v31, %v18004_v6 }
 0xc37   : > { %20171 = vst [vmem:[#allocation64_spill] sm:$0xff] %v18045_v36  ;;  %v9431_v39 = vsel %vm564_vm1, %v18045_v36, 0.0  ;;  %v18052_v0 = vpop.eup %13288 }
 0xc38   : > { %9432 = vadd.xlane.f32.xlu2 %v9431_v39  ;;  %9405 = vadd.xlane.f32.xlu0 %v9404_v16  ;;  %20172 = vst [vmem:[#allocation75_spill] sm:$0xff] %v18052_v0  ;;  %v18054_v50 = vpop.eup %13290  ;;  %13294 = vpow2.f32 %v9334_v34  ;;  %v9443_v38 = vsel %vm564_vm1, %v18052_v0, 0.0  ;;  %v9346_v16 = vmul.f32 1.442695, %v9290_v24 }
 0xc39   : > { %20173 = vst [vmem:[#allocation2_spill] sm:$0xff] %v18054_v50  ;;  %v9413_v5 = vsel %vm564_vm1, %v18054_v50, 0.0 }
 0xc3a   : > { %v18064_v22 = vpop.eup %13292 }
 0xc3b   : > { %20174 = vst [vmem:[#allocation5_spill] sm:$0xff] %v18064_v22  ;;  %v9425_v53 = vsel %vm564_vm1, %v18064_v22, 0.0  ;;  %v9256_v39 = vpop.xlane.xlu1 %9255 }
 0xc3e   : > { %v18066_v14 = vpop.eup %13294 }
 0xc3f   : > { %20175 = vst [vmem:[#allocation3_spill] sm:$0xff] %v18066_v14  ;;  %v9416_v19 = vsel %vm564_vm1, %v18066_v14, 0.0  ;;  %v18077_v14 = vpop.xlane.xlu2 %9261 }
 0xc40   : > { %9414 = vadd.xlane.f32.xlu2 %v9413_v5  ;;  %9444 = vadd.xlane.f32.xlu0 %v9443_v38  ;;  %v9294_v5 = vsub.f32 %v17916_v26, %v9256_v39 }
 0xc43   : > { %v9238_v36 = vpop.xlane.xlu1 %9237 }
 0xc44   : > { %v9288_v26 = vsub.f32 %v17931_v9, %v9238_v36 }
 0xc47   : > { %v9373_v54 = vpop.xlane.xlu0 %9372 }
 0xc48   : > { %9417 = vadd.xlane.f32.xlu2 %v9416_v19  ;;  %9426 = vadd.xlane.f32.xlu0 %v9425_v53  ;;  %13296 = vrcp.f32 %v9373_v54  ;;  %v9511_v50 = vand.u32 2147483648, %v9373_v54  ;;  %v9509_v19 = vand.u32 2147483647, %v9373_v54  ;;  %v9354_v53 = vmul.f32 1.442695, %v9294_v5 }
 0xc49   : > { %13298 = vpow2.f32 %v9346_v16  ;;  %vm9505_vm6 = vweird.f32 %v9373_v54 }
 0xc4a   : > { %v9512_v31 = vor.u32 1.1754944e-38, %v9511_v50  ;;  %vm9510_vm12 = vcmp.eq.f32.partialorder %v9509_v19, 8.507059e+37  ;;  %13300 = vpow2.f32 %v9354_v53  ;;  %v9342_v50 = vmul.f32 1.442695, %v9288_v26 }
 0xc4e   : > { %v13297_v21 = vpop.eup %13296 }
 0xc4f   : > { %v9501_v34 = vmul.f32 %v13297_v21, %v9373_v54  ;;  %vm9506_vm11 = vweird.f32 %v13297_v21  ;;  %v18079_v6 = vpop.eup %13298 }
 0xc50   : > { %vm9507_vm9 = vmor %vm9505_vm6, %vm9506_vm11  ;;  %v9434_v5 = vsel %vm564_vm1, %v18079_v6, 0.0  ;;  %v18089_v54 = vpop.eup %13300 }
 0xc51   : > { %v9502_v38 = vsub.f32 1.0, %v9501_v34  ;;  %v12810_v34 = vunpack.i.h.bf16 %v17907_v20  ;;  %20177 = vst [vmem:[#allocation6_spill] sm:$0xff] %v18089_v54 }
 0xc53   : > { %v9503_v22 = vmul.f32 %v13297_v21, %v9502_v38 }
 0xc55   : > { %v9504_v0 = vadd.f32 %v13297_v21, %v9503_v22 }
 0xc57   : > { %v9508_v24 = vsel %vm9507_vm9, %v13297_v21, %v9504_v0  ;;  %v20176_v0 = vld [vmem:[#allocation124_spill] sm:$0xff]  ;;  %v9446_v21 = vsel %vm564_vm1, %v18089_v54, 0.0 }
 0xc58   : > { %v9513_v16 = vsel %vm9510_vm12, %v9512_v31, %v9508_v24 }
 0xc59   : > { %v9909_v39 = vmul.f32 %v17937_v45, %v9513_v16 }
 0xc5b   : > { %v9364_v22 = vpop.xlane.xlu2 %9363  ;;  %12399 = vmatmul.msk.f32.vlgmr.msra.gmra.mxu0 %vm564_vm1, %v9909_v39 }
 0xc5c   : > { %9435 = vadd.xlane.f32.xlu1 %v9434_v5  ;;  %13302 = vrcp.f32 %v9364_v22  ;;  %10245 = vmatpush.msra.mxu0 %v12810_v34  ;;  %v9469_v19 = vand.u32 2147483648, %v9364_v22  ;;  %v9467_v31 = vand.u32 2147483647, %v9364_v22  ;;  %vm9463_vm15 = vweird.f32 %v9364_v22 }
 0xc5d   : > { %10820 = vrot.lane.b32.xlu0 %v20176_v0, %s13428_s10  ;;  %13304 = vpow2.f32 %v9342_v50 }
 0xc5e   : > { %v9470_v39 = vor.u32 1.1754944e-38, %v9469_v19  ;;  %vm9468_vm2 = vcmp.eq.f32.partialorder %v9467_v31, 8.507059e+37  ;;  %v12800_v19 = vunpack.i.h.bf16 %v17676_v35 }
 0xc60   : > { %10946 = vrot.lane.b32.xlu2 %v17711_v3, %s13429_s12  ;;  %v20179_v3 = vld [vmem:[#allocation81_spill] sm:$0xff] }
 0xc62   : > { %v13303_v45 = vpop.eup %13302 }
 0xc63   : > { %v9459_v9 = vmul.f32 %v13303_v45, %v9364_v22  ;;  %v9376_v36 = vpop.xlane.xlu0 %9375  ;;  %vm9464_vm13 = vweird.f32 %v13303_v45  ;;  %v18097_v24 = vpop.eup %13304  ;;  %v20180_v22 = vld [vmem:[#allocation115_spill] sm:$0xff] }
 0xc64   : > { %13306 = vrcp.f32 %v9376_v36  ;;  %9447 = vadd.xlane.f32.xlu1 %v9446_v21  ;;  %20178 = vst [vmem:[#allocation9_spill] sm:$0xff] %v18097_v24  ;;  %vm9465_vm14 = vmor %vm9463_vm15, %vm9464_vm13  ;;  %v9523_v31 = vand.u32 2147483647, %v9376_v36  ;;  %vm9519_vm4 = vweird.f32 %v9376_v36 }
 0xc65   : > { %v9460_v38 = vsub.f32 1.0, %v9459_v9  ;;  %10950 = vrot.lane.b32.xlu0 %v17723_v33, %s13429_s12  ;;  %v9428_v33 = vsel %vm564_vm1, %v18097_v24, 0.0 }
 0xc66   : > { %vm9524_vm7 = vcmp.eq.f32.partialorder %v9523_v31, 8.507059e+37 }
 0xc67   : > { %v9461_v53 = vmul.f32 %v13303_v45, %v9460_v38 }
 0xc68   : > { %12857 = vrot.lane.b32.xlu2 %v20179_v3, %s13427_s9 }
 0xc69   : > { %v9462_v16 = vadd.f32 %v13303_v45, %v9461_v53 }
 0xc6a   : > { %v13307_v26 = vpop.eup %13306 }
 0xc6b   : > { %v9466_v34 = vsel %vm9465_vm14, %v13303_v45, %v9462_v16  ;;  %v9515_v5 = vmul.f32 %v13307_v26, %v9376_v36  ;;  %v9385_v0 = vpop.xlane.xlu1 %9384  ;;  %v9525_v45 = vand.u32 2147483648, %v9376_v36  ;;  %vm9520_vm3 = vweird.f32 %v13307_v26 }
 0xc6c   : > { %v9471_v50 = vsel %vm9468_vm2, %v9470_v39, %v9466_v34  ;;  %13308 = vrcp.f32 %v9385_v0  ;;  %v9367_v9 = vpop.xlane.xlu0 %9366  ;;  %9429 = vadd.xlane.f32.xlu1 %v9428_v33  ;;  %vm9521_vm5 = vmor %vm9519_vm4, %vm9520_vm3  ;;  %v12814_v36 = vunpack.i.l.bf16 %v17921_v49  ;;  %vm9561_vm11 = vweird.f32 %v9385_v0 }
 0xc6d   : > { %v9906_v21 = vmul.f32 %v17949_v60, %v9471_v50  ;;  %v9516_v38 = vsub.f32 1.0, %v9515_v5  ;;  %13310 = vrcp.f32 %v9367_v9  ;;  %10824 = vrot.lane.b32.xlu0 %v20180_v22, %s13428_s10  ;;  %v9526_v16 = vor.u32 1.1754944e-38, %v9525_v45 }
 0xc6e   : > { %v9483_v31 = vand.u32 2147483648, %v9367_v9  ;;  %vm9477_vm9 = vweird.f32 %v9367_v9 }
 0xc6f   : > { %v9517_v53 = vmul.f32 %v13307_v26, %v9516_v38  ;;  %12396 = vmatmul.msk.f32.vlgmr.msra.gmra.mxu1 %vm564_vm1, %v9906_v21 }
 0xc70   : > { %10167 = vmatpush.msra.mxu1 %v12800_v19  ;;  %10948 = vrot.lane.b32.xlu2 %v17725_v32, %s13429_s12  ;;  %v20181_v32 = vld [vmem:[#allocation128_spill] sm:$0xff]  ;;  %v9567_v19 = vand.u32 2147483648, %v9385_v0 }
 0xc71   : > { %v9518_v3 = vadd.f32 %v13307_v26, %v9517_v53  ;;  %v9565_v53 = vand.u32 2147483647, %v9385_v0 }
 0xc72   : > { %v13309_v60 = vpop.eup %13308 }
 0xc73   : > { %v13311_v39 = vpop.eup %13310  ;;  %v9522_v34 = vsel %vm9521_vm5, %v13307_v26, %v9518_v3  ;;  %v9557_v5 = vmul.f32 %v13309_v60, %v9385_v0  ;;  %v18110_v35 = vpop.xlane.xlu2 %9387  ;;  %vm9562_vm8 = vweird.f32 %v13309_v60  ;;  %vm9566_vm12 = vcmp.eq.f32.partialorder %v9565_v53, 8.507059e+37 }
 0xc74   : > { %v9527_v33 = vsel %vm9524_vm7, %v9526_v16, %v9522_v34  ;;  %v9473_v50 = vmul.f32 %v13311_v39, %v9367_v9  ;;  %13312 = vrcp.f32 %v18110_v35  ;;  %v18114_v22 = vpop.xlane.xlu1 %9378  ;;  %vm9478_vm10 = vweird.f32 %v13311_v39  ;;  %v20182_v16 = vld [vmem:[#allocation42_spill] sm:$0xff]  ;;  %vm9563_vm6 = vmor %vm9561_vm11, %vm9562_vm8 }
 0xc75   : > { %v9910_v21 = vmul.f32 %v17955_v57, %v9527_v33  ;;  %v9558_v38 = vsub.f32 1.0, %v9557_v5  ;;  %10826 = vrot.lane.b32.xlu0 %v20181_v32, %s13428_s10  ;;  %13314 = vrcp.f32 %v18114_v22  ;;  %v9481_v57 = vand.u32 2147483647, %v9367_v9  ;;  %vm9479_vm13 = vmor %vm9477_vm9, %vm9478_vm10 }
 0xc76   : > { %v9474_v26 = vsub.f32 1.0, %v9473_v50  ;;  %v9568_v33 = vor.u32 1.1754944e-38, %v9567_v19  ;;  %v9484_v32 = vor.u32 1.1754944e-38, %v9483_v31  ;;  %v12805_v19 = vunpack.i.h.bf16 %v17690_v56 }
 0xc77   : > { %v9559_v45 = vmul.f32 %v13309_v60, %v9558_v38  ;;  %12400 = vmatmul.msk.f32.vlgmr.msrb.gmra.mxu1 %vm564_vm1, %v9910_v21  ;;  %vm9482_vm15 = vcmp.eq.f32.partialorder %v9481_v57, 8.507059e+37  ;;  %v12820_v53 = vunpack.i.h.bf16 %v17854_v52  ;;  %v9537_v57 = vand.u32 2147483647, %v18114_v22 }
 0xc78   : > { %v9475_v3 = vmul.f32 %v13311_v39, %v9474_v26  ;;  %10271 = vmatpush.msrb.mxu1 %v12814_v36  ;;  %10822 = vrot.lane.b32.xlu2 %v20182_v16, %s13428_s10  ;;  %v9579_v16 = vand.u32 2147483647, %v18110_v35  ;;  %v9539_v56 = vand.u32 2147483648, %v18114_v22  ;;  %vm9533_vm3 = vweird.f32 %v18114_v22 }
 0xc79   : > { %v9560_v34 = vadd.f32 %v13309_v60, %v9559_v45  ;;  %vm9575_vm4 = vweird.f32 %v18110_v35  ;;  %vm18148_vm7 = vcmp.eq.f32.partialorder %v9537_v57, 8.507059e+37 }
 0xc7a   : > { %v13313_v5 = vpop.eup %13312  ;;  %v9476_v50 = vadd.f32 %v13311_v39, %v9475_v3  ;;  %vm9580_vm5 = vcmp.eq.f32.partialorder %v9579_v16, 8.507059e+37 }
 0xc7b   : > { %v9564_v38 = vsel %vm9563_vm6, %v13309_v60, %v9560_v34  ;;  %v9571_v21 = vmul.f32 %v13313_v5, %v18110_v35  ;;  %v18124_v26 = vpop.xlane.xlu0 %9369  ;;  %v13315_v24 = vpop.eup %13314  ;;  %v9581_v34 = vand.u32 2147483648, %v18110_v35  ;;  %vm9576_vm14 = vweird.f32 %v13313_v5 }
 0xc7c   : > { %v9569_v36 = vsel %vm9566_vm12, %v9568_v33, %v9564_v38  ;;  %v9480_v54 = vsel %vm9479_vm13, %v13311_v39, %v9476_v50  ;;  %13316 = vrcp.f32 %v18124_v26  ;;  %v18127_v0 = vpop.xlane.xlu2 %9396  ;;  %v9529_v45 = vmul.f32 %v13315_v24, %v18114_v22  ;;  %vm9577_vm8 = vmor %vm9575_vm4, %vm9576_vm14 }
 0xc7d   : > { %v9913_v9 = vmul.f32 %v17961_v18, %v9569_v36  ;;  %v9485_v60 = vsel %vm9482_vm15, %v9484_v32, %v9480_v54  ;;  %v9572_v3 = vsub.f32 1.0, %v9571_v21  ;;  %13318 = vrcp.f32 %v18127_v0 }
 0xc7e   : > { %v9907_v31 = vmul.f32 %v17964_v12, %v9485_v60  ;;  %v9530_v39 = vsub.f32 1.0, %v9529_v45  ;;  %v12824_v12 = vunpack.i.l.bf16 %v17935_v58  ;;  %v9291_v54 = vsub.f32 %v17877_v40, %v18043_v44 }
 0xc7f   : > { %12403 = vmatmul.msk.f32.vlgmr.msrb.gmra.mxu0 %vm564_vm1, %v9913_v9  ;;  %v9573_v18 = vmul.f32 %v13313_v5, %v9572_v3  ;;  %vm9534_vm2 = vweird.f32 %v13315_v24  ;;  %v9582_v40 = vor.u32 1.1754944e-38, %v9581_v34  ;;  %v9495_v22 = vand.u32 2147483647, %v18124_v26 }
 0xc80   : > { %12397 = vmatmul.msk.f32.vlgmr.msra.gmra.mxu2 %vm564_vm1, %v9907_v31  ;;  %10349 = vmatpush.msrb.mxu0 %v12820_v53  ;;  %v9531_v33 = vmul.f32 %v13315_v24, %v9530_v39  ;;  %vm9535_vm10 = vmor %vm9533_vm3, %vm9534_vm2  ;;  %v20185_v31 = vld [vmem:[#allocation126_spill] sm:$0xff]  ;;  %v9497_v16 = vand.u32 2147483648, %v18124_v26  ;;  %vm9491_vm6 = vweird.f32 %v18124_v26  ;;  %vm9617_vm12 = vweird.f32 %v18127_v0 }
 0xc81   : > { %10193 = vmatpush.msra.mxu2 %v12805_v19  ;;  %10954 = vrot.lane.b32.xlu2 %v17719_v42, %s13429_s12  ;;  %v9574_v38 = vadd.f32 %v13313_v5, %v9573_v18  ;;  %v9540_v42 = vor.u32 1.1754944e-38, %v9539_v56  ;;  %v12815_v56 = vunpack.i.h.bf16 %v17921_v49  ;;  %vm9496_vm15 = vcmp.eq.f32.partialorder %v9495_v22, 8.507059e+37 }
 0xc82   : > { %v13317_v50 = vpop.eup %13316  ;;  %v9532_v32 = vadd.f32 %v13315_v24, %v9531_v33  ;;  %v9623_v33 = vand.u32 2147483648, %v18127_v0  ;;  %v9498_v21 = vor.u32 1.1754944e-38, %v9497_v16 }
 0xc83   : > { %v9487_v44 = vmul.f32 %v13317_v50, %v18124_v26  ;;  %v18154_v36 = vpop.xlane.xlu0 %9399  ;;  %v9578_v19 = vsel %vm9577_vm8, %v13313_v5, %v9574_v38  ;;  %v13319_v35 = vpop.eup %13318  ;;  %vm9492_vm11 = vweird.f32 %v13317_v50  ;;  %v12809_v38 = vunpack.i.l.bf16 %v17907_v20 }
 0xc84   : > { %v18157_v9 = vpop.xlane.xlu1 %9408  ;;  %13320 = vrcp.f32 %v18154_v36  ;;  %v9536_v60 = vsel %vm9535_vm10, %v13315_v24, %v9532_v32  ;;  %v9583_v45 = vsel %vm9580_vm5, %v9582_v40, %v9578_v19  ;;  %v9613_v39 = vmul.f32 %v13319_v35, %v18127_v0  ;;  %vm9493_vm9 = vmor %vm9491_vm6, %vm9492_vm11 }
 0xc85   : > { %v9488_v53 = vsub.f32 1.0, %v9487_v44  ;;  %13322 = vrcp.f32 %v18157_v9  ;;  %10818 = vrot.lane.b32.xlu1 %v20185_v31, %s13428_s10  ;;  %v9541_v3 = vsel %vm18148_vm7, %v9540_v42, %v9536_v60  ;;  %v9914_v5 = vmul.f32 %v17971_v13, %v9583_v45 }
 0xc86   : > { %v9911_v57 = vmul.f32 %v17975_v48, %v9541_v3  ;;  %v9621_v24 = vand.u32 2147483647, %v18127_v0  ;;  %v9614_v18 = vsub.f32 1.0, %v9613_v39  ;;  %v9348_v13 = vmul.f32 1.442695, %v9291_v54 }
 0xc87   : > { %v9489_v34 = vmul.f32 %v13317_v50, %v9488_v53  ;;  %12404 = vmatmul.msk.f32.vlgmr.msra.gmra.mxu1 %vm564_vm1, %v9914_v5  ;;  %vm9618_vm13 = vweird.f32 %v13319_v35  ;;  %v9624_v19 = vor.u32 1.1754944e-38, %v9623_v33  ;;  %v9635_v22 = vand.u32 2147483647, %v18154_v36 }
 0xc88   : > { %12401 = vmatmul.msk.f32.vlgmr.msrb.gmra.mxu2 %vm564_vm1, %v9911_v57  ;;  %10375 = vmatpush.msra.mxu1 %v12824_v12  ;;  %v9615_v40 = vmul.f32 %v13319_v35, %v9614_v18  ;;  %vm18177_vm14 = vcmp.eq.f32.partialorder %v9621_v24, 8.507059e+37  ;;  %vm9619_vm2 = vmor %vm9617_vm12, %vm9618_vm13  ;;  %v9679_v5 = vand.u32 2147483648, %v18157_v9  ;;  %v9637_v16 = vand.u32 2147483648, %v18154_v36 }
 0xc89   : > { %v9490_v32 = vadd.f32 %v13317_v50, %v9489_v34  ;;  %10297 = vmatpush.msrb.mxu2 %v12815_v56  ;;  %v12830_v34 = vunpack.i.h.bf16 %v17943_v55  ;;  %v9297_v24 = vsub.f32 %v17880_v11, %v18056_v8  ;;  %vm9631_vm5 = vweird.f32 %v18154_v36 }
 0xc8a   : > { %v13321_v48 = vpop.eup %13320  ;;  %v9616_v42 = vadd.f32 %v13319_v35, %v9615_v40  ;;  %vm9673_vm7 = vweird.f32 %v18157_v9  ;;  %vm9636_vm11 = vcmp.eq.f32.partialorder %v9635_v22, 8.507059e+37 }
 0xc8b   : > { %v13323_v49 = vpop.eup %13322  ;;  %v9494_v44 = vsel %vm9493_vm9, %v13317_v50, %v9490_v32  ;;  %v9627_v26 = vmul.f32 %v13321_v48, %v18154_v36  ;;  %v18182_v54 = vpop.xlane.xlu0 %9381  ;;  %vm9632_vm3 = vweird.f32 %v13321_v48  ;;  %v9680_v32 = vor.u32 1.1754944e-38, %v9679_v5 }
 0xc8c   : > { %v9499_v12 = vsel %vm9496_vm15, %v9498_v21, %v9494_v44  ;;  %v9669_v60 = vmul.f32 %v13323_v49, %v18157_v9  ;;  %v18185_v45 = vpop.xlane.xlu1 %9390  ;;  %13324 = vrcp.f32 %v18182_v54  ;;  %v9620_v31 = vsel %vm9619_vm2, %v13319_v35, %v9616_v42  ;;  %vm9633_vm8 = vmor %vm9631_vm5, %vm9632_vm3 }
 0xc8d   : > { %v9908_v53 = vmul.f32 %v17983_v61, %v9499_v12  ;;  %v9628_v50 = vsub.f32 1.0, %v9627_v26  ;;  %v9625_v39 = vsel %vm18177_vm14, %v9624_v19, %v9620_v31  ;;  %13326 = vrcp.f32 %v18185_v45 }
 0xc8e   : > { %v9670_v3 = vsub.f32 1.0, %v9669_v60  ;;  %v9917_v61 = vmul.f32 %v17979_v63, %v9625_v39  ;;  %vm9674_vm4 = vweird.f32 %v13323_v49  ;;  %v9677_v35 = vand.u32 2147483647, %v18157_v9 }
 0xc8f   : > { %v9629_v57 = vmul.f32 %v13321_v48, %v9628_v50  ;;  %12398 = vmatmul.msk.f32.vlgmr.msrb.gmra.mxu3 %vm564_vm1, %v9908_v53  ;;  %13328 = vpow2.f32 %v9348_v13  ;;  %v9638_v63 = vor.u32 1.1754944e-38, %v9637_v16  ;;  %vm9675_vm10 = vmor %vm9673_vm7, %vm9674_vm4  ;;  %v9360_v40 = vmul.f32 1.442695, %v9297_v24 }
 0xc90   : > { %v9671_v0 = vmul.f32 %v13323_v49, %v9670_v3  ;;  %10219 = vmatpush.msrb.mxu3 %v12809_v38  ;;  %12407 = vmatmul.msk.f32.vlgmr.msra.gmra.mxu0 %vm564_vm1, %v9917_v61  ;;  %v9292_v38 = vsub.f32 %v17893_v59, %v18058_v29  ;;  %vm9678_vm6 = vcmp.eq.f32.partialorder %v9677_v35, 8.507059e+37  ;;  %v12834_v59 = vunpack.i.l.bf16 %v17871_v25 }
 0xc91   : > { %v9630_v56 = vadd.f32 %v13321_v48, %v9629_v57  ;;  %10453 = vmatpush.msra.mxu0 %v12830_v34  ;;  %v9551_v12 = vand.u32 2147483647, %v18182_v54  ;;  %v12840_v53 = vunpack.i.h.bf16 %v17928_v47  ;;  %vm9547_vm12 = vweird.f32 %v18182_v54 }
 0xc92   : > { %v9672_v18 = vadd.f32 %v13323_v49, %v9671_v0  ;;  %v13325_v33 = vpop.eup %13324  ;;  %v9350_v26 = vmul.f32 1.442695, %v9292_v38  ;;  %v9595_v50 = vand.u32 2147483648, %v18185_v45  ;;  %v9593_v3 = vand.u32 2147483647, %v18185_v45 }
 0xc93   : > { %v9634_v11 = vsel %vm9633_vm8, %v13321_v48, %v9630_v56  ;;  %v18210_v8 = vpop.xlane.xlu0 %9411  ;;  %v9543_v13 = vmul.f32 %v13325_v33, %v18182_v54  ;;  %v13327_v21 = vpop.eup %13326  ;;  %vm9548_vm9 = vweird.f32 %v13325_v33  ;;  %vm9589_vm14 = vweird.f32 %v18185_v45 }
 0xc94   : > { %v9676_v36 = vsel %vm9675_vm10, %v13323_v49, %v9672_v18  ;;  %v9639_v9 = vsel %vm9636_vm11, %v9638_v63, %v9634_v11  ;;  %13330 = vrcp.f32 %v18210_v8  ;;  %v9585_v48 = vmul.f32 %v13327_v21, %v18185_v45  ;;  %vm9549_vm15 = vmor %vm9547_vm12, %vm9548_vm9 }
 0xc95   : > { %v9681_v44 = vsel %vm9678_vm6, %v9680_v32, %v9676_v36  ;;  %v9918_v20 = vmul.f32 %v17991_v10, %v9639_v9  ;;  %v9544_v29 = vsub.f32 1.0, %v9543_v13  ;;  %v9553_v49 = vand.u32 2147483648, %v18182_v54  ;;  %v18220_v42 = vpop.eup %13328 }
 0xc96   : > { %v9921_v19 = vmul.f32 %v17994_v37, %v9681_v44  ;;  %v9586_v10 = vsub.f32 1.0, %v9585_v48  ;;  %13332 = vpow2.f32 %v9360_v40  ;;  %vm9590_vm13 = vweird.f32 %v13327_v21 }
 0xc97   : > { %12408 = vmatmul.msk.f32.vlgmr.msrb.gmra.mxu1 %vm564_vm1, %v9918_v20  ;;  %v9545_v60 = vmul.f32 %v13325_v33, %v9544_v29  ;;  %13334 = vpow2.f32 %v9350_v26  ;;  %v9554_v37 = vor.u32 1.1754944e-38, %v9553_v49  ;;  %v9437_v54 = vsel %vm564_vm1, %v18220_v42, 0.0  ;;  %vm9591_vm3 = vmor %vm9589_vm14, %vm9590_vm13 }
 0xc98   : > { %10479 = vmatpush.msrb.mxu1 %v12834_v59  ;;  %v9587_v31 = vmul.f32 %v13327_v21, %v9586_v10  ;;  %12411 = vmatmul.msk.f32.vlgmr.msrb.gmra.mxu0 %vm564_vm1, %v9921_v19  ;;  %vm9552_vm2 = vcmp.eq.f32.partialorder %v9551_v12, 8.507059e+37  ;;  %v9295_v35 = vsub.f32 %v17905_v15, %v18072_v27  ;;  %v9596_v45 = vor.u32 1.1754944e-38, %v9595_v50 }
 0xc99   : > { %v9546_v22 = vadd.f32 %v13325_v33, %v9545_v60  ;;  %10557 = vmatpush.msrb.mxu0 %v12840_v53  ;;  %vm9594_vm4 = vcmp.eq.f32.partialorder %v9593_v3, 8.507059e+37  ;;  %v9693_v32 = vand.u32 2147483648, %v18210_v8  ;;  %v9691_v11 = vand.u32 2147483647, %v18210_v8 }
 0xc9a   : > { %v13331_v5 = vpop.eup %13330  ;;  %v9588_v61 = vadd.f32 %v13327_v21, %v9587_v31  ;;  %v12825_v36 = vunpack.i.h.bf16 %v17935_v58  ;;  %vm9687_vm7 = vweird.f32 %v18210_v8  ;;  %v12829_v59 = vunpack.i.l.bf16 %v17943_v55 }
 0xc9b   : > { %v18229_v16 = vpop.xlane.xlu0 %9393  ;;  %v18231_v39 = vpop.xlane.xlu2 %9420  ;;  %v9550_v57 = vsel %vm9549_vm15, %v13325_v33, %v9546_v22  ;;  %v9683_v0 = vmul.f32 %v13331_v5, %v18210_v8  ;;  %v12819_v33 = vunpack.i.l.bf16 %v17854_v52  ;;  %vm9688_vm5 = vweird.f32 %v13331_v5 }
 0xc9c   : > { %v9555_v34 = vsel %vm9552_vm2, %v9554_v37, %v9550_v57  ;;  %13336 = vrcp.f32 %v18229_v16  ;;  %v9592_v56 = vsel %vm9591_vm3, %v13327_v21, %v9588_v61  ;;  %v18241_v63 = vpop.eup %13332  ;;  %v9356_v52 = vmul.f32 1.442695, %v9295_v35  ;;  %vm9689_vm8 = vmor %vm9687_vm7, %vm9688_vm5 }
 0xc9d   : > { %v9912_v24 = vmul.f32 %v18000_v28, %v9555_v34  ;;  %v9684_v18 = vsub.f32 1.0, %v9683_v0  ;;  %v9597_v38 = vsel %vm9594_vm4, %v9596_v45, %v9592_v56  ;;  %13338 = vrcp.f32 %v18231_v39  ;;  %v18249_v28 = vpop.eup %13334 }
 0xc9e   : > { %v9915_v15 = vmul.f32 %v18002_v23, %v9597_v38  ;;  %v9296_v23 = vsub.f32 %v17919_v30, %v18077_v14  ;;  %v9694_v21 = vor.u32 1.1754944e-38, %v9693_v32  ;;  %vm9692_vm10 = vcmp.eq.f32.partialorder %v9691_v11, 8.507059e+37 }
 0xc9f   : > { %9438 = vadd.xlane.f32.xlu0 %v9437_v54  ;;  %v9685_v27 = vmul.f32 %v13331_v5, %v9684_v18  ;;  %12402 = vmatmul.msk.f32.vlgmr.msra.gmra.mxu3 %vm564_vm1, %v9912_v24  ;;  %v12844_v29 = vunpack.i.l.bf16 %v17946_v2  ;;  %v9607_v49 = vand.u32 2147483647, %v18229_v16  ;;  %v9609_v19 = vand.u32 2147483648, %v18229_v16 }
 0xca0   : > { %10323 = vmatpush.msra.mxu3 %v12819_v33  ;;  %12405 = vmatmul.msk.f32.vlgmr.msra.gmra.mxu2 %vm564_vm1, %v9915_v15  ;;  %v9358_v12 = vmul.f32 1.442695, %v9296_v23  ;;  %v12854_v60 = vunpack.i.l.bf16 %v17909_v43  ;;  %v9733_v50 = vand.u32 2147483647, %v18231_v39  ;;  %v9440_v22 = vsel %vm564_vm1, %v18249_v28, 0.0 }
 0xca1   : > { %v9686_v9 = vadd.f32 %v13331_v5, %v9685_v27  ;;  %10401 = vmatpush.msra.mxu2 %v12825_v36  ;;  %v9455_v31 = vsel %vm564_vm1, %v18241_v63, 0.0  ;;  %vm9603_vm6 = vweird.f32 %v18229_v16  ;;  %vm9608_vm13 = vcmp.eq.f32.partialorder %v9607_v49, 8.507059e+37 }
 0xca2   : > { %v13337_v13 = vpop.eup %13336  ;;  %v9610_v54 = vor.u32 1.1754944e-38, %v9609_v19  ;;  %vm9729_vm15 = vweird.f32 %v18231_v39  ;;  %vm9734_vm2 = vcmp.eq.f32.partialorder %v9733_v50, 8.507059e+37 }
 0xca3   : > { %v18256_v40 = vpop.xlane.xlu0 %9402  ;;  %v18258_v44 = vpop.xlane.xlu2 %9423  ;;  %v9690_v20 = vsel %vm9689_vm8, %v13331_v5, %v9686_v9  ;;  %v9599_v58 = vmul.f32 %v13337_v13, %v18229_v16  ;;  %vm9604_vm11 = vweird.f32 %v13337_v13 }
 0xca4   : > { %13340 = vrcp.f32 %v18256_v40  ;;  %v13339_v8 = vpop.eup %13338  ;;  %v9695_v48 = vsel %vm9692_vm10, %v9694_v21, %v9690_v20  ;;  %vm9605_vm12 = vmor %vm9603_vm6, %vm9604_vm11  ;;  %v9651_v32 = vand.u32 2147483648, %v18256_v40  ;;  %vm9645_vm4 = vweird.f32 %v18256_v40 }
 0xca5   : > { %13342 = vpow2.f32 %v9356_v52  ;;  %v9922_v30 = vmul.f32 %v18011_v1, %v9695_v48  ;;  %v9600_v14 = vsub.f32 1.0, %v9599_v58  ;;  %v9725_v26 = vmul.f32 %v13339_v8, %v18231_v39 }
 0xca6   : > { %13344 = vrcp.f32 %v18258_v44  ;;  %v9735_v1 = vand.u32 2147483648, %v18231_v39  ;;  %vm9730_vm9 = vweird.f32 %v13339_v8  ;;  %v9649_v39 = vand.u32 2147483647, %v18256_v40 }
 0xca7   : > { %v9601_v10 = vmul.f32 %v13337_v13, %v9600_v14  ;;  %v9726_v53 = vsub.f32 1.0, %v9725_v26  ;;  %12412 = vmatmul.msk.f32.vlgmr.msra.gmra.mxu1 %vm564_vm1, %v9922_v30  ;;  %13346 = vpow2.f32 %v9358_v12  ;;  %vm9731_vm14 = vmor %vm9729_vm15, %vm9730_vm9  ;;  %v9747_v23 = vand.u32 2147483647, %v18258_v44 }
 0xca8   : > { %10583 = vmatpush.msra.mxu1 %v12844_v29  ;;  %v9736_v56 = vor.u32 1.1754944e-38, %v9735_v1  ;;  %v9749_v21 = vand.u32 2147483648, %v18258_v44  ;;  %v9652_v20 = vor.u32 1.1754944e-38, %v9651_v32  ;;  %vm9650_vm8 = vcmp.eq.f32.partialorder %v9649_v39, 8.507059e+37 }
 0xca9   : > { %v9602_v5 = vadd.f32 %v13337_v13, %v9601_v10  ;;  %v9727_v37 = vmul.f32 %v13339_v8, %v9726_v53  ;;  %vm9743_vm10 = vweird.f32 %v18258_v44  ;;  %vm9748_vm6 = vcmp.eq.f32.partialorder %v9747_v23, 8.507059e+37  ;;  %v20193_v23 = vld [vmem:[#allocation64_spill] sm:$0xff] }
 0xcaa   : > { %v13341_v3 = vpop.eup %13340  ;;  %9441 = vadd.xlane.f32.xlu2 %v9440_v22  ;;  %v9750_v14 = vor.u32 1.1754944e-38, %v9749_v21 }
 0xcab   : > { %v9641_v57 = vmul.f32 %v13341_v3, %v18256_v40  ;;  %v18280_v61 = vpop.xlane.xlu0 %9405  ;;  %v18282_v0 = vpop.xlane.xlu2 %9432  ;;  %v9606_v34 = vsel %vm9605_vm12, %v13337_v13, %v9602_v5  ;;  %v9728_v45 = vadd.f32 %v13339_v8, %v9727_v37  ;;  %vm9646_vm3 = vweird.f32 %v13341_v3 }
 0xcac   : > { %v18284_v35 = vpop.eup %13342  ;;  %13348 = vrcp.f32 %v18280_v61  ;;  %v9611_v24 = vsel %vm9608_vm13, %v9610_v54, %v9606_v34  ;;  %vm9647_vm5 = vmor %vm9645_vm4, %vm9646_vm3  ;;  %v9665_v19 = vand.u32 2147483648, %v18280_v61  ;;  %v9789_v50 = vand.u32 2147483647, %v18282_v0 }
 0xcad   : > { %v13345_v16 = vpop.eup %13344  ;;  %v9642_v18 = vsub.f32 1.0, %v9641_v57  ;;  %v9916_v33 = vmul.f32 %v18017_v46, %v9611_v24  ;;  %v9732_v38 = vsel %vm9731_vm14, %v13339_v8, %v9728_v45  ;;  %13350 = vrcp.f32 %v18282_v0 }
 0xcae   : > { %v9739_v15 = vmul.f32 %v13345_v16, %v18258_v44  ;;  %v9737_v27 = vsel %vm9734_vm2, %v9736_v56, %v9732_v38  ;;  %v9449_v46 = vsel %vm564_vm1, %v18284_v35, 0.0  ;;  %v18298_v9 = vpop.eup %13346  ;;  %vm9744_vm7 = vweird.f32 %v13345_v16 }
 0xcaf   : > { %v9643_v11 = vmul.f32 %v13341_v3, %v9642_v18  ;;  %9456 = vadd.xlane.f32.xlu1 %v9455_v31  ;;  %v9925_v36 = vmul.f32 %v18020_v62, %v9737_v27  ;;  %12406 = vmatmul.msk.f32.vlgmr.msrb.gmra.mxu3 %vm564_vm1, %v9916_v33  ;;  %v12835_v8 = vunpack.i.h.bf16 %v17871_v25  ;;  %vm9745_vm11 = vmor %vm9743_vm10, %vm9744_vm7  ;;  %vm9659_vm12 = vweird.f32 %v18280_v61  ;;  %v20199_v18 = vld [vmem:[#allocation5_spill] sm:$0xff] }
 0xcb0   : > { %v9740_v52 = vsub.f32 1.0, %v9739_v15  ;;  %10427 = vmatpush.msrb.mxu3 %v12829_v59  ;;  %v9452_v31 = vsel %vm564_vm1, %v18298_v9, 0.0  ;;  %v12839_v5 = vunpack.i.l.bf16 %v17928_v47  ;;  %v9666_v54 = vor.u32 1.1754944e-38, %v9665_v19  ;;  %v20190_v47 = vld [vmem:[#allocation153_spill] sm:$0xff] }
 0xcb1   : > { %v9644_v13 = vadd.f32 %v13341_v3, %v9643_v11  ;;  %12415 = vmatmul.msk.f32.vlgmr.msra.gmra.mxu0 %vm564_vm1, %v9925_v36  ;;  %vm9785_vm2 = vweird.f32 %v18282_v0  ;;  %vm18349_vm3 = vcmp.eq.f32.partialorder %v9789_v50, 8.507059e+37 }
 0xcb2   : > { %v13349_v62 = vpop.eup %13348  ;;  %v9741_v58 = vmul.f32 %v13345_v16, %v9740_v52  ;;  %9450 = vadd.xlane.f32.xlu2 %v9449_v46  ;;  %10661 = vmatpush.msra.mxu0 %v12854_v60 }
 0xcb3   : > { %v9648_v29 = vsel %vm9647_vm5, %v13341_v3, %v9644_v13  ;;  %v9655_v40 = vmul.f32 %v13349_v62, %v18280_v61  ;;  %10956 = vrot.lane.b32.xlu0 %v17733_v4, %s13429_s12  ;;  %v18313_v55 = vpop.xlane.xlu0 %9444  ;;  %v18315_v59 = vpop.xlane.xlu2 %9414  ;;  %v9663_v4 = vand.u32 2147483647, %v18280_v61  ;;  %vm9660_vm9 = vweird.f32 %v13349_v62 }
 0xcb4   : > { %v9653_v48 = vsel %vm9650_vm8, %v9652_v20, %v9648_v29  ;;  %v9742_v30 = vadd.f32 %v13345_v16, %v9741_v58  ;;  %13352 = vrcp.f32 %v18313_v55  ;;  %v13351_v12 = vpop.eup %13350  ;;  %vm18333_vm13 = vmor %vm9659_vm12, %vm9660_vm9  ;;  %v9845_v11 = vand.u32 2147483647, %v18313_v55 }
 0xcb5   : > { %v9919_v25 = vmul.f32 %v18027_v7, %v9653_v48  ;;  %v9656_v26 = vsub.f32 1.0, %v9655_v40  ;;  %13354 = vrcp.f32 %v18315_v59  ;;  %v9781_v44 = vmul.f32 %v13351_v12, %v18282_v0  ;;  %v20194_v48 = vld [vmem:[#allocation82_spill] sm:$0xff] }
 0xcb6   : > { %v9746_v49 = vsel %vm9745_vm11, %v13345_v16, %v9742_v30  ;;  %v12850_v7 = vunpack.i.h.bf16 %v17895_v41  ;;  %vm9664_vm15 = vcmp.eq.f32.partialorder %v9663_v4, 8.507059e+37  ;;  %vm9786_vm14 = vweird.f32 %v13351_v12 }
 0xcb7   : > { %v9751_v60 = vsel %vm9748_vm6, %v9750_v14, %v9746_v49  ;;  %v9657_v10 = vmul.f32 %v13349_v62, %v9656_v26  ;;  %12409 = vmatmul.msk.f32.vlgmr.msrb.gmra.mxu2 %vm564_vm1, %v9919_v25  ;;  %v9782_v22 = vsub.f32 1.0, %v9781_v44  ;;  %vm9787_vm4 = vmor %vm9785_vm2, %vm9786_vm14  ;;  %v9847_v39 = vand.u32 2147483648, %v18313_v55  ;;  %v20195_v44 = vld [vmem:[#allocation75_spill] sm:$0xff] }
 0xcb8   : > { %v9926_v53 = vmul.f32 %v18031_v17, %v9751_v60  ;;  %10505 = vmatpush.msrb.mxu2 %v12835_v8  ;;  %v9791_v17 = vand.u32 2147483648, %v18282_v0  ;;  %vm9841_vm7 = vweird.f32 %v18313_v55  ;;  %v9705_v46 = vand.u32 2147483647, %v18315_v59 }
 0xcb9   : > { %v9658_v1 = vadd.f32 %v13349_v62, %v9657_v10  ;;  %v9783_v61 = vmul.f32 %v13351_v12, %v9782_v22  ;;  %v9707_v13 = vand.u32 2147483648, %v18315_v59  ;;  %v9848_v8 = vor.u32 1.1754944e-38, %v9847_v39  ;;  %v18377_v10 = vpop.permute.xlu1 %10944 }
 0xcba   : > { %v13353_v3 = vpop.eup %13352  ;;  %12416 = vmatmul.msk.f32.vlgmr.msrb.gmra.mxu1 %vm564_vm1, %v9926_v53  ;;  %9453 = vadd.xlane.f32.xlu2 %v9452_v31  ;;  %v9792_v27 = vor.u32 1.1754944e-38, %v9791_v17  ;;  %vm9701_vm11 = vweird.f32 %v18315_v59  ;;  %vm9846_vm6 = vcmp.eq.f32.partialorder %v9845_v11, 8.507059e+37  ;;  %vm9706_vm12 = vcmp.eq.f32.partialorder %v9705_v46, 8.507059e+37  ;;  %v20196_v53 = vld [vmem:[#allocation2_spill] sm:$0xff] }
 0xcbb   : > { %v9662_v57 = vsel %vm18333_vm13, %v13349_v62, %v9658_v1  ;;  %v9837_v34 = vmul.f32 %v13353_v3, %v18313_v55  ;;  %10687 = vmatpush.msrb.mxu1 %v12850_v7  ;;  %10958 = vrot.lane.b32.xlu0 %v20190_v47, %s13429_s12  ;;  %v18344_v45 = vpop.xlane.xlu0 %9426  ;;  %v18346_v16 = vpop.xlane.xlu2 %9417  ;;  %v9784_v38 = vadd.f32 %v13351_v12, %v9783_v61  ;;  %vm9842_vm5 = vweird.f32 %v13353_v3 }
 0xcbc   : > { %v13355_v24 = vpop.eup %13354  ;;  %v9667_v56 = vsel %vm9664_vm15, %v9666_v54, %v9662_v57  ;;  %13356 = vrcp.f32 %v18344_v45  ;;  %vm9843_vm10 = vmor %vm9841_vm7, %vm9842_vm5  ;;  %v9708_v26 = vor.u32 1.1754944e-38, %v9707_v13  ;;  %v9761_v19 = vand.u32 2147483647, %v18344_v45 }
 0xcbd   : > { %v9920_v33 = vmul.f32 %v18040_v51, %v9667_v56  ;;  %v9838_v32 = vsub.f32 1.0, %v9837_v34  ;;  %v9697_v15 = vmul.f32 %v13355_v24, %v18315_v59  ;;  %13358 = vrcp.f32 %v18346_v16  ;;  %v20198_v34 = vld [vmem:[#allocation160_spill] sm:$0xff] }
 0xcbe   : > { %v9788_v0 = vsel %vm9787_vm4, %v13351_v12, %v9784_v38  ;;  %vm9702_vm8 = vweird.f32 %v13355_v24  ;;  %v9763_v60 = vand.u32 2147483648, %v18344_v45  ;;  %v12845_v31 = vunpack.i.h.bf16 %v17946_v2 }
 0xcbf   : > { %v9839_v36 = vmul.f32 %v13353_v3, %v9838_v32  ;;  %v9698_v52 = vsub.f32 1.0, %v9697_v15  ;;  %12410 = vmatmul.msk.f32.vlgmr.msra.gmra.mxu3 %vm564_vm1, %v9920_v33  ;;  %v9793_v51 = vsel %vm18349_vm3, %v9792_v27, %v9788_v0  ;;  %vm9703_vm9 = vmor %vm9701_vm11, %vm9702_vm8  ;;  %vm9757_vm15 = vweird.f32 %v18344_v45  ;;  %v20200_v15 = vld [vmem:[#allocation3_spill] sm:$0xff] }
 0xcc0   : > { %10531 = vmatpush.msra.mxu3 %v12839_v5  ;;  %v9929_v21 = vmul.f32 %v20193_v23, %v9793_v51  ;;  %v20197_v5 = vld [vmem:[#allocation104_spill] sm:$0xff]  ;;  %v9719_v17 = vand.u32 2147483647, %v18346_v16  ;;  %v9764_v57 = vor.u32 1.1754944e-38, %v9763_v60  ;;  %vm9762_vm3 = vcmp.eq.f32.partialorder %v9761_v19, 8.507059e+37 }
 0xcc1   : > { %v9840_v62 = vadd.f32 %v13353_v3, %v9839_v36  ;;  %v9699_v20 = vmul.f32 %v13355_v24, %v9698_v52  ;;  %vm9715_vm4 = vweird.f32 %v18346_v16  ;;  %v12849_v39 = vunpack.i.l.bf16 %v17895_v41  ;;  %v20201_v36 = vld [vmem:[#allocation52_spill] sm:$0xff] }
 0xcc2   : > { %v13357_v58 = vpop.eup %13356  ;;  %12419 = vmatmul.msk.f32.vlgmr.msrb.gmra.mxu0 %vm564_vm1, %v9929_v21  ;;  %vm9720_vm7 = vcmp.eq.f32.partialorder %v9719_v17, 8.507059e+37  ;;  %v12855_v0 = vunpack.i.h.bf16 %v17909_v43  ;;  %vm11186_vm8 = vcmask 130048   ;;  %v20202_v51 = vld [vmem:[#allocation172_spill] sm:$0xff] }
 0xcc3   : > { %v9844_v29 = vsel %vm9843_vm10, %v13353_v3, %v9840_v62  ;;  %v9700_v40 = vadd.f32 %v13355_v24, %v9699_v20  ;;  %v9753_v55 = vmul.f32 %v13357_v58, %v18344_v45  ;;  %10960 = vrot.lane.b32.xlu0 %v20194_v48, %s13429_s12  ;;  %v18372_v30 = vpop.permute.xlu2 %10946  ;;  %v13359_v25 = vpop.eup %13358  ;;  %vm9758_vm13 = vweird.f32 %v13357_v58 }
 0xcc4   : > { %v9849_v14 = vsel %vm9846_vm6, %v9848_v8, %v9844_v29  ;;  %v9711_v59 = vmul.f32 %v13359_v25, %v18346_v16  ;;  %v9721_v3 = vand.u32 2147483648, %v18346_v16  ;;  %vm9716_vm14 = vweird.f32 %v13359_v25  ;;  %vm9759_vm2 = vmor %vm9757_vm15, %vm9758_vm13  ;;  %v20203_v29 = vld [vmem:[#allocation46_spill] sm:$0xff] }
 0xcc5   : > { %v9704_v12 = vsel %vm9703_vm9, %v13355_v24, %v9700_v40  ;;  %v9754_v49 = vsub.f32 1.0, %v9753_v55  ;;  %v9933_v7 = vmul.f32 %v20195_v44, %v9849_v14  ;;  %vm9717_vm5 = vmor %vm9715_vm4, %vm9716_vm14  ;;  %v20204_v55 = vld [vmem:[#allocation29_spill] sm:$0xff] }
 0xcc6   : > { %v9709_v4 = vsel %vm9706_vm12, %v9708_v26, %v9704_v12  ;;  %v9712_v22 = vsub.f32 1.0, %v9711_v59  ;;  %v9722_v24 = vor.u32 1.1754944e-38, %v9721_v3 }
 0xcc7   : > { %v9923_v50 = vmul.f32 %v20196_v53, %v9709_v4  ;;  %v9755_v1 = vmul.f32 %v13357_v58, %v9754_v49 }
 0xcc8   : > { %10952 = vrot.lane.b32.xlu1 %v20197_v5, %s13429_s12  ;;  %v9713_v54 = vmul.f32 %v13359_v25, %v9712_v22  ;;  %v20205_v22 = vld [vmem:[#allocation179_spill] sm:$0xff] }
 0xcc9   : > { %v9756_v37 = vadd.f32 %v13357_v58, %v9755_v1  ;;  %12413 = vmatmul.msk.f32.vlgmr.msra.gmra.mxu2 %vm564_vm1, %v9923_v50 }
 0xcca   : > { %10609 = vmatpush.msra.mxu2 %v12845_v31  ;;  %v9714_v2 = vadd.f32 %v13359_v25, %v9713_v54  ;;  %12423 = vmatmul.msk.f32.vlgmr.msra.gmra.mxu0 %vm564_vm1, %v9933_v7 }
 0xccb   : > { %v9760_v61 = vsel %vm9759_vm2, %v13357_v58, %v9756_v37  ;;  %10962 = vrot.lane.b32.xlu0 %v20198_v34, %s13429_s12  ;;  %v18393_v47 = vpop.permute.xlu2 %12857  ;;  %v20207_v34 = vld [vmem:[#allocation6_spill] sm:$0xff] }
 0xccc   : > { %v9765_v45 = vsel %vm9762_vm3, %v9764_v57, %v9760_v61  ;;  %v12860_v56 = vunpack.i.h.bf16 %v18393_v47  ;;  %v9718_v38 = vsel %vm9717_vm5, %v13359_v25, %v9714_v2  ;;  %v20206_v61 = vld [vmem:[#allocation51_spill] sm:$0xff] }
 0xccd   : > { %v9927_v33 = vmul.f32 %v20199_v18, %v9765_v45  ;;  %v9723_v32 = vsel %vm9720_vm7, %v9722_v24, %v9718_v38 }
 0xcce   : > { %10765 = vmatpush.msrb.mxu0 %v12860_v56  ;;  %v9924_v16 = vmul.f32 %v20200_v15, %v9723_v32  ;;  %v20208_v32 = vld [vmem:[#allocation37_spill] sm:$0xff] }
 0xccf   : > { %v9436_v27 = vpop.xlane.xlu1 %9435  ;;  %v10821_v11 = vpop.permute.xlu0 %10820 }
 0xcd0   : > { %13360 = vrcp.f32 %v9436_v27  ;;  %12414 = vmatmul.msk.f32.vlgmr.msrb.gmra.mxu3 %vm564_vm1, %v9924_v16  ;;  %v11163_v52 = vsel %vm564_vm1, %v20201_v36, %v10821_v11  ;;  %v9805_v20 = vand.u32 2147483648, %v9436_v27  ;;  %v9803_v8 = vand.u32 2147483647, %v9436_v27 }
 0xcd1   : > { %12417 = vmatmul.msk.f32.vlgmr.msrb.gmra.mxu2 %vm564_vm1, %v9927_v33  ;;  %10635 = vmatpush.msrb.mxu3 %v12849_v39  ;;  %vm9799_vm11 = vweird.f32 %v9436_v27  ;;  %v20209_v39 = vld [vmem:[#allocation9_spill] sm:$0xff]  ;;  %v12859_v36 = vunpack.i.l.bf16 %v18393_v47 }
 0xcd2   : > { %10713 = vmatpush.msrb.mxu2 %v12855_v0  ;;  %10828 = vrot.lane.b32.xlu2 %v20202_v51, %s13428_s10  ;;  %v9806_v12 = vor.u32 1.1754944e-38, %v9805_v20  ;;  %vm9804_vm9 = vcmp.eq.f32.partialorder %v9803_v8, 8.507059e+37  ;;  %v20210_v51 = vld [vmem:[#allocation49_spill] sm:$0xff] }
 0xcd3   : > { %v10949_v46 = vpop.permute.xlu2 %10948 }
 0xcd4   : > { %v18407_v13 = vsel %vm11186_vm8, %v11163_v52, %v10949_v46 }
 0xcd6   : > { %v13361_v41 = vpop.eup %13360 }
 0xcd7   : > { %v9795_v43 = vmul.f32 %v13361_v41, %v9436_v27  ;;  %v9448_v23 = vpop.xlane.xlu1 %9447  ;;  %v10951_v21 = vpop.permute.xlu0 %10950  ;;  %vm9800_vm10 = vweird.f32 %v13361_v41 }
 0xcd8   : > { %13362 = vrcp.f32 %v9448_v23  ;;  %vm9801_vm6 = vmor %vm9799_vm11, %vm9800_vm10  ;;  %v9861_v53 = vand.u32 2147483648, %v9448_v23  ;;  %v9859_v1 = vand.u32 2147483647, %v9448_v23  ;;  %vm9855_vm13 = vweird.f32 %v9448_v23  ;;  %v18438_v46 = vpop.f32.mrf.mxu0 }
 0xcd9   : > { %v9796_v62 = vsub.f32 1.0, %v9795_v43  ;;  %v20211_v43 = vld [vmem:[#allocation21_spill] sm:$0xff] }
 0xcda   : > { %10830 = vrot.lane.b32.xlu2 %v20203_v29, %s13428_s10  ;;  %v9862_v5 = vor.u32 1.1754944e-38, %v9861_v53  ;;  %vm9860_vm14 = vcmp.eq.f32.partialorder %v9859_v1, 8.507059e+37 }
 0xcdb   : > { %v9797_v58 = vmul.f32 %v13361_v41, %v9796_v62  ;;  %v10823_v40 = vpop.permute.xlu2 %10822 }
 0xcdc   : > { %v11164_v48 = vsel %vm564_vm1, %v20204_v55, %v10823_v40 }
 0xcdd   : > { %v9798_v25 = vadd.f32 %v13361_v41, %v9797_v58  ;;  %v18414_v14 = vsel %vm11186_vm8, %v11164_v48, %v10951_v21 }
 0xcde   : > { %v13363_v26 = vpop.eup %13362 }
 0xcdf   : > { %v9802_v49 = vsel %vm9801_vm6, %v13361_v41, %v9798_v25  ;;  %v9851_v59 = vmul.f32 %v13363_v26, %v9448_v23  ;;  %v9430_v4 = vpop.xlane.xlu1 %9429  ;;  %v18416_v19 = vpop.permute.xlu0 %10824  ;;  %vm9856_vm12 = vweird.f32 %v13363_v26 }
 0xce0   : > { %v9807_v60 = vsel %vm9804_vm9, %v9806_v12, %v9802_v49  ;;  %13364 = vrcp.f32 %v9430_v4  ;;  %vm9857_vm15 = vmor %vm9855_vm13, %vm9856_vm12  ;;  %v9777_v18 = vand.u32 2147483648, %v9430_v4  ;;  %v9775_v38 = vand.u32 2147483647, %v9430_v4 }
 0xce1   : > { %v9930_v44 = vmul.f32 %v18079_v6, %v9807_v60  ;;  %v9852_v7 = vsub.f32 1.0, %v9851_v59  ;;  %vm9771_vm3 = vweird.f32 %v9430_v4 }
 0xce2   : > { %10832 = vrot.lane.b32.xlu2 %v20205_v22, %s13428_s10  ;;  %v9778_v16 = vor.u32 1.1754944e-38, %v9777_v18  ;;  %vm9776_vm5 = vcmp.eq.f32.partialorder %v9775_v38, 8.507059e+37 }
 0xce3   : > { %v9853_v50 = vmul.f32 %v13363_v26, %v9852_v7  ;;  %12420 = vmatmul.msk.f32.vlgmr.msra.gmra.mxu1 %vm564_vm1, %v9930_v44  ;;  %v10955_v57 = vpop.permute.xlu2 %10954 }
 0xce5   : > { %v9854_v31 = vadd.f32 %v13363_v26, %v9853_v50 }
 0xce6   : > { %v13365_v3 = vpop.eup %13364 }
 0xce7   : > { %v9858_v37 = vsel %vm9857_vm15, %v13363_v26, %v9854_v31  ;;  %v9767_v54 = vmul.f32 %v13365_v3, %v9430_v4  ;;  %v10827_v17 = vpop.permute.xlu0 %10826  ;;  %vm9772_vm2 = vweird.f32 %v13365_v3 }
 0xce8   : > { %v9863_v6 = vsel %vm9860_vm14, %v9862_v5, %v9858_v37  ;;  %v11166_v2 = vsel %vm564_vm1, %v20206_v61, %v10827_v17  ;;  %vm9773_vm4 = vmor %vm9771_vm3, %vm9772_vm2 }
 0xce9   : > { %v9934_v45 = vmul.f32 %v20207_v34, %v9863_v6  ;;  %v9768_v24 = vsub.f32 1.0, %v9767_v54  ;;  %v18426_v56 = vsel %vm11186_vm8, %v11166_v2, %v10955_v57 }
 0xcea   : > { %10834 = vrot.lane.b32.xlu2 %v20208_v32, %s13428_s10 }
 0xceb   : > { %v9769_v33 = vmul.f32 %v13365_v3, %v9768_v24  ;;  %12424 = vmatmul.msk.f32.vlgmr.msrb.gmra.mxu1 %vm564_vm1, %v9934_v45 }
 0xcec   : > { %v18433_v52 = vpop.f32.mrf.mxu1 }
 0xced   : > { %v9770_v15 = vadd.f32 %v13365_v3, %v9769_v33 }
 0xcef   : > { %v9774_v27 = vsel %vm9773_vm4, %v13365_v3, %v9770_v15 }
 0xcf0   : > { %v9779_v11 = vsel %vm9776_vm5, %v9778_v16, %v9774_v27 }
 0xcf1   : > { %v9928_v0 = vmul.f32 %v20209_v39, %v9779_v11  ;;  %v20212_v39 = vld [vmem:[#allocation131_spill] sm:$0xff] }
 0xcf2   : > { %10836 = vrot.lane.b32.xlu2 %v20210_v51, %s13428_s10 }
 0xcf3   : > { %12418 = vmatmul.msk.f32.vlgmr.msra.gmra.mxu3 %vm564_vm1, %v9928_v0 }
 0xcf4   : > { %10739 = vmatpush.msra.mxu3 %v12859_v36  ;;  %v18446_v47 = vpop.f32.mrf.mxu1 }
 0xcf7   : > { %v10819_v41 = vpop.permute.xlu1 %10818 }
 0xcf8   : > { %v11162_v23 = vsel %vm564_vm1, %v20211_v43, %v10819_v41 }
 0xcf9   : > { %v18444_v21 = vsel %vm11186_vm8, %v11162_v23, %v18372_v30 }
 0xcfc   : > { %v10143_v62 = vpop.f32.mrf.mxu0 }
 0xcfd   : > { %11072 = vrot.lane.b32.xlu0 %v10143_v62, %s13430_s13 }
 0xd03   : > { %v18451_v29 = vpop.f32.mrf.mxu2 }
 0xd04   : > { %v10169_v20 = vpop.f32.mrf.mxu1 }
 0xd05   : > { %11074 = vrot.lane.b32.xlu0 %v10169_v20, %s13430_s13 }
 0xd0b   : > { %v18455_v26 = vpop.f32.mrf.mxu2 }
 0xd0d   : > { %v10247_v58 = vpop.f32.mrf.mxu0 }
 0xd0e   : > { %11080 = vrot.lane.b32.xlu2 %v10247_v58, %s13430_s13 }
 0xd12   : > { %v9439_v8 = vpop.xlane.xlu0 %9438  ;;  %v18457_v1 = vpop.f32.mrf.mxu3 }
 0xd13   : > { %13366 = vrcp.f32 %v9439_v8  ;;  %v9819_v12 = vand.u32 2147483648, %v9439_v8  ;;  %v9817_v4 = vand.u32 2147483647, %v9439_v8  ;;  %vm9813_vm10 = vweird.f32 %v9439_v8 }
 0xd14   : > { %v10273_v40 = vpop.f32.mrf.mxu1 }
 0xd15   : > { %11082 = vrot.lane.b32.xlu0 %v10273_v40, %s13430_s13  ;;  %v10351_v30 = vpop.f32.mrf.mxu0  ;;  %v9820_v44 = vor.u32 1.1754944e-38, %v9819_v12  ;;  %vm9818_vm6 = vcmp.eq.f32.partialorder %v9817_v4, 8.507059e+37  ;;  %v20213_v4 = vld [vmem:[#allocation74_spill] sm:$0xff] }
 0xd16   : > { %11088 = vrot.lane.b32.xlu1 %v10351_v30, %s13430_s13 }
 0xd19   : > { %v13367_v55 = vpop.eup %13366 }
 0xd1a   : > { %v9809_v48 = vmul.f32 %v13367_v55, %v9439_v8  ;;  %vm9814_vm7 = vweird.f32 %v13367_v55 }
 0xd1b   : > { %vm9815_vm11 = vmor %vm9813_vm10, %vm9814_vm7 }
 0xd1c   : > { %v9810_v25 = vsub.f32 1.0, %v9809_v48 }
 0xd1d   : > { %v9442_v49 = vpop.xlane.xlu2 %9441 }
 0xd1e   : > { %v9811_v59 = vmul.f32 %v13367_v55, %v9810_v25  ;;  %13368 = vrcp.f32 %v9442_v49  ;;  %v9833_v6 = vand.u32 2147483648, %v9442_v49  ;;  %v9831_v2 = vand.u32 2147483647, %v9442_v49 }
 0xd1f   : > { %vm9827_vm12 = vweird.f32 %v9442_v49 }
 0xd20   : > { %v9812_v60 = vadd.f32 %v13367_v55, %v9811_v59  ;;  %v9834_v24 = vor.u32 1.1754944e-38, %v9833_v6  ;;  %vm9832_vm15 = vcmp.eq.f32.partialorder %v9831_v2, 8.507059e+37  ;;  %v20215_v6 = vld [vmem:[#allocation174_spill] sm:$0xff] }
 0xd22   : > { %v9816_v7 = vsel %vm9815_vm11, %v13367_v55, %v9812_v60  ;;  %v9457_v53 = vpop.xlane.xlu1 %9456 }
 0xd23   : > { %v9821_v50 = vsel %vm9818_vm6, %v9820_v44, %v9816_v7  ;;  %13370 = vrcp.f32 %v9457_v53  ;;  %v10195_v5 = vpop.f32.mrf.mxu2  ;;  %v9901_v32 = vand.u32 2147483647, %v9457_v53  ;;  %v9903_v15 = vand.u32 2147483648, %v9457_v53  ;;  %v20214_v7 = vld [vmem:[#allocation45_spill] sm:$0xff] }
 0xd24   : > { %v13369_v22 = vpop.eup %13368  ;;  %v9931_v31 = vmul.f32 %v18220_v42, %v9821_v50  ;;  %11076 = vrot.lane.b32.xlu0 %v10195_v5, %s13430_s13  ;;  %v10377_v54 = vpop.f32.mrf.mxu1  ;;  %vm9897_vm2 = vweird.f32 %v9457_v53 }
 0xd25   : > { %v9823_v3 = vmul.f32 %v13369_v22, %v9442_v49  ;;  %v9451_v37 = vpop.xlane.xlu2 %9450  ;;  %11090 = vrot.lane.b32.xlu1 %v10377_v54, %s13430_s13  ;;  %vm9828_vm9 = vweird.f32 %v13369_v22  ;;  %v18463_v42 = vpop.f32.mrf.mxu3  ;;  %vm9902_vm4 = vcmp.eq.f32.partialorder %v9901_v32, 8.507059e+37  ;;  %v9904_v23 = vor.u32 1.1754944e-38, %v9903_v15  ;;  %v20219_v15 = vld [vmem:[#allocation12_spill] sm:$0xff] }
 0xd26   : > { %12421 = vmatmul.msk.f32.vlgmr.msra.gmra.mxu2 %vm564_vm1, %v9931_v31  ;;  %13372 = vrcp.f32 %v9451_v37  ;;  %vm9829_vm13 = vmor %vm9827_vm12, %vm9828_vm9  ;;  %v10957_v62 = vpop.permute.xlu0 %10956  ;;  %v9875_v20 = vand.u32 2147483648, %v9451_v37  ;;  %v9873_v40 = vand.u32 2147483647, %v9451_v37  ;;  %vm9869_vm7 = vweird.f32 %v9451_v37 }
 0xd27   : > { %v9824_v17 = vsub.f32 1.0, %v9823_v3 }
 0xd28   : > { %v9876_v12 = vor.u32 1.1754944e-38, %v9875_v20  ;;  %vm9874_vm11 = vcmp.eq.f32.partialorder %v9873_v40, 8.507059e+37  ;;  %v20224_v40 = vld [vmem:[#allocation114_spill] sm:$0xff] }
 0xd29   : > { %v13371_v57 = vpop.eup %13370  ;;  %v9825_v61 = vmul.f32 %v13369_v22, %v9824_v17 }
 0xd2a   : > { %v9893_v34 = vmul.f32 %v13371_v57, %v9457_v53  ;;  %vm9898_vm14 = vweird.f32 %v13371_v57 }
 0xd2b   : > { %v9826_v45 = vadd.f32 %v13369_v22, %v9825_v61  ;;  %vm9899_vm3 = vmor %vm9897_vm2, %vm9898_vm14  ;;  %v20216_v61 = vld [vmem:[#allocation162_spill] sm:$0xff] }
 0xd2c   : > { %v9894_v18 = vsub.f32 1.0, %v9893_v34  ;;  %v13373_v33 = vpop.eup %13372  ;;  %10964 = vrot.lane.b32.xlu0 %v20212_v39, %s13429_s12  ;;  %v11255_v39 = vld [vmem:[%s19248_s2 + $0x18] sm:$0xff] }
 0xd2d   : > { %v9830_v38 = vsel %vm9829_vm13, %v13369_v22, %v9826_v45  ;;  %v9865_v11 = vmul.f32 %v13373_v33, %v9451_v37  ;;  %v9454_v0 = vpop.xlane.xlu2 %9453  ;;  %vm9870_vm5 = vweird.f32 %v13373_v33  ;;  %v20217_v45 = vld [vmem:[#allocation107_spill] sm:$0xff]  ;;  %12494 = vmatpush.msra.mxu1 %v11255_v39  ;;  %11368 = vmatpush.msra.mxu0 %v11255_v39 }
 0xd2e   : > { %v9835_v16 = vsel %vm9832_vm15, %v9834_v24, %v9830_v38  ;;  %v9895_v27 = vmul.f32 %v13371_v57, %v9894_v18  ;;  %13374 = vrcp.f32 %v9454_v0  ;;  %v10455_v51 = vpop.f32.mrf.mxu0  ;;  %vm9871_vm10 = vmor %vm9869_vm7, %vm9870_vm5  ;;  %v9889_v3 = vand.u32 2147483648, %v9454_v0  ;;  %v10959_v54 = vpop.permute.xlu0 %10958  ;;  %v20218_v38 = vld [vmem:[#allocation182_spill] sm:$0xff] }
 0xd2f   : > { %v9932_v36 = vmul.f32 %v18249_v28, %v9835_v16  ;;  %v9866_v43 = vsub.f32 1.0, %v9865_v11  ;;  %11096 = vrot.lane.b32.xlu1 %v10455_v51, %s13430_s13  ;;  %v9887_v37 = vand.u32 2147483647, %v9454_v0  ;;  %vm9883_vm9 = vweird.f32 %v9454_v0  ;;  %v20220_v11 = vld [vmem:[#allocation62_spill] sm:$0xff] }
 0xd30   : > { %v9896_v41 = vadd.f32 %v13371_v57, %v9895_v27  ;;  %vm11219_vm15 = vcmask 195584  }
 0xd31   : > { %12422 = vmatmul.msk.f32.vlgmr.msrb.gmra.mxu3 %vm564_vm1, %v9932_v36  ;;  %v9867_v8 = vmul.f32 %v13373_v33, %v9866_v43  ;;  %vm9888_vm13 = vcmp.eq.f32.partialorder %v9887_v37, 8.507059e+37  ;;  %v20222_v36 = vld [vmem:[#allocation25_spill] sm:$0xff]  ;;  %v11253_v43 = vld [vmem:[%s19248_s2 + $0x8] sm:$0xff] }
 0xd32   : > { %v9900_v58 = vsel %vm9899_vm3, %v13371_v57, %v9896_v41  ;;  %v10221_v28 = vpop.f32.mrf.mxu3  ;;  %v11254_v41 = vld [vmem:[%s19248_s2 + $0x10] sm:$0xff] }
 0xd33   : > { %v9905_v30 = vsel %vm9902_vm4, %v9904_v23, %v9900_v58  ;;  %v9868_v48 = vadd.f32 %v13373_v33, %v9867_v8  ;;  %11078 = vrot.lane.b32.xlu2 %v10221_v28, %s13430_s13  ;;  %12495 = vmatpush.msra.mxu1 %v11254_v41  ;;  %v11252_v58 = vld [vmem:[%s19248_s2] sm:$0xff]  ;;  %v20226_v28 = vld [vmem:[#allocation176_spill] sm:$0xff] }
 0xd34   : > { %v9937_v55 = vmul.f32 %v18241_v63, %v9905_v30  ;;  %v13375_v25 = vpop.eup %13374  ;;  %10966 = vrot.lane.b32.xlu0 %v20213_v4, %s13429_s12  ;;  %11369 = vmatpush.msra.mxu0 %v11254_v41  ;;  %v20225_v30 = vld [vmem:[#allocation14_spill] sm:$0xff]  ;;  %v20231_v4 = vld [vmem:[#allocation67_spill] sm:$0xff]  ;;  %v20246_v41 = vld [vmem:[#allocation36_spill] sm:$0xff] }
 0xd35   : > { %v9872_v49 = vsel %vm9871_vm10, %v13373_v33, %v9868_v48  ;;  %v9879_v59 = vmul.f32 %v13375_v25, %v9454_v0  ;;  %v10829_v60 = vpop.permute.xlu2 %10828  ;;  %vm9884_vm6 = vweird.f32 %v13375_v25  ;;  %v20221_v0 = vld [vmem:[#allocation175_spill] sm:$0xff]  ;;  %12496 = vmatpush.msra.mxu1 %v11253_v43 }
 0xd36   : > { %12427 = vmatmul.msk.f32.vlgmr.msrb.gmra.mxu0 %vm564_vm1, %v9937_v55  ;;  %v9877_v44 = vsel %vm9874_vm11, %v9876_v12, %v9872_v49  ;;  %v11167_v63 = vsel %vm564_vm1, %v20214_v7, %v10829_v60  ;;  %vm9885_vm12 = vmor %vm9883_vm9, %vm9884_vm6  ;;  %v10961_v32 = vpop.permute.xlu0 %10960  ;;  %v20227_v55 = vld [vmem:[#allocation50_spill] sm:$0xff]  ;;  %v20233_v7 = vld [vmem:[#allocation101_spill] sm:$0xff] }
 0xd37   : > { %v10481_v53 = vpop.f32.mrf.mxu1  ;;  %v9935_v50 = vmul.f32 %v18284_v35, %v9877_v44  ;;  %v9880_v22 = vsub.f32 1.0, %v9879_v59  ;;  %v18480_v31 = vsel %vm11186_vm8, %v11167_v63, %v10957_v62  ;;  %v9890_v35 = vor.u32 1.1754944e-38, %v9889_v3  ;;  %v20223_v62 = vld [vmem:[#allocation108_spill] sm:$0xff]  ;;  %11370 = vmatpush.msra.mxu0 %v11253_v43  ;;  %12497 = vmatpush.msra.mxu1 %v11252_v58  ;;  %v20229_v12 = vld [vmem:[#allocation34_spill] sm:$0xff] }
 0xd38   : > { %11098 = vrot.lane.b32.xlu1 %v10481_v53, %s13430_s13  ;;  %v20230_v59 = vld [vmem:[#allocation56_spill] sm:$0xff]  ;;  %v20232_v60 = vld [vmem:[#allocation58_spill] sm:$0xff] }
 0xd39   : > { %v9881_v5 = vmul.f32 %v13375_v25, %v9880_v22  ;;  %12425 = vmatmul.msk.f32.vlgmr.msrb.gmra.mxu2 %vm564_vm1, %v9935_v50  ;;  %11371 = vmatpush.msra.mxu0 %v11252_v58  ;;  %v11161_v44 = vsel %vm564_vm1, %v20232_v60, %v20231_v4  ;;  %v20234_v3 = vld [vmem:[#allocation122_spill] sm:$0xff]  ;;  %v20248_v58 = vld [vmem:[#allocation15_spill] sm:$0xff] }
 0xd3a   : > { %v10299_v49 = vpop.f32.mrf.mxu2  ;;  %v11194_v63 = vsel %vm11186_vm8, %v11161_v44, %v18377_v10  ;;  %v20236_v10 = vld [vmem:[#allocation178_spill] sm:$0xff] }
 0xd3b   : > { %v9882_v17 = vadd.f32 %v13375_v25, %v9881_v5  ;;  %10838 = vrot.lane.b32.xlu2 %v20215_v6, %s13428_s10  ;;  %v20235_v5 = vld [vmem:[#allocation85_spill] sm:$0xff]  ;;  %v20253_v44 = vld [vmem:[#allocation102_spill] sm:$0xff] }
 0xd3c   : > { %10968 = vrot.lane.b32.xlu0 %v20216_v61, %s13429_s12  ;;  %v20237_v6 = vld [vmem:[#allocation13_spill] sm:$0xff]  ;;  %v20239_v61 = vld [vmem:[#allocation38_spill] sm:$0xff] }
 0xd3d   : > { %v9886_v57 = vsel %vm9885_vm12, %v13375_v25, %v9882_v17  ;;  %v10831_v2 = vpop.permute.xlu2 %10830  ;;  %v20228_v25 = vld [vmem:[#allocation183_spill] sm:$0xff] }
 0xd3e   : > { %v9891_v34 = vsel %vm9888_vm13, %v9890_v35, %v9886_v57  ;;  %v11168_v24 = vsel %vm564_vm1, %v20217_v45, %v10831_v2  ;;  %v10963_v23 = vpop.permute.xlu0 %10962  ;;  %v10953_v35 = vpop.permute.xlu1 %10952  ;;  %v20238_v57 = vld [vmem:[#allocation118_spill] sm:$0xff]  ;;  %v20240_v45 = vld [vmem:[#allocation180_spill] sm:$0xff] }
 0xd3f   : > { %v9936_v18 = vmul.f32 %v18298_v9, %v9891_v34  ;;  %v18493_v33 = vsel %vm11186_vm8, %v11168_v24, %v10959_v54  ;;  %v10559_v27 = vpop.f32.mrf.mxu0 }
 0xd40   : > { %11058 = vrot.lane.b32.xlu1 %v18433_v52, %s13430_s13 }
 0xd41   : > { %12426 = vmatmul.msk.f32.vlgmr.msra.gmra.mxu3 %vm564_vm1, %v9936_v18 }
 0xd42   : > { %v10325_v50 = vpop.f32.mrf.mxu3 }
 0xd43   : > { %10840 = vrot.lane.b32.xlu2 %v20218_v38, %s13428_s10 }
 0xd44   : > { %10970 = vrot.lane.b32.xlu0 %v20219_v15, %s13429_s12  ;;  %v20243_v15 = vld [vmem:[#allocation119_spill] sm:$0xff] }
 0xd45   : > { %v10833_v16 = vpop.permute.xlu2 %10832 }
 0xd46   : > { %v11169_v9 = vsel %vm564_vm1, %v20220_v11, %v10833_v16 }
 0xd47   : > { %v11202_v52 = vsel %vm11186_vm8, %v11169_v9, %v10961_v32  ;;  %v20242_v32 = vld [vmem:[#allocation112_spill] sm:$0xff] }
 0xd48   : > { %11104 = vrot.lane.b32.xlu1 %v10559_v27, %s13430_s13  ;;  %v10663_v27 = vpop.f32.mrf.mxu0 }
 0xd4b   : > { %10842 = vrot.lane.b32.xlu2 %v20221_v0, %s13428_s10  ;;  %v20244_v0 = vld [vmem:[#allocation125_spill] sm:$0xff] }
 0xd4c   : > { %10972 = vrot.lane.b32.xlu0 %v20222_v36, %s13429_s12  ;;  %v20245_v36 = vld [vmem:[#allocation158_spill] sm:$0xff] }
 0xd4d   : > { %v10835_v51 = vpop.permute.xlu2 %10834 }
 0xd4e   : > { %v11170_v20 = vsel %vm564_vm1, %v20223_v62, %v10835_v51 }
 0xd4f   : > { %v11203_v8 = vsel %vm11186_vm8, %v11170_v20, %v10963_v23  ;;  %v20247_v20 = vld [vmem:[#allocation18_spill] sm:$0xff] }
 0xd53   : > { %10844 = vrot.lane.b32.xlu2 %v20224_v40, %s13428_s10  ;;  %v10429_v18 = vpop.f32.mrf.mxu3  ;;  %v20249_v40 = vld [vmem:[#allocation97_spill] sm:$0xff] }
 0xd54   : > { %10974 = vrot.lane.b32.xlu0 %v20225_v30, %s13429_s12  ;;  %v11165_v30 = vsel %vm564_vm1, %v20249_v40, %v18416_v19 }
 0xd55   : > { %v10837_v17 = vpop.permute.xlu2 %10836 }
 0xd56   : > { %v11171_v43 = vsel %vm564_vm1, %v20246_v41, %v10837_v17  ;;  %v20256_v17 = vld [vmem:[#allocation65_spill] sm:$0xff] }
 0xd5b   : > { %10846 = vrot.lane.b32.xlu2 %v20226_v28, %s13428_s10 }
 0xd5c   : > { %10976 = vrot.lane.b32.xlu0 %v20227_v55, %s13429_s12  ;;  %v20250_v55 = vld [vmem:[#allocation61_spill] sm:$0xff] }
 0xd60   : > { %v10585_v48 = vpop.f32.mrf.mxu1 }
 0xd61   : > { %11106 = vrot.lane.b32.xlu1 %v10585_v48, %s13430_s13 }
 0xd63   : > { %10848 = vrot.lane.b32.xlu2 %v20228_v25, %s13428_s10 }
 0xd64   : > { %10978 = vrot.lane.b32.xlu0 %v20229_v12, %s13429_s12 }
 0xd69   : > { %11084 = vrot.lane.b32.xlu1 %v10299_v49, %s13430_s13  ;;  %v20251_v49 = vld [vmem:[#allocation177_spill] sm:$0xff] }
 0xd6b   : > { %10850 = vrot.lane.b32.xlu2 %v20230_v59, %s13428_s10  ;;  %v20252_v59 = vld [vmem:[#allocation138_spill] sm:$0xff] }
 0xd6c   : > { %10930 = vrot.lane.b32.xlu0 %v20233_v7, %s13429_s12 }
 0xd6f   : > { %v11073_v53 = vpop.permute.xlu0 %11072 }
 0xd70   : > { %v11227_v22 = vsel %vm11219_vm15, %v11194_v63, %v11073_v53 }
 0xd71   : > { %11086 = vrot.lane.b32.xlu1 %v10325_v50, %s13430_s13  ;;  %12435 = vmatmul.msk.f32.vlgmr.msra.gmra.mxu1 %vm345_vm0, %v11227_v22 }
 0xd73   : > { %10802 = vrot.lane.b32.xlu2 %v20234_v3, %s13428_s10  ;;  %v20254_v3 = vld [vmem:[#allocation55_spill] sm:$0xff] }
 0xd74   : > { %10980 = vrot.lane.b32.xlu0 %v20235_v5, %s13429_s12  ;;  %v20255_v5 = vld [vmem:[#allocation59_spill] sm:$0xff] }
 0xd76   : > { %v10533_v60 = vpop.f32.mrf.mxu3 }
 0xd77   : > { %v11075_v37 = vpop.permute.xlu0 %11074 }
 0xd78   : > { %v11228_v54 = vsel %vm11219_vm15, %v18444_v21, %v11075_v37  ;;  %v11081_v21 = vpop.permute.xlu2 %11080 }
 0xd79   : > { %11060 = vrot.lane.b32.xlu1 %v18451_v29, %s13430_s13  ;;  %12436 = vmatmul.msk.f32.gmra.mxu1 %vm345_vm0, %v11228_v54  ;;  %v10403_v29 = vpop.f32.mrf.mxu2 }
 0xd7b   : > { %10852 = vrot.lane.b32.xlu2 %v20236_v10, %s13428_s10  ;;  %v10689_v10 = vpop.f32.mrf.mxu1 }
 0xd7c   : > { %10932 = vrot.lane.b32.xlu0 %v20237_v6, %s13429_s12 }
 0xd81   : > { %11062 = vrot.lane.b32.xlu1 %v18457_v1, %s13430_s13  ;;  %v20241_v1 = vld [vmem:[#allocation93_spill] sm:$0xff]  ;;  %v10507_v28 = vpop.f32.mrf.mxu2 }
 0xd83   : > { %10804 = vrot.lane.b32.xlu2 %v20238_v57, %s13428_s10 }
 0xd84   : > { %10982 = vrot.lane.b32.xlu0 %v20239_v61, %s13429_s12  ;;  %v20258_v61 = vld [vmem:[#allocation96_spill] sm:$0xff] }
 0xd87   : > { %v11083_v38 = vpop.permute.xlu0 %11082 }
 0xd88   : > { %v11089_v2 = vpop.permute.xlu1 %11088  ;;  %v11232_v53 = vsel %vm11219_vm15, %v18426_v56, %v11083_v38  ;;  %v20260_v38 = vld [vmem:[#allocation120_spill] sm:$0xff] }
 0xd89   : > { %11092 = vrot.lane.b32.xlu1 %v10403_v29, %s13430_s13  ;;  %v18570_v34 = vsel %vm11219_vm15, %v11202_v52, %v11089_v2  ;;  %v20259_v2 = vld [vmem:[#allocation71_spill] sm:$0xff] }
 0xd8b   : > { %10854 = vrot.lane.b32.xlu2 %v20240_v45, %s13428_s10 }
 0xd8c   : > { %10934 = vrot.lane.b32.xlu0 %v20241_v1, %s13429_s12 }
 0xd8d   : > { %v11079_v24 = vpop.permute.xlu2 %11078 }
 0xd91   : > { %11094 = vrot.lane.b32.xlu1 %v10429_v18, %s13430_s13 }
 0xd93   : > { %10806 = vrot.lane.b32.xlu2 %v20242_v32, %s13428_s10  ;;  %v20261_v32 = vld [vmem:[#allocation53_spill] sm:$0xff] }
 0xd94   : > { %10984 = vrot.lane.b32.xlu0 %v20243_v15, %s13429_s12 }
 0xd95   : > { %v10839_v16 = vpop.permute.xlu2 %10838 }
 0xd96   : > { %v11077_v11 = vpop.permute.xlu0 %11076  ;;  %v11172_v48 = vsel %vm564_vm1, %v20250_v55, %v10839_v16  ;;  %v20262_v16 = vld [vmem:[#allocation68_spill] sm:$0xff]  ;;  %v20266_v55 = vld [vmem:[#allocation123_spill] sm:$0xff] }
 0xd97   : > { %v11229_v9 = vsel %vm11219_vm15, %v18407_v13, %v11077_v11  ;;  %v11091_v52 = vpop.permute.xlu1 %11090  ;;  %v11230_v13 = vsel %vm11219_vm15, %v18414_v14, %v11079_v24  ;;  %v11198_v14 = vsel %vm11186_vm8, %v11165_v30, %v10953_v35 }
 0xd98   : > { %12437 = vmatmul.msk.f32.gmra.mxu1 %vm345_vm0, %v11229_v9  ;;  %v18586_v39 = vsel %vm11219_vm15, %v11203_v8, %v11091_v52  ;;  %v11231_v25 = vsel %vm11219_vm15, %v11198_v14, %v11081_v21  ;;  %v20257_v21 = vld [vmem:[#allocation173_spill] sm:$0xff]  ;;  %v11502_v14 = vld [vmem:[%s19250_s4 + $0x8] sm:$0xff] }
 0xd99   : > { %11112 = vrot.lane.b32.xlu1 %v10663_v27, %s13430_s13 }
 0xd9b   : > { %10856 = vrot.lane.b32.xlu2 %v20244_v0, %s13428_s10 }
 0xd9c   : > { %10936 = vrot.lane.b32.xlu0 %v20245_v36, %s13429_s12  ;;  %v11504_v36 = vld [vmem:[%s19250_s4 + $0x18] sm:$0xff] }
 0xd9d   : > { %v10841_v51 = vpop.permute.xlu2 %10840  ;;  %12498 = vmatpush.msra.mxu2 %v11504_v36  ;;  %11617 = vmatpush.msrb.mxu0 %v11504_v36 }
 0xd9e   : > { %v10965_v23 = vpop.permute.xlu0 %10964  ;;  %v11173_v7 = vsel %vm564_vm1, %v20253_v44, %v10841_v51  ;;  %v20264_v51 = vld [vmem:[#allocation140_spill] sm:$0xff]  ;;  %v20269_v44 = vld [vmem:[#allocation127_spill] sm:$0xff] }
 0xd9f   : > { %v18597_v62 = vsel %vm11186_vm8, %v11171_v43, %v10965_v23  ;;  %v20265_v43 = vld [vmem:[#allocation48_spill] sm:$0xff] }
 0xda0   : > { %12438 = vmatmul.msk.f32.gmra.mxu1 %vm345_vm0, %v11230_v13 }
 0xda1   : > { %11064 = vrot.lane.b32.xlu1 %v18438_v46, %s13430_s13  ;;  %v11097_v19 = vpop.permute.xlu1 %11096 }
 0xda3   : > { %10808 = vrot.lane.b32.xlu2 %v20247_v20, %s13428_s10 }
 0xda4   : > { %10986 = vrot.lane.b32.xlu0 %v20248_v58, %s13429_s12  ;;  %v11503_v58 = vld [vmem:[%s19250_s4 + $0x10] sm:$0xff] }
 0xda5   : > { %v10843_v8 = vpop.permute.xlu2 %10842  ;;  %12499 = vmatpush.msra.mxu2 %v11503_v58  ;;  %11618 = vmatpush.msrb.mxu0 %v11503_v58 }
 0xda6   : > { %v10967_v46 = vpop.permute.xlu0 %10966  ;;  %v11174_v56 = vsel %vm564_vm1, %v20256_v17, %v10843_v8 }
 0xda7   : > { %v18614_v12 = vsel %vm11186_vm8, %v11172_v48, %v10967_v46  ;;  %12500 = vmatpush.msra.mxu2 %v11502_v14  ;;  %11619 = vmatpush.msrb.mxu0 %v11502_v14  ;;  %v20267_v48 = vld [vmem:[#allocation32_spill] sm:$0xff] }
 0xda8   : > { %12439 = vmatmul.msk.f32.gmra.mxu1 %vm345_vm0, %v11231_v25  ;;  %v20268_v46 = vld [vmem:[#allocation80_spill] sm:$0xff] }
 0xda9   : > { %11100 = vrot.lane.b32.xlu1 %v10507_v28, %s13430_s13  ;;  %v10611_v15 = vpop.f32.mrf.mxu2  ;;  %v11501_v28 = vld [vmem:[%s19250_s4] sm:$0xff] }
 0xdaa   : > { %v11099_v54 = vpop.permute.xlu1 %11098  ;;  %12501 = vmatpush.msra.mxu2 %v11501_v28  ;;  %11620 = vmatpush.msrb.mxu0 %v11501_v28 }
 0xdab   : > { %10858 = vrot.lane.b32.xlu2 %v20251_v49, %s13428_s10 }
 0xdac   : > { %10938 = vrot.lane.b32.xlu0 %v20252_v59, %s13429_s12 }
 0xdad   : > { %v10845_v4 = vpop.permute.xlu2 %10844 }
 0xdae   : > { %v10969_v63 = vpop.permute.xlu0 %10968  ;;  %v11175_v45 = vsel %vm564_vm1, %v20259_v2, %v10845_v4 }
 0xdaf   : > { %v11206_v50 = vsel %vm11186_vm8, %v11173_v7, %v10969_v63  ;;  %v20270_v63 = vld [vmem:[#allocation30_spill] sm:$0xff] }
 0xdb0   : > { %12440 = vmatmul.msk.f32.gmra.mxu1 %vm345_vm0, %v11232_v53  ;;  %v18630_v22 = vsel %vm11219_vm15, %v11206_v50, %v11097_v19 }
 0xdb1   : > { %11102 = vrot.lane.b32.xlu1 %v10533_v60, %s13430_s13 }
 0xdb2   : > { %v11059_v24 = vpop.permute.xlu1 %11058 }
 0xdb3   : > { %10810 = vrot.lane.b32.xlu2 %v20254_v3, %s13428_s10 }
 0xdb4   : > { %10988 = vrot.lane.b32.xlu0 %v20255_v5, %s13429_s12  ;;  %v10637_v41 = vpop.f32.mrf.mxu3 }
 0xdb5   : > { %v10847_v37 = vpop.permute.xlu2 %10846 }
 0xdb6   : > { %v10971_v6 = vpop.permute.xlu0 %10970  ;;  %v11176_v27 = vsel %vm564_vm1, %v20262_v16, %v10847_v37 }
 0xdb7   : > { %v11207_v35 = vsel %vm11186_vm8, %v11174_v56, %v10971_v6 }
 0xdb8   : > { %v18641_v57 = vsel %vm11219_vm15, %v11207_v35, %v11099_v54  ;;  %v18723_v35 = vld [vmem:[%s19249_s3] ss:$0 sm:$0xff] }
 0xdb9   : > { %11114 = vrot.lane.b32.xlu1 %v10689_v10, %s13430_s13  ;;  %v20271_v10 = vld [vmem:[#allocation60_spill] sm:$0xff] }
 0xdba   : > { %v11105_v0 = vpop.permute.xlu1 %11104 }
 0xdbb   : > { %10860 = vrot.lane.b32.xlu2 %v20257_v21, %s13428_s10 }
 0xdbc   : > { %10940 = vrot.lane.b32.xlu0 %v20258_v61, %s13429_s12  ;;  %v10715_v54 = vpop.f32.mrf.mxu2 }
 0xdbd   : > { %v10849_v29 = vpop.permute.xlu2 %10848 }
 0xdbe   : > { %v10973_v1 = vpop.permute.xlu0 %10972  ;;  %v11177_v23 = vsel %vm564_vm1, %v20265_v43, %v10849_v29  ;;  %v20272_v29 = vld [vmem:[#allocation47_spill] sm:$0xff] }
 0xdbf   : > { %v18650_v18 = vsel %vm11186_vm8, %v11175_v45, %v10973_v1 }
 0xdc1   : > { %11066 = vrot.lane.b32.xlu1 %v18446_v47, %s13430_s13  ;;  %v20263_v47 = vld [vmem:[#allocation132_spill] sm:$0xff] }
 0xdc3   : > { %10812 = vrot.lane.b32.xlu2 %v20260_v38, %s13428_s10  ;;  %v13376_v38 = vld [vmem:[%s13504_s19 + $0x38] sm:$0xff] }
 0xdc4   : > { %10990 = vrot.lane.b32.xlu0 %v20261_v32, %s13429_s12  ;;  %v10741_v61 = vpop.f32.mrf.mxu3 }
 0xdc5   : > { %v10851_v9 = vpop.permute.xlu2 %10850 }
 0xdc6   : > { %v10975_v11 = vpop.permute.xlu0 %10974  ;;  %v11178_v25 = vsel %vm564_vm1, %v20268_v46, %v10851_v9 }
 0xdc7   : > { %v18661_v52 = vsel %vm11186_vm8, %v11176_v27, %v10975_v11  ;;  %v10767_v27 = vpop.f32.mrf.mxu0  ;;  %v20273_v11 = vld [vmem:[#allocation69_spill] sm:$0xff] }
 0xdc9   : > { %11108 = vrot.lane.b32.xlu1 %v10611_v15, %s13430_s13 }
 0xdcb   : > { %10862 = vrot.lane.b32.xlu2 %v20263_v47, %s13428_s10 }
 0xdcc   : > { %10942 = vrot.lane.b32.xlu0 %v20264_v51, %s13429_s12  ;;  %v13377_v51 = vld [vmem:[%s13504_s19 + $0x40] sm:$0xff] }
 0xdcd   : > { %v10803_v40 = vpop.permute.xlu2 %10802 }
 0xdce   : > { %v10977_v13 = vpop.permute.xlu0 %10976  ;;  %v11154_v53 = vsel %vm564_vm1, %v20270_v63, %v10803_v40 }
 0xdcf   : > { %v11210_v20 = vsel %vm11186_vm8, %v11177_v23, %v10977_v13  ;;  %v20274_v13 = vld [vmem:[#allocation103_spill] sm:$0xff] }
 0xdd0   : > { %v18679_v8 = vsel %vm11219_vm15, %v11210_v20, %v11105_v0 }
 0xdd1   : > { %11110 = vrot.lane.b32.xlu1 %v10637_v41, %s13430_s13 }
 0xdd3   : > { %v11107_v30 = vpop.permute.xlu1 %11106  ;;  %10814 = vrot.lane.b32.xlu2 %v20266_v55, %s13428_s10  ;;  %v20275_v55 = vld [vmem:[#allocation83_spill] sm:$0xff] }
 0xdd4   : > { %10992 = vrot.lane.b32.xlu0 %v20267_v48, %s13429_s12 }
 0xdd5   : > { %v10853_v7 = vpop.permute.xlu2 %10852 }
 0xdd6   : > { %v10979_v49 = vpop.permute.xlu0 %10978  ;;  %v11179_v17 = vsel %vm564_vm1, %v20271_v10, %v10853_v7 }
 0xdd7   : > { %v11211_v19 = vsel %vm11186_vm8, %v11178_v25, %v10979_v49 }
 0xdd8   : > { %v18697_v59 = vsel %vm11219_vm15, %v11211_v19, %v11107_v30 }
 0xdd9   : > { %11068 = vrot.lane.b32.xlu1 %v18455_v26, %s13430_s13 }
 0xddb   : > { %v11085_v4 = vpop.permute.xlu1 %11084  ;;  %10864 = vrot.lane.b32.xlu2 %v20269_v44, %s13428_s10 }
 0xddc   : > { %v11233_v60 = vsel %vm11219_vm15, %v18480_v31, %v11085_v4 }
 0xddd   : > { %12441 = vmatmul.msk.f32.gmra.mxu1 %vm345_vm0, %v11233_v60  ;;  %v10805_v37 = vpop.permute.xlu2 %10804 }
 0xdde   : > { %v10931_v50 = vpop.permute.xlu0 %10930  ;;  %v11155_v2 = vsel %vm564_vm1, %v20272_v29, %v10805_v37 }
 0xddf   : > { %v11187_v3 = vsel %vm11186_vm8, %v11154_v53, %v10931_v50 }
 0xde0   : > { %v11220_v26 = vsel %vm11219_vm15, %v11187_v3, %v11059_v24 }
 0xde1   : > { %11070 = vrot.lane.b32.xlu1 %v18463_v42, %s13430_s13  ;;  %12428 = vmatmul.msk.f32.vlgmr.msra.gmra.mxu0 %vm345_vm0, %v11220_v26 }
 0xde3   : > { %v11087_v31 = vpop.permute.xlu1 %11086 }
 0xde4   : > { %v11234_v5 = vsel %vm11219_vm15, %v18493_v33, %v11087_v31 }
 0xde5   : > { %12442 = vmatmul.msk.f32.gmra.mxu1 %vm345_vm0, %v11234_v5  ;;  %v10855_v1 = vpop.permute.xlu2 %10854 }
 0xde6   : > { %v10981_v56 = vpop.permute.xlu0 %10980  ;;  %v11180_v9 = vsel %vm564_vm1, %v20273_v11, %v10855_v1 }
 0xde7   : > { %v18717_v6 = vsel %vm11186_vm8, %v11179_v17, %v10981_v56  ;;  %v13379_v17 = vld [vmem:[%s13504_s19 + $0x50] sm:$0xff] }
 0xde9   : > { %11116 = vrot.lane.b32.xlu1 %v10715_v54, %s13430_s13 }
 0xdeb   : > { %v11061_v42 = vpop.permute.xlu1 %11060 }
 0xded   : > { %12443 = vmatmul.msk.f32.gmra.mxu1 %vm345_vm0, %v18570_v34  ;;  %v10807_v43 = vpop.permute.xlu2 %10806 }
 0xdee   : > { %v11394_v33 = vpop.f32.mrf.mxu1  ;;  %v10933_v45 = vpop.permute.xlu0 %10932  ;;  %v11156_v20 = vsel %vm564_vm1, %v20274_v13, %v10807_v43 }
 0xdef   : > { %v11395_v21 = vadd.f32 %v18723_v35, %v11394_v33  ;;  %v11188_v24 = vsel %vm11186_vm8, %v11155_v2, %v10933_v45  ;;  %v13380_v2 = vld [vmem:[%s13504_s19 + $0x58] sm:$0xff] }
 0xdf0   : > { %v11221_v15 = vsel %vm11219_vm15, %v11188_v24, %v11061_v42 }
 0xdf1   : > { %v18732_v32 = vadd.f32 %v13376_v38, %v11395_v21  ;;  %11118 = vrot.lane.b32.xlu1 %v10741_v61, %s13430_s13  ;;  %12429 = vmatmul.msk.f32.gmra.mxu0 %vm345_vm0, %v11221_v15  ;;  %v20277_v15 = vld [vmem:[#allocation73_spill] sm:$0xff] }
 0xdf3   : > { %v11063_v34 = vpop.permute.xlu1 %11062  ;;  %12467 = vmatmul.msk.f32.vlgmr.msra.gmra.mxu2 %vm345_vm0, %v18732_v32 }
 0xdf5   : > { %12444 = vmatmul.msk.f32.gmra.mxu1 %vm345_vm0, %v18586_v39 }
 0xdf6   : > { %v11397_v16 = vpop.f32.mrf.mxu1  ;;  %v10983_v0 = vpop.permute.xlu0 %10982 }
 0xdf7   : > { %v11398_v47 = vadd.f32 %v18723_v35, %v11397_v16  ;;  %v18745_v36 = vsel %vm11186_vm8, %v11180_v9, %v10983_v0 }
 0xdf9   : > { %11120 = vrot.lane.b32.xlu1 %v10767_v27, %s13430_s13  ;;  %v18749_v41 = vadd.f32 %v13377_v51, %v11398_v47  ;;  %v13381_v27 = vld [vmem:[%s13504_s19 + $0x60] sm:$0xff] }
 0xdfb   : > { %v11093_v23 = vpop.permute.xlu1 %11092  ;;  %12468 = vmatmul.msk.f32.gmra.mxu2 %vm345_vm0, %v18749_v41 }
 0xdfc   : > { %v11237_v39 = vsel %vm11219_vm15, %v18597_v62, %v11093_v23  ;;  %v10857_v62 = vpop.permute.xlu2 %10856 }
 0xdfd   : > { %12445 = vmatmul.msk.f32.gmra.mxu1 %vm345_vm0, %v11237_v39  ;;  %v11181_v48 = vsel %vm564_vm1, %v20275_v55, %v10857_v62 }
 0xdfe   : > { %v10935_v58 = vpop.permute.xlu0 %10934 }
 0xdff   : > { %v11189_v40 = vsel %vm11186_vm8, %v11156_v20, %v10935_v58 }
 0xe00   : > { %v11222_v30 = vsel %vm11219_vm15, %v11189_v40, %v11063_v34  ;;  %v20278_v40 = vld [vmem:[#allocation88_spill] sm:$0xff] }
 0xe01   : > { %12430 = vmatmul.msk.f32.gmra.mxu0 %vm345_vm0, %v11222_v30 }
 0xe03   : > { %v11095_v14 = vpop.permute.xlu1 %11094 }
 0xe04   : > { %v11238_v28 = vsel %vm11219_vm15, %v18614_v12, %v11095_v14  ;;  %v10809_v4 = vpop.permute.xlu2 %10808  ;;  %v20276_v12 = vld [vmem:[#allocation41_spill] sm:$0xff] }
 0xe05   : > { %12446 = vmatmul.msk.f32.gmra.mxu1 %vm345_vm0, %v11238_v28  ;;  %v11157_v44 = vsel %vm564_vm1, %v20276_v12, %v10809_v4 }
 0xe06   : > { %v10985_v46 = vpop.permute.xlu0 %10984 }
 0xe07   : > { %v11214_v25 = vsel %vm11186_vm8, %v11181_v48, %v10985_v46  ;;  %v20280_v48 = vld [vmem:[#allocation40_spill] sm:$0xff] }
 0xe0b   : > { %v11113_v49 = vpop.permute.xlu1 %11112 }
 0xe0c   : > { %v18768_v19 = vsel %vm11219_vm15, %v11214_v25, %v11113_v49  ;;  %v10859_v37 = vpop.permute.xlu2 %10858 }
 0xe0d   : > { %12447 = vmatmul.msk.f32.gmra.mxu1 %vm345_vm0, %v18630_v22  ;;  %v13378_v22 = vld [vmem:[%s13504_s19 + $0x48] sm:$0xff] }
 0xe0e   : > { %v10937_v60 = vpop.permute.xlu0 %10936 }
 0xe0f   : > { %v11190_v7 = vsel %vm11186_vm8, %v11157_v44, %v10937_v60 }
 0xe13   : > { %v11065_v63 = vpop.permute.xlu1 %11064 }
 0xe14   : > { %v11223_v53 = vsel %vm11219_vm15, %v11190_v7, %v11065_v63 }
 0xe15   : > { %12431 = vmatmul.msk.f32.gmra.mxu0 %vm345_vm0, %v11223_v53  ;;  %12448 = vmatmul.msk.f32.gmra.mxu1 %vm345_vm0, %v18641_v57  ;;  %v11400_v50 = vpop.f32.mrf.mxu1 }
 0xe16   : > { %v11401_v3 = vadd.f32 %v18723_v35, %v11400_v50  ;;  %v10987_v54 = vpop.permute.xlu0 %10986 }
 0xe18   : > { %v18781_v26 = vadd.f32 %v13378_v22, %v11401_v3  ;;  %v13382_v22 = vld [vmem:[%s13504_s19 + $0x68] sm:$0xff] }
 0xe1a   : > { %12469 = vmatmul.msk.f32.gmra.mxu2 %vm345_vm0, %v18781_v26 }
 0xe1b   : > { %v11101_v31 = vpop.permute.xlu1 %11100 }
 0xe1c   : > { %v11241_v5 = vsel %vm11219_vm15, %v18650_v18, %v11101_v31  ;;  %v10811_v18 = vpop.permute.xlu2 %10810 }
 0xe1d   : > { %12449 = vmatmul.msk.f32.gmra.mxu1 %vm345_vm0, %v11241_v5  ;;  %v11403_v10 = vpop.f32.mrf.mxu1  ;;  %v11158_v34 = vsel %vm564_vm1, %v20277_v15, %v10811_v18 }
 0xe1e   : > { %v11404_v57 = vadd.f32 %v18723_v35, %v11403_v10  ;;  %v10939_v61 = vpop.permute.xlu0 %10938 }
 0xe1f   : > { %v11191_v9 = vsel %vm11186_vm8, %v11158_v34, %v10939_v61  ;;  %v11762_v34 = vld [vmem:[%s19252_s6 + $0x60] sm:$0xff] }
 0xe20   : > { %v18790_v56 = vadd.f32 %v13379_v17, %v11404_v57 }
 0xe22   : > { %12470 = vmatmul.msk.f32.gmra.mxu2 %vm345_vm0, %v18790_v56 }
 0xe23   : > { %v11103_v42 = vpop.permute.xlu1 %11102 }
 0xe24   : > { %v11242_v33 = vsel %vm11219_vm15, %v18661_v52, %v11103_v42  ;;  %v10861_v38 = vpop.permute.xlu2 %10860  ;;  %v13383_v42 = vld [vmem:[%s13504_s19] sm:$0xff] }
 0xe25   : > { %12450 = vmatmul.msk.f32.gmra.mxu1 %vm345_vm0, %v11242_v33  ;;  %v11406_v21 = vpop.f32.mrf.mxu1 }
 0xe26   : > { %v11407_v29 = vadd.f32 %v18723_v35, %v11406_v21  ;;  %v10989_v16 = vpop.permute.xlu0 %10988 }
 0xe28   : > { %v18799_v45 = vadd.f32 %v13380_v2, %v11407_v29  ;;  %v13384_v29 = vld [vmem:[%s13504_s19 + $0x70] sm:$0xff] }
 0xe2a   : > { %12471 = vmatmul.msk.f32.gmra.mxu2 %vm345_vm0, %v18799_v45 }
 0xe2b   : > { %v11115_v1 = vpop.permute.xlu1 %11114 }
 0xe2d   : > { %12451 = vmatmul.msk.f32.gmra.mxu1 %vm345_vm0, %v18679_v8  ;;  %v11409_v24 = vpop.f32.mrf.mxu1  ;;  %v10813_v8 = vpop.permute.xlu2 %10812 }
 0xe2e   : > { %v11410_v52 = vadd.f32 %v18723_v35, %v11409_v24  ;;  %v10941_v43 = vpop.permute.xlu0 %10940  ;;  %v11159_v30 = vsel %vm564_vm1, %v20278_v40, %v10813_v8  ;;  %v11764_v24 = vld [vmem:[%s19252_s6 + $0x70] sm:$0xff] }
 0xe30   : > { %v18809_v11 = vadd.f32 %v13381_v27, %v11410_v52 }
 0xe32   : > { %12472 = vmatmul.msk.f32.gmra.mxu2 %vm345_vm0, %v18809_v11 }
 0xe33   : > { %v11067_v0 = vpop.permute.xlu1 %11066 }
 0xe34   : > { %v11224_v47 = vsel %vm11219_vm15, %v11191_v9, %v11067_v0 }
 0xe35   : > { %12432 = vmatmul.msk.f32.gmra.mxu0 %vm345_vm0, %v11224_v47  ;;  %12452 = vmatmul.msk.f32.gmra.mxu1 %vm345_vm0, %v18697_v59  ;;  %v10863_v20 = vpop.permute.xlu2 %10862  ;;  %v11192_v59 = vsel %vm11186_vm8, %v11159_v30, %v10941_v43  ;;  %v13385_v43 = vld [vmem:[%s13504_s19 + $0x78] sm:$0xff]  ;;  %v11758_v30 = vld [vmem:[%s19252_s6 + $0x40] sm:$0xff] }
 0xe36   : > { %v10991_v58 = vpop.permute.xlu0 %10990 }
 0xe3b   : > { %v11109_v51 = vpop.permute.xlu1 %11108 }
 0xe3c   : > { %v11245_v23 = vsel %vm11219_vm15, %v18717_v6, %v11109_v51 }
 0xe3d   : > { %12453 = vmatmul.msk.f32.gmra.mxu1 %vm345_vm0, %v11245_v23  ;;  %v10815_v6 = vpop.permute.xlu2 %10814 }
 0xe3e   : > { %v10943_v62 = vpop.permute.xlu0 %10942  ;;  %v11160_v46 = vsel %vm564_vm1, %v20280_v48, %v10815_v6  ;;  %v11756_v48 = vld [vmem:[%s19252_s6 + $0x30] sm:$0xff] }
 0xe3f   : > { %v11193_v49 = vsel %vm11186_vm8, %v11160_v46, %v10943_v62  ;;  %v13387_v62 = vld [vmem:[%s13504_s19 + $0x80] sm:$0xff]  ;;  %v11755_v46 = vld [vmem:[%s19252_s6 + $0x28] sm:$0xff] }
 0xe43   : > { %v11111_v39 = vpop.permute.xlu1 %11110 }
 0xe44   : > { %v11246_v13 = vsel %vm11219_vm15, %v18745_v36, %v11111_v39  ;;  %v20279_v36 = vld [vmem:[#allocation84_spill] sm:$0xff]  ;;  %v11761_v39 = vld [vmem:[%s19252_s6 + $0x58] sm:$0xff] }
 0xe45   : > { %12454 = vmatmul.msk.f32.gmra.mxu1 %vm345_vm0, %v11246_v13  ;;  %v11182_v55 = vsel %vm564_vm1, %v20279_v36, %v10859_v37  ;;  %v10865_v52 = vpop.permute.xlu2 %10864  ;;  %v11760_v13 = vld [vmem:[%s19252_s6 + $0x50] sm:$0xff] }
 0xe46   : > { %v11215_v25 = vsel %vm11186_vm8, %v11182_v55, %v10987_v54  ;;  %v20282_v54 = vld [vmem:[#allocation90_spill] sm:$0xff]  ;;  %v10993_v15 = vpop.permute.xlu0 %10992  ;;  %v11757_v55 = vld [vmem:[%s19252_s6 + $0x38] sm:$0xff] }
 0xe47   : > { %v11248_v60 = vsel %vm11219_vm15, %v11215_v25, %v11115_v1  ;;  %v11184_v10 = vsel %vm564_vm1, %v20282_v54, %v10863_v20  ;;  %v11765_v1 = vld [vmem:[%s19252_s6 + $0x78] sm:$0xff]  ;;  %v11759_v20 = vld [vmem:[%s19252_s6 + $0x48] sm:$0xff]  ;;  %v11754_v25 = vld [vmem:[%s19252_s6 + $0x20] sm:$0xff] }
 0xe48   : > { %v11217_v17 = vsel %vm11186_vm8, %v11184_v10, %v10991_v58  ;;  %12502 = vmatpush.msrb.mxu3 %v11765_v1  ;;  %11770 = vmatpush.msra.mxu0 %v11765_v1  ;;  %v13390_v54 = vld [vmem:[%s13504_s19 + $0x90] sm:$0xff] }
 0xe4a   : > { %12503 = vmatpush.msrb.mxu3 %v11764_v24  ;;  %11771 = vmatpush.msra.mxu0 %v11764_v24 }
 0xe4b   : > { %v11069_v14 = vpop.permute.xlu1 %11068 }
 0xe4c   : > { %v11225_v28 = vsel %vm11219_vm15, %v11192_v59, %v11069_v14  ;;  %v13386_v14 = vld [vmem:[%s13504_s19 + $0x8] sm:$0xff] }
 0xe4d   : > { %12433 = vmatmul.msk.f32.gmra.mxu0 %vm345_vm0, %v11225_v28  ;;  %12455 = vmatmul.msk.f32.gmra.mxu1 %vm345_vm0, %v18768_v19  ;;  %v20281_v19 = vld [vmem:[#allocation78_spill] sm:$0xff] }
 0xe4e   : > { %v11183_v44 = vsel %vm564_vm1, %v20281_v19, %v10861_v38  ;;  %v11763_v38 = vld [vmem:[%s19252_s6 + $0x68] sm:$0xff]  ;;  %v11753_v19 = vld [vmem:[%s19252_s6 + $0x18] sm:$0xff] }
 0xe4f   : > { %v11216_v63 = vsel %vm11186_vm8, %v11183_v44, %v10989_v16  ;;  %v20283_v16 = vld [vmem:[#allocation86_spill] sm:$0xff]  ;;  %12504 = vmatpush.msrb.mxu3 %v11763_v38  ;;  %11772 = vmatpush.msra.mxu0 %v11763_v38 }
 0xe50   : > { %v11185_v27 = vsel %vm564_vm1, %v20283_v16, %v10865_v52  ;;  %v13392_v52 = vld [vmem:[%s13504_s19 + $0x18] sm:$0xff] }
 0xe51   : > { %v11218_v0 = vsel %vm11186_vm8, %v11185_v27, %v10993_v15  ;;  %12505 = vmatpush.msrb.mxu3 %v11762_v34  ;;  %11773 = vmatpush.msra.mxu0 %v11762_v34  ;;  %v13393_v15 = vld [vmem:[%s13504_s19 + $0xa0] sm:$0xff] }
 0xe53   : > { %v11071_v4 = vpop.permute.xlu1 %11070  ;;  %12506 = vmatpush.msrb.mxu3 %v11761_v39  ;;  %11774 = vmatpush.msra.mxu0 %v11761_v39 }
 0xe54   : > { %v11226_v12 = vsel %vm11219_vm15, %v11193_v49, %v11071_v4 }
 0xe55   : > { %12434 = vmatmul.msk.f32.gmra.mxu0 %vm345_vm0, %v11226_v12  ;;  %12456 = vmatmul.msk.f32.gmra.mxu1 %vm345_vm0, %v11248_v60  ;;  %v13388_v60 = vld [vmem:[%s13504_s19 + $0x88] sm:$0xff] }
 0xe56   : > { %12507 = vmatpush.msrb.mxu3 %v11760_v13  ;;  %11775 = vmatpush.msra.mxu0 %v11760_v13 }
 0xe58   : > { %12508 = vmatpush.msrb.mxu3 %v11759_v20  ;;  %11776 = vmatpush.msra.mxu0 %v11759_v20 }
 0xe5a   : > { %v11412_v7 = vpop.f32.mrf.mxu1  ;;  %12509 = vmatpush.msrb.mxu3 %v11758_v30  ;;  %11777 = vmatpush.msra.mxu0 %v11758_v30 }
 0xe5b   : > { %v11413_v53 = vadd.f32 %v18723_v35, %v11412_v7  ;;  %v11117_v50 = vpop.permute.xlu1 %11116 }
 0xe5c   : > { %v11249_v3 = vsel %vm11219_vm15, %v11216_v63, %v11117_v50  ;;  %12510 = vmatpush.msrb.mxu3 %v11757_v55  ;;  %11778 = vmatpush.msra.mxu0 %v11757_v55  ;;  %v11751_v50 = vld [vmem:[%s19252_s6 + $0x8] sm:$0xff]  ;;  %v13396_v55 = vld [vmem:[%s13504_s19 + $0xb8] sm:$0xff] }
 0xe5d   : > { %v18847_v31 = vadd.f32 %v13382_v22, %v11413_v53  ;;  %12457 = vmatmul.msk.f32.gmra.mxu1 %vm345_vm0, %v11249_v3  ;;  %v11752_v53 = vld [vmem:[%s19252_s6 + $0x10] sm:$0xff] }
 0xe5e   : > { %v11373_v5 = vpop.f32.mrf.mxu0  ;;  %12511 = vmatpush.msrb.mxu3 %v11756_v48  ;;  %11779 = vmatpush.msra.mxu0 %v11756_v48  ;;  %v13389_v3 = vld [vmem:[%s13504_s19 + $0x10] sm:$0xff] }
 0xe5f   : > { %12473 = vmatmul.msk.f32.gmra.mxu2 %vm345_vm0, %v18847_v31  ;;  %v11374_v37 = vadd.f32 %v18723_v35, %v11373_v5 }
 0xe60   : > { %12512 = vmatpush.msrb.mxu3 %v11755_v46  ;;  %11780 = vmatpush.msra.mxu0 %v11755_v46 }
 0xe61   : > { %v18857_v33 = vadd.f32 %v13383_v42, %v11374_v37  ;;  %v11750_v37 = vld [vmem:[%s19252_s6] sm:$0xff] }
 0xe62   : > { %v11415_v57 = vpop.f32.mrf.mxu1  ;;  %12513 = vmatpush.msrb.mxu3 %v11754_v25  ;;  %11781 = vmatpush.msra.mxu0 %v11754_v25 }
 0xe63   : > { %v11416_v18 = vadd.f32 %v18723_v35, %v11415_v57  ;;  %v11119_v21 = vpop.permute.xlu1 %11118  ;;  %12460 = vmatmul.msk.f32.vlgmr.msrb.gmra.mxu0 %vm345_vm0, %v18857_v33 }
 0xe64   : > { %v11250_v61 = vsel %vm11219_vm15, %v11217_v17, %v11119_v21  ;;  %12514 = vmatpush.msrb.mxu3 %v11753_v19  ;;  %11782 = vmatpush.msra.mxu0 %v11753_v19 }
 0xe65   : > { %v18862_v2 = vadd.f32 %v13384_v29, %v11416_v18  ;;  %12458 = vmatmul.msk.f32.gmra.mxu1 %vm345_vm0, %v11250_v61  ;;  %v13391_v18 = vld [vmem:[%s13504_s19 + $0x98] sm:$0xff] }
 0xe66   : > { %12515 = vmatpush.msrb.mxu3 %v11752_v53  ;;  %11783 = vmatpush.msra.mxu0 %v11752_v53  ;;  %v13398_v53 = vld [vmem:[%s13504_s19 + $0xc0] sm:$0xff] }
 0xe67   : > { %12474 = vmatmul.msk.f32.gmra.mxu2 %vm345_vm0, %v18862_v2 }
 0xe68   : > { %12516 = vmatpush.msrb.mxu3 %v11751_v50  ;;  %11784 = vmatpush.msra.mxu0 %v11751_v50 }
 0xe6a   : > { %v11418_v9 = vpop.f32.mrf.mxu1  ;;  %12517 = vmatpush.msrb.mxu3 %v11750_v37  ;;  %11785 = vmatpush.msra.mxu0 %v11750_v37 }
 0xe6b   : > { %v11419_v47 = vadd.f32 %v18723_v35, %v11418_v9  ;;  %v11121_v8 = vpop.permute.xlu1 %11120 }
 0xe6c   : > { %v11251_v51 = vsel %vm11219_vm15, %v11218_v0, %v11121_v8  ;;  %v13394_v0 = vld [vmem:[%s13504_s19 + $0xa8] sm:$0xff]  ;;  %v18987_v8 = vld [vmem:[%s19251_s5] ss:$0 sm:$0xff] }
 0xe6d   : > { %v18887_v23 = vadd.f32 %v13385_v43, %v11419_v47  ;;  %12459 = vmatmul.msk.f32.gmra.mxu1 %vm345_vm0, %v11251_v51 }
 0xe6e   : > { %v11376_v58 = vpop.f32.mrf.mxu0 }
 0xe6f   : > { %12475 = vmatmul.msk.f32.gmra.mxu2 %vm345_vm0, %v18887_v23  ;;  %v11377_v40 = vadd.f32 %v18723_v35, %v11376_v58  ;;  %v13395_v58 = vld [vmem:[%s13504_s19 + $0xb0] sm:$0xff] }
 0xe71   : > { %v18906_v28 = vadd.f32 %v13386_v14, %v11377_v40 }
 0xe72   : > { %v11421_v59 = vpop.f32.mrf.mxu1 }
 0xe73   : > { %v11422_v6 = vadd.f32 %v18723_v35, %v11421_v59  ;;  %12461 = vmatmul.msk.f32.gmra.mxu0 %vm345_vm0, %v18906_v28 }
 0xe75   : > { %v18910_v36 = vadd.f32 %v13387_v62, %v11422_v6 }
 0xe76   : > { %v18959_v42 = vpop.f32.mrf.mxu2 }
 0xe77   : > { %12476 = vmatmul.msk.f32.gmra.mxu2 %vm345_vm0, %v18910_v36 }
 0xe7a   : > { %v11424_v49 = vpop.f32.mrf.mxu1 }
 0xe7b   : > { %v11425_v4 = vadd.f32 %v18723_v35, %v11424_v49 }
 0xe7d   : > { %v18930_v12 = vadd.f32 %v13388_v60, %v11425_v4 }
 0xe7e   : > { %v11379_v44 = vpop.f32.mrf.mxu0  ;;  %v18974_v16 = vpop.f32.mrf.mxu2 }
 0xe7f   : > { %12477 = vmatmul.msk.f32.gmra.mxu2 %vm345_vm0, %v18930_v12  ;;  %v11380_v7 = vadd.f32 %v18723_v35, %v11379_v44 }
 0xe81   : > { %v18945_v22 = vadd.f32 %v13389_v3, %v11380_v7  ;;  %v13397_v7 = vld [vmem:[%s13504_s19 + $0x20] sm:$0xff] }
 0xe82   : > { %v11427_v63 = vpop.f32.mrf.mxu1 }
 0xe83   : > { %v11428_v5 = vadd.f32 %v18723_v35, %v11427_v63  ;;  %12462 = vmatmul.msk.f32.gmra.mxu0 %vm345_vm0, %v18945_v22 }
 0xe85   : > { %v18952_v10 = vadd.f32 %v13390_v54, %v11428_v5 }
 0xe87   : > { %12478 = vmatmul.msk.f32.gmra.mxu2 %vm345_vm0, %v18952_v10 }
 0xe8a   : > { %v11430_v57 = vpop.f32.mrf.mxu1 }
 0xe8b   : > { %v11431_v17 = vadd.f32 %v18723_v35, %v11430_v57 }
 0xe8d   : > { %v18962_v21 = vadd.f32 %v13391_v18, %v11431_v17  ;;  %v13399_v17 = vld [vmem:[%s13504_s19 + $0xc8] sm:$0xff] }
 0xe8f   : > { %12479 = vmatmul.msk.f32.gmra.mxu2 %vm345_vm0, %v18962_v21 }
 0xe92   : > { %v11382_v61 = vpop.f32.mrf.mxu0  ;;  %v11433_v29 = vpop.f32.mrf.mxu1 }
 0xe93   : > { %v11383_v1 = vadd.f32 %v18723_v35, %v11382_v61  ;;  %v11434_v24 = vadd.f32 %v18723_v35, %v11433_v29 }
 0xe95   : > { %v18969_v38 = vadd.f32 %v13392_v52, %v11383_v1  ;;  %v18972_v34 = vadd.f32 %v13393_v15, %v11434_v24  ;;  %v13400_v1 = vld [vmem:[%s13504_s19 + $0xd0] sm:$0xff] }
 0xe97   : > { %12463 = vmatmul.msk.f32.gmra.mxu0 %vm345_vm0, %v18969_v38  ;;  %12480 = vmatmul.msk.f32.gmra.mxu2 %vm345_vm0, %v18972_v34 }
 0xe9a   : > { %v11436_v27 = vpop.f32.mrf.mxu1 }
 0xe9b   : > { %v11437_v9 = vadd.f32 %v18723_v35, %v11436_v27 }
 0xe9d   : > { %v18982_v47 = vadd.f32 %v13394_v0, %v11437_v9  ;;  %v11649_v51 = vpop.f32.mrf.mxu2  ;;  %v13401_v0 = vld [vmem:[%s13504_s19 + $0x28] sm:$0xff] }
 0xe9e   : > { %v11650_v43 = vadd.f32 %v18987_v8, %v11649_v51 }
 0xe9f   : > { %12481 = vmatmul.msk.f32.gmra.mxu2 %vm345_vm0, %v18982_v47 }
 0xea0   : > { %v11727_v39 = vmax.f32 %v11650_v43, 0.0  ;;  %v13402_v43 = vld [vmem:[%s13504_s19 + $0xd8] sm:$0xff] }
 0xea2   : > { %v11439_v13 = vpop.f32.mrf.mxu1  ;;  %11813 = vmatmul.f32.vlgmr.msrb.gmra.mxu3 %v11727_v39 }
 0xea3   : > { %v11440_v20 = vadd.f32 %v18723_v35, %v11439_v13 }
 0xea5   : > { %v18994_v40 = vadd.f32 %v13395_v58, %v11440_v20  ;;  %v11652_v30 = vpop.f32.mrf.mxu2 }
 0xea6   : > { %v11653_v59 = vadd.f32 %v18987_v8, %v11652_v30 }
 0xea7   : > { %12482 = vmatmul.msk.f32.gmra.mxu2 %vm345_vm0, %v18994_v40 }
 0xea8   : > { %v11728_v14 = vmax.f32 %v11653_v59, 0.0  ;;  %v13403_v59 = vld [vmem:[%s13504_s19 + $0x30] sm:$0xff] }
 0xeaa   : > { %v11442_v6 = vpop.f32.mrf.mxu1  ;;  %11816 = vmatmul.f32.gmra.mxu3 %v11728_v14 }
 0xeab   : > { %v11443_v62 = vadd.f32 %v18723_v35, %v11442_v6  ;;  %v13404_v6 = vld [vmem:[%s13504_s19 + $0xe0] sm:$0xff] }
 0xead   : > { %v19001_v48 = vadd.f32 %v13396_v55, %v11443_v62  ;;  %v11655_v46 = vpop.f32.mrf.mxu2 }
 0xeae   : > { %v11656_v25 = vadd.f32 %v18987_v8, %v11655_v46 }
 0xeaf   : > { %12483 = vmatmul.msk.f32.gmra.mxu2 %vm345_vm0, %v19001_v48 }
 0xeb0   : > { %v11729_v49 = vmax.f32 %v11656_v25, 0.0  ;;  %v13405_v25 = vld [vmem:[%s13504_s19 + $0xe8] sm:$0xff] }
 0xeb2   : > { %v11385_v4 = vpop.f32.mrf.mxu0  ;;  %v11445_v60 = vpop.f32.mrf.mxu1  ;;  %11819 = vmatmul.f32.gmra.mxu3 %v11729_v49 }
 0xeb3   : > { %v11386_v19 = vadd.f32 %v18723_v35, %v11385_v4  ;;  %v11446_v44 = vadd.f32 %v18723_v35, %v11445_v60 }
 0xeb5   : > { %v19009_v63 = vadd.f32 %v13397_v7, %v11386_v19  ;;  %v19012_v50 = vadd.f32 %v13398_v53, %v11446_v44  ;;  %v11658_v3 = vpop.f32.mrf.mxu2 }
 0xeb6   : > { %v11659_v5 = vadd.f32 %v18987_v8, %v11658_v3 }
 0xeb7   : > { %12464 = vmatmul.msk.f32.gmra.mxu0 %vm345_vm0, %v19009_v63  ;;  %12484 = vmatmul.msk.f32.gmra.mxu2 %vm345_vm0, %v19012_v50 }
 0xeb8   : > { %v11730_v37 = vmax.f32 %v11659_v5, 0.0  ;;  %v13406_v5 = vld [vmem:[%s13504_s19 + $0xf0] sm:$0xff] }
 0xeba   : > { %v11448_v54 = vpop.f32.mrf.mxu1  ;;  %11822 = vmatmul.f32.gmra.mxu3 %v11730_v37 }
 0xebb   : > { %v11449_v57 = vadd.f32 %v18723_v35, %v11448_v54 }
 0xebd   : > { %v19021_v18 = vadd.f32 %v13399_v17, %v11449_v57 }
 0xebf   : > { %12485 = vmatmul.msk.f32.gmra.mxu2 %vm345_vm0, %v19021_v18 }
 0xec2   : > { %v11451_v61 = vpop.f32.mrf.mxu1 }
 0xec3   : > { %v11452_v29 = vadd.f32 %v18723_v35, %v11451_v61 }
 0xec5   : > { %v19027_v24 = vadd.f32 %v13400_v1, %v11452_v29  ;;  %v13407_v1 = vld [vmem:[%s13504_s19 + $0xf8] sm:$0xff] }
 0xec7   : > { %12486 = vmatmul.msk.f32.gmra.mxu2 %vm345_vm0, %v19027_v24 }
 0xeca   : > { %v11388_v52 = vpop.f32.mrf.mxu0  ;;  %v11454_v15 = vpop.f32.mrf.mxu1 }
 0xecb   : > { %v11389_v27 = vadd.f32 %v18723_v35, %v11388_v52  ;;  %v11455_v9 = vadd.f32 %v18723_v35, %v11454_v15 }
 0xecd   : > { %v19034_v51 = vadd.f32 %v13401_v0, %v11389_v27  ;;  %v19037_v39 = vadd.f32 %v13402_v43, %v11455_v9 }
 0xecf   : > { %12465 = vmatmul.msk.f32.gmra.mxu0 %vm345_vm0, %v19034_v51  ;;  %12487 = vmatmul.msk.f32.gmra.mxu2 %vm345_vm0, %v19037_v39 }
 0xed2   : > { %v11391_v13 = vpop.f32.mrf.mxu0  ;;  %v11457_v20 = vpop.f32.mrf.mxu1 }
 0xed3   : > { %v11392_v58 = vadd.f32 %v18723_v35, %v11391_v13  ;;  %v11458_v30 = vadd.f32 %v18723_v35, %v11457_v20 }
 0xed5   : > { %v19046_v14 = vadd.f32 %v13403_v59, %v11392_v58  ;;  %v19049_v62 = vadd.f32 %v13404_v6, %v11458_v30 }
 0xed7   : > { %12466 = vmatmul.msk.f32.gmra.mxu0 %vm345_vm0, %v19046_v14  ;;  %12488 = vmatmul.msk.f32.gmra.mxu2 %vm345_vm0, %v19049_v62 }
 0xeda   : > { %v11460_v55 = vpop.f32.mrf.mxu1 }
 0xedb   : > { %v11461_v46 = vadd.f32 %v18723_v35, %v11460_v55 }
 0xedd   : > { %v19057_v49 = vadd.f32 %v13405_v25, %v11461_v46 }
 0xedf   : > { %12489 = vmatmul.msk.f32.gmra.mxu2 %vm345_vm0, %v19057_v49 }
 0xee0   : > { %v11622_v4 = vpop.f32.mrf.mxu0 }
 0xee1   : > { %v11623_v19 = vadd.f32 %v18987_v8, %v11622_v4 }
 0xee2   : > { %v11463_v60 = vpop.f32.mrf.mxu1  ;;  %v11661_v7 = vpop.f32.mrf.mxu2 }
 0xee3   : > { %v11464_v44 = vadd.f32 %v18723_v35, %v11463_v60  ;;  %v11662_v53 = vadd.f32 %v18987_v8, %v11661_v7  ;;  %v11718_v3 = vmax.f32 %v11623_v19, 0.0 }
 0xee5   : > { %v19065_v37 = vadd.f32 %v13406_v5, %v11464_v44  ;;  %v11731_v54 = vmax.f32 %v11662_v53, 0.0  ;;  %11786 = vmatmul.f32.vlgmr.msra.gmra.mxu0 %v11718_v3 }
 0xee7   : > { %12490 = vmatmul.msk.f32.gmra.mxu2 %vm345_vm0, %v19065_v37  ;;  %11825 = vmatmul.f32.gmra.mxu3 %v11731_v54 }
 0xeea   : > { %v11466_v57 = vpop.f32.mrf.mxu1  ;;  %v11664_v61 = vpop.f32.mrf.mxu2 }
 0xeeb   : > { %v11467_v17 = vadd.f32 %v18723_v35, %v11466_v57  ;;  %v11665_v29 = vadd.f32 %v18987_v8, %v11664_v61 }
 0xeed   : > { %v19072_v52 = vadd.f32 %v13407_v1, %v11467_v17  ;;  %v11732_v15 = vmax.f32 %v11665_v29, 0.0 }
 0xeef   : > { %12491 = vmatmul.msk.f32.gmra.mxu2 %vm345_vm0, %v19072_v52  ;;  %11828 = vmatmul.f32.gmra.mxu3 %v11732_v15 }
 0xef0   : > { %v11625_v27 = vpop.f32.mrf.mxu0 }
 0xef1   : > { %v11626_v9 = vadd.f32 %v18987_v8, %v11625_v27  ;;  %v19089_v27 = vld [vmem:[%s19253_s7] ss:$0 sm:$0xff] }
 0xef2   : > { %v11667_v0 = vpop.f32.mrf.mxu2 }
 0xef3   : > { %v11668_v43 = vadd.f32 %v18987_v8, %v11667_v0  ;;  %v11719_v13 = vmax.f32 %v11626_v9, 0.0 }
 0xef5   : > { %v11733_v20 = vmax.f32 %v11668_v43, 0.0  ;;  %11789 = vmatmul.f32.gmra.mxu0 %v11719_v13 }
 0xef7   : > { %11831 = vmatmul.f32.gmra.mxu3 %v11733_v20 }
 0xefa   : > { %v11670_v35 = vpop.f32.mrf.mxu2 }
 0xefb   : > { %v11671_v58 = vadd.f32 %v18987_v8, %v11670_v35 }
 0xefd   : > { %v11734_v30 = vmax.f32 %v11671_v58, 0.0 }
 0xeff   : > { %11834 = vmatmul.f32.gmra.mxu3 %v11734_v30 }
 0xf00   : > { %v11628_v59 = vpop.f32.mrf.mxu0 }
 0xf01   : > { %v11629_v6 = vadd.f32 %v18987_v8, %v11628_v59 }
 0xf02   : > { %v11673_v55 = vpop.f32.mrf.mxu2 }
 0xf03   : > { %v11674_v46 = vadd.f32 %v18987_v8, %v11673_v55  ;;  %v11720_v25 = vmax.f32 %v11629_v6, 0.0 }
 0xf05   : > { %v11735_v4 = vmax.f32 %v11674_v46, 0.0  ;;  %11792 = vmatmul.f32.gmra.mxu0 %v11720_v25 }
 0xf07   : > { %11837 = vmatmul.f32.gmra.mxu3 %v11735_v4 }
 0xf0a   : > { %v11676_v60 = vpop.f32.mrf.mxu2 }
 0xf0b   : > { %v11677_v19 = vadd.f32 %v18987_v8, %v11676_v60 }
 0xf0d   : > { %v11736_v44 = vmax.f32 %v11677_v19, 0.0 }
 0xf0f   : > { %11840 = vmatmul.f32.gmra.mxu3 %v11736_v44 }
 0xf12   : > { %v11679_v7 = vpop.f32.mrf.mxu2 }
 0xf13   : > { %v11680_v53 = vadd.f32 %v18987_v8, %v11679_v7 }
 0xf14   : > { %v11631_v3 = vpop.f32.mrf.mxu0 }
 0xf15   : > { %v11632_v5 = vadd.f32 %v18987_v8, %v11631_v3  ;;  %v11737_v54 = vmax.f32 %v11680_v53, 0.0 }
 0xf17   : > { %v11721_v57 = vmax.f32 %v11632_v5, 0.0  ;;  %11843 = vmatmul.f32.gmra.mxu3 %v11737_v54 }
 0xf19   : > { %11795 = vmatmul.f32.gmra.mxu0 %v11721_v57 }
 0xf1a   : > { %v11682_v17 = vpop.f32.mrf.mxu2 }
 0xf1b   : > { %v11683_v61 = vadd.f32 %v18987_v8, %v11682_v17 }
 0xf1d   : > { %v11738_v29 = vmax.f32 %v11683_v61, 0.0 }
 0xf1f   : > { %11846 = vmatmul.f32.gmra.mxu3 %v11738_v29 }
 0xf22   : > { %v11685_v1 = vpop.f32.mrf.mxu2 }
 0xf23   : > { %v11686_v15 = vadd.f32 %v18987_v8, %v11685_v1 }
 0xf25   : > { %v11739_v9 = vmax.f32 %v11686_v15, 0.0  ;;  %v11814_v0 = vpop.f32.mrf.mxu3 }
 0xf26   : > { %v11815_v43 = vadd.f32 %v19089_v27, %v11814_v0 }
 0xf27   : > { %11849 = vmatmul.f32.gmra.mxu3 %v11739_v9 }
 0xf28   : > { %v11892_v13 = vadd.f32 %v11815_v43, %v18781_v26 }
 0xf2a   : > { %v11688_v20 = vpop.f32.mrf.mxu2  ;;  %11924 = vst.msk [vmem:[%s19097_s15 + $0x48] sm:$0xff] %vm345_vm0, %v11892_v13 }
 0xf2b   : > { %v11689_v35 = vadd.f32 %v18987_v8, %v11688_v20 }
 0xf2d   : > { %v11740_v58 = vmax.f32 %v11689_v35, 0.0  ;;  %v11817_v30 = vpop.f32.mrf.mxu3 }
 0xf2e   : > { %v11818_v59 = vadd.f32 %v19089_v27, %v11817_v30 }
 0xf2f   : > { %11852 = vmatmul.f32.gmra.mxu3 %v11740_v58 }
 0xf30   : > { %v11893_v6 = vadd.f32 %v11818_v59, %v18790_v56  ;;  %v11644_v59 = vadd.f32 %v18987_v8, %v18959_v42 }
 0xf32   : > { %v11691_v55 = vpop.f32.mrf.mxu2  ;;  %11925 = vst.msk [vmem:[%s19097_s15 + $0x50] sm:$0xff] %vm345_vm0, %v11893_v6 }
 0xf33   : > { %v11692_v46 = vadd.f32 %v18987_v8, %v11691_v55 }
 0xf34   : > { %v11634_v25 = vpop.f32.mrf.mxu0 }
 0xf35   : > { %v11635_v26 = vadd.f32 %v18987_v8, %v11634_v25  ;;  %v11741_v4 = vmax.f32 %v11692_v46, 0.0  ;;  %v11820_v19 = vpop.f32.mrf.mxu3  ;;  %v11725_v25 = vmax.f32 %v11644_v59, 0.0 }
 0xf36   : > { %v11821_v44 = vadd.f32 %v19089_v27, %v11820_v19 }
 0xf37   : > { %v11722_v60 = vmax.f32 %v11635_v26, 0.0  ;;  %11855 = vmatmul.f32.gmra.mxu3 %v11741_v4  ;;  %v11647_v26 = vadd.f32 %v18987_v8, %v18974_v16 }
 0xf38   : > { %v11894_v7 = vadd.f32 %v11821_v44, %v18799_v45 }
 0xf39   : > { %11798 = vmatmul.f32.gmra.mxu0 %v11722_v60  ;;  %v11726_v42 = vmax.f32 %v11647_v26, 0.0 }
 0xf3a   : > { %v11694_v53 = vpop.f32.mrf.mxu2  ;;  %11926 = vst.msk [vmem:[%s19097_s15 + $0x58] sm:$0xff] %vm345_vm0, %v11894_v7 }
 0xf3b   : > { %v11695_v56 = vadd.f32 %v18987_v8, %v11694_v53 }
 0xf3d   : > { %v11742_v3 = vmax.f32 %v11695_v56, 0.0  ;;  %v11823_v5 = vpop.f32.mrf.mxu3 }
 0xf3e   : > { %v11824_v54 = vadd.f32 %v19089_v27, %v11823_v5 }
 0xf3f   : > { %11858 = vmatmul.f32.gmra.mxu3 %v11742_v3 }
 0xf40   : > { %v11895_v57 = vadd.f32 %v11824_v54, %v18809_v11 }
 0xf42   : > { %v11697_v17 = vpop.f32.mrf.mxu2  ;;  %11927 = vst.msk [vmem:[%s19097_s15 + $0x60] sm:$0xff] %vm345_vm0, %v11895_v57 }
 0xf43   : > { %v11698_v61 = vadd.f32 %v18987_v8, %v11697_v17 }
 0xf45   : > { %v11743_v29 = vmax.f32 %v11698_v61, 0.0 }
 0xf47   : > { %11861 = vmatmul.f32.gmra.mxu3 %v11743_v29 }
 0xf4a   : > { %v11700_v45 = vpop.f32.mrf.mxu2 }
 0xf4b   : > { %v11701_v1 = vadd.f32 %v18987_v8, %v11700_v45 }
 0xf4c   : > { %v11637_v15 = vpop.f32.mrf.mxu0 }
 0xf4d   : > { %v11638_v9 = vadd.f32 %v18987_v8, %v11637_v15  ;;  %v11744_v0 = vmax.f32 %v11701_v1, 0.0 }
 0xf4f   : > { %v11723_v43 = vmax.f32 %v11638_v9, 0.0  ;;  %11864 = vmatmul.f32.gmra.mxu3 %v11744_v0 }
 0xf51   : > { %11801 = vmatmul.f32.gmra.mxu0 %v11723_v43 }
 0xf52   : > { %v11703_v13 = vpop.f32.mrf.mxu2 }
 0xf53   : > { %v11704_v11 = vadd.f32 %v18987_v8, %v11703_v13 }
 0xf54   : > { %v11640_v20 = vpop.f32.mrf.mxu0 }
 0xf55   : > { %v11641_v35 = vadd.f32 %v18987_v8, %v11640_v20  ;;  %v11745_v58 = vmax.f32 %v11704_v11, 0.0 }
 0xf57   : > { %v11724_v30 = vmax.f32 %v11641_v35, 0.0  ;;  %11867 = vmatmul.f32.gmra.mxu3 %v11745_v58 }
 0xf59   : > { %11804 = vmatmul.f32.gmra.mxu0 %v11724_v30 }
 0xf5a   : > { %v11706_v6 = vpop.f32.mrf.mxu2 }
 0xf5b   : > { %v11707_v55 = vadd.f32 %v18987_v8, %v11706_v6 }
 0xf5d   : > { %v11746_v46 = vmax.f32 %v11707_v55, 0.0 }
 0xf5f   : > { %11870 = vmatmul.f32.gmra.mxu3 %v11746_v46 }
 0xf61   : > { %11807 = vmatmul.f32.gmra.mxu0 %v11725_v25 }
 0xf62   : > { %v11709_v4 = vpop.f32.mrf.mxu2  ;;  %v11787_v19 = vpop.f32.mrf.mxu0 }
 0xf63   : > { %v11710_v60 = vadd.f32 %v18987_v8, %v11709_v4  ;;  %v11788_v44 = vadd.f32 %v19089_v27, %v11787_v19 }
 0xf65   : > { %v11747_v7 = vmax.f32 %v11710_v60, 0.0  ;;  %v11883_v53 = vadd.f32 %v11788_v44, %v18857_v33 }
 0xf67   : > { %11873 = vmatmul.f32.gmra.mxu3 %v11747_v7  ;;  %11915 = vst.msk [vmem:[%s19097_s15] sm:$0xff] %vm345_vm0, %v11883_v53 }
 0xf69   : > { %11810 = vmatmul.f32.gmra.mxu0 %v11726_v42 }
 0xf6a   : > { %v11712_v56 = vpop.f32.mrf.mxu2  ;;  %v11826_v3 = vpop.f32.mrf.mxu3 }
 0xf6b   : > { %v11713_v16 = vadd.f32 %v18987_v8, %v11712_v56  ;;  %v11827_v5 = vadd.f32 %v19089_v27, %v11826_v3 }
 0xf6d   : > { %v11748_v54 = vmax.f32 %v11713_v16, 0.0  ;;  %v11896_v57 = vadd.f32 %v11827_v5, %v18847_v31 }
 0xf6f   : > { %11928 = vst.msk [vmem:[%s19097_s15 + $0x68] sm:$0xff] %vm345_vm0, %v11896_v57  ;;  %11876 = vmatmul.f32.gmra.mxu3 %v11748_v54 }
 0xf72   : > { %v11715_v33 = vpop.f32.mrf.mxu2  ;;  %v11829_v17 = vpop.f32.mrf.mxu3 }
 0xf73   : > { %v11716_v61 = vadd.f32 %v18987_v8, %v11715_v33  ;;  %v11790_v29 = vpop.f32.mrf.mxu0  ;;  %v11830_v45 = vadd.f32 %v19089_v27, %v11829_v17 }
 0xf74   : > { %v11791_v1 = vadd.f32 %v19089_v27, %v11790_v29 }
 0xf75   : > { %v11749_v15 = vmax.f32 %v11716_v61, 0.0  ;;  %v11897_v9 = vadd.f32 %v11830_v45, %v18862_v2 }
 0xf76   : > { %v11884_v31 = vadd.f32 %v11791_v1, %v18906_v28 }
 0xf77   : > { %11929 = vst.msk [vmem:[%s19097_s15 + $0x70] sm:$0xff] %vm345_vm0, %v11897_v9  ;;  %11879 = vmatmul.f32.gmra.mxu3 %v11749_v15 }
 0xf78   : > { %11916 = vst.msk [vmem:[%s19097_s15 + $0x8] sm:$0xff] %vm345_vm0, %v11884_v31 }
 0xf7a   : > { %v11832_v0 = vpop.f32.mrf.mxu3 }
 0xf7b   : > { %v11833_v8 = vadd.f32 %v19089_v27, %v11832_v0 }
 0xf7d   : > { %v11898_v43 = vadd.f32 %v11833_v8, %v18887_v23 }
 0xf7f   : > { %11930 = vst.msk [vmem:[%s19097_s15 + $0x78] sm:$0xff] %vm345_vm0, %v11898_v43 }
 0xf82   : > { %v11835_v13 = vpop.f32.mrf.mxu3  ;;  %v11793_v11 = vpop.f32.mrf.mxu0 }
 0xf83   : > { %v11836_v2 = vadd.f32 %v19089_v27, %v11835_v13  ;;  %v11794_v28 = vadd.f32 %v19089_v27, %v11793_v11 }
 0xf85   : > { %v11899_v20 = vadd.f32 %v11836_v2, %v18910_v36  ;;  %v11885_v35 = vadd.f32 %v11794_v28, %v18945_v22 }
 0xf87   : > { %11931 = vst.msk [vmem:[%s19097_s15 + $0x80] sm:$0xff] %vm345_vm0, %v11899_v20 }
 0xf88   : > { %11917 = vst.msk [vmem:[%s19097_s15 + $0x10] sm:$0xff] %vm345_vm0, %v11885_v35 }
 0xf8a   : > { %v11838_v23 = vpop.f32.mrf.mxu3 }
 0xf8b   : > { %v11839_v58 = vadd.f32 %v19089_v27, %v11838_v23 }
 0xf8d   : > { %v11900_v30 = vadd.f32 %v11839_v58, %v18930_v12 }
 0xf8f   : > { %11932 = vst.msk [vmem:[%s19097_s15 + $0x88] sm:$0xff] %vm345_vm0, %v11900_v30 }
 0xf92   : > { %v11841_v59 = vpop.f32.mrf.mxu3 }
 0xf93   : > { %v11842_v6 = vadd.f32 %v19089_v27, %v11841_v59 }
 0xf95   : > { %v11901_v36 = vadd.f32 %v11842_v6, %v18952_v10 }
 0xf96   : > { %v11796_v55 = vpop.f32.mrf.mxu0 }
 0xf97   : > { %v11797_v22 = vadd.f32 %v19089_v27, %v11796_v55  ;;  %11933 = vst.msk [vmem:[%s19097_s15 + $0x90] sm:$0xff] %vm345_vm0, %v11901_v36 }
 0xf99   : > { %v11886_v46 = vadd.f32 %v11797_v22, %v18969_v38 }
 0xf9a   : > { %v11844_v25 = vpop.f32.mrf.mxu3 }
 0xf9b   : > { %11918 = vst.msk [vmem:[%s19097_s15 + $0x18] sm:$0xff] %vm345_vm0, %v11886_v46  ;;  %v11845_v12 = vadd.f32 %v19089_v27, %v11844_v25 }
 0xf9d   : > { %v11902_v26 = vadd.f32 %v11845_v12, %v18962_v21 }
 0xf9f   : > { %11934 = vst.msk [vmem:[%s19097_s15 + $0x98] sm:$0xff] %vm345_vm0, %v11902_v26 }
 0xfa2   : > { %v11847_v10 = vpop.f32.mrf.mxu3 }
 0xfa3   : > { %v11848_v4 = vadd.f32 %v19089_v27, %v11847_v10 }
 0xfa5   : > { %v11903_v60 = vadd.f32 %v11848_v4, %v18972_v34 }
 0xfa7   : > { %11935 = vst.msk [vmem:[%s19097_s15 + $0xa0] sm:$0xff] %vm345_vm0, %v11903_v60 }
 0xfaa   : > { %v11850_v38 = vpop.f32.mrf.mxu3 }
 0xfab   : > { %v11851_v19 = vadd.f32 %v19089_v27, %v11850_v38 }
 0xfad   : > { %v11904_v44 = vadd.f32 %v11851_v19, %v18982_v47 }
 0xfaf   : > { %11936 = vst.msk [vmem:[%s19097_s15 + $0xa8] sm:$0xff] %vm345_vm0, %v11904_v44 }
 0xfb2   : > { %v11853_v21 = vpop.f32.mrf.mxu3 }
 0xfb3   : > { %v11854_v7 = vadd.f32 %v19089_v27, %v11853_v21 }
 0xfb5   : > { %v11905_v42 = vadd.f32 %v11854_v7, %v18994_v40 }
 0xfb6   : > { %v11799_v53 = vpop.f32.mrf.mxu0 }
 0xfb7   : > { %v11800_v56 = vadd.f32 %v19089_v27, %v11799_v53  ;;  %11937 = vst.msk [vmem:[%s19097_s15 + $0xb0] sm:$0xff] %vm345_vm0, %v11905_v42 }
 0xfb9   : > { %v11887_v34 = vadd.f32 %v11800_v56, %v19009_v63 }
 0xfba   : > { %v11856_v47 = vpop.f32.mrf.mxu3 }
 0xfbb   : > { %11919 = vst.msk [vmem:[%s19097_s15 + $0x20] sm:$0xff] %vm345_vm0, %v11887_v34  ;;  %v11857_v3 = vadd.f32 %v19089_v27, %v11856_v47 }
 0xfbd   : > { %v11906_v16 = vadd.f32 %v11857_v3, %v19001_v48 }
 0xfbf   : > { %11938 = vst.msk [vmem:[%s19097_s15 + $0xb8] sm:$0xff] %vm345_vm0, %v11906_v16 }
 0xfc2   : > { %v11859_v5 = vpop.f32.mrf.mxu3 }
 0xfc3   : > { %v11860_v40 = vadd.f32 %v19089_v27, %v11859_v5 }
 0xfc5   : > { %v11907_v54 = vadd.f32 %v11860_v40, %v19012_v50 }
 0xfc7   : > { %11939 = vst.msk [vmem:[%s19097_s15 + $0xc0] sm:$0xff] %vm345_vm0, %v11907_v54 }
 0xfca   : > { %v11862_v63 = vpop.f32.mrf.mxu3 }
 0xfcb   : > { %v11863_v57 = vadd.f32 %v19089_v27, %v11862_v63 }
 0xfcd   : > { %v11908_v33 = vadd.f32 %v11863_v57, %v19021_v18 }
 0xfce   : > { %v11802_v17 = vpop.f32.mrf.mxu0 }
 0xfcf   : > { %v11803_v61 = vadd.f32 %v19089_v27, %v11802_v17  ;;  %11940 = vst.msk [vmem:[%s19097_s15 + $0xc8] sm:$0xff] %vm345_vm0, %v11908_v33 }
 0xfd1   : > { %v11888_v48 = vadd.f32 %v11803_v61, %v19034_v51 }
 0xfd2   : > { %v11865_v50 = vpop.f32.mrf.mxu3 }
 0xfd3   : > { %11920 = vst.msk [vmem:[%s19097_s15 + $0x28] sm:$0xff] %vm345_vm0, %v11888_v48  ;;  %v11866_v29 = vadd.f32 %v19089_v27, %v11865_v50 }
 0xfd5   : > { %v11909_v45 = vadd.f32 %v11866_v29, %v19027_v24 }
 0xfd6   : > { %v11805_v1 = vpop.f32.mrf.mxu0 }
 0xfd7   : > { %v11806_v15 = vadd.f32 %v19089_v27, %v11805_v1  ;;  %11941 = vst.msk [vmem:[%s19097_s15 + $0xd0] sm:$0xff] %vm345_vm0, %v11909_v45 }
 0xfd9   : > { %v11889_v18 = vadd.f32 %v11806_v15, %v19046_v14 }
 0xfda   : > { %v11868_v51 = vpop.f32.mrf.mxu3 }
 0xfdb   : > { %11921 = vst.msk [vmem:[%s19097_s15 + $0x30] sm:$0xff] %vm345_vm0, %v11889_v18  ;;  %v11869_v9 = vadd.f32 %v19089_v27, %v11868_v51 }
 0xfdd   : > { %v11910_v31 = vadd.f32 %v11869_v9, %v19037_v39 }
 0xfde   : > { %v11808_v0 = vpop.f32.mrf.mxu0 }
 0xfdf   : > { %v11809_v24 = vadd.f32 %v19089_v27, %v11808_v0  ;;  %11942 = vst.msk [vmem:[%s19097_s15 + $0xd8] sm:$0xff] %vm345_vm0, %v11910_v31 }
 0xfe1   : > { %v11890_v8 = vadd.f32 %v11809_v24, %v18732_v32 }
 0xfe2   : > { %v11871_v14 = vpop.f32.mrf.mxu3 }
 0xfe3   : > { %11922 = vst.msk [vmem:[%s19097_s15 + $0x38] sm:$0xff] %vm345_vm0, %v11890_v8  ;;  %v11872_v43 = vadd.f32 %v19089_v27, %v11871_v14 }
 0xfe5   : > { %v11911_v13 = vadd.f32 %v11872_v43, %v19049_v62 }
 0xfe6   : > { %v11811_v11 = vpop.f32.mrf.mxu0 }
 0xfe7   : > { %v11812_v39 = vadd.f32 %v19089_v27, %v11811_v11  ;;  %11943 = vst.msk [vmem:[%s19097_s15 + $0xe0] sm:$0xff] %vm345_vm0, %v11911_v13 }
 0xfe9   : > { %v11891_v2 = vadd.f32 %v11812_v39, %v18749_v41 }
 0xfea   : > { %v11874_v28 = vpop.f32.mrf.mxu3 }
 0xfeb   : > { %11923 = vst.msk [vmem:[%s19097_s15 + $0x40] sm:$0xff] %vm345_vm0, %v11891_v2  ;;  %v11875_v32 = vadd.f32 %v19089_v27, %v11874_v28 }
 0xfed   : > { %v11912_v20 = vadd.f32 %v11875_v32, %v19057_v49 }
 0xfef   : > { %11944 = vst.msk [vmem:[%s19097_s15 + $0xe8] sm:$0xff] %vm345_vm0, %v11912_v20 }
 0xff2   : > { %v11877_v35 = vpop.f32.mrf.mxu3 }
 0xff3   : > { %v11878_v62 = vadd.f32 %v19089_v27, %v11877_v35 }
 0xff5   : > { %v11913_v23 = vadd.f32 %v11878_v62, %v19065_v37 }
 0xff7   : > { %11945 = vst.msk [vmem:[%s19097_s15 + $0xf0] sm:$0xff] %vm345_vm0, %v11913_v23 }
 0xffa   : > { %v11880_v58 = vpop.f32.mrf.mxu3 }
 0xffb   : > { %v11881_v30 = vadd.f32 %v19089_v27, %v11880_v58 }
 0xffd   : > { %v11914_v41 = vadd.f32 %v11881_v30, %v19072_v52 }
 0xfff   : > { %11946 = vst.msk [vmem:[%s19097_s15 + $0xf8] sm:$0xff] %vm345_vm0, %v11914_v41 }
0x1000 PF: > { %s18_s27 = sadd.s32 1, %s13414_s27  }
0x1001   : > { %p15_p4 = scmp.ge.s32.totalorder %s18_s27, 4  }
0x1003   :  { %17 = sbr.rel (!%p15_p4) target bundleno = 1 (0x1), region = 82 }

</bundles_post_ra>
